<compile_context>
chip_gen: v7x
topology: tpu7x:2x2x1
jax: 0.10.0
libtpu: 0.0.40
codegen_flags: <defaults>
</compile_context>

<pallas_src>
import math

import jax
import jax.numpy as jnp
from jax.experimental import pallas as pl
from jax.experimental.pallas import tpu as pltpu


def make_res_block_kernel(H, LC, LO):
    """Kernel closed over static sizes. LC = P*W*C (input lanes), LO = P*W*O."""

    def conv3x3(a_bf, w_ref):
        # a_bf: (H, L) bf16 activation.  w_ref: (3, L, LO) bf16 banded tap
        # weights, one matrix per dh (3 dw taps + W-boundary zeros baked in).
        L = a_bf.shape[1]
        zero_row = jnp.zeros((1, L), jnp.bfloat16)
        a_up = jnp.concatenate([zero_row, a_bf[:H - 1]], axis=0)   # rows from h-1
        a_dn = jnp.concatenate([a_bf[1:], zero_row], axis=0)       # rows from h+1
        acc = jnp.dot(a_up, w_ref[0], preferred_element_type=jnp.float32)
        acc += jnp.dot(a_bf, w_ref[1], preferred_element_type=jnp.float32)
        acc += jnp.dot(a_dn, w_ref[2], preferred_element_type=jnp.float32)
        return acc                                                 # (H, LO) f32

    def kernel(x_ref, w1_ref, b1_ref, w2_ref, b2_ref, o_ref):
        # x_ref : (1, H, LC) f32     packed input (lane order = (image, w, c))
        # w?_ref: (3, L, LO) bf16    banded per-dh weights (block-diag over images)
        # b?_ref: (1, LO)     f32    bias tiled across (image, w)
        # o_ref : (1, H, LO)  f32
        x = x_ref[0]                                               # (H, LC) f32

        a1 = conv3x3(x.astype(jnp.bfloat16), w1_ref) + b1_ref[...]  # conv1 + bias
        y = jnp.where(a1 >= 0, a1, 0.1 * a1)                        # LeakyReLU(0.1)

        a2 = conv3x3(y.astype(jnp.bfloat16), w2_ref) + b2_ref[...]  # conv2 + bias

        o_ref[0] = (x + a2).astype(o_ref.dtype)                     # residual (C == O)

    return kernel


def _banded_taps(w, W, P):
    """PyTorch conv weight (O, C, 3, 3) -> (3, P*W*C, P*W*O) bf16 banded weights.

    band[dh][k*C + c, q*O + o] = w[o, c, dh, k - q + 1] for |k - q| <= 1 else 0,
    then block-diagonal over the P lane-packed images.
    """
    taps = jnp.transpose(w, (2, 3, 1, 0))                        # (dh, dw, c, o)
    C, O = taps.shape[2], taps.shape[3]
    k = jnp.arange(W)[:, None]                                   # input w position
    q = jnp.arange(W)[None, :]                                   # output w position
    dw = k - q + 1                                               # tap index
    valid = (dw >= 0) & (dw <= 2)
    band = taps[:, jnp.clip(dw, 0, 2)]                           # (dh, k, q, c, o)
    band = jnp.where(valid[None, :, :, None, None], band, 0.0)
    band = jnp.transpose(band, (0, 1, 3, 2, 4)).reshape(3, W * C, W * O)
    if P > 1:
        eye = jnp.eye(P, dtype=band.dtype)
        band = jax.vmap(lambda m: jnp.kron(eye, m))(band)        # (3, P*W*C, P*W*O)
    return band.astype(jnp.bfloat16)


def _pack_factor(WO):
    """Smallest P such that P*WO is a multiple of 128 (lane-dense stores)."""
    P = 128 // math.gcd(WO, 128)
    # Cap so the banded weights stay small in VMEM (block-diag grows ~P^2).
    return P if P * WO <= 512 else 1


@jax.jit
def res_block_pallas(x_nchw, w1, b1, w2, b2):
    N, C, H, W = x_nchw.shape
    O = w1.shape[0]
    assert O == C, "residual add requires out_num == in_num"

    P = _pack_factor(W * O)
    Ng = -(-N // P)
    Npad = Ng * P

    # NCHW -> NHWC; pack P images along the lane dim (no spatial pre-padding).
    x_nhwc = jnp.transpose(x_nchw, (0, 2, 3, 1)).astype(jnp.float32)
    if Npad != N:
        x_nhwc = jnp.pad(x_nhwc, ((0, Npad - N), (0, 0), (0, 0), (0, 0)))
    x_pack = (x_nhwc.reshape(Ng, P, H, W * C)
              .transpose(0, 2, 1, 3)
              .reshape(Ng, H, P * W * C))

    LC, LO = P * W * C, P * W * O
    w1_band = _banded_taps(w1, W, P)                             # (3, LC, LO)
    w2_band = _banded_taps(w2, W, P)                             # (3, LO, LO)  (C == O)
    b1_flat = jnp.tile(b1, P * W).reshape(1, LO).astype(jnp.float32)
    b2_flat = jnp.tile(b2, P * W).reshape(1, LO).astype(jnp.float32)

    kernel = make_res_block_kernel(H, LC, LO)

    out_pack = pl.pallas_call(
        kernel,
        out_shape=jax.ShapeDtypeStruct((Ng, H, LO), jnp.float32),
        grid_spec=pltpu.PrefetchScalarGridSpec(
            num_scalar_prefetch=0,
            grid=(Ng,),
            in_specs=[
                pl.BlockSpec((1, H, LC), lambda g: (g, 0, 0)),
                pl.BlockSpec((3, LC, LO), lambda g: (0, 0, 0)),
                pl.BlockSpec((1, LO), lambda g: (0, 0)),
                pl.BlockSpec((3, LO, LO), lambda g: (0, 0, 0)),
                pl.BlockSpec((1, LO), lambda g: (0, 0)),
            ],
            out_specs=pl.BlockSpec((1, H, LO), lambda g: (g, 0, 0)),
        ),
        compiler_params=pltpu.CompilerParams(
            dimension_semantics=("parallel",)),
    )(x_pack, w1_band, b1_flat, w2_band, b2_flat)

    # Unpack: (Ng, H, P*W*O) -> (Npad, H, W, O) -> NCHW, drop batch padding.
    out = (out_pack.reshape(Ng, H, P, W * O)
           .transpose(0, 2, 1, 3)
           .reshape(Npad, H, W, O))
    return out[:N].transpose(0, 3, 1, 2).astype(x_nchw.dtype)


def res_block_ref(x, w1, b1, w2, b2, matmul_dtype=jnp.float32):
    """Pure-JAX reference matching the PyTorch module.

    matmul_dtype=bfloat16 mimics the kernel's bf16-matmul / f32-accumulate path.
    """
    dn = ('NCHW', 'OIHW', 'NCHW')

    def conv(a, w):
        return jax.lax.conv_general_dilated(
            a.astype(matmul_dtype), w.astype(matmul_dtype), (1, 1),
            ((1, 1), (1, 1)), dimension_numbers=dn,
            preferred_element_type=jnp.float32)

    y = conv(x, w1) + b1[None, :, None, None]
    y = jnp.where(y >= 0, y, 0.1 * y)                    # LeakyReLU(0.1)
    y2 = conv(y, w2) + b2[None, :, None, None]
    return x + y2


if __name__ == "__main__":
    key = jax.random.PRNGKey(0)
    k_x, k_w1, k_b1, k_w2, k_b2 = jax.random.split(key, 5)

    N, C, H, W = 2, 4, 16, 16
    O = C                                   # residual requires in_num == out_num
    bound = (1.0 / (C * 3 * 3)) ** 0.5      # kaiming-uniform-ish, deterministic

    x = jax.random.normal(k_x, (N, C, H, W), jnp.float32)
    w1 = jax.random.uniform(k_w1, (O, C, 3, 3), jnp.float32, -bound, bound)
    b1 = jax.random.uniform(k_b1, (O,), jnp.float32, -bound, bound)
    w2 = jax.random.uniform(k_w2, (O, C, 3, 3), jnp.float32, -bound, bound)
    b2 = jax.random.uniform(k_b2, (O,), jnp.float32, -bound, bound)

    out = jax.block_until_ready(res_block_pallas(x, w1, b1, w2, b2))
    assert out.shape == (N, C, H, W)

    # Tight check against a reference that uses the same bf16-matmul numerics.
    ref_bf16 = res_block_ref(x, w1, b1, w2, b2, matmul_dtype=jnp.bfloat16)
    err_bf16 = float(jnp.max(jnp.abs(out - ref_bf16)))
    assert jnp.allclose(out, ref_bf16, atol=2e-2, rtol=2e-2), err_bf16

    # Looser sanity check against the full-f32 module semantics.
    ref_f32 = res_block_ref(x, w1, b1, w2, b2)
    err_f32 = float(jnp.max(jnp.abs(out - ref_f32)))
    assert jnp.allclose(out, ref_f32, atol=8e-2, rtol=8e-2), err_f32

    print("KERNEL_OK")
</pallas_src>

<mosaic_0001>
module attributes {stable_mosaic.version = 11 : i64} {
  func.func @kernel(%arg0: i32, %arg1: memref<1x16x128xf32, #tpu.memory_space<vmem>>, %arg2: memref<3x128x128xbf16, #tpu.memory_space<vmem>>, %arg3: memref<1x128xf32, #tpu.memory_space<vmem>>, %arg4: memref<3x128x128xbf16, #tpu.memory_space<vmem>>, %arg5: memref<1x128xf32, #tpu.memory_space<vmem>>, %arg6: memref<1x16x128xf32, #tpu.memory_space<vmem>>) attributes {dimension_semantics = [#tpu.dimension_semantics<parallel>], iteration_bounds = array<i64: 1>, scalar_prefetch = 0 : i64, scratch_operands = 0 : i64, tpu.core_type = #tpu.core_type<tc>, window_params = [{transform_indices = @transform_0, window_bounds = array<i64: 1, 16, 128>}, {pipeline_mode = #tpu.pipeline_mode<synchronous>, transform_indices = @transform_1, window_bounds = array<i64: 3, 128, 128>}, {pipeline_mode = #tpu.pipeline_mode<synchronous>, transform_indices = @transform_2, window_bounds = array<i64: 1, 128>}, {pipeline_mode = #tpu.pipeline_mode<synchronous>, transform_indices = @transform_3, window_bounds = array<i64: 3, 128, 128>}, {pipeline_mode = #tpu.pipeline_mode<synchronous>, transform_indices = @transform_4, window_bounds = array<i64: 1, 128>}, {transform_indices = @transform_5, window_bounds = array<i64: 1, 16, 128>}]} {
    %c0 = arith.constant 0 : index
    %c0_0 = arith.constant 0 : index
    %c0_1 = arith.constant 0 : index
    %0 = vector.load %arg1[%c0, %c0_0, %c0_1] : memref<1x16x128xf32, #tpu.memory_space<vmem>>, vector<1x16x128xf32>
    %1 = vector.shape_cast %0 : vector<1x16x128xf32> to vector<16x128xf32>
    %2 = arith.truncf %1 : vector<16x128xf32> to vector<16x128xbf16>
    %cst = arith.constant 0.000000e+00 : bf16
    %3 = vector.broadcast %cst : bf16 to vector<1x128xbf16>
    %4 = vector.extract_strided_slice %2 {offsets = [0, 0], sizes = [15, 128], strides = [1, 1]} : vector<16x128xbf16> to vector<15x128xbf16>
    %5 = tpu.concatenate %3, %4 in 0 : vector<1x128xbf16>, vector<15x128xbf16> -> vector<16x128xbf16>
    %6 = vector.extract_strided_slice %2 {offsets = [1, 0], sizes = [15, 128], strides = [1, 1]} : vector<16x128xbf16> to vector<15x128xbf16>
    %7 = tpu.concatenate %6, %3 in 0 : vector<15x128xbf16>, vector<1x128xbf16> -> vector<16x128xbf16>
    %c0_2 = arith.constant 0 : index
    %c0_3 = arith.constant 0 : index
    %c0_4 = arith.constant 0 : index
    %8 = vector.load %arg2[%c0_2, %c0_3, %c0_4] : memref<3x128x128xbf16, #tpu.memory_space<vmem>>, vector<1x128x128xbf16>
    %9 = vector.shape_cast %8 : vector<1x128x128xbf16> to vector<128x128xbf16>
    %cst_5 = arith.constant dense<0.000000e+00> : vector<16x128xf32>
    %10 = tpu.matmul %5, %9, %cst_5 {dimension_numbers = #tpu.dot_dimension_numbers<[1], [0], [0], [1], [0, 0, 1, 1], [], []>} : vector<16x128xbf16>, vector<128x128xbf16>, vector<16x128xf32> -> vector<16x128xf32>
    %c1 = arith.constant 1 : index
    %c0_6 = arith.constant 0 : index
    %c0_7 = arith.constant 0 : index
    %11 = vector.load %arg2[%c1, %c0_6, %c0_7] : memref<3x128x128xbf16, #tpu.memory_space<vmem>>, vector<1x128x128xbf16>
    %12 = vector.shape_cast %11 : vector<1x128x128xbf16> to vector<128x128xbf16>
    %cst_8 = arith.constant dense<0.000000e+00> : vector<16x128xf32>
    %13 = tpu.matmul %2, %12, %cst_8 {dimension_numbers = #tpu.dot_dimension_numbers<[1], [0], [0], [1], [0, 0, 1, 1], [], []>} : vector<16x128xbf16>, vector<128x128xbf16>, vector<16x128xf32> -> vector<16x128xf32>
    %14 = arith.addf %10, %13 : vector<16x128xf32>
    %c2 = arith.constant 2 : index
    %c0_9 = arith.constant 0 : index
    %c0_10 = arith.constant 0 : index
    %15 = vector.load %arg2[%c2, %c0_9, %c0_10] : memref<3x128x128xbf16, #tpu.memory_space<vmem>>, vector<1x128x128xbf16>
    %16 = vector.shape_cast %15 : vector<1x128x128xbf16> to vector<128x128xbf16>
    %cst_11 = arith.constant dense<0.000000e+00> : vector<16x128xf32>
    %17 = tpu.matmul %7, %16, %cst_11 {dimension_numbers = #tpu.dot_dimension_numbers<[1], [0], [0], [1], [0, 0, 1, 1], [], []>} : vector<16x128xbf16>, vector<128x128xbf16>, vector<16x128xf32> -> vector<16x128xf32>
    %18 = arith.addf %14, %17 : vector<16x128xf32>
    %c0_12 = arith.constant 0 : index
    %c0_13 = arith.constant 0 : index
    %19 = vector.load %arg3[%c0_12, %c0_13] : memref<1x128xf32, #tpu.memory_space<vmem>>, vector<1x128xf32>
    %20 = vector.broadcast %19 : vector<1x128xf32> to vector<16x128xf32>
    %21 = arith.addf %18, %20 : vector<16x128xf32>
    %cst_14 = arith.constant 0.000000e+00 : f32
    %22 = vector.broadcast %cst_14 : f32 to vector<16x128xf32>
    %23 = arith.cmpf oge, %21, %22 : vector<16x128xf32>
    %cst_15 = arith.constant 1.000000e-01 : f32
    %24 = vector.broadcast %cst_15 : f32 to vector<16x128xf32>
    %25 = arith.mulf %24, %21 : vector<16x128xf32>
    %26 = arith.select %23, %21, %25 : vector<16x128xi1>, vector<16x128xf32>
    %27 = arith.truncf %26 : vector<16x128xf32> to vector<16x128xbf16>
    %cst_16 = arith.constant 0.000000e+00 : bf16
    %28 = vector.broadcast %cst_16 : bf16 to vector<1x128xbf16>
    %29 = vector.extract_strided_slice %27 {offsets = [0, 0], sizes = [15, 128], strides = [1, 1]} : vector<16x128xbf16> to vector<15x128xbf16>
    %30 = tpu.concatenate %28, %29 in 0 : vector<1x128xbf16>, vector<15x128xbf16> -> vector<16x128xbf16>
    %31 = vector.extract_strided_slice %27 {offsets = [1, 0], sizes = [15, 128], strides = [1, 1]} : vector<16x128xbf16> to vector<15x128xbf16>
    %32 = tpu.concatenate %31, %28 in 0 : vector<15x128xbf16>, vector<1x128xbf16> -> vector<16x128xbf16>
    %c0_17 = arith.constant 0 : index
    %c0_18 = arith.constant 0 : index
    %c0_19 = arith.constant 0 : index
    %33 = vector.load %arg4[%c0_17, %c0_18, %c0_19] : memref<3x128x128xbf16, #tpu.memory_space<vmem>>, vector<1x128x128xbf16>
    %34 = vector.shape_cast %33 : vector<1x128x128xbf16> to vector<128x128xbf16>
    %cst_20 = arith.constant dense<0.000000e+00> : vector<16x128xf32>
    %35 = tpu.matmul %30, %34, %cst_20 {dimension_numbers = #tpu.dot_dimension_numbers<[1], [0], [0], [1], [0, 0, 1, 1], [], []>} : vector<16x128xbf16>, vector<128x128xbf16>, vector<16x128xf32> -> vector<16x128xf32>
    %c1_21 = arith.constant 1 : index
    %c0_22 = arith.constant 0 : index
    %c0_23 = arith.constant 0 : index
    %36 = vector.load %arg4[%c1_21, %c0_22, %c0_23] : memref<3x128x128xbf16, #tpu.memory_space<vmem>>, vector<1x128x128xbf16>
    %37 = vector.shape_cast %36 : vector<1x128x128xbf16> to vector<128x128xbf16>
    %cst_24 = arith.constant dense<0.000000e+00> : vector<16x128xf32>
    %38 = tpu.matmul %27, %37, %cst_24 {dimension_numbers = #tpu.dot_dimension_numbers<[1], [0], [0], [1], [0, 0, 1, 1], [], []>} : vector<16x128xbf16>, vector<128x128xbf16>, vector<16x128xf32> -> vector<16x128xf32>
    %39 = arith.addf %35, %38 : vector<16x128xf32>
    %c2_25 = arith.constant 2 : index
    %c0_26 = arith.constant 0 : index
    %c0_27 = arith.constant 0 : index
    %40 = vector.load %arg4[%c2_25, %c0_26, %c0_27] : memref<3x128x128xbf16, #tpu.memory_space<vmem>>, vector<1x128x128xbf16>
    %41 = vector.shape_cast %40 : vector<1x128x128xbf16> to vector<128x128xbf16>
    %cst_28 = arith.constant dense<0.000000e+00> : vector<16x128xf32>
    %42 = tpu.matmul %32, %41, %cst_28 {dimension_numbers = #tpu.dot_dimension_numbers<[1], [0], [0], [1], [0, 0, 1, 1], [], []>} : vector<16x128xbf16>, vector<128x128xbf16>, vector<16x128xf32> -> vector<16x128xf32>
    %43 = arith.addf %39, %42 : vector<16x128xf32>
    %c0_29 = arith.constant 0 : index
    %c0_30 = arith.constant 0 : index
    %44 = vector.load %arg5[%c0_29, %c0_30] : memref<1x128xf32, #tpu.memory_space<vmem>>, vector<1x128xf32>
    %45 = vector.broadcast %44 : vector<1x128xf32> to vector<16x128xf32>
    %46 = arith.addf %43, %45 : vector<16x128xf32>
    %47 = arith.addf %1, %46 : vector<16x128xf32>
    %c0_31 = arith.constant 0 : index
    %c0_32 = arith.constant 0 : index
    %c0_33 = arith.constant 0 : index
    %48 = vector.load %arg6[%c0_31, %c0_32, %c0_33] : memref<1x16x128xf32, #tpu.memory_space<vmem>>, vector<1x16x128xf32>
    %49 = vector.shape_cast %48 : vector<1x16x128xf32> to vector<16x128xf32>
    %50 = vector.shape_cast %47 : vector<16x128xf32> to vector<1x16x128xf32>
    tpu.vector_store %arg6[%c0_31, %c0_32, %c0_33], %50 {strides = array<i32>} : memref<1x16x128xf32, #tpu.memory_space<vmem>>, vector<1x16x128xf32>,
    return
  }
  func.func @transform_0(%arg0: i32) -> (i32, i32, i32) {
    %c0_i32 = arith.constant 0 : i32
    %c0_i32_0 = arith.constant 0 : i32
    %c0_i32_1 = arith.constant 0 : i32
    return %arg0, %c0_i32, %c0_i32_0 : i32, i32, i32
  }
  func.func @transform_1(%arg0: i32) -> (i32, i32, i32) {
    %c0_i32 = arith.constant 0 : i32
    %c0_i32_0 = arith.constant 0 : i32
    %c0_i32_1 = arith.constant 0 : i32
    %c0_i32_2 = arith.constant 0 : i32
    return %c0_i32, %c0_i32_0, %c0_i32_1 : i32, i32, i32
  }
  func.func @transform_2(%arg0: i32) -> (i32, i32) {
    %c0_i32 = arith.constant 0 : i32
    %c0_i32_0 = arith.constant 0 : i32
    %c0_i32_1 = arith.constant 0 : i32
    return %c0_i32, %c0_i32_0 : i32, i32
  }
  func.func @transform_3(%arg0: i32) -> (i32, i32, i32) {
    %c0_i32 = arith.constant 0 : i32
    %c0_i32_0 = arith.constant 0 : i32
    %c0_i32_1 = arith.constant 0 : i32
    %c0_i32_2 = arith.constant 0 : i32
    return %c0_i32, %c0_i32_0, %c0_i32_1 : i32, i32, i32
  }
  func.func @transform_4(%arg0: i32) -> (i32, i32) {
    %c0_i32 = arith.constant 0 : i32
    %c0_i32_0 = arith.constant 0 : i32
    %c0_i32_1 = arith.constant 0 : i32
    return %c0_i32, %c0_i32_0 : i32, i32
  }
  func.func @transform_5(%arg0: i32) -> (i32, i32, i32) {
    %c0_i32 = arith.constant 0 : i32
    %c0_i32_0 = arith.constant 0 : i32
    %c0_i32_1 = arith.constant 0 : i32
    return %arg0, %c0_i32, %c0_i32_0 : i32, i32, i32
  }
}

</mosaic_0001>

<bundles_post_ra>
// kernel: mul.4
= control target key start
LH: loop header
LB: loop body
LE: loop exit
PB: predicated region body
PF: predicated region fallthrough
CT: control target
= control target key end

     0   :  { %vm6_vm0 = vcmask 1043458   ;;  %s547_s6 = smov 3  ;;  %vm10_vm1 = vcmask 1045508   ;;  %vm14_vm2 = vcmask 1047558   ;;  %s550_s9 = smov 12  ;;  %vm16_vm3 = vcmask 31744   ;;  %s18446_s0 = inlined_call_operand.vmem [shape: f32[3,16,4,16,4], index: 0, kind: input, shape index: {}]   ;;  %s18447_s1 = inlined_call_operand.vmem [shape: f32[3,64,64], index: 1, kind: output, shape index: {}]  }
   0x1   :  { %v8890_v0 = vld [vmem:[%s18446_s0 + $0x40f] ss:$16 sm:%s547_s6]   ;;  %s555_s10 = smov 48  ;;  %s560_s15 = smov 192  ;;  %vm521_vm4 = vcmask 523744   ;;  %vm1072_vm5 = vcmask 490944  }
   0x2   :  { %v8891_v1 = vld [vmem:[%s18446_s0 + $0x40f] ss:$16 sm:%s550_s9]   ;;  %s502_s16 = smov 3  ;;  %s505_s21 = smov 12  ;;  %vm1623_vm6 = vcmask 458144   ;;  %vm2174_vm7 = vcmask 425344  }
   0x3   :  { %v8892_v2 = vld [vmem:[%s18446_s0 + $0x40f] ss:$16 sm:%s555_s10]   ;;  %v553_v3 = vsel %vm6_vm0, %v8891_v1, %v8890_v0  ;;  %s510_s22 = smov 48  ;;  %s515_s27 = smov 192  ;;  %vm2725_vm8 = vcmask 392544   ;;  %vm3276_vm9 = vcmask 359744  }
   0x4   :  { %v8893_v4 = vld [vmem:[%s18446_s0 + $0x40f] ss:$16 sm:%s560_s15]   ;;  %v558_v6 = vsel %vm10_vm1, %v8892_v2, %v553_v3  ;;  %s570_s28 = smov 3  ;;  %s573_s4 = smov 12  ;;  %vm3827_vm10 = vcmask 326944   ;;  %vm4378_vm11 = vcmask 294144  }
   0x5   :  { %v8881_v5 = vld [vmem:[%s18446_s0 + $0xf] ss:$16 sm:%s502_s16]   ;;  %v563_v9 = vsel %vm14_vm2, %v8893_v4, %v558_v6  ;;  %s578_s5 = smov 48  ;;  %s10681_s6 = smov 60   ;;  %vm4929_vm12 = vcmask 261344   ;;  %vm5480_vm13 = vcmask 228544  }
   0x6   :  { %v8882_v7 = vld [vmem:[%s18446_s0 + $0xf] ss:$16 sm:%s505_s21]   ;;  %564 = vrot.lane.b32.xlu1 %v563_v9, %s10681_s6  ;;  %s583_s9 = smov 192  ;;  %s524_s10 = smov 3  ;;  %vm6031_vm14 = vcmask 195744   ;;  %vm6582_vm15 = vcmask 162944  }
   0x7   :  { %v8883_v8 = vld [vmem:[%s18446_s0 + $0xf] ss:$16 sm:%s510_s22]   ;;  %v508_v10 = vsel %vm6_vm0, %v8882_v7, %v8881_v5  ;;  %s527_s15 = smov 12  ;;  %s532_s16 = smov 48 }
   0x8   :  { %v8884_v11 = vld [vmem:[%s18446_s0 + $0xf] ss:$16 sm:%s515_s27]   ;;  %v513_v13 = vsel %vm10_vm1, %v8883_v8, %v508_v10  ;;  %s537_s19 = smov 192  ;;  %s616_s20 = smov 3 }
   0x9   :  { %v8895_v12 = vld [vmem:[%s18446_s0 + $0x60f] ss:$16 sm:%s570_s28]   ;;  %v518_v15 = vsel %vm14_vm2, %v8884_v11, %v513_v13  ;;  %s619_s25 = smov 12  ;;  %s624_s26 = smov 48 }
   0xa   :  { %v8896_v14 = vld [vmem:[%s18446_s0 + $0x60f] ss:$16 sm:%s573_s4]   ;;  %519 = vrot.lane.b32.xlu0 %v518_v15, %s10681_s6  ;;  %s629_s29 = smov 192  ;;  %s593_s30 = smov 3 }
   0xb   :  { %v576_v16 = vsel %vm6_vm0, %v8896_v14, %v8895_v12  ;;  %v8897_v17 = vld [vmem:[%s18446_s0 + $0x60f] ss:$16 sm:%s578_s5]   ;;  %s596_s7 = smov 12  ;;  %s601_s8 = smov 48 }
   0xc   :  { %v8898_v18 = vld [vmem:[%s18446_s0 + $0x60f] ss:$16 sm:%s583_s9]   ;;  %v581_v19 = vsel %vm10_vm1, %v8897_v17, %v576_v16  ;;  %s606_s13 = smov 192  ;;  %s665_s17 = smov 12 }
   0xd   :  { %v8885_v20 = vld [vmem:[%s18446_s0 + $0x20f] ss:$16 sm:%s524_s10]   ;;  %v586_v21 = vsel %vm14_vm2, %v8898_v18, %v581_v19  ;;  %s670_s22 = smov 48  ;;  %s675_s23 = smov 192 }
   0xe   :  { %v8886_v22 = vld [vmem:[%s18446_s0 + $0x20f] ss:$16 sm:%s527_s15]   ;;  %587 = vrot.lane.b32.xlu1 %v586_v21, %s10681_s6  ;;  %s642_s2 = smov 12  ;;  %s647_s3 = smov 48 }
   0xf   :  { %v8887_v23 = vld [vmem:[%s18446_s0 + $0x20f] ss:$16 sm:%s532_s16]   ;;  %v530_v24 = vsel %vm6_vm0, %v8886_v22, %v8885_v20  ;;  %s662_s16 = smov 3  ;;  %s652_s9 = smov 192 }
  0x10   :  { %v8888_v25 = vld [vmem:[%s18446_s0 + $0x20f] ss:$16 sm:%s537_s19]   ;;  %v535_v26 = vsel %vm10_vm1, %v8887_v23, %v530_v24  ;;  %s708_s12 = smov 3  ;;  %s716_s18 = smov 48 }
  0x11   :  { %v8905_v27 = vld [vmem:[%s18446_s0 + $0xa0f] ss:$16 sm:%s616_s20]   ;;  %v540_v29 = vsel %vm14_vm2, %v8888_v25, %v535_v26  ;;  %s721_s19 = smov 192  ;;  %s688_s27 = smov 12 }
  0x12   :  { %v8906_v28 = vld [vmem:[%s18446_s0 + $0xa0f] ss:$16 sm:%s619_s25]   ;;  %541 = vrot.lane.b32.xlu0 %v540_v29, %s10681_s6  ;;  %s693_s28 = smov 48  ;;  %s698_s4 = smov 192 }
  0x13   :  { %v622_v30 = vsel %vm6_vm0, %v8906_v28, %v8905_v27  ;;  %v8907_v31 = vld [vmem:[%s18446_s0 + $0xa0f] ss:$16 sm:%s624_s26]   ;;  %s639_s26 = smov 3  ;;  %s762_s14 = smov 48 }
  0x14   :  { %v8908_v32 = vld [vmem:[%s18446_s0 + $0xa0f] ss:$16 sm:%s629_s29]   ;;  %v627_v33 = vsel %vm10_vm1, %v8907_v31, %v622_v30  ;;  %s767_s15 = smov 192  ;;  %s739_s24 = smov 48 }
  0x15   :  { %v8900_v34 = vld [vmem:[%s18446_s0 + $0x80f] ss:$16 sm:%s593_s30]   ;;  %v632_v35 = vsel %vm14_vm2, %v8908_v32, %v627_v33  ;;  %s744_s29 = smov 192  ;;  %s808_s10 = smov 48 }
  0x16   :  { %v8901_v36 = vld [vmem:[%s18446_s0 + $0x80f] ss:$16 sm:%s596_s7]   ;;  %633 = vrot.lane.b32.xlu1 %v632_v35, %s10681_s6  ;;  %s813_s11 = smov 192  ;;  %s785_s20 = smov 48 }
  0x17   :  { %v8902_v37 = vld [vmem:[%s18446_s0 + $0x80f] ss:$16 sm:%s601_s8]   ;;  %v599_v38 = vsel %vm6_vm0, %v8901_v36, %v8900_v34  ;;  %s754_s8 = smov 3  ;;  %s790_s25 = smov 192 }
  0x18   :  { %v8903_v39 = vld [vmem:[%s18446_s0 + $0x80f] ss:$16 sm:%s606_s13]   ;;  %v604_v40 = vsel %vm10_vm1, %v8902_v37, %v599_v38  ;;  %s711_s13 = smov 12  ;;  %s854_s5 = smov 48 }
  0x19   :  { %v8915_v41 = vld [vmem:[%s18446_s0 + $0x28f] ss:$16 sm:%s662_s16]   ;;  %v609_v43 = vsel %vm14_vm2, %v8903_v39, %v604_v40  ;;  %s859_s7 = smov 192  ;;  %s831_s16 = smov 48 }
  0x1a   :  { %v8916_v42 = vld [vmem:[%s18446_s0 + $0x28f] ss:$16 sm:%s665_s17]   ;;  %610 = vrot.lane.b32.xlu0 %v609_v43, %s10681_s6  ;;  %s836_s21 = smov 192  ;;  %s900_s30 = smov 48 }
  0x1b   :  { %v668_v44 = vsel %vm6_vm0, %v8916_v42, %v8915_v41  ;;  %v8917_v45 = vld [vmem:[%s18446_s0 + $0x28f] ss:$16 sm:%s670_s22]   ;;  %s685_s22 = smov 3  ;;  %s882_s17 = smov 192 }
  0x1c   :  { %v8918_v46 = vld [vmem:[%s18446_s0 + $0x28f] ss:$16 sm:%s675_s23]   ;;  %v673_v47 = vsel %vm10_vm1, %v8917_v45, %v668_v44  ;;  %s734_s23 = smov 12 }
  0x1d   :  { %v8910_v48 = vld [vmem:[%s18446_s0 + $0x8f] ss:$16 sm:%s639_s26]   ;;  %v678_v49 = vsel %vm14_vm2, %v8918_v46, %v673_v47  ;;  %s946_s26 = smov 48 }
  0x1e   :  { %v8911_v50 = vld [vmem:[%s18446_s0 + $0x8f] ss:$16 sm:%s642_s2]   ;;  %679 = vrot.lane.b32.xlu1 %v678_v49, %s10681_s6  ;;  %s905_s2 = smov 192 }
  0x1f   :  { %v8912_v51 = vld [vmem:[%s18446_s0 + $0x8f] ss:$16 sm:%s647_s3]   ;;  %v645_v52 = vsel %vm6_vm0, %v8911_v50, %v8910_v48  ;;  %s800_s3 = smov 3 }
  0x20   :  { %v8913_v53 = vld [vmem:[%s18446_s0 + $0x8f] ss:$16 sm:%s652_s9]   ;;  %v650_v54 = vsel %vm10_vm1, %v8912_v51, %v645_v52  ;;  %s757_s9 = smov 12 }
  0x21   :  { %v8925_v55 = vld [vmem:[%s18446_s0 + $0x68f] ss:$16 sm:%s708_s12]   ;;  %v655_v57 = vsel %vm14_vm2, %v8913_v53, %v650_v54  ;;  %s877_s12 = smov 48 }
  0x22   :  { %v8926_v56 = vld [vmem:[%s18446_s0 + $0x68f] ss:$16 sm:%s711_s13]   ;;  %656 = vrot.lane.b32.xlu0 %v655_v57, %s10681_s6  ;;  %s928_s13 = smov 192 }
  0x23   :  { %v714_v58 = vsel %vm6_vm0, %v8926_v56, %v8925_v55  ;;  %v8927_v59 = vld [vmem:[%s18446_s0 + $0x68f] ss:$16 sm:%s716_s18]   ;;  %s731_s18 = smov 3 }
  0x24   :  { %v8928_v60 = vld [vmem:[%s18446_s0 + $0x68f] ss:$16 sm:%s721_s19]   ;;  %v719_v61 = vsel %vm10_vm1, %v8927_v59, %v714_v58  ;;  %s780_s19 = smov 12 }
  0x25   :  { %v8920_v62 = vld [vmem:[%s18446_s0 + $0x48f] ss:$16 sm:%s685_s22]   ;;  %v724_v63 = vsel %vm14_vm2, %v8928_v60, %v719_v61  ;;  %s992_s22 = smov 48 }
  0x26   :  { %v8921_v0 = vld [vmem:[%s18446_s0 + $0x48f] ss:$16 sm:%s688_s27]   ;;  %725 = vrot.lane.b32.xlu1 %v724_v63, %s10681_s6  ;;  %s951_s27 = smov 192 }
  0x27   :  { %v8922_v1 = vld [vmem:[%s18446_s0 + $0x48f] ss:$16 sm:%s693_s28]   ;;  %v691_v2 = vsel %vm6_vm0, %v8921_v0, %v8920_v62  ;;  %s846_s28 = smov 3 }
  0x28   :  { %v8923_v3 = vld [vmem:[%s18446_s0 + $0x48f] ss:$16 sm:%s698_s4]   ;;  %v696_v4 = vsel %vm10_vm1, %v8922_v1, %v691_v2  ;;  %s803_s4 = smov 12 }
  0x29   :  { %v8935_v5 = vld [vmem:[%s18446_s0 + $0xa8f] ss:$16 sm:%s754_s8]   ;;  %v701_v7 = vsel %vm14_vm2, %v8923_v3, %v696_v4  ;;  %s923_s8 = smov 48 }
  0x2a   :  { %v8936_v6 = vld [vmem:[%s18446_s0 + $0xa8f] ss:$16 sm:%s757_s9]   ;;  %702 = vrot.lane.b32.xlu0 %v701_v7, %s10681_s6  ;;  %s974_s9 = smov 192 }
  0x2b   :  { %v760_v8 = vsel %vm6_vm0, %v8936_v6, %v8935_v5  ;;  %v8937_v9 = vld [vmem:[%s18446_s0 + $0xa8f] ss:$16 sm:%s762_s14]   ;;  %s777_s14 = smov 3 }
  0x2c   :  { %v8938_v10 = vld [vmem:[%s18446_s0 + $0xa8f] ss:$16 sm:%s767_s15]   ;;  %v765_v11 = vsel %vm10_vm1, %v8937_v9, %v760_v8  ;;  %s826_s15 = smov 12 }
  0x2d   :  { %v8930_v12 = vld [vmem:[%s18446_s0 + $0x88f] ss:$16 sm:%s731_s18]   ;;  %v770_v13 = vsel %vm14_vm2, %v8938_v10, %v765_v11  ;;  %s1038_s18 = smov 48 }
  0x2e   :  { %v8931_v14 = vld [vmem:[%s18446_s0 + $0x88f] ss:$16 sm:%s734_s23]   ;;  %771 = vrot.lane.b32.xlu1 %v770_v13, %s10681_s6  ;;  %s997_s23 = smov 192 }
  0x2f   :  { %v8932_v15 = vld [vmem:[%s18446_s0 + $0x88f] ss:$16 sm:%s739_s24]   ;;  %v737_v16 = vsel %vm6_vm0, %v8931_v14, %v8930_v12  ;;  %s892_s24 = smov 3 }
  0x30   :  { %v8933_v17 = vld [vmem:[%s18446_s0 + $0x88f] ss:$16 sm:%s744_s29]   ;;  %v742_v18 = vsel %vm10_vm1, %v8932_v15, %v737_v16  ;;  %s849_s29 = smov 12 }
  0x31   :  { %v8945_v19 = vld [vmem:[%s18446_s0 + $0x30f] ss:$16 sm:%s800_s3]   ;;  %v747_v21 = vsel %vm14_vm2, %v8933_v17, %v742_v18  ;;  %s969_s3 = smov 48 }
  0x32   :  { %v8946_v20 = vld [vmem:[%s18446_s0 + $0x30f] ss:$16 sm:%s803_s4]   ;;  %748 = vrot.lane.b32.xlu0 %v747_v21, %s10681_s6  ;;  %s1020_s4 = smov 192 }
  0x33   :  { %v806_v22 = vsel %vm6_vm0, %v8946_v20, %v8945_v19  ;;  %v8947_v23 = vld [vmem:[%s18446_s0 + $0x30f] ss:$16 sm:%s808_s10]   ;;  %s823_s10 = smov 3 }
  0x34   :  { %v8948_v24 = vld [vmem:[%s18446_s0 + $0x30f] ss:$16 sm:%s813_s11]   ;;  %v811_v25 = vsel %vm10_vm1, %v8947_v23, %v806_v22  ;;  %s872_s11 = smov 12 }
  0x35   :  { %v8940_v26 = vld [vmem:[%s18446_s0 + $0x10f] ss:$16 sm:%s777_s14]   ;;  %v816_v27 = vsel %vm14_vm2, %v8948_v24, %v811_v25  ;;  %s1083_s14 = smov 48 }
  0x36   :  { %v8941_v28 = vld [vmem:[%s18446_s0 + $0x10f] ss:$16 sm:%s780_s19]   ;;  %817 = vrot.lane.b32.xlu1 %v816_v27, %s10681_s6  ;;  %s1043_s19 = smov 192 }
  0x37   :  { %v8942_v29 = vld [vmem:[%s18446_s0 + $0x10f] ss:$16 sm:%s785_s20]   ;;  %v783_v30 = vsel %vm6_vm0, %v8941_v28, %v8940_v26  ;;  %s938_s20 = smov 3 }
  0x38   :  { %v8943_v31 = vld [vmem:[%s18446_s0 + $0x10f] ss:$16 sm:%s790_s25]   ;;  %v788_v32 = vsel %vm10_vm1, %v8942_v29, %v783_v30  ;;  %s895_s25 = smov 12 }
  0x39   :  { %v8955_v33 = vld [vmem:[%s18446_s0 + $0x70f] ss:$16 sm:%s846_s28]   ;;  %v793_v35 = vsel %vm14_vm2, %v8943_v31, %v788_v32  ;;  %s1015_s28 = smov 48 }
  0x3a   :  { %v8956_v34 = vld [vmem:[%s18446_s0 + $0x70f] ss:$16 sm:%s849_s29]   ;;  %794 = vrot.lane.b32.xlu0 %v793_v35, %s10681_s6  ;;  %s1066_s29 = smov 192 }
  0x3b   :  { %v852_v36 = vsel %vm6_vm0, %v8956_v34, %v8955_v33  ;;  %v8957_v37 = vld [vmem:[%s18446_s0 + $0x70f] ss:$16 sm:%s854_s5]   ;;  %s869_s5 = smov 3 }
  0x3c   :  { %v8958_v38 = vld [vmem:[%s18446_s0 + $0x70f] ss:$16 sm:%s859_s7]   ;;  %v857_v39 = vsel %vm10_vm1, %v8957_v37, %v852_v36  ;;  %s918_s7 = smov 12 }
  0x3d   :  { %v8950_v40 = vld [vmem:[%s18446_s0 + $0x50f] ss:$16 sm:%s823_s10]   ;;  %v862_v41 = vsel %vm14_vm2, %v8958_v38, %v857_v39  ;;  %s1134_s10 = smov 192 }
  0x3e   :  { %v8951_v42 = vld [vmem:[%s18446_s0 + $0x50f] ss:$16 sm:%s826_s15]   ;;  %863 = vrot.lane.b32.xlu1 %v862_v41, %s10681_s6  ;;  %s1088_s15 = smov 192 }
  0x3f   :  { %v8952_v43 = vld [vmem:[%s18446_s0 + $0x50f] ss:$16 sm:%s831_s16]   ;;  %v829_v44 = vsel %vm6_vm0, %v8951_v42, %v8950_v40  ;;  %s984_s16 = smov 3 }
  0x40   :  { %v8953_v45 = vld [vmem:[%s18446_s0 + $0x50f] ss:$16 sm:%s836_s21]   ;;  %v834_v46 = vsel %vm10_vm1, %v8952_v43, %v829_v44  ;;  %s941_s21 = smov 12  ;;  %v9006_v43 = vld [vmem:[%s18446_s0 + $0x20e] ss:$16 sm:%s1083_s14]   ;;  %s1098_s14 = smov 3 }
  0x41   :  { %v8965_v47 = vld [vmem:[%s18446_s0 + $0xb0f] ss:$16 sm:%s892_s24]   ;;  %v839_v49 = vsel %vm14_vm2, %v8953_v45, %v834_v46  ;;  %s1061_s24 = smov 48  ;;  %v9007_v44 = vld [vmem:[%s18446_s0 + $0x20e] ss:$16 sm:%s1088_s15]   ;;  %s1147_s15 = smov 12 }
  0x42   :  { %v8966_v48 = vld [vmem:[%s18446_s0 + $0xb0f] ss:$16 sm:%s895_s25]   ;;  %840 = vrot.lane.b32.xlu0 %v839_v49, %s10681_s6  ;;  %s1111_s25 = smov 192 }
  0x43   :  { %v898_v50 = vsel %vm6_vm0, %v8966_v48, %v8965_v47  ;;  %v8967_v51 = vld [vmem:[%s18446_s0 + $0xb0f] ss:$16 sm:%s900_s30]   ;;  %s915_s30 = smov 3  ;;  %v9002_v49 = vld [vmem:[%s18446_s0 + $0xe] ss:$16 sm:%s1061_s24]   ;;  %s1213_s24 = smov 3 }
  0x44   :  { %v8968_v52 = vld [vmem:[%s18446_s0 + $0xb0f] ss:$16 sm:%s905_s2]   ;;  %v903_v53 = vsel %vm10_vm1, %v8967_v51, %v898_v50  ;;  %s964_s2 = smov 12  ;;  %v9003_v51 = vld [vmem:[%s18446_s0 + $0xe] ss:$16 sm:%s1066_s29]   ;;  %s1170_s29 = smov 12 }
  0x45   :  { %v8960_v54 = vld [vmem:[%s18446_s0 + $0x90f] ss:$16 sm:%s869_s5]   ;;  %v908_v55 = vsel %vm14_vm2, %v8968_v52, %v903_v53  ;;  %s1180_s5 = smov 192 }
  0x46   :  { %v8961_v56 = vld [vmem:[%s18446_s0 + $0x90f] ss:$16 sm:%s872_s11]   ;;  %909 = vrot.lane.b32.xlu1 %v908_v55, %s10681_s6  ;;  %s10682_s11 = smov 56  }
  0x47   :  { %v8962_v57 = vld [vmem:[%s18446_s0 + $0x90f] ss:$16 sm:%s877_s12]   ;;  %v875_v58 = vsel %vm6_vm0, %v8961_v56, %v8960_v54  ;;  %s1030_s12 = smov 3 }
  0x48   :  { %v8963_v59 = vld [vmem:[%s18446_s0 + $0x90f] ss:$16 sm:%s882_s17]   ;;  %v880_v60 = vsel %vm10_vm1, %v8962_v57, %v875_v58  ;;  %s987_s17 = smov 12  ;;  %v9017_v58 = vld [vmem:[%s18446_s0 + $0x60e] ss:$16 sm:%s1134_s10]   ;;  %s1193_s10 = smov 12 }
  0x49   :  { %v8975_v61 = vld [vmem:[%s18446_s0 + $0x38f] ss:$16 sm:%s938_s20]   ;;  %v885_v63 = vsel %vm14_vm2, %v8963_v59, %v880_v60  ;;  %s1106_s20 = smov 48  ;;  %v9009_v60 = vld [vmem:[%s18446_s0 + $0x40e] ss:$16 sm:%s1098_s14]   ;;  %s1405_s14 = smov 48 }
  0x4a   :  { %v8976_v62 = vld [vmem:[%s18446_s0 + $0x38f] ss:$16 sm:%s941_s21]   ;;  %886 = vrot.lane.b32.xlu0 %v885_v63, %s10681_s6  ;;  %s1157_s21 = smov 192 }
  0x4b   :  { %v944_v0 = vsel %vm6_vm0, %v8976_v62, %v8975_v61  ;;  %v8977_v1 = vld [vmem:[%s18446_s0 + $0x38f] ss:$16 sm:%s946_s26]   ;;  %s961_s26 = smov 3  ;;  %v9011_v63 = vld [vmem:[%s18446_s0 + $0x40e] ss:$16 sm:%s1106_s20]   ;;  %s1259_s20 = smov 3 }
  0x4c   :  { %v8978_v2 = vld [vmem:[%s18446_s0 + $0x38f] ss:$16 sm:%s951_s27]   ;;  %v949_v3 = vsel %vm10_vm1, %v8977_v1, %v944_v0  ;;  %s1010_s27 = smov 12  ;;  %v9012_v1 = vld [vmem:[%s18446_s0 + $0x40e] ss:$16 sm:%s1111_s25]   ;;  %s1216_s25 = smov 12 }
  0x4d   :  { %v8970_v4 = vld [vmem:[%s18446_s0 + $0x18f] ss:$16 sm:%s915_s30]   ;;  %v954_v5 = vsel %vm14_vm2, %v8978_v2, %v949_v3  ;;  %s1226_s30 = smov 192 }
  0x4e   :  { %v8971_v6 = vld [vmem:[%s18446_s0 + $0x18f] ss:$16 sm:%s918_s7]   ;;  %955 = vrot.lane.b32.xlu1 %v954_v5, %s10681_s6  ;;  %s1244_s7 = smov 48 }
  0x4f   :  { %v8972_v7 = vld [vmem:[%s18446_s0 + $0x18f] ss:$16 sm:%s923_s8]   ;;  %v921_v8 = vsel %vm6_vm0, %v8971_v6, %v8970_v4  ;;  %s1075_s8 = smov 3  ;;  %v9025_v4 = vld [vmem:[%s18446_s0 + $0xa0e] ss:$16 sm:%s1170_s29]   ;;  %s1387_s29 = smov 192 }
  0x50   :  { %v8973_v9 = vld [vmem:[%s18446_s0 + $0x18f] ss:$16 sm:%s928_s13]   ;;  %v926_v10 = vsel %vm10_vm1, %v8972_v7, %v921_v8  ;;  %s1033_s13 = smov 12  ;;  %v9004_v39 = vld [vmem:[%s18446_s0 + $0x20e] ss:$16 sm:%s1075_s8]   ;;  %s1295_s8 = smov 192 }
  0x51   :  { %v8985_v11 = vld [vmem:[%s18446_s0 + $0x78f] ss:$16 sm:%s984_s16]   ;;  %v931_v13 = vsel %vm14_vm2, %v8973_v9, %v926_v10  ;;  %s1152_s16 = smov 48  ;;  %v9027_v8 = vld [vmem:[%s18446_s0 + $0xa0e] ss:$16 sm:%s1180_s5]   ;;  %s1239_s5 = smov 12 }
  0x52   :  { %v8986_v12 = vld [vmem:[%s18446_s0 + $0x78f] ss:$16 sm:%s987_s17]   ;;  %932 = vrot.lane.b32.xlu0 %v931_v13, %s10681_s6  ;;  %s1203_s17 = smov 192 }
  0x53   :  { %v990_v14 = vsel %vm6_vm0, %v8986_v12, %v8985_v11  ;;  %v8987_v15 = vld [vmem:[%s18446_s0 + $0x78f] ss:$16 sm:%s992_s22]   ;;  %s1007_s22 = smov 3  ;;  %v9020_v12 = vld [vmem:[%s18446_s0 + $0x80e] ss:$16 sm:%s1147_s15]   ;;  %s1410_s15 = smov 192 }
  0x54   :  { %v8988_v16 = vld [vmem:[%s18446_s0 + $0x78f] ss:$16 sm:%s997_s23]   ;;  %v995_v17 = vsel %vm10_vm1, %v8987_v15, %v990_v14  ;;  %s1056_s23 = smov 12  ;;  %v9021_v13 = vld [vmem:[%s18446_s0 + $0x80e] ss:$16 sm:%s1152_s16]   ;;  %s1305_s16 = smov 3 }
  0x55   :  { %v8980_v18 = vld [vmem:[%s18446_s0 + $0x58f] ss:$16 sm:%s961_s26]   ;;  %v1000_v19 = vsel %vm14_vm2, %v8988_v16, %v995_v17  ;;  %v9001_v48 = vld [vmem:[%s18446_s0 + $0xe] ss:$16 sm:%s1056_s23]   ;;  %s1267_s26 = smov 48  ;;  %s1318_s23 = smov 192 }
  0x56   :  { %v8981_v20 = vld [vmem:[%s18446_s0 + $0x58f] ss:$16 sm:%s964_s2]   ;;  %1001 = vrot.lane.b32.xlu1 %v1000_v19, %s10681_s6  ;;  %s1121_s2 = smov 3 }
  0x57   :  { %v8982_v21 = vld [vmem:[%s18446_s0 + $0x58f] ss:$16 sm:%s969_s3]   ;;  %v967_v22 = vsel %vm6_vm0, %v8981_v20, %v8980_v18  ;;  %s1124_s3 = smov 12  ;;  %v9014_v53 = vld [vmem:[%s18446_s0 + $0x60e] ss:$16 sm:%s1121_s2]   ;;  %s1290_s2 = smov 48 }
  0x58   :  { %v8983_v23 = vld [vmem:[%s18446_s0 + $0x58f] ss:$16 sm:%s974_s9]   ;;  %v972_v24 = vsel %vm10_vm1, %v8982_v21, %v967_v22  ;;  %s1078_s9 = smov 12  ;;  %v9015_v54 = vld [vmem:[%s18446_s0 + $0x60e] ss:$16 sm:%s1124_s3]   ;;  %s1341_s3 = smov 192 }
  0x59   :  { %v8995_v25 = vld [vmem:[%s18446_s0 + $0xb8f] ss:$16 sm:%s1030_s12]   ;;  %v977_v27 = vsel %vm14_vm2, %v8983_v23, %v972_v24  ;;  %v9005_v40 = vld [vmem:[%s18446_s0 + $0x20e] ss:$16 sm:%s1078_s9]   ;;  %s1129_s9 = smov 48  ;;  %v1127_v56 = vsel %vm6_vm0, %v9015_v54, %v9014_v53  ;;  %s1198_s12 = smov 48 }
  0x5a   :  { %v8996_v26 = vld [vmem:[%s18446_s0 + $0xb8f] ss:$16 sm:%s1033_s13]   ;;  %978 = vrot.lane.b32.xlu0 %v977_v27, %s10681_s6  ;;  %v1081_v42 = vsel %vm6_vm0, %v9005_v40, %v9004_v39  ;;  %s1249_s13 = smov 192 }
  0x5b   :  { %v1036_v28 = vsel %vm6_vm0, %v8996_v26, %v8995_v25  ;;  %v8997_v29 = vld [vmem:[%s18446_s0 + $0xb8f] ss:$16 sm:%s1038_s18]   ;;  %s1053_s18 = smov 3  ;;  %v1086_v45 = vsel %vm10_vm1, %v9006_v43, %v1081_v42  ;;  %v9016_v57 = vld [vmem:[%s18446_s0 + $0x60e] ss:$16 sm:%s1129_s9]   ;;  %s1144_s9 = smov 3 }
  0x5c   :  { %v8998_v30 = vld [vmem:[%s18446_s0 + $0xb8f] ss:$16 sm:%s1043_s19]   ;;  %v1041_v31 = vsel %vm10_vm1, %v8997_v29, %v1036_v28  ;;  %v9000_v46 = vld [vmem:[%s18446_s0 + $0xe] ss:$16 sm:%s1053_s18]   ;;  %v1091_v47 = vsel %vm14_vm2, %v9007_v44, %v1086_v45  ;;  %s1101_s19 = smov 12  ;;  %v1132_v59 = vsel %vm10_vm1, %v9016_v57, %v1127_v56  ;;  %s1359_s18 = smov 48 }
  0x5d   :  { %v8990_v32 = vld [vmem:[%s18446_s0 + $0x98f] ss:$16 sm:%s1007_s22]   ;;  %v1046_v33 = vsel %vm14_vm2, %v8998_v30, %v1041_v31  ;;  %v1059_v50 = vsel %vm6_vm0, %v9001_v48, %v9000_v46  ;;  %v1137_v61 = vsel %vm14_vm2, %v9017_v58, %v1132_v59  ;;  %v9010_v62 = vld [vmem:[%s18446_s0 + $0x40e] ss:$16 sm:%s1101_s19]   ;;  %s1313_s22 = smov 48  ;;  %s1364_s19 = smov 192 }
  0x5e   :  { %v8991_v34 = vld [vmem:[%s18446_s0 + $0x98f] ss:$16 sm:%s1010_s27]   ;;  %1047 = vrot.lane.b32.xlu1 %v1046_v33, %s10681_s6  ;;  %v1064_v52 = vsel %vm10_vm1, %v9002_v49, %v1059_v50  ;;  %v1104_v0 = vsel %vm6_vm0, %v9010_v62, %v9009_v60  ;;  %s1272_s27 = smov 192 }
  0x5f   :  { %v8992_v35 = vld [vmem:[%s18446_s0 + $0x98f] ss:$16 sm:%s1015_s28]   ;;  %v1013_v36 = vsel %vm6_vm0, %v8991_v34, %v8990_v32  ;;  %v1069_v55 = vsel %vm14_vm2, %v9003_v51, %v1064_v52  ;;  %s1167_s28 = smov 3  ;;  %v1109_v2 = vsel %vm10_vm1, %v9011_v63, %v1104_v0  ;;  %v9019_v10 = vld [vmem:[%s18446_s0 + $0x80e] ss:$16 sm:%s1144_s9]   ;;  %s1451_s9 = smov 48 }
  0x60   :  { %v8993_v37 = vld [vmem:[%s18446_s0 + $0x98f] ss:$16 sm:%s1020_s4]   ;;  %v1018_v38 = vsel %vm10_vm1, %v8992_v35, %v1013_v36  ;;  %s1175_s4 = smov 48  ;;  %v9024_v3 = vld [vmem:[%s18446_s0 + $0xa0e] ss:$16 sm:%s1167_s28]   ;;  %v1114_v5 = vsel %vm14_vm2, %v9012_v1, %v1109_v2  ;;  %v1150_v14 = vsel %vm6_vm0, %v9020_v12, %v9019_v10  ;;  %s1336_s28 = smov 48 }
  0x61   :  { %v1023_v41 = vsel %vm14_vm2, %v8993_v37, %v1018_v38  ;;  %v1173_v6 = vsel %vm6_vm0, %v9025_v4, %v9024_v3  ;;  %v9026_v7 = vld [vmem:[%s18446_s0 + $0xa0e] ss:$16 sm:%s1175_s4]   ;;  %s1190_s4 = smov 3  ;;  %v1155_v16 = vsel %vm10_vm1, %v9021_v13, %v1150_v14 }
  0x62   :  { %1024 = vrot.lane.b32.xlu0 %v1023_v41, %s10681_s6  ;;  %1092 = vrot.lane.b32.xlu1 %v1091_v47, %s10682_s11  ;;  %v1178_v9 = vsel %vm10_vm1, %v9026_v7, %v1173_v6  ;;  %s1221_s6 = smov 48  ;;  %v9022_v15 = vld [vmem:[%s18446_s0 + $0x80e] ss:$16 sm:%s1157_s21]   ;;  %s1262_s21 = smov 12 }
  0x63   :  { %v1183_v11 = vsel %vm14_vm2, %v9027_v8, %v1178_v9  ;;  %v9034_v17 = vld [vmem:[%s18446_s0 + $0x28e] ss:$16 sm:%s1213_s24]   ;;  %v1160_v19 = vsel %vm14_vm2, %v9022_v15, %v1155_v16  ;;  %s1382_s24 = smov 48 }
  0x64   :  { %v9035_v18 = vld [vmem:[%s18446_s0 + $0x28e] ss:$16 sm:%s1216_s25]   ;;  %s1433_s25 = smov 192 }
  0x65   :  { %v1219_v20 = vsel %vm6_vm0, %v9035_v18, %v9034_v17  ;;  %v9036_v21 = vld [vmem:[%s18446_s0 + $0x28e] ss:$16 sm:%s1221_s6]   ;;  %s1236_s6 = smov 3 }
  0x66   :  { %1070 = vrot.lane.b32.xlu0 %v1069_v55, %s10682_s11  ;;  %1138 = vrot.lane.b32.xlu1 %v1137_v61, %s10682_s11  ;;  %v9037_v22 = vld [vmem:[%s18446_s0 + $0x28e] ss:$16 sm:%s1226_s30]   ;;  %v1224_v23 = vsel %vm10_vm1, %v9036_v21, %v1219_v20  ;;  %s1285_s30 = smov 12 }
  0x67   :  { %v9029_v24 = vld [vmem:[%s18446_s0 + $0x8e] ss:$16 sm:%s1190_s4]   ;;  %v1229_v25 = vsel %vm14_vm2, %v9037_v22, %v1224_v23  ;;  %s1497_s4 = smov 48 }
  0x68   :  { %v9030_v26 = vld [vmem:[%s18446_s0 + $0x8e] ss:$16 sm:%s1193_s10]   ;;  %s1456_s10 = smov 192 }
  0x69   :  { %v9031_v27 = vld [vmem:[%s18446_s0 + $0x8e] ss:$16 sm:%s1198_s12]   ;;  %v1196_v28 = vsel %vm6_vm0, %v9030_v26, %v9029_v24  ;;  %s1351_s12 = smov 3 }
  0x6a   :  { %1115 = vrot.lane.b32.xlu0 %v1114_v5, %s10682_s11  ;;  %1184 = vrot.lane.b32.xlu1 %v1183_v11, %s10682_s11  ;;  %v9032_v29 = vld [vmem:[%s18446_s0 + $0x8e] ss:$16 sm:%s1203_s17]   ;;  %v1201_v30 = vsel %vm10_vm1, %v9031_v27, %v1196_v28  ;;  %s1308_s17 = smov 12 }
  0x6b   :  { %v9044_v31 = vld [vmem:[%s18446_s0 + $0x68e] ss:$16 sm:%s1259_s20]   ;;  %v1206_v33 = vsel %vm14_vm2, %v9032_v29, %v1201_v30  ;;  %s1428_s20 = smov 48 }
  0x6c   :  { %v9045_v32 = vld [vmem:[%s18446_s0 + $0x68e] ss:$16 sm:%s1262_s21]   ;;  %s1479_s21 = smov 192 }
  0x6d   :  { %v1265_v34 = vsel %vm6_vm0, %v9045_v32, %v9044_v31  ;;  %v9046_v35 = vld [vmem:[%s18446_s0 + $0x68e] ss:$16 sm:%s1267_s26]   ;;  %s1282_s26 = smov 3 }
  0x6e   :  { %1161 = vrot.lane.b32.xlu0 %v1160_v19, %s10682_s11  ;;  %1230 = vrot.lane.b32.xlu1 %v1229_v25, %s10682_s11  ;;  %v9047_v36 = vld [vmem:[%s18446_s0 + $0x68e] ss:$16 sm:%s1272_s27]   ;;  %v1270_v37 = vsel %vm10_vm1, %v9046_v35, %v1265_v34  ;;  %s1331_s27 = smov 12 }
  0x6f   :  { %v9039_v38 = vld [vmem:[%s18446_s0 + $0x48e] ss:$16 sm:%s1236_s6]   ;;  %v1275_v39 = vsel %vm14_vm2, %v9047_v36, %v1270_v37  ;;  %s1543_s6 = smov 48 }
  0x70   :  { %v9040_v40 = vld [vmem:[%s18446_s0 + $0x48e] ss:$16 sm:%s1239_s5]   ;;  %s1502_s5 = smov 192 }
  0x71   :  { %v9041_v41 = vld [vmem:[%s18446_s0 + $0x48e] ss:$16 sm:%s1244_s7]   ;;  %v1242_v42 = vsel %vm6_vm0, %v9040_v40, %v9039_v38  ;;  %s1397_s7 = smov 3 }
  0x72   :  { %1207 = vrot.lane.b32.xlu0 %v1206_v33, %s10682_s11  ;;  %1276 = vrot.lane.b32.xlu1 %v1275_v39, %s10682_s11  ;;  %v9042_v43 = vld [vmem:[%s18446_s0 + $0x48e] ss:$16 sm:%s1249_s13]   ;;  %v1247_v44 = vsel %vm10_vm1, %v9041_v41, %v1242_v42  ;;  %s1354_s13 = smov 12 }
  0x73   :  { %v9054_v45 = vld [vmem:[%s18446_s0 + $0xa8e] ss:$16 sm:%s1305_s16]   ;;  %v1252_v47 = vsel %vm14_vm2, %v9042_v43, %v1247_v44  ;;  %s1474_s16 = smov 48 }
  0x74   :  { %v9055_v46 = vld [vmem:[%s18446_s0 + $0xa8e] ss:$16 sm:%s1308_s17]   ;;  %s1525_s17 = smov 192 }
  0x75   :  { %v1311_v48 = vsel %vm6_vm0, %v9055_v46, %v9054_v45  ;;  %v9056_v49 = vld [vmem:[%s18446_s0 + $0xa8e] ss:$16 sm:%s1313_s22]   ;;  %s1328_s22 = smov 3 }
  0x76   :  { %v9057_v50 = vld [vmem:[%s18446_s0 + $0xa8e] ss:$16 sm:%s1318_s23]   ;;  %1253 = vrot.lane.b32.xlu0 %v1252_v47, %s10682_s11  ;;  %v1316_v51 = vsel %vm10_vm1, %v9056_v49, %v1311_v48  ;;  %s1377_s23 = smov 12 }
  0x77   :  { %v9049_v52 = vld [vmem:[%s18446_s0 + $0x88e] ss:$16 sm:%s1282_s26]   ;;  %v1321_v53 = vsel %vm14_vm2, %v9057_v50, %v1316_v51  ;;  %s1589_s26 = smov 48 }
  0x78   :  { %v9050_v54 = vld [vmem:[%s18446_s0 + $0x88e] ss:$16 sm:%s1285_s30]   ;;  %1322 = vrot.lane.b32.xlu1 %v1321_v53, %s10682_s11  ;;  %s1548_s30 = smov 192 }
  0x79   :  { %v9051_v55 = vld [vmem:[%s18446_s0 + $0x88e] ss:$16 sm:%s1290_s2]   ;;  %v1288_v56 = vsel %vm6_vm0, %v9050_v54, %v9049_v52  ;;  %s1443_s2 = smov 3 }
  0x7a   :  { %v9052_v57 = vld [vmem:[%s18446_s0 + $0x88e] ss:$16 sm:%s1295_s8]   ;;  %v1293_v58 = vsel %vm10_vm1, %v9051_v55, %v1288_v56  ;;  %s1400_s8 = smov 12 }
  0x7b   :  { %v9064_v59 = vld [vmem:[%s18446_s0 + $0x30e] ss:$16 sm:%s1351_s12]   ;;  %v1298_v61 = vsel %vm14_vm2, %v9052_v57, %v1293_v58  ;;  %s1520_s12 = smov 48 }
  0x7c   :  { %v9065_v60 = vld [vmem:[%s18446_s0 + $0x30e] ss:$16 sm:%s1354_s13]   ;;  %1299 = vrot.lane.b32.xlu0 %v1298_v61, %s10682_s11  ;;  %s1571_s13 = smov 192 }
  0x7d   :  { %v1357_v62 = vsel %vm6_vm0, %v9065_v60, %v9064_v59  ;;  %v9066_v63 = vld [vmem:[%s18446_s0 + $0x30e] ss:$16 sm:%s1359_s18]   ;;  %s1374_s18 = smov 3 }
  0x7e   :  { %v9067_v0 = vld [vmem:[%s18446_s0 + $0x30e] ss:$16 sm:%s1364_s19]   ;;  %v1362_v1 = vsel %vm10_vm1, %v9066_v63, %v1357_v62  ;;  %s1423_s19 = smov 12 }
  0x7f   :  { %v9059_v2 = vld [vmem:[%s18446_s0 + $0x10e] ss:$16 sm:%s1328_s22]   ;;  %v1367_v3 = vsel %vm14_vm2, %v9067_v0, %v1362_v1  ;;  %s1634_s22 = smov 48 }
  0x80   :  { %v9060_v4 = vld [vmem:[%s18446_s0 + $0x10e] ss:$16 sm:%s1331_s27]   ;;  %1368 = vrot.lane.b32.xlu1 %v1367_v3, %s10682_s11  ;;  %s1594_s27 = smov 192 }
  0x81   :  { %v9061_v5 = vld [vmem:[%s18446_s0 + $0x10e] ss:$16 sm:%s1336_s28]   ;;  %v1334_v6 = vsel %vm6_vm0, %v9060_v4, %v9059_v2  ;;  %s1489_s28 = smov 3 }
  0x82   :  { %v9062_v7 = vld [vmem:[%s18446_s0 + $0x10e] ss:$16 sm:%s1341_s3]   ;;  %v1339_v8 = vsel %vm10_vm1, %v9061_v5, %v1334_v6  ;;  %s1446_s3 = smov 12 }
  0x83   :  { %v9074_v9 = vld [vmem:[%s18446_s0 + $0x70e] ss:$16 sm:%s1397_s7]   ;;  %v1344_v11 = vsel %vm14_vm2, %v9062_v7, %v1339_v8  ;;  %s1566_s7 = smov 48 }
  0x84   :  { %v9075_v10 = vld [vmem:[%s18446_s0 + $0x70e] ss:$16 sm:%s1400_s8]   ;;  %1345 = vrot.lane.b32.xlu0 %v1344_v11, %s10682_s11  ;;  %s1617_s8 = smov 192 }
  0x85   :  { %v1403_v12 = vsel %vm6_vm0, %v9075_v10, %v9074_v9  ;;  %v9076_v13 = vld [vmem:[%s18446_s0 + $0x70e] ss:$16 sm:%s1405_s14]   ;;  %s1420_s14 = smov 3 }
  0x86   :  { %v9077_v14 = vld [vmem:[%s18446_s0 + $0x70e] ss:$16 sm:%s1410_s15]   ;;  %v1408_v15 = vsel %vm10_vm1, %v9076_v13, %v1403_v12  ;;  %s1469_s15 = smov 12 }
  0x87   :  { %v9069_v16 = vld [vmem:[%s18446_s0 + $0x50e] ss:$16 sm:%s1374_s18]   ;;  %v1413_v17 = vsel %vm14_vm2, %v9077_v14, %v1408_v15  ;;  %v11471_v14 = vpop.permute.xlu1 %564   ;;  %s1685_s18 = smov 192 }
  0x88   :  { %v9070_v18 = vld [vmem:[%s18446_s0 + $0x50e] ss:$16 sm:%s1377_s23]   ;;  %1414 = vrot.lane.b32.xlu1 %v1413_v17, %s10682_s11  ;;  %s1639_s23 = smov 192 }
  0x89   :  { %v9071_v19 = vld [vmem:[%s18446_s0 + $0x50e] ss:$16 sm:%s1382_s24]   ;;  %v1380_v20 = vsel %vm6_vm0, %v9070_v18, %v9069_v16  ;;  %s1535_s24 = smov 3 }
  0x8a   :  { %v9072_v21 = vld [vmem:[%s18446_s0 + $0x50e] ss:$16 sm:%s1387_s29]   ;;  %v1385_v22 = vsel %vm10_vm1, %v9071_v19, %v1380_v20  ;;  %s1492_s29 = smov 12  ;;  %v9125_v20 = vld [vmem:[%s18446_s0 + $0x20d] ss:$16 sm:%s1634_s22]   ;;  %s1649_s22 = smov 3 }
  0x8b   :  { %v9084_v23 = vld [vmem:[%s18446_s0 + $0xb0e] ss:$16 sm:%s1443_s2]   ;;  %v1390_v25 = vsel %vm14_vm2, %v9072_v21, %v1385_v22  ;;  %s1612_s2 = smov 48  ;;  %v9126_v21 = vld [vmem:[%s18446_s0 + $0x20d] ss:$16 sm:%s1639_s23]   ;;  %v11488_v22 = vpop.permute.xlu0 %519   ;;  %s1698_s23 = smov 12 }
  0x8c   :  { %v9085_v24 = vld [vmem:[%s18446_s0 + $0xb0e] ss:$16 sm:%s1446_s3]   ;;  %1391 = vrot.lane.b32.xlu0 %v1390_v25, %s10682_s11  ;;  %s1662_s3 = smov 192 }
  0x8d   :  { %v1449_v26 = vsel %vm6_vm0, %v9085_v24, %v9084_v23  ;;  %v9086_v27 = vld [vmem:[%s18446_s0 + $0xb0e] ss:$16 sm:%s1451_s9]   ;;  %s1466_s9 = smov 3 }
  0x8e   :  { %v9087_v28 = vld [vmem:[%s18446_s0 + $0xb0e] ss:$16 sm:%s1456_s10]   ;;  %v1454_v29 = vsel %vm10_vm1, %v9086_v27, %v1449_v26  ;;  %s1515_s10 = smov 12  ;;  %v9121_v27 = vld [vmem:[%s18446_s0 + $0xd] ss:$16 sm:%s1612_s2]   ;;  %s1764_s2 = smov 3 }
  0x8f   :  { %v9079_v30 = vld [vmem:[%s18446_s0 + $0x90e] ss:$16 sm:%s1420_s14]   ;;  %v1459_v31 = vsel %vm14_vm2, %v9087_v28, %v1454_v29  ;;  %v11502_v28 = vpop.permute.xlu1 %587   ;;  %s1731_s14 = smov 192 }
  0x90   :  { %v9080_v32 = vld [vmem:[%s18446_s0 + $0x90e] ss:$16 sm:%s1423_s19]   ;;  %1460 = vrot.lane.b32.xlu1 %v1459_v31, %s10682_s11  ;;  %s10683_s19 = smov 52  }
  0x91   :  { %v9081_v33 = vld [vmem:[%s18446_s0 + $0x90e] ss:$16 sm:%s1428_s20]   ;;  %v1426_v34 = vsel %vm6_vm0, %v9080_v32, %v9079_v30  ;;  %s1581_s20 = smov 3  ;;  %v9122_v30 = vld [vmem:[%s18446_s0 + $0xd] ss:$16 sm:%s1617_s8]   ;;  %s1721_s8 = smov 12 }
  0x92   :  { %v9082_v35 = vld [vmem:[%s18446_s0 + $0x90e] ss:$16 sm:%s1433_s25]   ;;  %v1431_v36 = vsel %vm10_vm1, %v9081_v33, %v1426_v34  ;;  %s1538_s25 = smov 12 }
  0x93   :  { %v9094_v37 = vld [vmem:[%s18446_s0 + $0x38e] ss:$16 sm:%s1489_s28]   ;;  %v1436_v39 = vsel %vm14_vm2, %v9082_v35, %v1431_v36  ;;  %s1657_s28 = smov 48 }
  0x94   :  { %v9095_v38 = vld [vmem:[%s18446_s0 + $0x38e] ss:$16 sm:%s1492_s29]   ;;  %1437 = vrot.lane.b32.xlu0 %v1436_v39, %s10682_s11  ;;  %s1708_s29 = smov 192 }
  0x95   :  { %v1495_v40 = vsel %vm6_vm0, %v9095_v38, %v9094_v37  ;;  %v9096_v41 = vld [vmem:[%s18446_s0 + $0x38e] ss:$16 sm:%s1497_s4]   ;;  %s1512_s4 = smov 3  ;;  %v9136_v37 = vld [vmem:[%s18446_s0 + $0x60d] ss:$16 sm:%s1685_s18]   ;;  %v11524_v38 = vpop.permute.xlu0 %541   ;;  %s1744_s18 = smov 12 }
  0x96   :  { %v9097_v42 = vld [vmem:[%s18446_s0 + $0x38e] ss:$16 sm:%s1502_s5]   ;;  %v1500_v43 = vsel %vm10_vm1, %v9096_v41, %v1495_v40  ;;  %s1561_s5 = smov 12  ;;  %v9128_v40 = vld [vmem:[%s18446_s0 + $0x40d] ss:$16 sm:%s1649_s22]   ;;  %s1864_s22 = smov 48 }
  0x97   :  { %v9089_v44 = vld [vmem:[%s18446_s0 + $0x18e] ss:$16 sm:%s1466_s9]   ;;  %v1505_v45 = vsel %vm14_vm2, %v9097_v42, %v1500_v43  ;;  %v9130_v43 = vld [vmem:[%s18446_s0 + $0x40d] ss:$16 sm:%s1657_s28]   ;;  %s1777_s9 = smov 192  ;;  %s1810_s28 = smov 3 }
  0x98   :  { %v9090_v46 = vld [vmem:[%s18446_s0 + $0x18e] ss:$16 sm:%s1469_s15]   ;;  %1506 = vrot.lane.b32.xlu1 %v1505_v45, %s10682_s11  ;;  %s1795_s15 = smov 48 }
  0x99   :  { %v9091_v47 = vld [vmem:[%s18446_s0 + $0x18e] ss:$16 sm:%s1474_s16]   ;;  %v1472_v48 = vsel %vm6_vm0, %v9090_v46, %v9089_v44  ;;  %s1626_s16 = smov 3  ;;  %v11538_v44 = vpop.permute.xlu1 %633   ;;  %v9131_v46 = vld [vmem:[%s18446_s0 + $0x40d] ss:$16 sm:%s1662_s3]   ;;  %s1767_s3 = smov 12 }
  0x9a   :  { %v9092_v49 = vld [vmem:[%s18446_s0 + $0x18e] ss:$16 sm:%s1479_s21]   ;;  %v1477_v50 = vsel %vm10_vm1, %v9091_v47, %v1472_v48  ;;  %s1584_s21 = smov 12  ;;  %v9123_v16 = vld [vmem:[%s18446_s0 + $0x20d] ss:$16 sm:%s1626_s16]   ;;  %s12_s16 = smov 192 }
  0x9b   :  { %v9104_v51 = vld [vmem:[%s18446_s0 + $0x78e] ss:$16 sm:%s1535_s24]   ;;  %v1482_v53 = vsel %vm14_vm2, %v9092_v49, %v1477_v50  ;;  %v9144_v49 = vld [vmem:[%s18446_s0 + $0xa0d] ss:$16 sm:%s1721_s8]   ;;  %s1703_s24 = smov 48  ;;  %s452_s8 = smov 192 }
  0x9c   :  { %v9105_v52 = vld [vmem:[%s18446_s0 + $0x78e] ss:$16 sm:%s1538_s25]   ;;  %1483 = vrot.lane.b32.xlu0 %v1482_v53, %s10682_s11  ;;  %s1754_s25 = smov 192 }
  0x9d   :  { %v1541_v54 = vsel %vm6_vm0, %v9105_v52, %v9104_v51  ;;  %v9106_v55 = vld [vmem:[%s18446_s0 + $0x78e] ss:$16 sm:%s1543_s6]   ;;  %s1558_s6 = smov 3  ;;  %v9146_v53 = vld [vmem:[%s18446_s0 + $0xa0d] ss:$16 sm:%s1731_s14]   ;;  %s1790_s14 = smov 12 }
  0x9e   :  { %v9107_v56 = vld [vmem:[%s18446_s0 + $0x78e] ss:$16 sm:%s1548_s30]   ;;  %v1546_v57 = vsel %vm10_vm1, %v9106_v55, %v1541_v54  ;;  %s1607_s30 = smov 12  ;;  %v11560_v54 = vpop.permute.xlu0 %610  }
  0x9f   :  { %v9099_v58 = vld [vmem:[%s18446_s0 + $0x58e] ss:$16 sm:%s1512_s4]   ;;  %v1551_v59 = vsel %vm14_vm2, %v9107_v56, %v1546_v57  ;;  %v9120_v26 = vld [vmem:[%s18446_s0 + $0xd] ss:$16 sm:%s1607_s30]   ;;  %s1818_s4 = smov 48  ;;  %s179_s30 = smov 192 }
  0xa0   :  { %v9100_v60 = vld [vmem:[%s18446_s0 + $0x58e] ss:$16 sm:%s1515_s10]   ;;  %1552 = vrot.lane.b32.xlu1 %v1551_v59, %s10682_s11  ;;  %s1672_s10 = smov 3 }
  0xa1   :  { %v9101_v61 = vld [vmem:[%s18446_s0 + $0x58e] ss:$16 sm:%s1520_s12]   ;;  %v1518_v62 = vsel %vm6_vm0, %v9100_v60, %v9099_v58  ;;  %s1675_s12 = smov 12  ;;  %v9133_v32 = vld [vmem:[%s18446_s0 + $0x60d] ss:$16 sm:%s1672_s10]   ;;  %v11574_v60 = vpop.permute.xlu1 %679   ;;  %s8_s10 = smov 48 }
  0xa2   :  { %v9102_v63 = vld [vmem:[%s18446_s0 + $0x58e] ss:$16 sm:%s1525_s17]   ;;  %v1523_v0 = vsel %vm10_vm1, %v9101_v61, %v1518_v62  ;;  %s1629_s17 = smov 12  ;;  %v9134_v33 = vld [vmem:[%s18446_s0 + $0x60d] ss:$16 sm:%s1675_s12]   ;;  %s190_s12 = smov 12 }
  0xa3   :  { %v9114_v1 = vld [vmem:[%s18446_s0 + $0xb8e] ss:$16 sm:%s1581_s20]   ;;  %v1528_v3 = vsel %vm14_vm2, %v9102_v63, %v1523_v0  ;;  %v9124_v17 = vld [vmem:[%s18446_s0 + $0x20d] ss:$16 sm:%s1629_s17]   ;;  %s1680_s17 = smov 48  ;;  %v1678_v35 = vsel %vm6_vm0, %v9134_v33, %v9133_v32  ;;  %s1749_s20 = smov 48 }
  0xa4   :  { %v9115_v2 = vld [vmem:[%s18446_s0 + $0xb8e] ss:$16 sm:%s1584_s21]   ;;  %1529 = vrot.lane.b32.xlu0 %v1528_v3, %s10682_s11  ;;  %v1632_v19 = vsel %vm6_vm0, %v9124_v17, %v9123_v16  ;;  %s1800_s21 = smov 192 }
  0xa5   :  { %v1587_v4 = vsel %vm6_vm0, %v9115_v2, %v9114_v1  ;;  %v9116_v5 = vld [vmem:[%s18446_s0 + $0xb8e] ss:$16 sm:%s1589_s26]   ;;  %s1604_s26 = smov 3  ;;  %v1637_v23 = vsel %vm10_vm1, %v9125_v20, %v1632_v19  ;;  %v9135_v36 = vld [vmem:[%s18446_s0 + $0x60d] ss:$16 sm:%s1680_s17]   ;;  %s1695_s17 = smov 3 }
  0xa6   :  { %v9117_v6 = vld [vmem:[%s18446_s0 + $0xb8e] ss:$16 sm:%s1594_s27]   ;;  %v1592_v7 = vsel %vm10_vm1, %v9116_v5, %v1587_v4  ;;  %v9119_v24 = vld [vmem:[%s18446_s0 + $0xd] ss:$16 sm:%s1604_s26]   ;;  %v1642_v25 = vsel %vm14_vm2, %v9126_v21, %v1637_v23  ;;  %s1652_s27 = smov 12  ;;  %v1683_v39 = vsel %vm10_vm1, %v9135_v36, %v1678_v35  ;;  %s2048_s26 = smov 48 }
  0xa7   :  { %v9109_v8 = vld [vmem:[%s18446_s0 + $0x98e] ss:$16 sm:%s1558_s6]   ;;  %v1597_v9 = vsel %vm14_vm2, %v9117_v6, %v1592_v7  ;;  %v1610_v29 = vsel %vm6_vm0, %v9120_v26, %v9119_v24  ;;  %v1688_v41 = vsel %vm14_vm2, %v9136_v37, %v1683_v39  ;;  %v9129_v42 = vld [vmem:[%s18446_s0 + $0x40d] ss:$16 sm:%s1652_s27]   ;;  %v11596_v6 = vpop.permute.xlu0 %656   ;;  %s174_s6 = smov 48  ;;  %s1869_s27 = smov 192 }
  0xa8   :  { %v9110_v10 = vld [vmem:[%s18446_s0 + $0x98e] ss:$16 sm:%s1561_s5]   ;;  %1598 = vrot.lane.b32.xlu1 %v1597_v9, %s10682_s11  ;;  %v1615_v31 = vsel %vm10_vm1, %v9121_v27, %v1610_v29  ;;  %v1655_v45 = vsel %vm6_vm0, %v9129_v42, %v9128_v40  ;;  %s1823_s5 = smov 192 }
  0xa9   :  { %v9111_v11 = vld [vmem:[%s18446_s0 + $0x98e] ss:$16 sm:%s1566_s7]   ;;  %v1564_v12 = vsel %vm6_vm0, %v9110_v10, %v9109_v8  ;;  %v1620_v34 = vsel %vm14_vm2, %v9122_v30, %v1615_v31  ;;  %s1718_s7 = smov 3  ;;  %v1660_v47 = vsel %vm10_vm1, %v9130_v43, %v1655_v45  ;;  %v9138_v56 = vld [vmem:[%s18446_s0 + $0x80d] ss:$16 sm:%s1695_s17]   ;;  %s1856_s17 = smov 3 }
  0xaa   :  { %v9112_v13 = vld [vmem:[%s18446_s0 + $0x98e] ss:$16 sm:%s1571_s13]   ;;  %v1569_v15 = vsel %vm10_vm1, %v9111_v11, %v1564_v12  ;;  %s1726_s13 = smov 48  ;;  %v9143_v48 = vld [vmem:[%s18446_s0 + $0xa0d] ss:$16 sm:%s1718_s7]   ;;  %v1665_v50 = vsel %vm14_vm2, %v9131_v46, %v1660_v47  ;;  %v11610_v12 = vpop.permute.xlu1 %725   ;;  %s1841_s7 = smov 48 }
  0xab   :  { %v1574_v18 = vsel %vm14_vm2, %v9112_v13, %v1569_v15  ;;  %v1724_v51 = vsel %vm6_vm0, %v9144_v49, %v9143_v48  ;;  %v9145_v52 = vld [vmem:[%s18446_s0 + $0xa0d] ss:$16 sm:%s1726_s13]   ;;  %s1741_s13 = smov 3  ;;  %v11632_v24 = vpop.permute.xlu0 %702   ;;  %v8803_v40 = vld [vmem:[%s18446_s0 + $0x400] ss:$16 sm:%s174_s6]   ;;  %s124_s6 = smov 3 }
  0xac   :  { %1575 = vrot.lane.b32.xlu0 %v1574_v18, %s10682_s11  ;;  %1643 = vrot.lane.b32.xlu1 %v1642_v25, %s10683_s19  ;;  %v1729_v55 = vsel %vm10_vm1, %v9145_v52, %v1724_v51  ;;  %v9139_v58 = vld [vmem:[%s18446_s0 + $0x80d] ss:$16 sm:%s1698_s23]   ;;  %s1772_s11 = smov 48  ;;  %s305_s23 = smov 192 }
  0xad   :  { %v1734_v57 = vsel %vm14_vm2, %v9146_v53, %v1729_v55  ;;  %v9140_v59 = vld [vmem:[%s18446_s0 + $0x80d] ss:$16 sm:%s1703_s24]   ;;  %v1701_v61 = vsel %vm6_vm0, %v9139_v58, %v9138_v56  ;;  %s166_s24 = smov 3  ;;  %v9_v48 = vld [vmem:[%s18446_s0] ss:$16 sm:%s8_s10]   ;;  %s90_s10 = smov 48 }
  0xae   :  { %v9141_v62 = vld [vmem:[%s18446_s0 + $0x80d] ss:$16 sm:%s1708_s29]   ;;  %v1706_v63 = vsel %vm10_vm1, %v9140_v59, %v1701_v61  ;;  %s1813_s29 = smov 12  ;;  %v11646_v31 = vpop.permute.xlu1 %771   ;;  %v8801_v35 = vld [vmem:[%s18446_s0 + $0x400] ss:$16 sm:%s166_s24]   ;;  %s40_s24 = smov 3 }
  0xaf   :  { %v9153_v0 = vld [vmem:[%s18446_s0 + $0x28d] ss:$16 sm:%s1764_s2]   ;;  %v1711_v2 = vsel %vm14_vm2, %v9141_v62, %v1706_v63  ;;  %v11668_v42 = vpop.permute.xlu0 %748   ;;  %v13_v51 = vld [vmem:[%s18446_s0] ss:$16 sm:%s12_s16]   ;;  %s95_s16 = smov 192  ;;  %s2017_s2 = smov 3 }
  0xb0   :  { %1621 = vrot.lane.b32.xlu0 %v1620_v34, %s10683_s19  ;;  %1689 = vrot.lane.b32.xlu1 %v1688_v41, %s10683_s19  ;;  %v9154_v1 = vld [vmem:[%s18446_s0 + $0x28d] ss:$16 sm:%s1767_s3]   ;;  %s2163_s3 = smov 48 }
  0xb1   :  { %v1770_v3 = vsel %vm6_vm0, %v9154_v1, %v9153_v0  ;;  %v9155_v4 = vld [vmem:[%s18446_s0 + $0x28d] ss:$16 sm:%s1772_s11]   ;;  %s1787_s11 = smov 3  ;;  %v8804_v41 = vld [vmem:[%s18446_s0 + $0x400] ss:$16 sm:%s179_s30]   ;;  %s2053_s30 = smov 192 }
  0xb2   :  { %v9156_v5 = vld [vmem:[%s18446_s0 + $0x28d] ss:$16 sm:%s1777_s9]   ;;  %v1775_v7 = vsel %vm10_vm1, %v9155_v4, %v1770_v3  ;;  %s4_s9 = smov 12  ;;  %v11682_v49 = vpop.permute.xlu1 %817  }
  0xb3   :  { %v9148_v8 = vld [vmem:[%s18446_s0 + $0x8d] ss:$16 sm:%s1741_s13]   ;;  %v1780_v9 = vsel %vm14_vm2, %v9156_v5, %v1775_v7  ;;  %v5_v47 = vld [vmem:[%s18446_s0] ss:$16 sm:%s4_s9]   ;;  %v11715_v61 = vpop.permute.xlu0 %794   ;;  %s85_s9 = smov 12  ;;  %s195_s13 = smov 48 }
  0xb4   :  { %1666 = vrot.lane.b32.xlu0 %v1665_v50, %s10683_s19  ;;  %1735 = vrot.lane.b32.xlu1 %v1734_v57, %s10683_s19  ;;  %v9149_v10 = vld [vmem:[%s18446_s0 + $0x8d] ss:$16 sm:%s1744_s18]   ;;  %s200_s18 = smov 192 }
  0xb5   :  { %v9150_v11 = vld [vmem:[%s18446_s0 + $0x8d] ss:$16 sm:%s1749_s20]   ;;  %v1747_v13 = vsel %vm6_vm0, %v9149_v10, %v9148_v8  ;;  %s2040_s20 = smov 3 }
  0xb6   :  { %v9151_v15 = vld [vmem:[%s18446_s0 + $0x8d] ss:$16 sm:%s1754_s25]   ;;  %v1752_v16 = vsel %vm10_vm1, %v9150_v11, %v1747_v13  ;;  %s169_s25 = smov 12  ;;  %v11741_v4 = vpop.permute.xlu1 %863  }
  0xb7   :  { %v9163_v17 = vld [vmem:[%s18446_s0 + $0x68d] ss:$16 sm:%s1810_s28]   ;;  %v1757_v19 = vsel %vm14_vm2, %v9151_v15, %v1752_v16  ;;  %v8802_v36 = vld [vmem:[%s18446_s0 + $0x400] ss:$16 sm:%s169_s25]   ;;  %s1833_s28 = smov 3  ;;  %v11761_v16 = vpop.permute.xlu0 %840   ;;  %s2043_s25 = smov 12 }
  0xb8   :  { %1712 = vrot.lane.b32.xlu0 %v1711_v2, %s10683_s19  ;;  %1781 = vrot.lane.b32.xlu1 %v1780_v9, %s10683_s19  ;;  %v9164_v18 = vld [vmem:[%s18446_s0 + $0x68d] ss:$16 sm:%s1813_s29]   ;;  %v172_v39 = vsel %vm6_vm0, %v8802_v36, %v8801_v35  ;;  %s263_s29 = smov 192 }
  0xb9   :  { %v1816_v20 = vsel %vm6_vm0, %v9164_v18, %v9163_v17  ;;  %v9165_v21 = vld [vmem:[%s18446_s0 + $0x68d] ss:$16 sm:%s1818_s4]   ;;  %s2_s4 = smov 3  ;;  %v177_v43 = vsel %vm10_vm1, %v8803_v40, %v172_v39  ;;  %v8824_v11 = vld [vmem:[%s18446_s0 + $0x600] ss:$16 sm:%s263_s29]   ;;  %s431_s29 = smov 192 }
  0xba   :  { %v9166_v23 = vld [vmem:[%s18446_s0 + $0x68d] ss:$16 sm:%s1823_s5]   ;;  %v1821_v25 = vsel %vm10_vm1, %v9165_v21, %v1816_v20  ;;  %v3_v45 = vld [vmem:[%s18446_s0] ss:$16 sm:%s2_s4]   ;;  %v182_v46 = vsel %vm14_vm2, %v8804_v41, %v177_v43  ;;  %s1836_s5 = smov 12  ;;  %s2246_s4 = smov 3 }
  0xbb   :  { %v9158_v26 = vld [vmem:[%s18446_s0 + $0x48d] ss:$16 sm:%s1787_s11]   ;;  %v1826_v27 = vsel %vm14_vm2, %v9166_v23, %v1821_v25  ;;  %8805 = vst.msk [vmem:[%s18447_s1 + $0x40] sm:$0xff] %vm16_vm3, %v182_v46   ;;  %v7_v50 = vsel %vm6_vm0, %v5_v47, %v3_v45  ;;  %v11781_v25 = vpop.permute.xlu1 %909   ;;  %s187_s11 = smov 3 }
  0xbc   :  { %1758 = vrot.lane.b32.xlu0 %v1757_v19, %s10683_s19  ;;  %v9159_v29 = vld [vmem:[%s18446_s0 + $0x48d] ss:$16 sm:%s1790_s14]   ;;  %1827 = vrot.lane.b32.xlu1 %v1826_v27, %s10683_s19  ;;  %s1846_s14 = smov 192 }
  0xbd   :  { %v9160_v30 = vld [vmem:[%s18446_s0 + $0x48d] ss:$16 sm:%s1795_s15]   ;;  %v1793_v32 = vsel %vm6_vm0, %v9159_v29, %v9158_v26  ;;  %8894 = vst.msk [vmem:[%s18447_s1 + $0x40] sm:$0xff] %vm521_vm4, %v11471_v14   ;;  %v11_v14 = vsel %vm10_vm1, %v9_v48, %v7_v50  ;;  %s250_s15 = smov 3 }
  0xbe   :  { %v9161_v33 = vld [vmem:[%s18446_s0 + $0x48d] ss:$16 sm:%s1800_s21]   ;;  %v1798_v34 = vsel %vm10_vm1, %v9160_v30, %v1793_v32  ;;  %s1859_s21 = smov 12  ;;  %v15_v56 = vsel %vm14_vm2, %v13_v51, %v11_v14  ;;  %v8821_v3 = vld [vmem:[%s18446_s0 + $0x600] ss:$16 sm:%s250_s15]   ;;  %s418_s15 = smov 3 }
  0xbf   :  { %v1803_v37 = vsel %vm14_vm2, %v9161_v33, %v1798_v34  ;;  %v9173_v52 = vld [vmem:[%s18446_s0 + $0xa8d] ss:$16 sm:%s1856_s17]   ;;  %17 = vst.msk [vmem:[%s18447_s1] sm:$0xff] %vm16_vm3, %v15_v56   ;;  %s1902_s17 = smov 3 }
  0xc0   :  { %1804 = vrot.lane.b32.xlu0 %v1803_v37, %s10683_s19  ;;  %v9174_v53 = vld [vmem:[%s18446_s0 + $0xa8d] ss:$16 sm:%s1859_s21]   ;;  %s253_s21 = smov 12  ;;  %522 = vst.msk [vmem:[%s18447_s1] sm:$0xff] %vm521_vm4, %v11488_v22   ;;  %v11814_v37 = vpop.permute.xlu0 %886   ;;  %v11834_v46 = vpop.permute.xlu1 %955  }
  0xc1   :  { %v9175_v55 = vld [vmem:[%s18446_s0 + $0xa8d] ss:$16 sm:%s1864_s22]   ;;  %v1862_v57 = vsel %vm6_vm0, %v9174_v53, %v9173_v52  ;;  %v8822_v7 = vld [vmem:[%s18446_s0 + $0x600] ss:$16 sm:%s253_s21]   ;;  %s1905_s21 = smov 12  ;;  %s1910_s22 = smov 48 }
  0xc2   :  { %v9176_v58 = vld [vmem:[%s18446_s0 + $0xa8d] ss:$16 sm:%s1869_s27]   ;;  %v1867_v62 = vsel %vm10_vm1, %v9175_v55, %v1862_v57  ;;  %v256_v9 = vsel %vm6_vm0, %v8822_v7, %v8821_v3  ;;  %v8782_v18 = vld [vmem:[%s18446_s0 + $0x200] ss:$16 sm:%s85_s9]   ;;  %s1915_s27 = smov 192  ;;  %s337_s9 = smov 12 }
  0xc3   :  { %v9168_v59 = vld [vmem:[%s18446_s0 + $0x88d] ss:$16 sm:%s1833_s28]   ;;  %s258_s28 = smov 48  ;;  %v1872_v22 = vsel %vm14_vm2, %v9176_v58, %v1867_v62  ;;  %v8783_v19 = vld [vmem:[%s18446_s0 + $0x200] ss:$16 sm:%s90_s10]   ;;  %s342_s10 = smov 48 }
  0xc4   :  { %v9169_v63 = vld [vmem:[%s18446_s0 + $0x88d] ss:$16 sm:%s1836_s5]   ;;  %1873 = vrot.lane.b32.xlu1 %v1872_v22, %s10683_s19  ;;  %s1882_s5 = smov 12  ;;  %v11856_v57 = vpop.permute.xlu0 %932  }
  0xc5   :  { %v9170_v0 = vld [vmem:[%s18446_s0 + $0x88d] ss:$16 sm:%s1841_s7]   ;;  %v1839_v1 = vsel %vm6_vm0, %v9169_v63, %v9168_v59  ;;  %s82_s7 = smov 3  ;;  %v8823_v10 = vld [vmem:[%s18446_s0 + $0x600] ss:$16 sm:%s258_s28]   ;;  %s1879_s28 = smov 3 }
  0xc6   :  { %v9171_v2 = vld [vmem:[%s18446_s0 + $0x88d] ss:$16 sm:%s1846_s14]   ;;  %v1844_v5 = vsel %vm10_vm1, %v9170_v0, %v1839_v1  ;;  %v261_v13 = vsel %vm10_vm1, %v8823_v10, %v256_v9  ;;  %v8781_v15 = vld [vmem:[%s18446_s0 + $0x200] ss:$16 sm:%s82_s7]   ;;  %s1887_s7 = smov 48  ;;  %s1892_s14 = smov 192 }
  0xc7   :  { %v1849_v8 = vsel %vm14_vm2, %v9171_v2, %v1844_v5  ;;  %v266_v17 = vsel %vm14_vm2, %v8824_v11, %v261_v13  ;;  %v88_v20 = vsel %vm6_vm0, %v8782_v18, %v8781_v15  ;;  %v8784_v21 = vld [vmem:[%s18446_s0 + $0x200] ss:$16 sm:%s95_s16]   ;;  %v9183_v23 = vld [vmem:[%s18446_s0 + $0x30d] ss:$16 sm:%s1902_s17]   ;;  %s347_s16 = smov 192  ;;  %s1948_s17 = smov 3 }
  0xc8   :  { %1850 = vrot.lane.b32.xlu0 %v1849_v8, %s10683_s19  ;;  %8825 = vst.msk [vmem:[%s18447_s1 + $0x60] sm:$0xff] %vm16_vm3, %v266_v17   ;;  %v9184_v26 = vld [vmem:[%s18446_s0 + $0x30d] ss:$16 sm:%s1905_s21]   ;;  %s421_s21 = smov 12  ;;  %v11881_v22 = vpop.permute.xlu1 %1001  }
  0xc9   :  { %8899 = vst.msk [vmem:[%s18447_s1 + $0x60] sm:$0xff] %vm521_vm4, %v11502_v28   ;;  %v93_v28 = vsel %vm10_vm1, %v8783_v19, %v88_v20  ;;  %v9185_v27 = vld [vmem:[%s18446_s0 + $0x30d] ss:$16 sm:%s1910_s22]   ;;  %v1908_v30 = vsel %vm6_vm0, %v9184_v26, %v9183_v23  ;;  %s1956_s22 = smov 48 }
  0xca   :  { %v98_v29 = vsel %vm14_vm2, %v8784_v21, %v93_v28  ;;  %v9186_v32 = vld [vmem:[%s18446_s0 + $0x30d] ss:$16 sm:%s1915_s27]   ;;  %v1913_v34 = vsel %vm10_vm1, %v9185_v27, %v1908_v30  ;;  %v8861_v41 = vld [vmem:[%s18446_s0 + $0xa00] ss:$16 sm:%s418_s15]   ;;  %s1961_s27 = smov 192  ;;  %s103_s15 = smov 3 }
  0xcb   :  { %v9178_v33 = vld [vmem:[%s18446_s0 + $0x10d] ss:$16 sm:%s1879_s28]   ;;  %8785 = vst.msk [vmem:[%s18447_s1 + $0x20] sm:$0xff] %vm16_vm3, %v98_v29   ;;  %s426_s28 = smov 48 }
  0xcc   :  { %v9179_v35 = vld [vmem:[%s18446_s0 + $0x10d] ss:$16 sm:%s1882_s5]   ;;  %8889 = vst.msk [vmem:[%s18447_s1 + $0x20] sm:$0xff] %vm521_vm4, %v11524_v38   ;;  %v1918_v38 = vsel %vm14_vm2, %v9186_v32, %v1913_v34  ;;  %s1928_s5 = smov 12  ;;  %v11915_v15 = vpop.permute.xlu0 %978  }
  0xcd   :  { %v9180_v36 = vld [vmem:[%s18446_s0 + $0x10d] ss:$16 sm:%s1887_s7]   ;;  %v1885_v39 = vsel %vm6_vm0, %v9179_v35, %v9178_v33  ;;  %s334_s7 = smov 3  ;;  %1919 = vrot.lane.b32.xlu1 %v1918_v38, %s10683_s19 }
  0xce   :  { %v9181_v40 = vld [vmem:[%s18446_s0 + $0x10d] ss:$16 sm:%s1892_s14]   ;;  %v1890_v43 = vsel %vm10_vm1, %v9180_v36, %v1885_v39  ;;  %v8862_v45 = vld [vmem:[%s18446_s0 + $0xa00] ss:$16 sm:%s421_s21]   ;;  %s1951_s21 = smov 12  ;;  %s1938_s14 = smov 192 }
  0xcf   :  { %v1895_v47 = vsel %vm14_vm2, %v9181_v40, %v1890_v43  ;;  %v424_v48 = vsel %vm6_vm0, %v8862_v45, %v8861_v41  ;;  %v8863_v50 = vld [vmem:[%s18446_s0 + $0xa00] ss:$16 sm:%s426_s28]   ;;  %s1925_s28 = smov 3  ;;  %v9193_v62 = vld [vmem:[%s18446_s0 + $0x70d] ss:$16 sm:%s1948_s17]   ;;  %s1994_s17 = smov 3 }
  0xd0   :  { %v8864_v51 = vld [vmem:[%s18446_s0 + $0xa00] ss:$16 sm:%s431_s29]   ;;  %1896 = vrot.lane.b32.xlu0 %v1895_v47, %s10683_s19  ;;  %v429_v52 = vsel %vm10_vm1, %v8863_v50, %v424_v48  ;;  %s116_s29 = smov 192  ;;  %v11930_v28 = vpop.permute.xlu1 %1047  }
  0xd1   :  { %v8841_v14 = vld [vmem:[%s18446_s0 + $0x800] ss:$16 sm:%s334_s7]   ;;  %v434_v53 = vsel %vm14_vm2, %v8864_v51, %v429_v52  ;;  %s1933_s7 = smov 48  ;;  %v9194_v63 = vld [vmem:[%s18446_s0 + $0x70d] ss:$16 sm:%s1951_s21]   ;;  %s106_s21 = smov 12 }
  0xd2   :  { %v8842_v55 = vld [vmem:[%s18446_s0 + $0x800] ss:$16 sm:%s337_s9]   ;;  %8865 = vst.msk [vmem:[%s18447_s1 + $0xa0] sm:$0xff] %vm16_vm3, %v434_v53   ;;  %v1954_v2 = vsel %vm6_vm0, %v9194_v63, %v9193_v62  ;;  %s22_s9 = smov 12 }
  0xd3   :  { %v8843_v56 = vld [vmem:[%s18446_s0 + $0x800] ss:$16 sm:%s342_s10]   ;;  %v340_v58 = vsel %vm6_vm0, %v8842_v55, %v8841_v14  ;;  %8909 = vst.msk [vmem:[%s18447_s1 + $0xa0] sm:$0xff] %vm521_vm4, %v11538_v44   ;;  %s27_s10 = smov 48 }
  0xd4   :  { %v8844_v59 = vld [vmem:[%s18446_s0 + $0x800] ss:$16 sm:%s347_s16]   ;;  %v345_v44 = vsel %vm10_vm1, %v8843_v56, %v340_v58  ;;  %v9195_v0 = vld [vmem:[%s18446_s0 + $0x70d] ss:$16 sm:%s1956_s22]   ;;  %s32_s16 = smov 192  ;;  %s2002_s22 = smov 48  ;;  %v11955_v36 = vpop.permute.xlu0 %1024   ;;  %v1093_v47 = vpop.permute.xlu1 %1092  }
  0xd5   :  { %v350_v1 = vsel %vm14_vm2, %v8844_v59, %v345_v44  ;;  %v9196_v3 = vld [vmem:[%s18446_s0 + $0x70d] ss:$16 sm:%s1961_s27]   ;;  %v1959_v7 = vsel %vm10_vm1, %v9195_v0, %v1954_v2  ;;  %v8786_v13 = vld [vmem:[%s18446_s0 + $0x280] ss:$16 sm:%s103_s15]   ;;  %s2007_s27 = smov 192  ;;  %s271_s15 = smov 3 }
  0xd6   :  { %v9188_v5 = vld [vmem:[%s18446_s0 + $0x50d] ss:$16 sm:%s1925_s28]   ;;  %8845 = vst.msk [vmem:[%s18447_s1 + $0x80] sm:$0xff] %vm16_vm3, %v350_v1   ;;  %s111_s28 = smov 48 }
  0xd7   :  { %v9189_v8 = vld [vmem:[%s18446_s0 + $0x50d] ss:$16 sm:%s1928_s5]   ;;  %8904 = vst.msk [vmem:[%s18447_s1 + $0x80] sm:$0xff] %vm521_vm4, %v11560_v54   ;;  %v1964_v54 = vsel %vm14_vm2, %v9196_v3, %v1959_v7  ;;  %s1974_s5 = smov 12 }
  0xd8   :  { %v9190_v9 = vld [vmem:[%s18446_s0 + $0x50d] ss:$16 sm:%s1933_s7]   ;;  %v1931_v10 = vsel %vm6_vm0, %v9189_v8, %v9188_v5  ;;  %s19_s7 = smov 3  ;;  %1965 = vrot.lane.b32.xlu1 %v1964_v54, %s10683_s19  ;;  %9008 = vst.msk [vmem:[%s18447_s1 + $0x20] sm:$0xff] %vm1072_vm5, %v1093_v47   ;;  %v1071_v58 = vpop.permute.xlu0 %1070   ;;  %v1139_v2 = vpop.permute.xlu1 %1138  }
  0xd9   :  { %v9191_v11 = vld [vmem:[%s18446_s0 + $0x50d] ss:$16 sm:%s1938_s14]   ;;  %v1936_v17 = vsel %vm10_vm1, %v9190_v9, %v1931_v10  ;;  %v8787_v18 = vld [vmem:[%s18446_s0 + $0x280] ss:$16 sm:%s106_s21]   ;;  %s1997_s21 = smov 12  ;;  %s1984_s14 = smov 192 }
  0xda   :  { %v1941_v19 = vsel %vm14_vm2, %v9191_v11, %v1936_v17  ;;  %v109_v20 = vsel %vm6_vm0, %v8787_v18, %v8786_v13  ;;  %v8788_v21 = vld [vmem:[%s18446_s0 + $0x280] ss:$16 sm:%s111_s28]   ;;  %s1971_s28 = smov 3  ;;  %v9203_v35 = vld [vmem:[%s18446_s0 + $0xb0d] ss:$16 sm:%s1994_s17]   ;;  %s2109_s17 = smov 3 }
  0xdb   :  { %v8789_v23 = vld [vmem:[%s18446_s0 + $0x280] ss:$16 sm:%s116_s29]   ;;  %1942 = vrot.lane.b32.xlu0 %v1941_v19, %s10683_s19  ;;  %v114_v26 = vsel %vm10_vm1, %v8788_v21, %v109_v20  ;;  %s284_s29 = smov 192  ;;  %1073 = vst.msk [vmem:[%s18447_s1] sm:$0xff] %vm1072_vm5, %v1071_v58  }
  0xdc   :  { %v8766_v27 = vld [vmem:[%s18446_s0 + $0x80] ss:$16 sm:%s19_s7]   ;;  %v119_v29 = vsel %vm14_vm2, %v8789_v23, %v114_v26  ;;  %s1979_s7 = smov 48  ;;  %v9204_v38 = vld [vmem:[%s18446_s0 + $0xb0d] ss:$16 sm:%s1997_s21]   ;;  %s274_s21 = smov 12  ;;  %v1116_v13 = vpop.permute.xlu0 %1115  }
  0xdd   :  { %v8767_v30 = vld [vmem:[%s18446_s0 + $0x80] ss:$16 sm:%s22_s9]   ;;  %8790 = vst.msk [vmem:[%s18447_s1 + $0x28] sm:$0xff] %vm16_vm3, %v119_v29   ;;  %v2000_v41 = vsel %vm6_vm0, %v9204_v38, %v9203_v35  ;;  %s2099_s9 = smov 192 }
  0xde   :  { %v8768_v32 = vld [vmem:[%s18446_s0 + $0x80] ss:$16 sm:%s27_s10]   ;;  %v25_v33 = vsel %vm6_vm0, %v8767_v30, %v8766_v27  ;;  %8919 = vst.msk [vmem:[%s18447_s1 + $0x28] sm:$0xff] %vm521_vm4, %v11574_v60   ;;  %v1185_v27 = vpop.permute.xlu1 %1184   ;;  %s2063_s10 = smov 3 }
  0xdf   :  { %v8769_v34 = vld [vmem:[%s18446_s0 + $0x80] ss:$16 sm:%s32_s16]   ;;  %v30_v60 = vsel %vm10_vm1, %v8768_v32, %v25_v33  ;;  %v9205_v39 = vld [vmem:[%s18446_s0 + $0xb0d] ss:$16 sm:%s2002_s22]   ;;  %s439_s22 = smov 3  ;;  %s2145_s16 = smov 192 }
  0xe0   :  { %v35_v40 = vsel %vm14_vm2, %v8769_v34, %v30_v60  ;;  %v9206_v43 = vld [vmem:[%s18446_s0 + $0xb0d] ss:$16 sm:%s2007_s27]   ;;  %v2005_v48 = vsel %vm10_vm1, %v9205_v39, %v2000_v41  ;;  %v8826_v53 = vld [vmem:[%s18446_s0 + $0x680] ss:$16 sm:%s271_s15]   ;;  %s442_s27 = smov 12  ;;  %s355_s15 = smov 3 }
  0xe1   :  { %v9198_v45 = vld [vmem:[%s18446_s0 + $0x90d] ss:$16 sm:%s1971_s28]   ;;  %8770 = vst.msk [vmem:[%s18447_s1 + $0x8] sm:$0xff] %vm16_vm3, %v35_v40   ;;  %s279_s28 = smov 48  ;;  %v1162_v40 = vpop.permute.xlu0 %1161  }
  0xe2   :  { %v9199_v50 = vld [vmem:[%s18446_s0 + $0x90d] ss:$16 sm:%s1974_s5]   ;;  %8914 = vst.msk [vmem:[%s18447_s1 + $0x8] sm:$0xff] %vm521_vm4, %v11596_v6   ;;  %v2010_v6 = vsel %vm14_vm2, %v9206_v43, %v2005_v48  ;;  %s127_s5 = smov 12 }
  0xe3   :  { %v9200_v51 = vld [vmem:[%s18446_s0 + $0x90d] ss:$16 sm:%s1979_s7]   ;;  %v1977_v52 = vsel %vm6_vm0, %v9199_v50, %v9198_v45  ;;  %2011 = vrot.lane.b32.xlu1 %v2010_v6, %s10683_s19  ;;  %9018 = vst.msk [vmem:[%s18447_s1 + $0x60] sm:$0xff] %vm1072_vm5, %v1139_v2   ;;  %s447_s7 = smov 48  ;;  %v1231_v50 = vpop.permute.xlu1 %1230  }
  0xe4   :  { %v9201_v14 = vld [vmem:[%s18446_s0 + $0x90d] ss:$16 sm:%s1984_s14]   ;;  %v1982_v55 = vsel %vm10_vm1, %v9200_v51, %v1977_v52  ;;  %v8827_v56 = vld [vmem:[%s18446_s0 + $0x680] ss:$16 sm:%s274_s21]   ;;  %s2030_s21 = smov 192  ;;  %s137_s14 = smov 192 }
  0xe5   :  { %v1987_v59 = vsel %vm14_vm2, %v9201_v14, %v1982_v55  ;;  %v277_v62 = vsel %vm6_vm0, %v8827_v56, %v8826_v53  ;;  %v8828_v44 = vld [vmem:[%s18446_s0 + $0x680] ss:$16 sm:%s279_s28]   ;;  %v9213_v54 = vld [vmem:[%s18446_s0 + $0x38d] ss:$16 sm:%s2040_s20]   ;;  %s2086_s28 = smov 3  ;;  %s2071_s20 = smov 48 }
  0xe6   :  { %v8829_v63 = vld [vmem:[%s18446_s0 + $0x680] ss:$16 sm:%s284_s29]   ;;  %1988 = vrot.lane.b32.xlu0 %v1987_v59, %s10683_s19  ;;  %v282_v0 = vsel %vm10_vm1, %v8828_v44, %v277_v62  ;;  %9013 = vst.msk [vmem:[%s18447_s1 + $0x40] sm:$0xff] %vm1072_vm5, %v1116_v13   ;;  %s2076_s29 = smov 192  ;;  %v1208_v62 = vpop.permute.xlu0 %1207  }
  0xe7   :  { %v8806_v1 = vld [vmem:[%s18446_s0 + $0x480] ss:$16 sm:%s187_s11]   ;;  %v287_v3 = vsel %vm14_vm2, %v8829_v63, %v282_v0  ;;  %v9214_v10 = vld [vmem:[%s18446_s0 + $0x38d] ss:$16 sm:%s2043_s25]   ;;  %s2155_s25 = smov 3  ;;  %s2203_s11 = smov 12 }
  0xe8   :  { %v8807_v5 = vld [vmem:[%s18446_s0 + $0x480] ss:$16 sm:%s190_s12]   ;;  %8830 = vst.msk [vmem:[%s18447_s1 + $0x68] sm:$0xff] %vm16_vm3, %v287_v3   ;;  %s2020_s12 = smov 12  ;;  %v2046_v18 = vsel %vm6_vm0, %v9214_v10, %v9213_v54 }
  0xe9   :  { %v8808_v7 = vld [vmem:[%s18446_s0 + $0x480] ss:$16 sm:%s195_s13]   ;;  %v193_v8 = vsel %vm6_vm0, %v8807_v5, %v8806_v1  ;;  %s2025_s13 = smov 48  ;;  %8929 = vst.msk [vmem:[%s18447_s1 + $0x68] sm:$0xff] %vm521_vm4, %v11610_v12   ;;  %v1277_v5 = vpop.permute.xlu1 %1276  }
  0xea   :  { %v8809_v9 = vld [vmem:[%s18446_s0 + $0x480] ss:$16 sm:%s200_s18]   ;;  %v198_v12 = vsel %vm10_vm1, %v8808_v7, %v193_v8  ;;  %v9215_v11 = vld [vmem:[%s18446_s0 + $0x38d] ss:$16 sm:%s2048_s26]   ;;  %s2066_s18 = smov 12  ;;  %s2415_s26 = smov 48 }
  0xeb   :  { %v203_v17 = vsel %vm14_vm2, %v8809_v9, %v198_v12  ;;  %v9216_v19 = vld [vmem:[%s18446_s0 + $0x38d] ss:$16 sm:%s2053_s30]   ;;  %v2051_v21 = vsel %vm10_vm1, %v9215_v11, %v2046_v18  ;;  %v8866_v32 = vld [vmem:[%s18446_s0 + $0xa80] ss:$16 sm:%s439_s22]   ;;  %s363_s22 = smov 48  ;;  %s2089_s30 = smov 12 }
  0xec   :  { %v9208_v20 = vld [vmem:[%s18446_s0 + $0x18d] ss:$16 sm:%s2017_s2]   ;;  %8810 = vst.msk [vmem:[%s18447_s1 + $0x48] sm:$0xff] %vm16_vm3, %v203_v17   ;;  %s2094_s2 = smov 48  ;;  %v1254_v17 = vpop.permute.xlu0 %1253  }
  0xed   :  { %v9209_v23 = vld [vmem:[%s18446_s0 + $0x18d] ss:$16 sm:%s2020_s12]   ;;  %8924 = vst.msk [vmem:[%s18447_s1 + $0x48] sm:$0xff] %vm521_vm4, %v11632_v24   ;;  %v2056_v24 = vsel %vm14_vm2, %v9216_v19, %v2051_v21  ;;  %s221_s12 = smov 192 }
  0xee   :  { %v9210_v26 = vld [vmem:[%s18446_s0 + $0x18d] ss:$16 sm:%s2025_s13]   ;;  %v2023_v29 = vsel %vm6_vm0, %v9209_v23, %v9208_v20  ;;  %9028 = vst.msk [vmem:[%s18447_s1 + $0xa0] sm:$0xff] %vm1072_vm5, %v1185_v27   ;;  %2057 = vrot.lane.b32.xlu1 %v2056_v24, %s10683_s19  ;;  %s132_s13 = smov 48  ;;  %v1323_v27 = vpop.permute.xlu1 %1322  }
  0xef   :  { %v9211_v30 = vld [vmem:[%s18446_s0 + $0x18d] ss:$16 sm:%s2030_s21]   ;;  %v2028_v33 = vsel %vm10_vm1, %v9210_v26, %v2023_v29  ;;  %v8867_v34 = vld [vmem:[%s18446_s0 + $0xa80] ss:$16 sm:%s442_s27]   ;;  %s358_s21 = smov 12  ;;  %s368_s27 = smov 192 }
  0xf0   :  { %v2033_v35 = vsel %vm14_vm2, %v9211_v30, %v2028_v33  ;;  %v445_v60 = vsel %vm6_vm0, %v8867_v34, %v8866_v32  ;;  %v8868_v38 = vld [vmem:[%s18446_s0 + $0xa80] ss:$16 sm:%s447_s7]   ;;  %9023 = vst.msk [vmem:[%s18447_s1 + $0x80] sm:$0xff] %vm1072_vm5, %v1162_v40   ;;  %9038 = vst.msk [vmem:[%s18447_s1 + $0x28] sm:$0xff] %vm1072_vm5, %v1231_v50   ;;  %s2132_s7 = smov 3 }
  0xf1   :  { %v8869_v39 = vld [vmem:[%s18446_s0 + $0xa80] ss:$16 sm:%s452_s8]   ;;  %2034 = vrot.lane.b32.xlu0 %v2033_v35, %s10683_s19  ;;  %v450_v41 = vsel %vm10_vm1, %v8868_v38, %v445_v60  ;;  %9033 = vst.msk [vmem:[%s18447_s1 + $0x8] sm:$0xff] %vm1072_vm5, %v1208_v62   ;;  %s10684_s8 = smov 48  }
  0xf2   :  { %v8846_v43 = vld [vmem:[%s18446_s0 + $0x880] ss:$16 sm:%s355_s15]   ;;  %v455_v45 = vsel %vm14_vm2, %v8869_v39, %v450_v41  ;;  %v9223_v52 = vld [vmem:[%s18446_s0 + $0x78d] ss:$16 sm:%s2086_s28]   ;;  %s48_s28 = smov 48  ;;  %v1300_v39 = vpop.permute.xlu0 %1299   ;;  %s64_s15 = smov 12 }
  0xf3   :  { %v8847_v47 = vld [vmem:[%s18446_s0 + $0x880] ss:$16 sm:%s358_s21]   ;;  %8870 = vst.msk [vmem:[%s18447_s1 + $0xa8] sm:$0xff] %vm16_vm3, %v455_v45   ;;  %s2259_s21 = smov 192 }
  0xf4   :  { %v8848_v48 = vld [vmem:[%s18446_s0 + $0x880] ss:$16 sm:%s363_s22]   ;;  %v361_v51 = vsel %vm6_vm0, %v8847_v47, %v8846_v43  ;;  %8939 = vst.msk [vmem:[%s18447_s1 + $0xa8] sm:$0xff] %vm521_vm4, %v11646_v31   ;;  %s300_s22 = smov 48 }
  0xf5   :  { %v8849_v6 = vld [vmem:[%s18446_s0 + $0x880] ss:$16 sm:%s368_s27]   ;;  %v366_v31 = vsel %vm10_vm1, %v8848_v48, %v361_v51  ;;  %v9224_v14 = vld [vmem:[%s18446_s0 + $0x78d] ss:$16 sm:%s2089_s30]   ;;  %s43_s27 = smov 12  ;;  %v1369_v48 = vpop.permute.xlu1 %1368   ;;  %s2318_s30 = smov 12 }
  0xf6   :  { %v9225_v53 = vld [vmem:[%s18446_s0 + $0x78d] ss:$16 sm:%s2094_s2]   ;;  %v371_v55 = vsel %vm14_vm2, %v8849_v6, %v366_v31  ;;  %v2092_v56 = vsel %vm6_vm0, %v9224_v14, %v9223_v52  ;;  %v8791_v3 = vld [vmem:[%s18446_s0 + $0x300] ss:$16 sm:%s124_s6]   ;;  %s208_s6 = smov 3  ;;  %s2158_s2 = smov 12 }
  0xf7   :  { %v9226_v58 = vld [vmem:[%s18446_s0 + $0x78d] ss:$16 sm:%s2099_s9]   ;;  %8850 = vst.msk [vmem:[%s18447_s1 + $0x88] sm:$0xff] %vm16_vm3, %v371_v55   ;;  %v2097_v44 = vsel %vm10_vm1, %v9225_v53, %v2092_v56  ;;  %s2135_s9 = smov 12 }
  0xf8   :  { %v9218_v59 = vld [vmem:[%s18446_s0 + $0x58d] ss:$16 sm:%s2063_s10]   ;;  %8934 = vst.msk [vmem:[%s18447_s1 + $0x88] sm:$0xff] %vm521_vm4, %v11668_v42   ;;  %v2102_v42 = vsel %vm14_vm2, %v9226_v58, %v2097_v44  ;;  %s2140_s10 = smov 48  ;;  %v1346_v58 = vpop.permute.xlu0 %1345  }
  0xf9   :  { %v9219_v63 = vld [vmem:[%s18446_s0 + $0x58d] ss:$16 sm:%s2066_s18]   ;;  %2103 = vrot.lane.b32.xlu1 %v2102_v42, %s10683_s19  ;;  %9048 = vst.msk [vmem:[%s18447_s1 + $0x68] sm:$0xff] %vm1072_vm5, %v1277_v5   ;;  %s2185_s18 = smov 48 }
  0xfa   :  { %v9220_v0 = vld [vmem:[%s18446_s0 + $0x58d] ss:$16 sm:%s2071_s20]   ;;  %v2069_v1 = vsel %vm6_vm0, %v9219_v63, %v9218_v59  ;;  %v8792_v8 = vld [vmem:[%s18446_s0 + $0x300] ss:$16 sm:%s127_s5]   ;;  %s53_s5 = smov 192  ;;  %v1415_v42 = vpop.permute.xlu1 %1414   ;;  %s2223_s20 = smov 3 }
  0xfb   :  { %v9221_v2 = vld [vmem:[%s18446_s0 + $0x58d] ss:$16 sm:%s2076_s29]   ;;  %v2074_v7 = vsel %vm10_vm1, %v9220_v0, %v2069_v1  ;;  %v130_v54 = vsel %vm6_vm0, %v8792_v8, %v8791_v3  ;;  %v8793_v12 = vld [vmem:[%s18446_s0 + $0x300] ss:$16 sm:%s132_s13]   ;;  %s2177_s13 = smov 3  ;;  %s473_s29 = smov 192 }
  0xfc   :  { %v2079_v9 = vsel %vm14_vm2, %v9221_v2, %v2074_v7  ;;  %v8794_v10 = vld [vmem:[%s18446_s0 + $0x300] ss:$16 sm:%s137_s14]   ;;  %v135_v11 = vsel %vm10_vm1, %v8793_v12, %v130_v54  ;;  %9043 = vst.msk [vmem:[%s18447_s1 + $0x48] sm:$0xff] %vm1072_vm5, %v1254_v17   ;;  %9058 = vst.msk [vmem:[%s18447_s1 + $0xa8] sm:$0xff] %vm1072_vm5, %v1323_v27   ;;  %s295_s14 = smov 12 }
  0xfd   :  { %2080 = vrot.lane.b32.xlu0 %v2079_v9, %s10683_s19  ;;  %v8771_v13 = vld [vmem:[%s18446_s0 + $0x100] ss:$16 sm:%s40_s24]   ;;  %v140_v18 = vsel %vm14_vm2, %v8794_v10, %v135_v11  ;;  %9053 = vst.msk [vmem:[%s18447_s1 + $0x88] sm:$0xff] %vm1072_vm5, %v1300_v39   ;;  %s2190_s24 = smov 192 }
  0xfe   :  { %v8772_v19 = vld [vmem:[%s18446_s0 + $0x100] ss:$16 sm:%s43_s27]   ;;  %8795 = vst.msk [vmem:[%s18447_s1 + $0x30] sm:$0xff] %vm16_vm3, %v140_v18   ;;  %s2112_s27 = smov 12  ;;  %v1392_v11 = vpop.permute.xlu0 %1391  }
  0xff   :  { %v8773_v20 = vld [vmem:[%s18446_s0 + $0x100] ss:$16 sm:%s48_s28]   ;;  %v46_v21 = vsel %vm6_vm0, %v8772_v19, %v8771_v13  ;;  %v9233_v26 = vld [vmem:[%s18446_s0 + $0xb8d] ss:$16 sm:%s2132_s7]   ;;  %s2117_s28 = smov 48  ;;  %s292_s7 = smov 3 }
 0x100   :  { %v8774_v23 = vld [vmem:[%s18446_s0 + $0x100] ss:$16 sm:%s53_s5]   ;;  %8949 = vst.msk [vmem:[%s18447_s1 + $0x30] sm:$0xff] %vm521_vm4, %v11682_v49   ;;  %v51_v49 = vsel %vm10_vm1, %v8773_v20, %v46_v21  ;;  %s2122_s5 = smov 192 }
 0x101   :  { %v9234_v24 = vld [vmem:[%s18446_s0 + $0xb8d] ss:$16 sm:%s2135_s9]   ;;  %v56_v30 = vsel %vm14_vm2, %v8774_v23, %v51_v49  ;;  %v8831_v43 = vld [vmem:[%s18446_s0 + $0x700] ss:$16 sm:%s292_s7]   ;;  %s216_s7 = smov 48  ;;  %s2208_s9 = smov 48 }
 0x102   :  { %v9235_v29 = vld [vmem:[%s18446_s0 + $0xb8d] ss:$16 sm:%s2140_s10]   ;;  %v2138_v32 = vsel %vm6_vm0, %v9234_v24, %v9233_v26  ;;  %8775 = vst.msk [vmem:[%s18447_s1 + $0x10] sm:$0xff] %vm16_vm3, %v56_v30   ;;  %s379_s10 = smov 12  ;;  %v1461_v23 = vpop.permute.xlu1 %1460  }
 0x103   :  { %v9236_v33 = vld [vmem:[%s18446_s0 + $0xb8d] ss:$16 sm:%s2145_s16]   ;;  %v2143_v35 = vsel %vm10_vm1, %v9235_v29, %v2138_v32  ;;  %8944 = vst.msk [vmem:[%s18447_s1 + $0x10] sm:$0xff] %vm521_vm4, %v11715_v61   ;;  %s2213_s16 = smov 192 }
 0x104   :  { %v9228_v34 = vld [vmem:[%s18446_s0 + $0x98d] ss:$16 sm:%s2109_s17]   ;;  %v2148_v61 = vsel %vm14_vm2, %v9236_v33, %v2143_v35  ;;  %v8832_v47 = vld [vmem:[%s18446_s0 + $0x700] ss:$16 sm:%s295_s14]   ;;  %s2180_s17 = smov 12  ;;  %s460_s14 = smov 3 }
 0x105   :  { %v9229_v60 = vld [vmem:[%s18446_s0 + $0x98d] ss:$16 sm:%s2112_s27]   ;;  %2149 = vrot.lane.b32.xlu1 %v2148_v61, %s10683_s19  ;;  %v298_v51 = vsel %vm6_vm0, %v8832_v47, %v8831_v43  ;;  %9068 = vst.msk [vmem:[%s18447_s1 + $0x30] sm:$0xff] %vm1072_vm5, %v1369_v48   ;;  %s2272_s27 = smov 12 }
 0x106   :  { %v9230_v38 = vld [vmem:[%s18446_s0 + $0x98d] ss:$16 sm:%s2117_s28]   ;;  %v2115_v40 = vsel %vm6_vm0, %v9229_v60, %v9228_v34  ;;  %v8833_v6 = vld [vmem:[%s18446_s0 + $0x700] ss:$16 sm:%s300_s22]   ;;  %s468_s28 = smov 48  ;;  %v1438_v34 = vpop.permute.xlu0 %1437   ;;  %s313_s22 = smov 3 }
 0x107   :  { %v9231_v41 = vld [vmem:[%s18446_s0 + $0x98d] ss:$16 sm:%s2122_s5]   ;;  %v2120_v45 = vsel %vm10_vm1, %v9230_v38, %v2115_v40  ;;  %s211_s5 = smov 12  ;;  %v8834_v52 = vld [vmem:[%s18446_s0 + $0x700] ss:$16 sm:%s305_s23]   ;;  %v303_v31 = vsel %vm10_vm1, %v8833_v6, %v298_v51  ;;  %s2226_s23 = smov 12 }
 0x108   :  { %v2125_v50 = vsel %vm14_vm2, %v9231_v41, %v2120_v45  ;;  %v8811_v14 = vld [vmem:[%s18446_s0 + $0x500] ss:$16 sm:%s208_s6]   ;;  %v308_v53 = vsel %vm14_vm2, %v8834_v52, %v303_v31  ;;  %v9242_v44 = vld [vmem:[%s18446_s0 + $0x20c] ss:$16 sm:%s2177_s13]   ;;  %s2168_s13 = smov 192  ;;  %s2200_s6 = smov 3 }
 0x109   :  { %2126 = vrot.lane.b32.xlu0 %v2125_v50, %s10683_s19  ;;  %v8812_v55 = vld [vmem:[%s18446_s0 + $0x500] ss:$16 sm:%s211_s5]   ;;  %8835 = vst.msk [vmem:[%s18447_s1 + $0x70] sm:$0xff] %vm16_vm3, %v308_v53   ;;  %s69_s19 = smov 48  ;;  %s2764_s5 = smov 192 }
 0x10a   :  { %v8813_v56 = vld [vmem:[%s18446_s0 + $0x500] ss:$16 sm:%s216_s7]   ;;  %v214_v59 = vsel %vm6_vm0, %v8812_v55, %v8811_v14  ;;  %9063 = vst.msk [vmem:[%s18447_s1 + $0x10] sm:$0xff] %vm1072_vm5, %v1346_v58   ;;  %s376_s7 = smov 3  ;;  %v1507_v41 = vpop.permute.xlu1 %1506  }
 0x10b   :  { %v8814_v62 = vld [vmem:[%s18446_s0 + $0x500] ss:$16 sm:%s221_s12]   ;;  %8959 = vst.msk [vmem:[%s18447_s1 + $0x70] sm:$0xff] %vm521_vm4, %v11741_v4   ;;  %v219_v4 = vsel %vm10_vm1, %v8813_v56, %v214_v59  ;;  %s384_s12 = smov 48 }
 0x10c   :  { %v9243_v63 = vld [vmem:[%s18446_s0 + $0x20c] ss:$16 sm:%s2180_s17]   ;;  %v224_v1 = vsel %vm14_vm2, %v8814_v62, %v219_v4  ;;  %9078 = vst.msk [vmem:[%s18447_s1 + $0x70] sm:$0xff] %vm1072_vm5, %v1415_v42   ;;  %s145_s17 = smov 3 }
 0x10d   :  { %v9244_v0 = vld [vmem:[%s18446_s0 + $0x20c] ss:$16 sm:%s2185_s18]   ;;  %v2183_v2 = vsel %vm6_vm0, %v9243_v63, %v9242_v44  ;;  %s463_s18 = smov 12  ;;  %8815 = vst.msk [vmem:[%s18447_s1 + $0x50] sm:$0xff] %vm16_vm3, %v224_v1  }
 0x10e   :  { %v9245_v3 = vld [vmem:[%s18446_s0 + $0x20c] ss:$16 sm:%s2190_s24]   ;;  %v2188_v7 = vsel %vm10_vm1, %v9244_v0, %v2183_v2  ;;  %8954 = vst.msk [vmem:[%s18447_s1 + $0x50] sm:$0xff] %vm521_vm4, %v11761_v16   ;;  %s2231_s24 = smov 48  ;;  %v1484_v31 = vpop.permute.xlu0 %1483  }
 0x10f   :  { %v9238_v5 = vld [vmem:[%s18446_s0 + $0xc] ss:$16 sm:%s2155_s25]   ;;  %v2193_v16 = vsel %vm14_vm2, %v9245_v3, %v2188_v7  ;;  %v8871_v10 = vld [vmem:[%s18446_s0 + $0xb00] ss:$16 sm:%s460_s14]   ;;  %s2254_s14 = smov 48  ;;  %s2456_s25 = smov 12 }
 0x110   :  { %v9239_v8 = vld [vmem:[%s18446_s0 + $0xc] ss:$16 sm:%s2158_s2]   ;;  %2194 = vrot.lane.b32.xlu1 %v2193_v16, %s10684_s8  ;;  %9073 = vst.msk [vmem:[%s18447_s1 + $0x50] sm:$0xff] %vm1072_vm5, %v1392_v11   ;;  %s153_s2 = smov 48 }
 0x111   :  { %v9240_v9 = vld [vmem:[%s18446_s0 + $0xc] ss:$16 sm:%s2163_s3]   ;;  %v2161_v54 = vsel %vm6_vm0, %v9239_v8, %v9238_v5  ;;  %v8872_v17 = vld [vmem:[%s18446_s0 + $0xb00] ss:$16 sm:%s463_s18]   ;;  %s389_s18 = smov 192  ;;  %s158_s3 = smov 192 }
 0x112   :  { %v9241_v12 = vld [vmem:[%s18446_s0 + $0xc] ss:$16 sm:%s2168_s13]   ;;  %v2166_v13 = vsel %vm10_vm1, %v9240_v9, %v2161_v54  ;;  %v466_v19 = vsel %vm6_vm0, %v8872_v17, %v8871_v10  ;;  %v8873_v20 = vld [vmem:[%s18446_s0 + $0xb00] ss:$16 sm:%s468_s28]   ;;  %s2277_s28 = smov 48  ;;  %v12491_v62 = vpop.permute.xlu1 %1552   ;;  %s2249_s13 = smov 12 }
 0x113   :  { %v2171_v18 = vsel %vm14_vm2, %v9241_v12, %v2166_v13  ;;  %v8874_v21 = vld [vmem:[%s18446_s0 + $0xb00] ss:$16 sm:%s473_s29]   ;;  %v471_v26 = vsel %vm10_vm1, %v8873_v20, %v466_v19  ;;  %s2236_s29 = smov 192  ;;  %v9252_v33 = vld [vmem:[%s18446_s0 + $0x60c] ss:$16 sm:%s2223_s20]   ;;  %s237_s20 = smov 48 }
 0x114   :  { %2172 = vrot.lane.b32.xlu0 %v2171_v18, %s10684_s8  ;;  %v8851_v27 = vld [vmem:[%s18446_s0 + $0x900] ss:$16 sm:%s376_s7]   ;;  %v476_v49 = vsel %vm14_vm2, %v8874_v21, %v471_v26  ;;  %s321_s7 = smov 48 }
 0x115   :  { %v8852_v24 = vld [vmem:[%s18446_s0 + $0x900] ss:$16 sm:%s379_s10]   ;;  %8875 = vst.msk [vmem:[%s18447_s1 + $0xb0] sm:$0xff] %vm16_vm3, %v476_v49   ;;  %s2387_s10 = smov 12 }
 0x116   :  { %v8853_v29 = vld [vmem:[%s18446_s0 + $0x900] ss:$16 sm:%s384_s12]   ;;  %v382_v30 = vsel %vm6_vm0, %v8852_v24, %v8851_v27  ;;  %8969 = vst.msk [vmem:[%s18447_s1 + $0xb0] sm:$0xff] %vm521_vm4, %v11781_v25   ;;  %s61_s12 = smov 3  ;;  %v12523_v5 = vpop.permute.xlu0 %1529  }
 0x117   :  { %v8854_v32 = vld [vmem:[%s18446_s0 + $0x900] ss:$16 sm:%s389_s18]   ;;  %v387_v25 = vsel %vm10_vm1, %v8853_v29, %v382_v30  ;;  %v9253_v35 = vld [vmem:[%s18446_s0 + $0x60c] ss:$16 sm:%s2226_s23]   ;;  %s148_s23 = smov 12  ;;  %s232_s18 = smov 12 }
 0x118   :  { %v9254_v60 = vld [vmem:[%s18446_s0 + $0x60c] ss:$16 sm:%s2231_s24]   ;;  %v392_v38 = vsel %vm14_vm2, %v8854_v32, %v387_v25  ;;  %v2229_v39 = vsel %vm6_vm0, %v9253_v35, %v9252_v33  ;;  %9088 = vst.msk [vmem:[%s18447_s1 + $0xb0] sm:$0xff] %vm1072_vm5, %v1461_v23   ;;  %s2269_s24 = smov 3 }
 0x119   :  { %v9255_v61 = vld [vmem:[%s18446_s0 + $0x60c] ss:$16 sm:%s2236_s29]   ;;  %8855 = vst.msk [vmem:[%s18447_s1 + $0x90] sm:$0xff] %vm16_vm3, %v392_v38   ;;  %v2234_v43 = vsel %vm10_vm1, %v9254_v60, %v2229_v39  ;;  %s2341_s29 = smov 12 }
 0x11a   :  { %v9247_v40 = vld [vmem:[%s18446_s0 + $0x40c] ss:$16 sm:%s2200_s6]   ;;  %8964 = vst.msk [vmem:[%s18447_s1 + $0x90] sm:$0xff] %vm521_vm4, %v11814_v37   ;;  %v2239_v37 = vsel %vm14_vm2, %v9255_v61, %v2234_v43  ;;  %v12548_v11 = vpop.permute.xlu1 %1598   ;;  %s2346_s6 = smov 48 }
 0x11b   :  { %v9248_v45 = vld [vmem:[%s18446_s0 + $0x40c] ss:$16 sm:%s2203_s11]   ;;  %v8796_v51 = vld [vmem:[%s18446_s0 + $0x380] ss:$16 sm:%s145_s17]   ;;  %s326_s11 = smov 192  ;;  %s2300_s17 = smov 48 }
 0x11c   :  { %v9249_v47 = vld [vmem:[%s18446_s0 + $0x40c] ss:$16 sm:%s2208_s9]   ;;  %v2206_v48 = vsel %vm6_vm0, %v9248_v45, %v9247_v40  ;;  %2240 = vrot.lane.b32.xlu1 %v2239_v37, %s10684_s8  ;;  %9083 = vst.msk [vmem:[%s18447_s1 + $0x90] sm:$0xff] %vm1072_vm5, %v1438_v34   ;;  %s2292_s9 = smov 3 }
 0x11d   :  { %v9250_v50 = vld [vmem:[%s18446_s0 + $0x40c] ss:$16 sm:%s2213_s16]   ;;  %v2211_v6 = vsel %vm10_vm1, %v9249_v47, %v2206_v48  ;;  %v8797_v52 = vld [vmem:[%s18446_s0 + $0x380] ss:$16 sm:%s148_s23]   ;;  %s74_s23 = smov 192  ;;  %s2295_s16 = smov 12 }
 0x11e   :  { %v2216_v14 = vsel %vm14_vm2, %v9250_v50, %v2211_v6  ;;  %v151_v53 = vsel %vm6_vm0, %v8797_v52, %v8796_v51  ;;  %v8798_v55 = vld [vmem:[%s18446_s0 + $0x380] ss:$16 sm:%s153_s2]   ;;  %v9262_v1 = vld [vmem:[%s18446_s0 + $0xa0c] ss:$16 sm:%s2269_s24]   ;;  %v12580_v49 = vpop.permute.xlu0 %1575   ;;  %s2323_s2 = smov 48  ;;  %v1644_v34 = vpop.permute.xlu1 %1643   ;;  %s397_s24 = smov 3 }
 0x11f   :  { %v8799_v56 = vld [vmem:[%s18446_s0 + $0x380] ss:$16 sm:%s158_s3]   ;;  %2217 = vrot.lane.b32.xlu0 %v2216_v14, %s10684_s8  ;;  %v156_v58 = vsel %vm10_vm1, %v8798_v55, %v151_v53  ;;  %s2282_s3 = smov 192  ;;  %9127 = vst.msk [vmem:[%s18447_s1 + $0x20] sm:$0xff] %vm1623_vm6, %v1644_v34  }
 0x120   :  { %v8776_v59 = vld [vmem:[%s18446_s0 + $0x180] ss:$16 sm:%s61_s12]   ;;  %v161_v44 = vsel %vm14_vm2, %v8799_v56, %v156_v58  ;;  %v9263_v2 = vld [vmem:[%s18446_s0 + $0xa0c] ss:$16 sm:%s2272_s27]   ;;  %s316_s27 = smov 12  ;;  %s2392_s12 = smov 48 }
 0x121   :  { %v8777_v4 = vld [vmem:[%s18446_s0 + $0x180] ss:$16 sm:%s64_s15]   ;;  %8800 = vst.msk [vmem:[%s18447_s1 + $0x38] sm:$0xff] %vm16_vm3, %v161_v44   ;;  %v2275_v8 = vsel %vm6_vm0, %v9263_v2, %v9262_v1  ;;  %s494_s15 = smov 192 }
 0x122   :  { %v8778_v63 = vld [vmem:[%s18446_s0 + $0x180] ss:$16 sm:%s69_s19]   ;;  %v67_v0 = vsel %vm6_vm0, %v8777_v4, %v8776_v59  ;;  %8979 = vst.msk [vmem:[%s18447_s1 + $0x38] sm:$0xff] %vm521_vm4, %v11834_v46   ;;  %s229_s19 = smov 3  ;;  %v1622_v45 = vpop.permute.xlu0 %1621   ;;  %v1690_v52 = vpop.permute.xlu1 %1689  }
 0x123   :  { %v8779_v42 = vld [vmem:[%s18446_s0 + $0x180] ss:$16 sm:%s74_s23]   ;;  %v72_v46 = vsel %vm10_vm1, %v8778_v63, %v67_v0  ;;  %v9264_v3 = vld [vmem:[%s18446_s0 + $0xa0c] ss:$16 sm:%s2277_s28]   ;;  %s2315_s28 = smov 3  ;;  %s2548_s23 = smov 12 }
 0x124   :  { %v77_v7 = vsel %vm14_vm2, %v8779_v42, %v72_v46  ;;  %v9265_v9 = vld [vmem:[%s18446_s0 + $0xa0c] ss:$16 sm:%s2282_s3]   ;;  %9098 = vst.msk [vmem:[%s18447_s1 + $0x38] sm:$0xff] %vm1072_vm5, %v1507_v41   ;;  %v2280_v54 = vsel %vm10_vm1, %v9264_v3, %v2275_v8  ;;  %s484_s3 = smov 12 }
 0x125   :  { %v9257_v16 = vld [vmem:[%s18446_s0 + $0x80c] ss:$16 sm:%s2246_s4]   ;;  %8780 = vst.msk [vmem:[%s18447_s1 + $0x18] sm:$0xff] %vm16_vm3, %v77_v7   ;;  %s2384_s4 = smov 3 }
 0x126   :  { %v9258_v12 = vld [vmem:[%s18446_s0 + $0x80c] ss:$16 sm:%s2249_s13]   ;;  %8974 = vst.msk [vmem:[%s18447_s1 + $0x18] sm:$0xff] %vm521_vm4, %v11856_v57   ;;  %v2285_v57 = vsel %vm14_vm2, %v9265_v9, %v2280_v54  ;;  %s2364_s13 = smov 12  ;;  %v1667_v44 = vpop.permute.xlu0 %1666   ;;  %v1736_v2 = vpop.permute.xlu1 %1735  }
 0x127   :  { %v9259_v10 = vld [vmem:[%s18446_s0 + $0x80c] ss:$16 sm:%s2254_s14]   ;;  %v2252_v13 = vsel %vm6_vm0, %v9258_v12, %v9257_v16  ;;  %v8836_v18 = vld [vmem:[%s18446_s0 + $0x780] ss:$16 sm:%s313_s22]   ;;  %s489_s14 = smov 48  ;;  %s2545_s22 = smov 3 }
 0x128   :  { %v9260_v17 = vld [vmem:[%s18446_s0 + $0x80c] ss:$16 sm:%s2259_s21]   ;;  %2286 = vrot.lane.b32.xlu1 %v2285_v57, %s10684_s8  ;;  %v2257_v19 = vsel %vm10_vm1, %v9259_v10, %v2252_v13  ;;  %9093 = vst.msk [vmem:[%s18447_s1 + $0x18] sm:$0xff] %vm1072_vm5, %v1484_v31   ;;  %s2594_s21 = smov 12 }
 0x129   :  { %v8837_v20 = vld [vmem:[%s18446_s0 + $0x780] ss:$16 sm:%s316_s27]   ;;  %v2262_v21 = vsel %vm14_vm2, %v9260_v17, %v2257_v19  ;;  %s242_s27 = smov 192  ;;  %v9272_v60 = vld [vmem:[%s18446_s0 + $0x28c] ss:$16 sm:%s2315_s28]   ;;  %s481_s28 = smov 3 }
 0x12a   :  { %v319_v23 = vsel %vm6_vm0, %v8837_v20, %v8836_v18  ;;  %v8838_v26 = vld [vmem:[%s18446_s0 + $0x780] ss:$16 sm:%s321_s7]   ;;  %2263 = vrot.lane.b32.xlu0 %v2262_v21, %s10684_s8  ;;  %1624 = vst.msk [vmem:[%s18447_s1] sm:$0xff] %vm1623_vm6, %v1622_v45   ;;  %v1782_v20 = vpop.permute.xlu1 %1781   ;;  %s3058_s7 = smov 48 }
 0x12b   :  { %v8839_v27 = vld [vmem:[%s18446_s0 + $0x780] ss:$16 sm:%s326_s11]   ;;  %v324_v24 = vsel %vm10_vm1, %v8838_v26, %v319_v23  ;;  %s2328_s11 = smov 192  ;;  %v9273_v38 = vld [vmem:[%s18446_s0 + $0x28c] ss:$16 sm:%s2318_s30]   ;;  %s2466_s30 = smov 192 }
 0x12c   :  { %v8816_v29 = vld [vmem:[%s18446_s0 + $0x580] ss:$16 sm:%s229_s19]   ;;  %v329_v30 = vsel %vm14_vm2, %v8839_v27, %v324_v24  ;;  %v9274_v39 = vld [vmem:[%s18446_s0 + $0x28c] ss:$16 sm:%s2323_s2]   ;;  %v2321_v40 = vsel %vm6_vm0, %v9273_v38, %v9272_v60  ;;  %s2522_s2 = smov 3  ;;  %s2683_s19 = smov 3 }
 0x12d   :  { %v8817_v32 = vld [vmem:[%s18446_s0 + $0x580] ss:$16 sm:%s232_s18]   ;;  %8840 = vst.msk [vmem:[%s18447_s1 + $0x78] sm:$0xff] %vm16_vm3, %v329_v30   ;;  %v2326_v47 = vsel %vm10_vm1, %v9274_v39, %v2321_v40  ;;  %s2374_s18 = smov 192 }
 0x12e   :  { %v8818_v33 = vld [vmem:[%s18446_s0 + $0x580] ss:$16 sm:%s237_s20]   ;;  %v235_v25 = vsel %vm6_vm0, %v8817_v32, %v8816_v29  ;;  %8989 = vst.msk [vmem:[%s18447_s1 + $0x78] sm:$0xff] %vm521_vm4, %v11881_v22   ;;  %s2338_s20 = smov 3  ;;  %v1828_v38 = vpop.permute.xlu1 %1827  }
 0x12f   :  { %v8819_v35 = vld [vmem:[%s18446_s0 + $0x580] ss:$16 sm:%s242_s27]   ;;  %v240_v22 = vsel %vm10_vm1, %v8818_v33, %v235_v25  ;;  %s2305_s27 = smov 192  ;;  %v9275_v41 = vld [vmem:[%s18446_s0 + $0x28c] ss:$16 sm:%s2328_s11]   ;;  %s410_s11 = smov 192 }
 0x130   :  { %v245_v61 = vsel %vm14_vm2, %v8819_v35, %v240_v22  ;;  %v9267_v43 = vld [vmem:[%s18446_s0 + $0x8c] ss:$16 sm:%s2292_s9]   ;;  %9108 = vst.msk [vmem:[%s18447_s1 + $0x78] sm:$0xff] %vm1072_vm5, %v12491_v62   ;;  %s2361_s9 = smov 3 }
 0x131   :  { %8820 = vst.msk [vmem:[%s18447_s1 + $0x58] sm:$0xff] %vm16_vm3, %v245_v61   ;;  %v9268_v37 = vld [vmem:[%s18446_s0 + $0x8c] ss:$16 sm:%s2295_s16]   ;;  %s2410_s16 = smov 12 }
 0x132   :  { %v9269_v48 = vld [vmem:[%s18446_s0 + $0x8c] ss:$16 sm:%s2300_s17]   ;;  %8984 = vst.msk [vmem:[%s18447_s1 + $0x58] sm:$0xff] %vm521_vm4, %v11915_v15   ;;  %v2331_v15 = vsel %vm14_vm2, %v9275_v41, %v2326_v47  ;;  %v2298_v50 = vsel %vm6_vm0, %v9268_v37, %v9267_v43  ;;  %s2637_s17 = smov 3 }
 0x133   :  { %v9270_v51 = vld [vmem:[%s18446_s0 + $0x8c] ss:$16 sm:%s2305_s27]   ;;  %v8876_v6 = vld [vmem:[%s18446_s0 + $0xb80] ss:$16 sm:%s481_s28]   ;;  %v2303_v31 = vsel %vm10_vm1, %v9269_v48, %v2298_v50  ;;  %s400_s27 = smov 12  ;;  %s405_s28 = smov 48 }
 0x134   :  { %2332 = vrot.lane.b32.xlu1 %v2331_v15, %s10684_s8  ;;  %v8877_v14 = vld [vmem:[%s18446_s0 + $0xb80] ss:$16 sm:%s484_s3]   ;;  %9103 = vst.msk [vmem:[%s18447_s1 + $0x58] sm:$0xff] %vm1072_vm5, %v12523_v5   ;;  %v2308_v53 = vsel %vm14_vm2, %v9270_v51, %v2303_v31  ;;  %s2617_s3 = smov 12 }
 0x135   :  { %9137 = vst.msk [vmem:[%s18447_s1 + $0x60] sm:$0xff] %vm1623_vm6, %v1690_v52   ;;  %v487_v55 = vsel %vm6_vm0, %v8877_v14, %v8876_v6  ;;  %v8878_v56 = vld [vmem:[%s18446_s0 + $0xb80] ss:$16 sm:%s489_s14]   ;;  %2309 = vrot.lane.b32.xlu0 %v2308_v53, %s10684_s8  ;;  %s2369_s14 = smov 48 }
 0x136   :  { %v8879_v58 = vld [vmem:[%s18446_s0 + $0xb80] ss:$16 sm:%s494_s15]   ;;  %v492_v59 = vsel %vm10_vm1, %v8878_v56, %v487_v55  ;;  %9132 = vst.msk [vmem:[%s18447_s1 + $0x40] sm:$0xff] %vm1623_vm6, %v1667_v44   ;;  %9147 = vst.msk [vmem:[%s18447_s1 + $0xa0] sm:$0xff] %vm1623_vm6, %v1736_v2   ;;  %v1874_v2 = vpop.permute.xlu1 %1873   ;;  %s2535_s15 = smov 192 }
 0x137   :  { %v8856_v62 = vld [vmem:[%s18446_s0 + $0x980] ss:$16 sm:%s397_s24]   ;;  %v497_v4 = vsel %vm14_vm2, %v8879_v58, %v492_v59  ;;  %v9282_v46 = vld [vmem:[%s18446_s0 + $0x68c] ss:$16 sm:%s2361_s9]   ;;  %s2407_s9 = smov 3  ;;  %s2453_s24 = smov 3 }
 0x138   :  { %v8857_v63 = vld [vmem:[%s18446_s0 + $0x980] ss:$16 sm:%s400_s27]   ;;  %8880 = vst.msk [vmem:[%s18447_s1 + $0xb8] sm:$0xff] %vm16_vm3, %v497_v4   ;;  %s2420_s27 = smov 192 }
 0x139   :  { %v8858_v0 = vld [vmem:[%s18446_s0 + $0x980] ss:$16 sm:%s405_s28]   ;;  %v403_v42 = vsel %vm6_vm0, %v8857_v63, %v8856_v62  ;;  %8999 = vst.msk [vmem:[%s18447_s1 + $0xb8] sm:$0xff] %vm521_vm4, %v11930_v28   ;;  %s2553_s28 = smov 48 }
 0x13a   :  { %v8859_v1 = vld [vmem:[%s18446_s0 + $0x980] ss:$16 sm:%s410_s11]   ;;  %v408_v28 = vsel %vm10_vm1, %v8858_v0, %v403_v42  ;;  %v9283_v3 = vld [vmem:[%s18446_s0 + $0x68c] ss:$16 sm:%s2364_s13]   ;;  %s2351_s11 = smov 192  ;;  %s2433_s13 = smov 12 }
 0x13b   :  { %v9284_v5 = vld [vmem:[%s18446_s0 + $0x68c] ss:$16 sm:%s2369_s14]   ;;  %v413_v7 = vsel %vm14_vm2, %v8859_v1, %v408_v28  ;;  %v2367_v8 = vsel %vm6_vm0, %v9283_v3, %v9282_v46  ;;  %9118 = vst.msk [vmem:[%s18447_s1 + $0xb8] sm:$0xff] %vm1072_vm5, %v12548_v11   ;;  %v1713_v11 = vpop.permute.xlu0 %1712   ;;  %s2438_s14 = smov 48 }
 0x13c   :  { %v9285_v9 = vld [vmem:[%s18446_s0 + $0x68c] ss:$16 sm:%s2374_s18]   ;;  %8860 = vst.msk [vmem:[%s18447_s1 + $0x98] sm:$0xff] %vm16_vm3, %v413_v7   ;;  %v2372_v54 = vsel %vm10_vm1, %v9284_v5, %v2367_v8  ;;  %s2397_s18 = smov 192  ;;  %vm7133_vm3 = vcmask 130144  }
 0x13d   :  { %v9277_v16 = vld [vmem:[%s18446_s0 + $0x48c] ss:$16 sm:%s2338_s20]   ;;  %8994 = vst.msk [vmem:[%s18447_s1 + $0x98] sm:$0xff] %vm521_vm4, %v11955_v36   ;;  %v2377_v36 = vsel %vm14_vm2, %v9285_v9, %v2372_v54  ;;  %s2591_s20 = smov 3  ;;  %vm7684_vm4 = vcmask 97344  }
 0x13e   :  { %v9278_v12 = vld [vmem:[%s18446_s0 + $0x48c] ss:$16 sm:%s2341_s29]   ;;  %9142 = vst.msk [vmem:[%s18447_s1 + $0x80] sm:$0xff] %vm1623_vm6, %v1713_v11   ;;  %2378 = vrot.lane.b32.xlu1 %v2377_v36, %s10684_s8  ;;  %s2558_s29 = smov 192 }
 0x13f   :  { %v9279_v10 = vld [vmem:[%s18446_s0 + $0x48c] ss:$16 sm:%s2346_s6]   ;;  %v2344_v57 = vsel %vm6_vm0, %v9278_v12, %v9277_v16  ;;  %9113 = vst.msk [vmem:[%s18447_s1 + $0x98] sm:$0xff] %vm1072_vm5, %v12580_v49   ;;  %s2461_s6 = smov 48  ;;  %v1759_v33 = vpop.permute.xlu0 %1758  }
 0x140   :  { %v9280_v13 = vld [vmem:[%s18446_s0 + $0x48c] ss:$16 sm:%s2351_s11]   ;;  %v2349_v18 = vsel %vm10_vm1, %v9279_v10, %v2344_v57  ;;  %9157 = vst.msk [vmem:[%s18447_s1 + $0x28] sm:$0xff] %vm1623_vm6, %v1782_v20   ;;  %9152 = vst.msk [vmem:[%s18447_s1 + $0x8] sm:$0xff] %vm1623_vm6, %v1759_v33   ;;  %s2525_s11 = smov 12 }
 0x141   :  { %v9292_v17 = vld [vmem:[%s18446_s0 + $0xa8c] ss:$16 sm:%s2407_s9]   ;;  %v2354_v21 = vsel %vm14_vm2, %v9280_v13, %v2349_v18  ;;  %9167 = vst.msk [vmem:[%s18447_s1 + $0x68] sm:$0xff] %vm1623_vm6, %v1828_v38   ;;  %s2530_s9 = smov 48  ;;  %9177 = vst.msk [vmem:[%s18447_s1 + $0xa8] sm:$0xff] %vm1623_vm6, %v1874_v2  }
 0x142   :  { %v9293_v19 = vld [vmem:[%s18446_s0 + $0xa8c] ss:$16 sm:%s2410_s16]   ;;  %2355 = vrot.lane.b32.xlu0 %v2354_v21, %s10684_s8  ;;  %s2686_s16 = smov 12 }
 0x143   :  { %v2413_v23 = vsel %vm6_vm0, %v9293_v19, %v9292_v17  ;;  %v9294_v26 = vld [vmem:[%s18446_s0 + $0xa8c] ss:$16 sm:%s2415_s26]   ;;  %v1805_v15 = vpop.permute.xlu0 %1804   ;;  %s2599_s26 = smov 48 }
 0x144   :  { %v9295_v27 = vld [vmem:[%s18446_s0 + $0xa8c] ss:$16 sm:%s2420_s27]   ;;  %v2418_v49 = vsel %vm10_vm1, %v9294_v26, %v2413_v23  ;;  %9162 = vst.msk [vmem:[%s18447_s1 + $0x48] sm:$0xff] %vm1623_vm6, %v1805_v15   ;;  %s2604_s27 = smov 192 }
 0x145   :  { %v9287_v24 = vld [vmem:[%s18446_s0 + $0x88c] ss:$16 sm:%s2384_s4]   ;;  %v2423_v29 = vsel %vm14_vm2, %v9295_v27, %v2418_v49  ;;  %s2430_s4 = smov 3 }
 0x146   :  { %v9288_v30 = vld [vmem:[%s18446_s0 + $0x88c] ss:$16 sm:%s2387_s10]   ;;  %2424 = vrot.lane.b32.xlu1 %v2423_v29, %s10684_s8  ;;  %s2673_s10 = smov 192 }
 0x147   :  { %v9289_v32 = vld [vmem:[%s18446_s0 + $0x88c] ss:$16 sm:%s2392_s12]   ;;  %v2390_v34 = vsel %vm6_vm0, %v9288_v30, %v9287_v24  ;;  %v1851_v16 = vpop.permute.xlu0 %1850   ;;  %s2971_s12 = smov 192 }
 0x148   :  { %v9290_v25 = vld [vmem:[%s18446_s0 + $0x88c] ss:$16 sm:%s2397_s18]   ;;  %v2395_v35 = vsel %vm10_vm1, %v9289_v32, %v2390_v34  ;;  %s2443_s18 = smov 192  ;;  %9172 = vst.msk [vmem:[%s18447_s1 + $0x88] sm:$0xff] %vm1623_vm6, %v1851_v16   ;;  %v1920_v32 = vpop.permute.xlu1 %1919  }
 0x149   :  { %v9302_v60 = vld [vmem:[%s18446_s0 + $0x30c] ss:$16 sm:%s2453_s24]   ;;  %v2400_v39 = vsel %vm14_vm2, %v9290_v25, %v2395_v35  ;;  %s2499_s24 = smov 3  ;;  %9187 = vst.msk [vmem:[%s18447_s1 + $0x30] sm:$0xff] %vm1623_vm6, %v1920_v32  }
 0x14a   :  { %v9303_v22 = vld [vmem:[%s18446_s0 + $0x30c] ss:$16 sm:%s2456_s25]   ;;  %2401 = vrot.lane.b32.xlu0 %v2400_v39, %s10684_s8  ;;  %s2502_s25 = smov 12 }
 0x14b   :  { %v2459_v61 = vsel %vm6_vm0, %v9303_v22, %v9302_v60  ;;  %v9304_v40 = vld [vmem:[%s18446_s0 + $0x30c] ss:$16 sm:%s2461_s6]   ;;  %s2507_s6 = smov 48  ;;  %v1897_v39 = vpop.permute.xlu0 %1896  }
 0x14c   :  { %v9305_v41 = vld [vmem:[%s18446_s0 + $0x30c] ss:$16 sm:%s2466_s30]   ;;  %v2464_v43 = vsel %vm10_vm1, %v9304_v40, %v2459_v61  ;;  %s2512_s30 = smov 192  ;;  %9182 = vst.msk [vmem:[%s18447_s1 + $0x10] sm:$0xff] %vm1623_vm6, %v1897_v39  }
 0x14d   :  { %v9297_v45 = vld [vmem:[%s18446_s0 + $0x10c] ss:$16 sm:%s2430_s4]   ;;  %v2469_v47 = vsel %vm14_vm2, %v9305_v41, %v2464_v43  ;;  %s2476_s4 = smov 3 }
 0x14e   :  { %v9298_v37 = vld [vmem:[%s18446_s0 + $0x10c] ss:$16 sm:%s2433_s13]   ;;  %2470 = vrot.lane.b32.xlu1 %v2469_v47, %s10684_s8  ;;  %s2479_s13 = smov 12 }
 0x14f   :  { %v9299_v48 = vld [vmem:[%s18446_s0 + $0x10c] ss:$16 sm:%s2438_s14]   ;;  %v2436_v50 = vsel %vm6_vm0, %v9298_v37, %v9297_v45  ;;  %s2484_s14 = smov 48 }
 0x150   :  { %v9300_v51 = vld [vmem:[%s18446_s0 + $0x10c] ss:$16 sm:%s2443_s18]   ;;  %v2441_v6 = vsel %vm10_vm1, %v9299_v48, %v2436_v50  ;;  %s2489_s18 = smov 192 }
 0x151   :  { %v9312_v52 = vld [vmem:[%s18446_s0 + $0x70c] ss:$16 sm:%s2499_s24]   ;;  %v2446_v14 = vsel %vm14_vm2, %v9300_v51, %v2441_v6  ;;  %s2645_s24 = smov 48 }
 0x152   :  { %v9313_v31 = vld [vmem:[%s18446_s0 + $0x70c] ss:$16 sm:%s2502_s25]   ;;  %2447 = vrot.lane.b32.xlu0 %v2446_v14, %s10684_s8  ;;  %s2650_s25 = smov 192 }
 0x153   :  { %v2505_v53 = vsel %vm6_vm0, %v9313_v31, %v9312_v52  ;;  %v9314_v55 = vld [vmem:[%s18446_s0 + $0x70c] ss:$16 sm:%s2507_s6]   ;;  %s2759_s6 = smov 48 }
 0x154   :  { %v9315_v56 = vld [vmem:[%s18446_s0 + $0x70c] ss:$16 sm:%s2512_s30]   ;;  %v2510_v58 = vsel %vm10_vm1, %v9314_v55, %v2505_v53  ;;  %s2709_s30 = smov 12 }
 0x155   :  { %v9307_v59 = vld [vmem:[%s18446_s0 + $0x50c] ss:$16 sm:%s2476_s4]   ;;  %v2515_v62 = vsel %vm14_vm2, %v9315_v56, %v2510_v58  ;;  %s2622_s4 = smov 48 }
 0x156   :  { %v9308_v44 = vld [vmem:[%s18446_s0 + $0x50c] ss:$16 sm:%s2479_s13]   ;;  %2516 = vrot.lane.b32.xlu1 %v2515_v62, %s10684_s8  ;;  %s2627_s13 = smov 192 }
 0x157   :  { %v9309_v4 = vld [vmem:[%s18446_s0 + $0x50c] ss:$16 sm:%s2484_s14]   ;;  %v2482_v63 = vsel %vm6_vm0, %v9308_v44, %v9307_v59  ;;  %s2728_s14 = smov 3  ;;  %v1966_v59 = vpop.permute.xlu1 %1965  }
 0x158   :  { %v9310_v0 = vld [vmem:[%s18446_s0 + $0x50c] ss:$16 sm:%s2489_s18]   ;;  %v2487_v42 = vsel %vm10_vm1, %v9309_v4, %v2482_v63  ;;  %s2640_s18 = smov 12  ;;  %9197 = vst.msk [vmem:[%s18447_s1 + $0x70] sm:$0xff] %vm1623_vm6, %v1966_v59  }
 0x159   :  { %v9322_v1 = vld [vmem:[%s18446_s0 + $0xb0c] ss:$16 sm:%s2545_s22]   ;;  %v2492_v28 = vsel %vm14_vm2, %v9310_v0, %v2487_v42  ;;  %v9361_v63 = vld [vmem:[%s18446_s0 + $0x20b] ss:$16 sm:%s2728_s14]   ;;  %v1943_v42 = vpop.permute.xlu0 %1942   ;;  %s2777_s14 = smov 12  ;;  %s2797_s22 = smov 3 }
 0x15a   :  { %v9323_v46 = vld [vmem:[%s18446_s0 + $0xb0c] ss:$16 sm:%s2548_s23]   ;;  %2493 = vrot.lane.b32.xlu0 %v2492_v28, %s10684_s8  ;;  %9192 = vst.msk [vmem:[%s18447_s1 + $0x50] sm:$0xff] %vm1623_vm6, %v1943_v42   ;;  %s3086_s23 = smov 192 }
 0x15b   :  { %v2551_v3 = vsel %vm6_vm0, %v9323_v46, %v9322_v1  ;;  %v9324_v5 = vld [vmem:[%s18446_s0 + $0xb0c] ss:$16 sm:%s2553_s28]   ;;  %s2614_s28 = smov 3 }
 0x15c   :  { %v9325_v7 = vld [vmem:[%s18446_s0 + $0xb0c] ss:$16 sm:%s2558_s29]   ;;  %v2556_v8 = vsel %vm10_vm1, %v9324_v5, %v2551_v3  ;;  %s2754_s29 = smov 12 }
 0x15d   :  { %v9317_v9 = vld [vmem:[%s18446_s0 + $0x90c] ss:$16 sm:%s2522_s2]   ;;  %v2561_v54 = vsel %vm14_vm2, %v9325_v7, %v2556_v8  ;;  %s2568_s2 = smov 3  ;;  %v9358_v8 = vld [vmem:[%s18446_s0 + $0xb] ss:$16 sm:%s2709_s30]   ;;  %s2856_s30 = smov 192 }
 0x15e   :  { %v9318_v12 = vld [vmem:[%s18446_s0 + $0x90c] ss:$16 sm:%s2525_s11]   ;;  %2562 = vrot.lane.b32.xlu1 %v2561_v54, %s10684_s8  ;;  %s2571_s11 = smov 12 }
 0x15f   :  { %v9319_v10 = vld [vmem:[%s18446_s0 + $0x90c] ss:$16 sm:%s2530_s9]   ;;  %v2528_v11 = vsel %vm6_vm0, %v9318_v12, %v9317_v9  ;;  %s2576_s9 = smov 48 }
 0x160   :  { %v9320_v36 = vld [vmem:[%s18446_s0 + $0x90c] ss:$16 sm:%s2535_s15]   ;;  %v2533_v57 = vsel %vm10_vm1, %v9319_v10, %v2528_v11  ;;  %s2581_s15 = smov 192  ;;  %v9372_v11 = vld [vmem:[%s18446_s0 + $0x60b] ss:$16 sm:%s2777_s14]   ;;  %s2925_s14 = smov 192 }
 0x161   :  { %v9332_v13 = vld [vmem:[%s18446_s0 + $0x38c] ss:$16 sm:%s2591_s20]   ;;  %v2538_v18 = vsel %vm14_vm2, %v9320_v36, %v2533_v57  ;;  %s2736_s20 = smov 48  ;;  %v9404_v42 = vld [vmem:[%s18446_s0 + $0x68b] ss:$16 sm:%s2925_s14]   ;;  %s3122_s14 = smov 12 }
 0x162   :  { %v9333_v17 = vld [vmem:[%s18446_s0 + $0x38c] ss:$16 sm:%s2594_s21]   ;;  %2539 = vrot.lane.b32.xlu0 %v2538_v18, %s10684_s8  ;;  %s2741_s21 = smov 192 }
 0x163   :  { %v2597_v19 = vsel %vm6_vm0, %v9333_v17, %v9332_v13  ;;  %v9334_v20 = vld [vmem:[%s18446_s0 + $0x38c] ss:$16 sm:%s2599_s26]   ;;  %v9363_v2 = vld [vmem:[%s18446_s0 + $0x20b] ss:$16 sm:%s2736_s20]   ;;  %s2787_s20 = smov 192  ;;  %s2851_s26 = smov 48 }
 0x164   :  { %v9335_v21 = vld [vmem:[%s18446_s0 + $0x38c] ss:$16 sm:%s2604_s27]   ;;  %v2602_v23 = vsel %vm10_vm1, %v9334_v20, %v2597_v19  ;;  %v9364_v28 = vld [vmem:[%s18446_s0 + $0x20b] ss:$16 sm:%s2741_s21]   ;;  %s10685_s21 = smov 44   ;;  %v2012_v20 = vpop.permute.xlu1 %2011   ;;  %s2800_s27 = smov 12 }
 0x165   :  { %v9327_v26 = vld [vmem:[%s18446_s0 + $0x18c] ss:$16 sm:%s2568_s2]   ;;  %v2607_v27 = vsel %vm14_vm2, %v9335_v21, %v2602_v23  ;;  %s2714_s2 = smov 48  ;;  %v9374_v17 = vld [vmem:[%s18446_s0 + $0x60b] ss:$16 sm:%s2787_s20]   ;;  %s2938_s20 = smov 12 }
 0x166   :  { %v9328_v49 = vld [vmem:[%s18446_s0 + $0x18c] ss:$16 sm:%s2571_s11]   ;;  %2608 = vrot.lane.b32.xlu1 %v2607_v27, %s10684_s8  ;;  %s2719_s11 = smov 192  ;;  %9207 = vst.msk [vmem:[%s18447_s1 + $0xb0] sm:$0xff] %vm1623_vm6, %v2012_v20  }
 0x167   :  { %v9329_v24 = vld [vmem:[%s18446_s0 + $0x18c] ss:$16 sm:%s2576_s9]   ;;  %v2574_v29 = vsel %vm6_vm0, %v9328_v49, %v9327_v26  ;;  %v9359_v9 = vld [vmem:[%s18446_s0 + $0xb] ss:$16 sm:%s2714_s2]   ;;  %s2820_s9 = smov 3  ;;  %s3004_s2 = smov 3 }
 0x168   :  { %v9330_v30 = vld [vmem:[%s18446_s0 + $0x18c] ss:$16 sm:%s2581_s15]   ;;  %v2579_v33 = vsel %vm10_vm1, %v9329_v24, %v2574_v29  ;;  %s2731_s15 = smov 12  ;;  %v9360_v54 = vld [vmem:[%s18446_s0 + $0xb] ss:$16 sm:%s2719_s11]   ;;  %v1989_v24 = vpop.permute.xlu0 %1988   ;;  %s3063_s11 = smov 192 }
 0x169   :  { %v9342_v34 = vld [vmem:[%s18446_s0 + $0x78c] ss:$16 sm:%s2637_s17]   ;;  %v2584_v35 = vsel %vm14_vm2, %v9330_v30, %v2579_v33  ;;  %v9362_v0 = vld [vmem:[%s18446_s0 + $0x20b] ss:$16 sm:%s2731_s15]   ;;  %s2828_s15 = smov 48  ;;  %s3178_s17 = smov 192 }
 0x16a   :  { %v9343_v25 = vld [vmem:[%s18446_s0 + $0x78c] ss:$16 sm:%s2640_s18]   ;;  %2585 = vrot.lane.b32.xlu0 %v2584_v35, %s10684_s8  ;;  %v2734_v46 = vsel %vm6_vm0, %v9362_v0, %v9361_v63  ;;  %s2782_s18 = smov 48  ;;  %9202 = vst.msk [vmem:[%s18447_s1 + $0x90] sm:$0xff] %vm1623_vm6, %v1989_v24  }
 0x16b   :  { %v2643_v60 = vsel %vm6_vm0, %v9343_v25, %v9342_v34  ;;  %v9344_v22 = vld [vmem:[%s18446_s0 + $0x78c] ss:$16 sm:%s2645_s24]   ;;  %s2691_s24 = smov 48  ;;  %v2739_v3 = vsel %vm10_vm1, %v9363_v2, %v2734_v46  ;;  %v9373_v13 = vld [vmem:[%s18446_s0 + $0x60b] ss:$16 sm:%s2782_s18]   ;;  %s2843_s18 = smov 3 }
 0x16c   :  { %v9345_v38 = vld [vmem:[%s18446_s0 + $0x78c] ss:$16 sm:%s2650_s25]   ;;  %v2648_v61 = vsel %vm10_vm1, %v9344_v22, %v2643_v60  ;;  %s2696_s25 = smov 192  ;;  %v2744_v7 = vsel %vm14_vm2, %v9364_v28, %v2739_v3  ;;  %v9367_v23 = vld [vmem:[%s18446_s0 + $0x40b] ss:$16 sm:%s2754_s29]   ;;  %s3099_s29 = smov 12 }
 0x16d   :  { %v9337_v40 = vld [vmem:[%s18446_s0 + $0x58c] ss:$16 sm:%s2614_s28]   ;;  %v2653_v41 = vsel %vm14_vm2, %v9345_v38, %v2648_v61  ;;  %s2660_s28 = smov 3  ;;  %v9368_v26 = vld [vmem:[%s18446_s0 + $0x40b] ss:$16 sm:%s2759_s6]   ;;  %s3050_s6 = smov 3 }
 0x16e   :  { %v9338_v43 = vld [vmem:[%s18446_s0 + $0x58c] ss:$16 sm:%s2617_s3]   ;;  %2654 = vrot.lane.b32.xlu1 %v2653_v41, %s10684_s8  ;;  %s2663_s3 = smov 12 }
 0x16f   :  { %v9339_v45 = vld [vmem:[%s18446_s0 + $0x58c] ss:$16 sm:%s2622_s4]   ;;  %v2620_v47 = vsel %vm6_vm0, %v9338_v43, %v9337_v40  ;;  %s2668_s4 = smov 48  ;;  %v9369_v49 = vld [vmem:[%s18446_s0 + $0x40b] ss:$16 sm:%s2764_s5]   ;;  %s2810_s5 = smov 192 }
 0x170   :  { %v9340_v37 = vld [vmem:[%s18446_s0 + $0x58c] ss:$16 sm:%s2627_s13]   ;;  %v2625_v48 = vsel %vm10_vm1, %v9339_v45, %v2620_v47  ;;  %s2774_s13 = smov 3  ;;  %v9381_v30 = vld [vmem:[%s18446_s0 + $0xa0b] ss:$16 sm:%s2820_s9]   ;;  %s2866_s9 = smov 3 }
 0x171   :  { %v9352_v15 = vld [vmem:[%s18446_s0 + $0xb8c] ss:$16 sm:%s2683_s19]   ;;  %v2630_v51 = vsel %vm14_vm2, %v9340_v37, %v2625_v48  ;;  %v9371_v10 = vld [vmem:[%s18446_s0 + $0x60b] ss:$16 sm:%s2774_s13]   ;;  %s2833_s19 = smov 192  ;;  %s2920_s13 = smov 48 }
 0x172   :  { %v9353_v50 = vld [vmem:[%s18446_s0 + $0xb8c] ss:$16 sm:%s2686_s16]   ;;  %2631 = vrot.lane.b32.xlu0 %v2630_v51, %s10684_s8  ;;  %v2780_v57 = vsel %vm6_vm0, %v9372_v11, %v9371_v10  ;;  %v2058_v51 = vpop.permute.xlu1 %2057   ;;  %s2889_s16 = smov 3 }
 0x173   :  { %v2689_v6 = vsel %vm6_vm0, %v9353_v50, %v9352_v15  ;;  %v9354_v52 = vld [vmem:[%s18446_s0 + $0xb8c] ss:$16 sm:%s2691_s24]   ;;  %s2706_s24 = smov 3  ;;  %v2785_v18 = vsel %vm10_vm1, %v9373_v13, %v2780_v57  ;;  %v9383_v25 = vld [vmem:[%s18446_s0 + $0xa0b] ss:$16 sm:%s2828_s15]   ;;  %s2874_s15 = smov 48 }
 0x174   :  { %v9355_v31 = vld [vmem:[%s18446_s0 + $0xb8c] ss:$16 sm:%s2696_s25]   ;;  %v2694_v14 = vsel %vm10_vm1, %v9354_v52, %v2689_v6  ;;  %v9357_v5 = vld [vmem:[%s18446_s0 + $0xb] ss:$16 sm:%s2706_s24]   ;;  %s2751_s24 = smov 3  ;;  %v2790_v21 = vsel %vm14_vm2, %v9374_v17, %v2785_v18  ;;  %s2846_s25 = smov 12 }
 0x175   :  { %v9347_v53 = vld [vmem:[%s18446_s0 + $0x98c] ss:$16 sm:%s2660_s28]   ;;  %v2699_v55 = vsel %vm14_vm2, %v9355_v31, %v2694_v14  ;;  %v2712_v16 = vsel %vm6_vm0, %v9358_v8, %v9357_v5  ;;  %v9366_v19 = vld [vmem:[%s18446_s0 + $0x40b] ss:$16 sm:%s2751_s24]   ;;  %s2805_s28 = smov 48  ;;  %s3384_s24 = smov 192 }
 0x176   :  { %v9348_v56 = vld [vmem:[%s18446_s0 + $0x98c] ss:$16 sm:%s2663_s3]   ;;  %2700 = vrot.lane.b32.xlu1 %v2699_v55, %s10684_s8  ;;  %v2717_v12 = vsel %vm10_vm1, %v9359_v9, %v2712_v16  ;;  %v2757_v27 = vsel %vm6_vm0, %v9367_v23, %v9366_v19  ;;  %9217 = vst.msk [vmem:[%s18447_s1 + $0x38] sm:$0xff] %vm1623_vm6, %v2058_v51   ;;  %v2035_v55 = vpop.permute.xlu0 %2034   ;;  %s3007_s3 = smov 12 }
 0x177   :  { %v9349_v58 = vld [vmem:[%s18446_s0 + $0x98c] ss:$16 sm:%s2668_s4]   ;;  %v2666_v62 = vsel %vm6_vm0, %v9348_v56, %v9347_v53  ;;  %v2722_v36 = vsel %vm14_vm2, %v9360_v54, %v2717_v12  ;;  %v2762_v29 = vsel %vm10_vm1, %v9368_v26, %v2757_v27  ;;  %v9384_v35 = vld [vmem:[%s18446_s0 + $0xa0b] ss:$16 sm:%s2833_s19]   ;;  %s2879_s19 = smov 192  ;;  %s2912_s4 = smov 3  ;;  %v2104_v54 = vpop.permute.xlu1 %2103  }
 0x178   :  { %v9350_v44 = vld [vmem:[%s18446_s0 + $0x98c] ss:$16 sm:%s2673_s10]   ;;  %v2671_v4 = vsel %vm10_vm1, %v9349_v58, %v2666_v62  ;;  %s2823_s10 = smov 12  ;;  %v2767_v33 = vsel %vm14_vm2, %v9369_v49, %v2762_v29  ;;  %v9376_v22 = vld [vmem:[%s18446_s0 + $0x80b] ss:$16 sm:%s2797_s22]   ;;  %s2943_s22 = smov 48 }
 0x179   :  { %v2676_v1 = vsel %vm14_vm2, %v9350_v44, %v2671_v4  ;;  %v9382_v32 = vld [vmem:[%s18446_s0 + $0xa0b] ss:$16 sm:%s2823_s10]   ;;  %s2869_s10 = smov 12  ;;  %9212 = vst.msk [vmem:[%s18447_s1 + $0x18] sm:$0xff] %vm1623_vm6, %v2035_v55   ;;  %9227 = vst.msk [vmem:[%s18447_s1 + $0x78] sm:$0xff] %vm1623_vm6, %v2104_v54  }
 0x17a   :  { %2677 = vrot.lane.b32.xlu0 %v2676_v1, %s10684_s8  ;;  %2745 = vrot.lane.b32.xlu1 %v2744_v7, %s10685_s21  ;;  %v2826_v34 = vsel %vm6_vm0, %v9382_v32, %v9381_v30  ;;  %v9377_v39 = vld [vmem:[%s18446_s0 + $0x80b] ss:$16 sm:%s2800_s27]   ;;  %s2966_s8 = smov 48  ;;  %s2948_s27 = smov 192  ;;  %v2081_v17 = vpop.permute.xlu0 %2080  }
 0x17b   :  { %v2831_v60 = vsel %vm10_vm1, %v9383_v25, %v2826_v34  ;;  %v9378_v61 = vld [vmem:[%s18446_s0 + $0x80b] ss:$16 sm:%s2805_s28]   ;;  %v2803_v40 = vsel %vm6_vm0, %v9377_v39, %v9376_v22  ;;  %9222 = vst.msk [vmem:[%s18447_s1 + $0x58] sm:$0xff] %vm1623_vm6, %v2081_v17   ;;  %v2150_v39 = vpop.permute.xlu1 %2149   ;;  %s3096_s28 = smov 3 }
 0x17c   :  { %v2836_v38 = vsel %vm14_vm2, %v9384_v35, %v2831_v60  ;;  %v9379_v41 = vld [vmem:[%s18446_s0 + $0x80b] ss:$16 sm:%s2810_s5]   ;;  %v2808_v43 = vsel %vm10_vm1, %v9378_v61, %v2803_v40  ;;  %s2915_s5 = smov 12  ;;  %9237 = vst.msk [vmem:[%s18447_s1 + $0xb8] sm:$0xff] %vm1623_vm6, %v2150_v39  }
 0x17d   :  { %v9391_v45 = vld [vmem:[%s18446_s0 + $0x28b] ss:$16 sm:%s2866_s9]   ;;  %v2813_v37 = vsel %vm14_vm2, %v9379_v41, %v2808_v43  ;;  %s3012_s9 = smov 48 }
 0x17e   :  { %2723 = vrot.lane.b32.xlu0 %v2722_v36, %s10685_s21  ;;  %2791 = vrot.lane.b32.xlu1 %v2790_v21, %s10685_s21  ;;  %v9392_v47 = vld [vmem:[%s18446_s0 + $0x28b] ss:$16 sm:%s2869_s10]   ;;  %s3017_s10 = smov 192 }
 0x17f   :  { %v2872_v48 = vsel %vm6_vm0, %v9392_v47, %v9391_v45  ;;  %v9393_v15 = vld [vmem:[%s18446_s0 + $0x28b] ss:$16 sm:%s2874_s15]   ;;  %s2935_s15 = smov 3 }
 0x180   :  { %v9394_v50 = vld [vmem:[%s18446_s0 + $0x28b] ss:$16 sm:%s2879_s19]   ;;  %v2877_v6 = vsel %vm10_vm1, %v9393_v15, %v2872_v48  ;;  %s3030_s19 = smov 12  ;;  %v2127_v48 = vpop.permute.xlu0 %2126  }
 0x181   :  { %v9386_v52 = vld [vmem:[%s18446_s0 + $0x8b] ss:$16 sm:%s2843_s18]   ;;  %v2882_v31 = vsel %vm14_vm2, %v9394_v50, %v2877_v6  ;;  %9232 = vst.msk [vmem:[%s18447_s1 + $0x98] sm:$0xff] %vm1623_vm6, %v2127_v48   ;;  %s3476_s18 = smov 192 }
 0x182   :  { %2768 = vrot.lane.b32.xlu0 %v2767_v33, %s10685_s21  ;;  %2837 = vrot.lane.b32.xlu1 %v2836_v38, %s10685_s21  ;;  %v9387_v14 = vld [vmem:[%s18446_s0 + $0x8b] ss:$16 sm:%s2846_s25]   ;;  %s2892_s25 = smov 12 }
 0x183   :  { %v9388_v53 = vld [vmem:[%s18446_s0 + $0x8b] ss:$16 sm:%s2851_s26]   ;;  %v2849_v56 = vsel %vm6_vm0, %v9387_v14, %v9386_v52  ;;  %s2897_s26 = smov 48 }
 0x184   :  { %v9389_v58 = vld [vmem:[%s18446_s0 + $0x8b] ss:$16 sm:%s2856_s30]   ;;  %v2854_v59 = vsel %vm10_vm1, %v9388_v53, %v2849_v56  ;;  %s2902_s30 = smov 192 }
 0x185   :  { %v9401_v62 = vld [vmem:[%s18446_s0 + $0x68b] ss:$16 sm:%s2912_s4]   ;;  %v2859_v4 = vsel %vm14_vm2, %v9389_v58, %v2854_v59  ;;  %s2958_s4 = smov 3 }
 0x186   :  { %2814 = vrot.lane.b32.xlu0 %v2813_v37, %s10685_s21  ;;  %2883 = vrot.lane.b32.xlu1 %v2882_v31, %s10685_s21  ;;  %v9402_v44 = vld [vmem:[%s18446_s0 + $0x68b] ss:$16 sm:%s2915_s5]   ;;  %s2961_s5 = smov 12 }
 0x187   :  { %v2918_v63 = vsel %vm6_vm0, %v9402_v44, %v9401_v62  ;;  %v9403_v0 = vld [vmem:[%s18446_s0 + $0x68b] ss:$16 sm:%s2920_s13]   ;;  %s3173_s13 = smov 48 }
 0x188   :  { %v2923_v1 = vsel %vm10_vm1, %v9403_v0, %v2918_v63  ;;  %v9396_v46 = vld [vmem:[%s18446_s0 + $0x48b] ss:$16 sm:%s2889_s16]   ;;  %s3035_s16 = smov 48 }
 0x189   :  { %v2928_v2 = vsel %vm14_vm2, %v9404_v42, %v2923_v1  ;;  %v9397_v28 = vld [vmem:[%s18446_s0 + $0x48b] ss:$16 sm:%s2892_s25]   ;;  %s3040_s25 = smov 192 }
 0x18a   :  { %2860 = vrot.lane.b32.xlu0 %v2859_v4, %s10685_s21  ;;  %v9398_v3 = vld [vmem:[%s18446_s0 + $0x48b] ss:$16 sm:%s2897_s26]   ;;  %2929 = vrot.lane.b32.xlu1 %v2928_v2, %s10685_s21  ;;  %v2895_v5 = vsel %vm6_vm0, %v9397_v28, %v9396_v46  ;;  %s3142_s26 = smov 3  ;;  %v2195_v46 = vpop.permute.xlu1 %2194  }
 0x18b   :  { %v9399_v7 = vld [vmem:[%s18446_s0 + $0x48b] ss:$16 sm:%s2902_s30]   ;;  %v2900_v8 = vsel %vm10_vm1, %v9398_v3, %v2895_v5  ;;  %s3053_s30 = smov 12  ;;  %9246 = vst.msk [vmem:[%s18447_s1 + $0x20] sm:$0xff] %vm2174_vm7, %v2195_v46  }
 0x18c   :  { %v9411_v9 = vld [vmem:[%s18446_s0 + $0xa8b] ss:$16 sm:%s2958_s4]   ;;  %v2905_v12 = vsel %vm14_vm2, %v9399_v7, %v2900_v8  ;;  %v2173_v8 = vpop.permute.xlu0 %2172   ;;  %s3211_s4 = smov 3 }
 0x18d   :  { %v9412_v16 = vld [vmem:[%s18446_s0 + $0xa8b] ss:$16 sm:%s2961_s5]   ;;  %2175 = vst.msk [vmem:[%s18447_s1] sm:$0xff] %vm2174_vm7, %v2173_v8  }
 0x18e   :  { %v2964_v10 = vsel %vm6_vm0, %v9412_v16, %v9411_v9  ;;  %v9413_v11 = vld [vmem:[%s18446_s0 + $0xa8b] ss:$16 sm:%s2966_s8]   ;;  %2906 = vrot.lane.b32.xlu0 %v2905_v12, %s10685_s21  ;;  %s3027_s8 = smov 3 }
 0x18f   :  { %v9414_v36 = vld [vmem:[%s18446_s0 + $0xa8b] ss:$16 sm:%s2971_s12]   ;;  %v2969_v57 = vsel %vm10_vm1, %v9413_v11, %v2964_v10  ;;  %s3168_s12 = smov 12 }
 0x190   :  { %v9406_v13 = vld [vmem:[%s18446_s0 + $0x88b] ss:$16 sm:%s2935_s15]   ;;  %v2974_v18 = vsel %vm14_vm2, %v9414_v36, %v2969_v57  ;;  %s2981_s15 = smov 3 }
 0x191   :  { %v9407_v19 = vld [vmem:[%s18446_s0 + $0x88b] ss:$16 sm:%s2938_s20]   ;;  %2975 = vrot.lane.b32.xlu1 %v2974_v18, %s10685_s21  ;;  %s2984_s20 = smov 12 }
 0x192   :  { %v9408_v20 = vld [vmem:[%s18446_s0 + $0x88b] ss:$16 sm:%s2943_s22]   ;;  %v2941_v21 = vsel %vm6_vm0, %v9407_v19, %v9406_v13  ;;  %s2989_s22 = smov 48 }
 0x193   :  { %v9409_v23 = vld [vmem:[%s18446_s0 + $0x88b] ss:$16 sm:%s2948_s27]   ;;  %v2946_v26 = vsel %vm10_vm1, %v9408_v20, %v2941_v21  ;;  %s2994_s27 = smov 192 }
 0x194   :  { %v9421_v27 = vld [vmem:[%s18446_s0 + $0x30b] ss:$16 sm:%s3004_s2]   ;;  %v2951_v24 = vsel %vm14_vm2, %v9409_v23, %v2946_v26  ;;  %s3150_s2 = smov 48 }
 0x195   :  { %v9422_v49 = vld [vmem:[%s18446_s0 + $0x30b] ss:$16 sm:%s3007_s3]   ;;  %2952 = vrot.lane.b32.xlu0 %v2951_v24, %s10685_s21  ;;  %s3155_s3 = smov 192 }
 0x196   :  { %v3010_v29 = vsel %vm6_vm0, %v9422_v49, %v9421_v27  ;;  %v9423_v30 = vld [vmem:[%s18446_s0 + $0x30b] ss:$16 sm:%s3012_s9]   ;;  %s3265_s9 = smov 48 }
 0x197   :  { %v9424_v32 = vld [vmem:[%s18446_s0 + $0x30b] ss:$16 sm:%s3017_s10]   ;;  %v3015_v33 = vsel %vm10_vm1, %v9423_v30, %v3010_v29  ;;  %v2241_v30 = vpop.permute.xlu1 %2240   ;;  %s3214_s10 = smov 12 }
 0x198   :  { %v9416_v34 = vld [vmem:[%s18446_s0 + $0x10b] ss:$16 sm:%s2981_s15]   ;;  %v3020_v25 = vsel %vm14_vm2, %v9424_v32, %v3015_v33  ;;  %s3127_s15 = smov 48  ;;  %9256 = vst.msk [vmem:[%s18447_s1 + $0x60] sm:$0xff] %vm2174_vm7, %v2241_v30  }
 0x199   :  { %v9417_v35 = vld [vmem:[%s18446_s0 + $0x10b] ss:$16 sm:%s2984_s20]   ;;  %3021 = vrot.lane.b32.xlu1 %v3020_v25, %s10685_s21  ;;  %s3132_s20 = smov 192 }
 0x19a   :  { %v9418_v60 = vld [vmem:[%s18446_s0 + $0x10b] ss:$16 sm:%s2989_s22]   ;;  %v2987_v22 = vsel %vm6_vm0, %v9417_v35, %v9416_v34  ;;  %s3234_s22 = smov 3 }
 0x19b   :  { %v9419_v38 = vld [vmem:[%s18446_s0 + $0x10b] ss:$16 sm:%s2994_s27]   ;;  %v2992_v61 = vsel %vm10_vm1, %v9418_v60, %v2987_v22  ;;  %s3145_s27 = smov 12  ;;  %v2218_v60 = vpop.permute.xlu0 %2217  }
 0x19c   :  { %v9431_v40 = vld [vmem:[%s18446_s0 + $0x70b] ss:$16 sm:%s3050_s6]   ;;  %v2997_v43 = vsel %vm14_vm2, %v9419_v38, %v2992_v61  ;;  %9251 = vst.msk [vmem:[%s18447_s1 + $0x40] sm:$0xff] %vm2174_vm7, %v2218_v60   ;;  %s3302_s6 = smov 3 }
 0x19d   :  { %v9432_v41 = vld [vmem:[%s18446_s0 + $0x70b] ss:$16 sm:%s3053_s30]   ;;  %2998 = vrot.lane.b32.xlu0 %v2997_v43, %s10685_s21  ;;  %s3489_s30 = smov 12 }
 0x19e   :  { %v3056_v45 = vsel %vm6_vm0, %v9432_v41, %v9431_v40  ;;  %v9433_v47 = vld [vmem:[%s18446_s0 + $0x70b] ss:$16 sm:%s3058_s7]   ;;  %s3104_s7 = smov 48 }
 0x19f   :  { %v9434_v37 = vld [vmem:[%s18446_s0 + $0x70b] ss:$16 sm:%s3063_s11]   ;;  %v3061_v15 = vsel %vm10_vm1, %v9433_v47, %v3056_v45  ;;  %s3109_s11 = smov 192 }
 0x1a0   :  { %v9426_v50 = vld [vmem:[%s18446_s0 + $0x50b] ss:$16 sm:%s3027_s8]   ;;  %v3066_v51 = vsel %vm14_vm2, %v9434_v37, %v3061_v15  ;;  %s3073_s8 = smov 3 }
 0x1a1   :  { %v9427_v6 = vld [vmem:[%s18446_s0 + $0x50b] ss:$16 sm:%s3030_s19]   ;;  %3067 = vrot.lane.b32.xlu1 %v3066_v51, %s10685_s21  ;;  %s3076_s19 = smov 12 }
 0x1a2   :  { %v9428_v52 = vld [vmem:[%s18446_s0 + $0x50b] ss:$16 sm:%s3035_s16]   ;;  %v3033_v31 = vsel %vm6_vm0, %v9427_v6, %v9426_v50  ;;  %s3081_s16 = smov 48 }
 0x1a3   :  { %v9429_v14 = vld [vmem:[%s18446_s0 + $0x50b] ss:$16 sm:%s3040_s25]   ;;  %v3038_v53 = vsel %vm10_vm1, %v9428_v52, %v3033_v31  ;;  %s3333_s25 = smov 48 }
 0x1a4   :  { %v9441_v55 = vld [vmem:[%s18446_s0 + $0xb0b] ss:$16 sm:%s3096_s28]   ;;  %v3043_v58 = vsel %vm14_vm2, %v9429_v14, %v3038_v53  ;;  %s3242_s28 = smov 48 }
 0x1a5   :  { %v9442_v56 = vld [vmem:[%s18446_s0 + $0xb0b] ss:$16 sm:%s3099_s29]   ;;  %3044 = vrot.lane.b32.xlu0 %v3043_v58, %s10685_s21  ;;  %s3247_s29 = smov 192  ;;  %v2287_v58 = vpop.permute.xlu1 %2286  }
 0x1a6   :  { %v3102_v59 = vsel %vm6_vm0, %v9442_v56, %v9441_v55  ;;  %v9443_v62 = vld [vmem:[%s18446_s0 + $0xb0b] ss:$16 sm:%s3104_s7]   ;;  %s3119_s7 = smov 3  ;;  %9266 = vst.msk [vmem:[%s18447_s1 + $0xa0] sm:$0xff] %vm2174_vm7, %v2287_v58  }
 0x1a7   :  { %v9444_v44 = vld [vmem:[%s18446_s0 + $0xb0b] ss:$16 sm:%s3109_s11]   ;;  %v3107_v4 = vsel %vm10_vm1, %v9443_v62, %v3102_v59  ;;  %s3260_s11 = smov 12 }
 0x1a8   :  { %v9436_v63 = vld [vmem:[%s18446_s0 + $0x90b] ss:$16 sm:%s3073_s8]   ;;  %v3112_v0 = vsel %vm14_vm2, %v9444_v44, %v3107_v4  ;;  %s3219_s8 = smov 48  ;;  %v9477_v4 = vld [vmem:[%s18446_s0 + $0xa] ss:$16 sm:%s3260_s11]   ;;  %s3305_s11 = smov 12 }
 0x1a9   :  { %v9437_v42 = vld [vmem:[%s18446_s0 + $0x90b] ss:$16 sm:%s3076_s19]   ;;  %3113 = vrot.lane.b32.xlu1 %v3112_v0, %s10685_s21  ;;  %s3325_s19 = smov 3  ;;  %v2264_v0 = vpop.permute.xlu0 %2263  }
 0x1aa   :  { %v9438_v1 = vld [vmem:[%s18446_s0 + $0x90b] ss:$16 sm:%s3081_s16]   ;;  %v3079_v2 = vsel %vm6_vm0, %v9437_v42, %v9436_v63  ;;  %s3328_s16 = smov 12  ;;  %v9478_v63 = vld [vmem:[%s18446_s0 + $0xa] ss:$16 sm:%s3265_s9]   ;;  %s3310_s9 = smov 48 }
 0x1ab   :  { %v9439_v28 = vld [vmem:[%s18446_s0 + $0x90b] ss:$16 sm:%s3086_s23]   ;;  %v3084_v3 = vsel %vm10_vm1, %v9438_v1, %v3079_v2  ;;  %s3237_s23 = smov 12  ;;  %9261 = vst.msk [vmem:[%s18447_s1 + $0x80] sm:$0xff] %vm2174_vm7, %v2264_v0  }
 0x1ac   :  { %v9451_v5 = vld [vmem:[%s18446_s0 + $0x38b] ss:$16 sm:%s3142_s26]   ;;  %v3089_v9 = vsel %vm14_vm2, %v9439_v28, %v3084_v3  ;;  %s3188_s26 = smov 3  ;;  %v9490_v2 = vld [vmem:[%s18446_s0 + $0x60a] ss:$16 sm:%s3325_s19]   ;;  %s3371_s19 = smov 3 }
 0x1ad   :  { %v9452_v7 = vld [vmem:[%s18446_s0 + $0x38b] ss:$16 sm:%s3145_s27]   ;;  %3090 = vrot.lane.b32.xlu0 %v3089_v9, %s10685_s21  ;;  %s3191_s27 = smov 12 }
 0x1ae   :  { %v3148_v16 = vsel %vm6_vm0, %v9452_v7, %v9451_v5  ;;  %v9453_v54 = vld [vmem:[%s18446_s0 + $0x38b] ss:$16 sm:%s3150_s2]   ;;  %s3196_s2 = smov 48  ;;  %v9491_v28 = vld [vmem:[%s18446_s0 + $0x60a] ss:$16 sm:%s3328_s16]   ;;  %s3374_s16 = smov 12 }
 0x1af   :  { %v9454_v12 = vld [vmem:[%s18446_s0 + $0x38b] ss:$16 sm:%s3155_s3]   ;;  %v3153_v10 = vsel %vm10_vm1, %v9453_v54, %v3148_v16  ;;  %s3201_s3 = smov 192  ;;  %v3331_v5 = vsel %vm6_vm0, %v9491_v28, %v9490_v2  ;;  %v9492_v7 = vld [vmem:[%s18446_s0 + $0x60a] ss:$16 sm:%s3333_s25]  }
 0x1b0   :  { %v9446_v11 = vld [vmem:[%s18446_s0 + $0x18b] ss:$16 sm:%s3119_s7]   ;;  %v3158_v36 = vsel %vm14_vm2, %v9454_v12, %v3153_v10  ;;  %s3165_s7 = smov 3  ;;  %v3336_v9 = vsel %vm10_vm1, %v9492_v7, %v3331_v5  ;;  %v9485_v16 = vld [vmem:[%s18446_s0 + $0x40a] ss:$16 sm:%s3302_s6]   ;;  %s3448_s6 = smov 48 }
 0x1b1   :  { %v9447_v57 = vld [vmem:[%s18446_s0 + $0x18b] ss:$16 sm:%s3122_s14]   ;;  %3159 = vrot.lane.b32.xlu1 %v3158_v36, %s10685_s21  ;;  %s3270_s14 = smov 192 }
 0x1b2   :  { %v9448_v13 = vld [vmem:[%s18446_s0 + $0x18b] ss:$16 sm:%s3127_s15]   ;;  %v3125_v17 = vsel %vm6_vm0, %v9447_v57, %v9446_v11  ;;  %v9479_v1 = vld [vmem:[%s18446_s0 + $0xa] ss:$16 sm:%s3270_s14]   ;;  %s3315_s14 = smov 192  ;;  %s3420_s15 = smov 12 }
 0x1b3   :  { %v9449_v18 = vld [vmem:[%s18446_s0 + $0x18b] ss:$16 sm:%s3132_s20]   ;;  %v3130_v19 = vsel %vm10_vm1, %v9448_v13, %v3125_v17  ;;  %v9486_v12 = vld [vmem:[%s18446_s0 + $0x40a] ss:$16 sm:%s3305_s11]   ;;  %s3425_s20 = smov 48  ;;  %s3453_s11 = smov 192 }
 0x1b4   :  { %v9461_v20 = vld [vmem:[%s18446_s0 + $0x78b] ss:$16 sm:%s3188_s26]   ;;  %v3135_v23 = vsel %vm14_vm2, %v9449_v18, %v3130_v19  ;;  %s3338_s26 = smov 192  ;;  %v9487_v10 = vld [vmem:[%s18446_s0 + $0x40a] ss:$16 sm:%s3310_s9]   ;;  %v3308_v11 = vsel %vm6_vm0, %v9486_v12, %v9485_v16  ;;  %v2333_v18 = vpop.permute.xlu1 %2332   ;;  %s4427_s9 = smov 3 }
 0x1b5   :  { %v9462_v21 = vld [vmem:[%s18446_s0 + $0x78b] ss:$16 sm:%s3191_s27]   ;;  %3136 = vrot.lane.b32.xlu0 %v3135_v23, %s10685_s21  ;;  %s10686_s27 = smov 40   ;;  %v3313_v57 = vsel %vm10_vm1, %v9487_v10, %v3308_v11  ;;  %9276 = vst.msk [vmem:[%s18447_s1 + $0x28] sm:$0xff] %vm2174_vm7, %v2333_v18  }
 0x1b6   :  { %v3194_v26 = vsel %vm6_vm0, %v9462_v21, %v9461_v20  ;;  %v9463_v27 = vld [vmem:[%s18446_s0 + $0x78b] ss:$16 sm:%s3196_s2]   ;;  %s3257_s2 = smov 3  ;;  %v9493_v8 = vld [vmem:[%s18446_s0 + $0x60a] ss:$16 sm:%s3338_s26]  }
 0x1b7   :  { %v9464_v49 = vld [vmem:[%s18446_s0 + $0x78b] ss:$16 sm:%s3201_s3]   ;;  %v3199_v24 = vsel %vm10_vm1, %v9463_v27, %v3194_v26  ;;  %v9476_v62 = vld [vmem:[%s18446_s0 + $0xa] ss:$16 sm:%s3257_s2]   ;;  %v3341_v54 = vsel %vm14_vm2, %v9493_v8, %v3336_v9  ;;  %s3351_s3 = smov 12  ;;  %s3494_s2 = smov 48 }
 0x1b8   :  { %v9456_v29 = vld [vmem:[%s18446_s0 + $0x58b] ss:$16 sm:%s3165_s7]   ;;  %v3204_v32 = vsel %vm14_vm2, %v9464_v49, %v3199_v24  ;;  %v3263_v42 = vsel %vm6_vm0, %v9477_v4, %v9476_v62  ;;  %v9488_v36 = vld [vmem:[%s18446_s0 + $0x40a] ss:$16 sm:%s3315_s14]   ;;  %v2310_v49 = vpop.permute.xlu0 %2309   ;;  %s3466_s14 = smov 12 }
 0x1b9   :  { %v9457_v33 = vld [vmem:[%s18446_s0 + $0x58b] ss:$16 sm:%s3168_s12]   ;;  %3205 = vrot.lane.b32.xlu1 %v3204_v32, %s10685_s21  ;;  %v3268_v46 = vsel %vm10_vm1, %v9478_v63, %v3263_v42  ;;  %v3318_v19 = vsel %vm14_vm2, %v9488_v36, %v3313_v57  ;;  %9271 = vst.msk [vmem:[%s18447_s1 + $0x8] sm:$0xff] %vm2174_vm7, %v2310_v49   ;;  %s3512_s12 = smov 12 }
 0x1ba   :  { %v9458_v34 = vld [vmem:[%s18446_s0 + $0x58b] ss:$16 sm:%s3173_s13]   ;;  %v3171_v25 = vsel %vm6_vm0, %v9457_v33, %v9456_v29  ;;  %v3273_v3 = vsel %vm14_vm2, %v9479_v1, %v3268_v46  ;;  %v9500_v13 = vld [vmem:[%s18446_s0 + $0xa0a] ss:$16 sm:%s3371_s19]   ;;  %s3463_s13 = smov 3  ;;  %s4435_s19 = smov 48 }
 0x1bb   :  { %v9459_v35 = vld [vmem:[%s18446_s0 + $0x58b] ss:$16 sm:%s3178_s17]   ;;  %v3176_v22 = vsel %vm10_vm1, %v9458_v34, %v3171_v25  ;;  %s3224_s17 = smov 192  ;;  %v9501_v17 = vld [vmem:[%s18446_s0 + $0xa0a] ss:$16 sm:%s3374_s16]   ;;  %s3884_s16 = smov 48 }
 0x1bc   :  { %v9471_v38 = vld [vmem:[%s18446_s0 + $0xb8b] ss:$16 sm:%s3234_s22]   ;;  %v3181_v61 = vsel %vm14_vm2, %v9459_v35, %v3176_v22  ;;  %s3279_s22 = smov 3  ;;  %v3377_v20 = vsel %vm6_vm0, %v9501_v17, %v9500_v13  ;;  %v9503_v23 = vld [vmem:[%s18446_s0 + $0xa0a] ss:$16 sm:%s3384_s24]  }
 0x1bd   :  { %v9472_v39 = vld [vmem:[%s18446_s0 + $0xb8b] ss:$16 sm:%s3237_s23]   ;;  %3182 = vrot.lane.b32.xlu0 %v3181_v61, %s10685_s21  ;;  %s3282_s23 = smov 12 }
 0x1be   :  { %v3240_v40 = vsel %vm6_vm0, %v9472_v39, %v9471_v38  ;;  %v9473_v41 = vld [vmem:[%s18446_s0 + $0xb8b] ss:$16 sm:%s3242_s28]   ;;  %s3287_s28 = smov 48  ;;  %v9480_v52 = vld [vmem:[%s18446_s0 + $0x20a] ss:$16 sm:%s3279_s22]   ;;  %s3430_s22 = smov 192 }
 0x1bf   :  { %v9474_v43 = vld [vmem:[%s18446_s0 + $0xb8b] ss:$16 sm:%s3247_s29]   ;;  %v3245_v45 = vsel %vm10_vm1, %v9473_v41, %v3240_v40  ;;  %s3292_s29 = smov 192  ;;  %v9481_v31 = vld [vmem:[%s18446_s0 + $0x20a] ss:$16 sm:%s3282_s23]   ;;  %s3379_s23 = smov 48 }
 0x1c0   :  { %v9466_v47 = vld [vmem:[%s18446_s0 + $0x98b] ss:$16 sm:%s3211_s4]   ;;  %v3250_v37 = vsel %vm14_vm2, %v9474_v43, %v3245_v45  ;;  %v3285_v53 = vsel %vm6_vm0, %v9481_v31, %v9480_v52  ;;  %v9482_v55 = vld [vmem:[%s18446_s0 + $0x20a] ss:$16 sm:%s3287_s28]   ;;  %s3348_s28 = smov 3  ;;  %s3356_s4 = smov 48 }
 0x1c1   :  { %v9467_v48 = vld [vmem:[%s18446_s0 + $0x98b] ss:$16 sm:%s3214_s10]   ;;  %3251 = vrot.lane.b32.xlu1 %v3250_v37, %s10685_s21  ;;  %v3290_v59 = vsel %vm10_vm1, %v9482_v55, %v3285_v53  ;;  %s3361_s10 = smov 192  ;;  %v2356_v53 = vpop.permute.xlu0 %2355  }
 0x1c2   :  { %v9468_v15 = vld [vmem:[%s18446_s0 + $0x98b] ss:$16 sm:%s3219_s8]   ;;  %v3217_v50 = vsel %vm6_vm0, %v9467_v48, %v9466_v47  ;;  %v9483_v56 = vld [vmem:[%s18446_s0 + $0x20a] ss:$16 sm:%s3292_s29]   ;;  %v2379_v48 = vpop.permute.xlu1 %2378   ;;  %s3443_s29 = smov 12  ;;  %s3509_s8 = smov 3 }
 0x1c3   :  { %v9469_v51 = vld [vmem:[%s18446_s0 + $0x98b] ss:$16 sm:%s3224_s17]   ;;  %v3222_v6 = vsel %vm10_vm1, %v9468_v15, %v3217_v50  ;;  %v3295_v44 = vsel %vm14_vm2, %v9483_v56, %v3290_v59  ;;  %v9502_v21 = vld [vmem:[%s18446_s0 + $0xa0a] ss:$16 sm:%s3379_s23]   ;;  %s3471_s17 = smov 48  ;;  %s3440_s23 = smov 3 }
 0x1c4   :  { %v3227_v14 = vsel %vm14_vm2, %v9469_v51, %v3222_v6  ;;  %v3382_v26 = vsel %vm10_vm1, %v9502_v21, %v3377_v20  ;;  %v9495_v27 = vld [vmem:[%s18446_s0 + $0x80a] ss:$16 sm:%s3348_s28]   ;;  %s3394_s28 = smov 3  ;;  %9286 = vst.msk [vmem:[%s18447_s1 + $0x68] sm:$0xff] %vm2174_vm7, %v2379_v48   ;;  %9281 = vst.msk [vmem:[%s18447_s1 + $0x48] sm:$0xff] %vm2174_vm7, %v2356_v53  }
 0x1c5   :  { %3228 = vrot.lane.b32.xlu0 %v3227_v14, %s10685_s21  ;;  %3296 = vrot.lane.b32.xlu1 %v3295_v44, %s10686_s27  ;;  %s3417_s21 = smov 3  ;;  %v3387_v24 = vsel %vm14_vm2, %v9503_v23, %v3382_v26  ;;  %v9496_v29 = vld [vmem:[%s18446_s0 + $0x80a] ss:$16 sm:%s3351_s3]   ;;  %s3397_s3 = smov 12  ;;  %v2402_v5 = vpop.permute.xlu0 %2401  }
 0x1c6   :  { %v9497_v30 = vld [vmem:[%s18446_s0 + $0x80a] ss:$16 sm:%s3356_s4]   ;;  %v3354_v32 = vsel %vm6_vm0, %v9496_v29, %v9495_v27  ;;  %s3402_s4 = smov 48  ;;  %v2425_v44 = vpop.permute.xlu1 %2424   ;;  %9291 = vst.msk [vmem:[%s18447_s1 + $0x88] sm:$0xff] %vm2174_vm7, %v2402_v5  }
 0x1c7   :  { %v9498_v33 = vld [vmem:[%s18446_s0 + $0x80a] ss:$16 sm:%s3361_s10]   ;;  %v3359_v34 = vsel %vm10_vm1, %v9497_v30, %v3354_v32  ;;  %s3407_s10 = smov 192  ;;  %9296 = vst.msk [vmem:[%s18447_s1 + $0xa8] sm:$0xff] %vm2174_vm7, %v2425_v44  }
 0x1c8   :  { %v9510_v25 = vld [vmem:[%s18446_s0 + $0x28a] ss:$16 sm:%s3417_s21]   ;;  %v3364_v60 = vsel %vm14_vm2, %v9498_v33, %v3359_v34  ;;  %s5537_s21 = smov 48 }
 0x1c9   :  { %3274 = vrot.lane.b32.xlu0 %v3273_v3, %s10686_s27  ;;  %3342 = vrot.lane.b32.xlu1 %v3341_v54, %s10686_s27  ;;  %v9511_v35 = vld [vmem:[%s18446_s0 + $0x28a] ss:$16 sm:%s3420_s15]   ;;  %v2448_v21 = vpop.permute.xlu0 %2447   ;;  %s4986_s15 = smov 48 }
 0x1ca   :  { %v3423_v22 = vsel %vm6_vm0, %v9511_v35, %v9510_v25  ;;  %v9512_v38 = vld [vmem:[%s18446_s0 + $0x28a] ss:$16 sm:%s3425_s20]   ;;  %v2471_v12 = vpop.permute.xlu1 %2470   ;;  %9301 = vst.msk [vmem:[%s18447_s1 + $0x10] sm:$0xff] %vm2174_vm7, %v2448_v21  }
 0x1cb   :  { %v9513_v39 = vld [vmem:[%s18446_s0 + $0x28a] ss:$16 sm:%s3430_s22]   ;;  %v3428_v61 = vsel %vm10_vm1, %v9512_v38, %v3423_v22  ;;  %9306 = vst.msk [vmem:[%s18447_s1 + $0x30] sm:$0xff] %vm2174_vm7, %v2471_v12  }
 0x1cc   :  { %v9505_v40 = vld [vmem:[%s18446_s0 + $0x8a] ss:$16 sm:%s3394_s28]   ;;  %v3433_v41 = vsel %vm14_vm2, %v9513_v39, %v3428_v61 }
 0x1cd   :  { %3319 = vrot.lane.b32.xlu0 %v3318_v19, %s10686_s27  ;;  %3388 = vrot.lane.b32.xlu1 %v3387_v24, %s10686_s27  ;;  %v9506_v43 = vld [vmem:[%s18446_s0 + $0x8a] ss:$16 sm:%s3397_s3]   ;;  %v2494_v39 = vpop.permute.xlu0 %2493  }
 0x1ce   :  { %v9507_v45 = vld [vmem:[%s18446_s0 + $0x8a] ss:$16 sm:%s3402_s4]   ;;  %v3400_v47 = vsel %vm6_vm0, %v9506_v43, %v9505_v40  ;;  %v2517_v29 = vpop.permute.xlu1 %2516   ;;  %9311 = vst.msk [vmem:[%s18447_s1 + $0x50] sm:$0xff] %vm2174_vm7, %v2494_v39  }
 0x1cf   :  { %v9508_v37 = vld [vmem:[%s18446_s0 + $0x8a] ss:$16 sm:%s3407_s10]   ;;  %v3405_v15 = vsel %vm10_vm1, %v9507_v45, %v3400_v47  ;;  %9316 = vst.msk [vmem:[%s18447_s1 + $0x70] sm:$0xff] %vm2174_vm7, %v2517_v29   ;;  %s3876_s10 = smov 3 }
 0x1d0   :  { %v9520_v50 = vld [vmem:[%s18446_s0 + $0x68a] ss:$16 sm:%s3463_s13]   ;;  %v3410_v6 = vsel %vm14_vm2, %v9508_v37, %v3405_v15  ;;  %s6639_s13 = smov 48 }
 0x1d1   :  { %3365 = vrot.lane.b32.xlu0 %v3364_v60, %s10686_s27  ;;  %3434 = vrot.lane.b32.xlu1 %v3433_v41, %s10686_s27  ;;  %v9521_v51 = vld [vmem:[%s18446_s0 + $0x68a] ss:$16 sm:%s3466_s14]   ;;  %s6088_s14 = smov 48 }
 0x1d2   :  { %v3469_v52 = vsel %vm6_vm0, %v9521_v51, %v9520_v50  ;;  %v9522_v31 = vld [vmem:[%s18446_s0 + $0x68a] ss:$16 sm:%s3471_s17]   ;;  %s3517_s17 = smov 48  ;;  %v2563_v47 = vpop.permute.xlu1 %2562  }
 0x1d3   :  { %v9523_v14 = vld [vmem:[%s18446_s0 + $0x68a] ss:$16 sm:%s3476_s18]   ;;  %v3474_v55 = vsel %vm10_vm1, %v9522_v31, %v3469_v52  ;;  %s3522_s18 = smov 192  ;;  %9326 = vst.msk [vmem:[%s18447_s1 + $0xb0] sm:$0xff] %vm2174_vm7, %v2563_v47  }
 0x1d4   :  { %v9515_v56 = vld [vmem:[%s18446_s0 + $0x48a] ss:$16 sm:%s3440_s23]   ;;  %v3479_v58 = vsel %vm14_vm2, %v9523_v14, %v3474_v55  ;;  %s3486_s23 = smov 3  ;;  %v2540_v53 = vpop.permute.xlu0 %2539  }
 0x1d5   :  { %3411 = vrot.lane.b32.xlu0 %v3410_v6, %s10686_s27  ;;  %v9516_v59 = vld [vmem:[%s18446_s0 + $0x48a] ss:$16 sm:%s3443_s29]   ;;  %3480 = vrot.lane.b32.xlu1 %v3479_v58, %s10686_s27 }
 0x1d6   :  { %v9517_v62 = vld [vmem:[%s18446_s0 + $0x48a] ss:$16 sm:%s3448_s6]   ;;  %v3446_v4 = vsel %vm6_vm0, %v9516_v59, %v9515_v56  ;;  %9321 = vst.msk [vmem:[%s18447_s1 + $0x90] sm:$0xff] %vm2174_vm7, %v2540_v53  }
 0x1d7   :  { %v9518_v63 = vld [vmem:[%s18446_s0 + $0x48a] ss:$16 sm:%s3453_s11]   ;;  %v3451_v0 = vsel %vm10_vm1, %v9517_v62, %v3446_v4  ;;  %s3499_s11 = smov 192 }
 0x1d8   :  { %v9530_v42 = vld [vmem:[%s18446_s0 + $0xa8a] ss:$16 sm:%s3509_s8]   ;;  %v3456_v46 = vsel %vm14_vm2, %v9518_v63, %v3451_v0  ;;  %s3555_s8 = smov 3  ;;  %v2609_v44 = vpop.permute.xlu1 %2608  }
 0x1d9   :  { %v9531_v1 = vld [vmem:[%s18446_s0 + $0xa8a] ss:$16 sm:%s3512_s12]   ;;  %3457 = vrot.lane.b32.xlu0 %v3456_v46, %s10686_s27  ;;  %s3558_s12 = smov 12  ;;  %9336 = vst.msk [vmem:[%s18447_s1 + $0x38] sm:$0xff] %vm2174_vm7, %v2609_v44  }
 0x1da   :  { %v3515_v2 = vsel %vm6_vm0, %v9531_v1, %v9530_v42  ;;  %v9532_v28 = vld [vmem:[%s18446_s0 + $0xa8a] ss:$16 sm:%s3517_s17]   ;;  %s3563_s17 = smov 48 }
 0x1db   :  { %v9533_v3 = vld [vmem:[%s18446_s0 + $0xa8a] ss:$16 sm:%s3522_s18]   ;;  %v3520_v7 = vsel %vm10_vm1, %v9532_v28, %v3515_v2  ;;  %s3568_s18 = smov 192 }
 0x1dc   :  { %v9525_v8 = vld [vmem:[%s18446_s0 + $0x88a] ss:$16 sm:%s3486_s23]   ;;  %v3525_v9 = vsel %vm14_vm2, %v9533_v3, %v3520_v7  ;;  %s3532_s23 = smov 3  ;;  %v2586_v5 = vpop.permute.xlu0 %2585  }
 0x1dd   :  { %v9526_v16 = vld [vmem:[%s18446_s0 + $0x88a] ss:$16 sm:%s3489_s30]   ;;  %3526 = vrot.lane.b32.xlu1 %v3525_v9, %s10686_s27  ;;  %s3535_s30 = smov 12  ;;  %9331 = vst.msk [vmem:[%s18447_s1 + $0x18] sm:$0xff] %vm2174_vm7, %v2586_v5  }
 0x1de   :  { %v9527_v54 = vld [vmem:[%s18446_s0 + $0x88a] ss:$16 sm:%s3494_s2]   ;;  %v3492_v10 = vsel %vm6_vm0, %v9526_v16, %v9525_v8  ;;  %s3540_s2 = smov 48 }
 0x1df   :  { %v9528_v11 = vld [vmem:[%s18446_s0 + $0x88a] ss:$16 sm:%s3499_s11]   ;;  %v3497_v36 = vsel %vm10_vm1, %v9527_v54, %v3492_v10  ;;  %s3545_s11 = smov 192 }
 0x1e0   :  { %v9540_v57 = vld [vmem:[%s18446_s0 + $0x30a] ss:$16 sm:%s3555_s8]   ;;  %v3502_v17 = vsel %vm14_vm2, %v9528_v11, %v3497_v36  ;;  %s3601_s8 = smov 3  ;;  %v2655_v12 = vpop.permute.xlu1 %2654  }
 0x1e1   :  { %v9541_v13 = vld [vmem:[%s18446_s0 + $0x30a] ss:$16 sm:%s3558_s12]   ;;  %3503 = vrot.lane.b32.xlu0 %v3502_v17, %s10686_s27  ;;  %s3604_s12 = smov 12  ;;  %9346 = vst.msk [vmem:[%s18447_s1 + $0x78] sm:$0xff] %vm2174_vm7, %v2655_v12  }
 0x1e2   :  { %v3561_v18 = vsel %vm6_vm0, %v9541_v13, %v9540_v57  ;;  %v9542_v19 = vld [vmem:[%s18446_s0 + $0x30a] ss:$16 sm:%s3563_s17]   ;;  %s3609_s17 = smov 48 }
 0x1e3   :  { %v9543_v20 = vld [vmem:[%s18446_s0 + $0x30a] ss:$16 sm:%s3568_s18]   ;;  %v3566_v23 = vsel %vm10_vm1, %v9542_v19, %v3561_v18  ;;  %s3614_s18 = smov 192 }
 0x1e4   :  { %v9535_v26 = vld [vmem:[%s18446_s0 + $0x10a] ss:$16 sm:%s3532_s23]   ;;  %v3571_v27 = vsel %vm14_vm2, %v9543_v20, %v3566_v23  ;;  %s3578_s23 = smov 3  ;;  %v2632_v21 = vpop.permute.xlu0 %2631  }
 0x1e5   :  { %v9536_v49 = vld [vmem:[%s18446_s0 + $0x10a] ss:$16 sm:%s3535_s30]   ;;  %3572 = vrot.lane.b32.xlu1 %v3571_v27, %s10686_s27  ;;  %s3581_s30 = smov 12  ;;  %9341 = vst.msk [vmem:[%s18447_s1 + $0x58] sm:$0xff] %vm2174_vm7, %v2632_v21  }
 0x1e6   :  { %v9537_v24 = vld [vmem:[%s18446_s0 + $0x10a] ss:$16 sm:%s3540_s2]   ;;  %v3538_v30 = vsel %vm6_vm0, %v9536_v49, %v9535_v26  ;;  %s3586_s2 = smov 48 }
 0x1e7   :  { %v9538_v32 = vld [vmem:[%s18446_s0 + $0x10a] ss:$16 sm:%s3545_s11]   ;;  %v3543_v33 = vsel %vm10_vm1, %v9537_v24, %v3538_v30  ;;  %s3591_s11 = smov 192 }
 0x1e8   :  { %v9550_v34 = vld [vmem:[%s18446_s0 + $0x70a] ss:$16 sm:%s3601_s8]   ;;  %v3548_v35 = vsel %vm14_vm2, %v9538_v32, %v3543_v33  ;;  %s3647_s8 = smov 3  ;;  %v2701_v29 = vpop.permute.xlu1 %2700  }
 0x1e9   :  { %v9551_v25 = vld [vmem:[%s18446_s0 + $0x70a] ss:$16 sm:%s3604_s12]   ;;  %3549 = vrot.lane.b32.xlu0 %v3548_v35, %s10686_s27  ;;  %s3650_s12 = smov 12  ;;  %9356 = vst.msk [vmem:[%s18447_s1 + $0xb8] sm:$0xff] %vm2174_vm7, %v2701_v29  }
 0x1ea   :  { %v3607_v60 = vsel %vm6_vm0, %v9551_v25, %v9550_v34  ;;  %v9552_v22 = vld [vmem:[%s18446_s0 + $0x70a] ss:$16 sm:%s3609_s17]   ;;  %s3655_s17 = smov 48 }
 0x1eb   :  { %v9553_v38 = vld [vmem:[%s18446_s0 + $0x70a] ss:$16 sm:%s3614_s18]   ;;  %v3612_v61 = vsel %vm10_vm1, %v9552_v22, %v3607_v60  ;;  %s3660_s18 = smov 192 }
 0x1ec   :  { %v9545_v40 = vld [vmem:[%s18446_s0 + $0x50a] ss:$16 sm:%s3578_s23]   ;;  %v3617_v41 = vsel %vm14_vm2, %v9553_v38, %v3612_v61  ;;  %s3624_s23 = smov 3  ;;  %v2678_v39 = vpop.permute.xlu0 %2677   ;;  %v2746_v47 = vpop.permute.xlu1 %2745  }
 0x1ed   :  { %v9546_v43 = vld [vmem:[%s18446_s0 + $0x50a] ss:$16 sm:%s3581_s30]   ;;  %3618 = vrot.lane.b32.xlu1 %v3617_v41, %s10686_s27  ;;  %s3627_s30 = smov 12  ;;  %9351 = vst.msk [vmem:[%s18447_s1 + $0x98] sm:$0xff] %vm2174_vm7, %v2678_v39  }
 0x1ee   :  { %v9547_v45 = vld [vmem:[%s18446_s0 + $0x50a] ss:$16 sm:%s3586_s2]   ;;  %v3584_v37 = vsel %vm6_vm0, %v9546_v43, %v9545_v40  ;;  %s3632_s2 = smov 48  ;;  %9365 = vst.msk [vmem:[%s18447_s1 + $0x20] sm:$0xff] %vm2725_vm8, %v2746_v47  }
 0x1ef   :  { %v9548_v48 = vld [vmem:[%s18446_s0 + $0x50a] ss:$16 sm:%s3591_s11]   ;;  %v3589_v15 = vsel %vm10_vm1, %v9547_v45, %v3584_v37  ;;  %s3637_s11 = smov 192 }
 0x1f0   :  { %v9560_v50 = vld [vmem:[%s18446_s0 + $0xb0a] ss:$16 sm:%s3647_s8]   ;;  %v3594_v6 = vsel %vm14_vm2, %v9548_v48, %v3589_v15  ;;  %s3693_s8 = smov 3  ;;  %v2724_v53 = vpop.permute.xlu0 %2723   ;;  %v2792_v44 = vpop.permute.xlu1 %2791  }
 0x1f1   :  { %v9561_v51 = vld [vmem:[%s18446_s0 + $0xb0a] ss:$16 sm:%s3650_s12]   ;;  %3595 = vrot.lane.b32.xlu0 %v3594_v6, %s10686_s27  ;;  %s3696_s12 = smov 12  ;;  %2726 = vst.msk [vmem:[%s18447_s1] sm:$0xff] %vm2725_vm8, %v2724_v53  }
 0x1f2   :  { %v3653_v52 = vsel %vm6_vm0, %v9561_v51, %v9560_v50  ;;  %v9562_v31 = vld [vmem:[%s18446_s0 + $0xb0a] ss:$16 sm:%s3655_s17]   ;;  %s3701_s17 = smov 48  ;;  %9375 = vst.msk [vmem:[%s18447_s1 + $0x60] sm:$0xff] %vm2725_vm8, %v2792_v44  }
 0x1f3   :  { %v9563_v14 = vld [vmem:[%s18446_s0 + $0xb0a] ss:$16 sm:%s3660_s18]   ;;  %v3658_v55 = vsel %vm10_vm1, %v9562_v31, %v3653_v52  ;;  %s3706_s18 = smov 192 }
 0x1f4   :  { %v9555_v56 = vld [vmem:[%s18446_s0 + $0x90a] ss:$16 sm:%s3624_s23]   ;;  %v3663_v58 = vsel %vm14_vm2, %v9563_v14, %v3658_v55  ;;  %s3670_s23 = smov 3  ;;  %v2769_v5 = vpop.permute.xlu0 %2768   ;;  %v2838_v12 = vpop.permute.xlu1 %2837  }
 0x1f5   :  { %v9556_v59 = vld [vmem:[%s18446_s0 + $0x90a] ss:$16 sm:%s3627_s30]   ;;  %3664 = vrot.lane.b32.xlu1 %v3663_v58, %s10686_s27  ;;  %s3673_s30 = smov 12  ;;  %9370 = vst.msk [vmem:[%s18447_s1 + $0x40] sm:$0xff] %vm2725_vm8, %v2769_v5  }
 0x1f6   :  { %v9557_v62 = vld [vmem:[%s18446_s0 + $0x90a] ss:$16 sm:%s3632_s2]   ;;  %v3630_v4 = vsel %vm6_vm0, %v9556_v59, %v9555_v56  ;;  %s3678_s2 = smov 48  ;;  %9385 = vst.msk [vmem:[%s18447_s1 + $0xa0] sm:$0xff] %vm2725_vm8, %v2838_v12  }
 0x1f7   :  { %v9558_v63 = vld [vmem:[%s18446_s0 + $0x90a] ss:$16 sm:%s3637_s11]   ;;  %v3635_v0 = vsel %vm10_vm1, %v9557_v62, %v3630_v4  ;;  %s3683_s11 = smov 192 }
 0x1f8   :  { %v9570_v42 = vld [vmem:[%s18446_s0 + $0x38a] ss:$16 sm:%s3693_s8]   ;;  %v3640_v46 = vsel %vm14_vm2, %v9558_v63, %v3635_v0  ;;  %s3739_s8 = smov 3  ;;  %v2815_v21 = vpop.permute.xlu0 %2814   ;;  %v2884_v29 = vpop.permute.xlu1 %2883  }
 0x1f9   :  { %v9571_v1 = vld [vmem:[%s18446_s0 + $0x38a] ss:$16 sm:%s3696_s12]   ;;  %3641 = vrot.lane.b32.xlu0 %v3640_v46, %s10686_s27  ;;  %s3742_s12 = smov 12  ;;  %9380 = vst.msk [vmem:[%s18447_s1 + $0x80] sm:$0xff] %vm2725_vm8, %v2815_v21  }
 0x1fa   :  { %v3699_v2 = vsel %vm6_vm0, %v9571_v1, %v9570_v42  ;;  %v9572_v28 = vld [vmem:[%s18446_s0 + $0x38a] ss:$16 sm:%s3701_s17]   ;;  %s3747_s17 = smov 48  ;;  %v9609_v42 = vld [vmem:[%s18446_s0 + $0x609] ss:$16 sm:%s3876_s10]   ;;  %s3922_s10 = smov 3 }
 0x1fb   :  { %v9573_v3 = vld [vmem:[%s18446_s0 + $0x38a] ss:$16 sm:%s3706_s18]   ;;  %v3704_v7 = vsel %vm10_vm1, %v9572_v28, %v3699_v2  ;;  %s3752_s18 = smov 192  ;;  %v9611_v28 = vld [vmem:[%s18446_s0 + $0x609] ss:$16 sm:%s3884_s16]   ;;  %s3930_s16 = smov 48 }
 0x1fc   :  { %v9565_v8 = vld [vmem:[%s18446_s0 + $0x18a] ss:$16 sm:%s3670_s23]   ;;  %v3709_v9 = vsel %vm14_vm2, %v9573_v3, %v3704_v7  ;;  %s3716_s23 = smov 3  ;;  %9395 = vst.msk [vmem:[%s18447_s1 + $0x28] sm:$0xff] %vm2725_vm8, %v2884_v29   ;;  %v2861_v39 = vpop.permute.xlu0 %2860   ;;  %v2930_v47 = vpop.permute.xlu1 %2929  }
 0x1fd   :  { %v9566_v16 = vld [vmem:[%s18446_s0 + $0x18a] ss:$16 sm:%s3673_s30]   ;;  %3710 = vrot.lane.b32.xlu1 %v3709_v9, %s10686_s27  ;;  %s3719_s30 = smov 12  ;;  %9390 = vst.msk [vmem:[%s18447_s1 + $0x8] sm:$0xff] %vm2725_vm8, %v2861_v39  }
 0x1fe   :  { %v9567_v54 = vld [vmem:[%s18446_s0 + $0x18a] ss:$16 sm:%s3678_s2]   ;;  %v3676_v10 = vsel %vm6_vm0, %v9566_v16, %v9565_v8  ;;  %s3724_s2 = smov 48  ;;  %9405 = vst.msk [vmem:[%s18447_s1 + $0x68] sm:$0xff] %vm2725_vm8, %v2930_v47  }
 0x1ff   :  { %v9568_v11 = vld [vmem:[%s18446_s0 + $0x18a] ss:$16 sm:%s3683_s11]   ;;  %v3681_v36 = vsel %vm10_vm1, %v9567_v54, %v3676_v10  ;;  %s3729_s11 = smov 192 }
 0x200   :  { %v9580_v57 = vld [vmem:[%s18446_s0 + $0x78a] ss:$16 sm:%s3739_s8]   ;;  %v3686_v17 = vsel %vm14_vm2, %v9568_v11, %v3681_v36  ;;  %s3785_s8 = smov 3  ;;  %v2907_v53 = vpop.permute.xlu0 %2906  }
 0x201   :  { %v9581_v13 = vld [vmem:[%s18446_s0 + $0x78a] ss:$16 sm:%s3742_s12]   ;;  %3687 = vrot.lane.b32.xlu0 %v3686_v17, %s10686_s27  ;;  %s3788_s12 = smov 12  ;;  %9400 = vst.msk [vmem:[%s18447_s1 + $0x48] sm:$0xff] %vm2725_vm8, %v2907_v53  }
 0x202   :  { %v3745_v18 = vsel %vm6_vm0, %v9581_v13, %v9580_v57  ;;  %v9582_v19 = vld [vmem:[%s18446_s0 + $0x78a] ss:$16 sm:%s3747_s17]   ;;  %s3793_s17 = smov 48  ;;  %v9619_v57 = vld [vmem:[%s18446_s0 + $0xa09] ss:$16 sm:%s3922_s10]   ;;  %s3968_s10 = smov 3 }
 0x203   :  { %v9583_v20 = vld [vmem:[%s18446_s0 + $0x78a] ss:$16 sm:%s3752_s18]   ;;  %v3750_v23 = vsel %vm10_vm1, %v9582_v19, %v3745_v18  ;;  %s3798_s18 = smov 192  ;;  %v9621_v19 = vld [vmem:[%s18446_s0 + $0xa09] ss:$16 sm:%s3930_s16]   ;;  %s3976_s16 = smov 48  ;;  %v2976_v44 = vpop.permute.xlu1 %2975  }
 0x204   :  { %v9575_v26 = vld [vmem:[%s18446_s0 + $0x58a] ss:$16 sm:%s3716_s23]   ;;  %v3755_v27 = vsel %vm14_vm2, %v9583_v20, %v3750_v23  ;;  %s3762_s23 = smov 3  ;;  %9415 = vst.msk [vmem:[%s18447_s1 + $0xa8] sm:$0xff] %vm2725_vm8, %v2976_v44  }
 0x205   :  { %v9576_v49 = vld [vmem:[%s18446_s0 + $0x58a] ss:$16 sm:%s3719_s30]   ;;  %3756 = vrot.lane.b32.xlu1 %v3755_v27, %s10686_s27  ;;  %s3765_s30 = smov 12 }
 0x206   :  { %v9577_v24 = vld [vmem:[%s18446_s0 + $0x58a] ss:$16 sm:%s3724_s2]   ;;  %v3722_v30 = vsel %vm6_vm0, %v9576_v49, %v9575_v26  ;;  %s3770_s2 = smov 48 }
 0x207   :  { %v9578_v32 = vld [vmem:[%s18446_s0 + $0x58a] ss:$16 sm:%s3729_s11]   ;;  %v3727_v33 = vsel %vm10_vm1, %v9577_v24, %v3722_v30  ;;  %s3775_s11 = smov 192  ;;  %v2953_v5 = vpop.permute.xlu0 %2952  }
 0x208   :  { %v9590_v34 = vld [vmem:[%s18446_s0 + $0xb8a] ss:$16 sm:%s3785_s8]   ;;  %v3732_v35 = vsel %vm14_vm2, %v9578_v32, %v3727_v33  ;;  %s3830_s8 = smov 3  ;;  %9410 = vst.msk [vmem:[%s18447_s1 + $0x88] sm:$0xff] %vm2725_vm8, %v2953_v5  }
 0x209   :  { %v9591_v25 = vld [vmem:[%s18446_s0 + $0xb8a] ss:$16 sm:%s3788_s12]   ;;  %3733 = vrot.lane.b32.xlu0 %v3732_v35, %s10686_s27  ;;  %s3833_s12 = smov 12 }
 0x20a   :  { %v3791_v60 = vsel %vm6_vm0, %v9591_v25, %v9590_v34  ;;  %v9592_v22 = vld [vmem:[%s18446_s0 + $0xb8a] ss:$16 sm:%s3793_s17]   ;;  %s3838_s17 = smov 48  ;;  %v9599_v50 = vld [vmem:[%s18446_s0 + $0x209] ss:$16 sm:%s3830_s8]   ;;  %s3879_s8 = smov 12 }
 0x20b   :  { %v9593_v38 = vld [vmem:[%s18446_s0 + $0xb8a] ss:$16 sm:%s3798_s18]   ;;  %v3796_v61 = vsel %vm10_vm1, %v9592_v22, %v3791_v60  ;;  %s3843_s18 = smov 192  ;;  %v9600_v51 = vld [vmem:[%s18446_s0 + $0x209] ss:$16 sm:%s3833_s12]   ;;  %v3022_v12 = vpop.permute.xlu1 %3021   ;;  %s7190_s12 = smov 48 }
 0x20c   :  { %v9585_v40 = vld [vmem:[%s18446_s0 + $0x98a] ss:$16 sm:%s3762_s23]   ;;  %v3801_v41 = vsel %vm14_vm2, %v9593_v38, %v3796_v61  ;;  %s3808_s23 = smov 3  ;;  %v3836_v52 = vsel %vm6_vm0, %v9600_v51, %v9599_v50  ;;  %v9601_v31 = vld [vmem:[%s18446_s0 + $0x209] ss:$16 sm:%s3838_s17]   ;;  %s3889_s17 = smov 192 }
 0x20d   :  { %v9586_v43 = vld [vmem:[%s18446_s0 + $0x98a] ss:$16 sm:%s3765_s30]   ;;  %3802 = vrot.lane.b32.xlu1 %v3801_v41, %s10686_s27  ;;  %s3811_s30 = smov 12  ;;  %v3841_v55 = vsel %vm10_vm1, %v9601_v31, %v3836_v52  ;;  %9425 = vst.msk [vmem:[%s18447_s1 + $0x30] sm:$0xff] %vm2725_vm8, %v3022_v12  }
 0x20e   :  { %v9587_v45 = vld [vmem:[%s18446_s0 + $0x98a] ss:$16 sm:%s3770_s2]   ;;  %v3768_v37 = vsel %vm6_vm0, %v9586_v43, %v9585_v40  ;;  %s3816_s2 = smov 48  ;;  %v9602_v14 = vld [vmem:[%s18446_s0 + $0x209] ss:$16 sm:%s3843_s18]   ;;  %s10687_s18 = smov 36  }
 0x20f   :  { %v9588_v48 = vld [vmem:[%s18446_s0 + $0x98a] ss:$16 sm:%s3775_s11]   ;;  %v3773_v15 = vsel %vm10_vm1, %v9587_v45, %v3768_v37  ;;  %s3821_s11 = smov 192  ;;  %v9595_v56 = vld [vmem:[%s18446_s0 + $0x9] ss:$16 sm:%s3808_s23]   ;;  %v3846_v58 = vsel %vm14_vm2, %v9602_v14, %v3841_v55  ;;  %s3853_s23 = smov 3  ;;  %v2999_v21 = vpop.permute.xlu0 %2998  }
 0x210   :  { %v3778_v6 = vsel %vm14_vm2, %v9588_v48, %v3773_v15  ;;  %v9596_v59 = vld [vmem:[%s18446_s0 + $0x9] ss:$16 sm:%s3811_s30]   ;;  %s3856_s30 = smov 12  ;;  %9420 = vst.msk [vmem:[%s18447_s1 + $0x10] sm:$0xff] %vm2725_vm8, %v2999_v21  }
 0x211   :  { %3779 = vrot.lane.b32.xlu0 %v3778_v6, %s10686_s27  ;;  %v9597_v62 = vld [vmem:[%s18446_s0 + $0x9] ss:$16 sm:%s3816_s2]   ;;  %3847 = vrot.lane.b32.xlu1 %v3846_v58, %s10687_s18  ;;  %v3814_v4 = vsel %vm6_vm0, %v9596_v59, %v9595_v56  ;;  %s3861_s2 = smov 48  ;;  %s4978_s27 = smov 3 }
 0x212   :  { %v9598_v63 = vld [vmem:[%s18446_s0 + $0x9] ss:$16 sm:%s3821_s11]   ;;  %v3819_v0 = vsel %vm10_vm1, %v9597_v62, %v3814_v4  ;;  %s3866_s11 = smov 192 }
 0x213   :  { %v9610_v1 = vld [vmem:[%s18446_s0 + $0x609] ss:$16 sm:%s3879_s8]   ;;  %v3824_v46 = vsel %vm14_vm2, %v9598_v63, %v3819_v0  ;;  %s3925_s8 = smov 12  ;;  %v3068_v29 = vpop.permute.xlu1 %3067  }
 0x214   :  { %v3882_v2 = vsel %vm6_vm0, %v9610_v1, %v9609_v42  ;;  %v9612_v3 = vld [vmem:[%s18446_s0 + $0x609] ss:$16 sm:%s3889_s17]   ;;  %s3935_s17 = smov 192  ;;  %9435 = vst.msk [vmem:[%s18447_s1 + $0x70] sm:$0xff] %vm2725_vm8, %v3068_v29  }
 0x215   :  { %3825 = vrot.lane.b32.xlu0 %v3824_v46, %s10687_s18  ;;  %v3887_v7 = vsel %vm10_vm1, %v9611_v28, %v3882_v2  ;;  %v9604_v8 = vld [vmem:[%s18446_s0 + $0x409] ss:$16 sm:%s3853_s23]   ;;  %s3899_s23 = smov 3 }
 0x216   :  { %v3892_v9 = vsel %vm14_vm2, %v9612_v3, %v3887_v7  ;;  %v9605_v16 = vld [vmem:[%s18446_s0 + $0x409] ss:$16 sm:%s3856_s30]   ;;  %s3902_s30 = smov 12 }
 0x217   :  { %v9606_v54 = vld [vmem:[%s18446_s0 + $0x409] ss:$16 sm:%s3861_s2]   ;;  %3893 = vrot.lane.b32.xlu1 %v3892_v9, %s10687_s18  ;;  %v3859_v10 = vsel %vm6_vm0, %v9605_v16, %v9604_v8  ;;  %s3907_s2 = smov 48  ;;  %v3045_v39 = vpop.permute.xlu0 %3044  }
 0x218   :  { %v9607_v11 = vld [vmem:[%s18446_s0 + $0x409] ss:$16 sm:%s3866_s11]   ;;  %v3864_v36 = vsel %vm10_vm1, %v9606_v54, %v3859_v10  ;;  %s3912_s11 = smov 192  ;;  %9430 = vst.msk [vmem:[%s18447_s1 + $0x50] sm:$0xff] %vm2725_vm8, %v3045_v39  }
 0x219   :  { %v9620_v13 = vld [vmem:[%s18446_s0 + $0xa09] ss:$16 sm:%s3925_s8]   ;;  %v3869_v17 = vsel %vm14_vm2, %v9607_v11, %v3864_v36  ;;  %s3971_s8 = smov 12 }
 0x21a   :  { %v3928_v18 = vsel %vm6_vm0, %v9620_v13, %v9619_v57  ;;  %v9622_v20 = vld [vmem:[%s18446_s0 + $0xa09] ss:$16 sm:%s3935_s17]   ;;  %3870 = vrot.lane.b32.xlu0 %v3869_v17, %s10687_s18  ;;  %s3981_s17 = smov 192 }
 0x21b   :  { %v3933_v23 = vsel %vm10_vm1, %v9621_v19, %v3928_v18  ;;  %v9614_v26 = vld [vmem:[%s18446_s0 + $0x809] ss:$16 sm:%s3899_s23]   ;;  %s3945_s23 = smov 3  ;;  %v3114_v47 = vpop.permute.xlu1 %3113  }
 0x21c   :  { %v3938_v27 = vsel %vm14_vm2, %v9622_v20, %v3933_v23  ;;  %v9615_v49 = vld [vmem:[%s18446_s0 + $0x809] ss:$16 sm:%s3902_s30]   ;;  %s3948_s30 = smov 12  ;;  %9445 = vst.msk [vmem:[%s18447_s1 + $0xb0] sm:$0xff] %vm2725_vm8, %v3114_v47  }
 0x21d   :  { %v9616_v24 = vld [vmem:[%s18446_s0 + $0x809] ss:$16 sm:%s3907_s2]   ;;  %3939 = vrot.lane.b32.xlu1 %v3938_v27, %s10687_s18  ;;  %v3905_v30 = vsel %vm6_vm0, %v9615_v49, %v9614_v26  ;;  %s3953_s2 = smov 48 }
 0x21e   :  { %v9617_v32 = vld [vmem:[%s18446_s0 + $0x809] ss:$16 sm:%s3912_s11]   ;;  %v3910_v33 = vsel %vm10_vm1, %v9616_v24, %v3905_v30  ;;  %s3958_s11 = smov 192 }
 0x21f   :  { %v9629_v34 = vld [vmem:[%s18446_s0 + $0x289] ss:$16 sm:%s3968_s10]   ;;  %v3915_v35 = vsel %vm14_vm2, %v9617_v32, %v3910_v33  ;;  %s4014_s10 = smov 3  ;;  %v3091_v53 = vpop.permute.xlu0 %3090  }
 0x220   :  { %v9630_v25 = vld [vmem:[%s18446_s0 + $0x289] ss:$16 sm:%s3971_s8]   ;;  %3916 = vrot.lane.b32.xlu0 %v3915_v35, %s10687_s18  ;;  %s4017_s8 = smov 12  ;;  %9440 = vst.msk [vmem:[%s18447_s1 + $0x90] sm:$0xff] %vm2725_vm8, %v3091_v53  }
 0x221   :  { %v3974_v60 = vsel %vm6_vm0, %v9630_v25, %v9629_v34  ;;  %v9631_v22 = vld [vmem:[%s18446_s0 + $0x289] ss:$16 sm:%s3976_s16]   ;;  %s4022_s16 = smov 48 }
 0x222   :  { %v9632_v38 = vld [vmem:[%s18446_s0 + $0x289] ss:$16 sm:%s3981_s17]   ;;  %v3979_v61 = vsel %vm10_vm1, %v9631_v22, %v3974_v60  ;;  %s4027_s17 = smov 192 }
 0x223   :  { %v9624_v40 = vld [vmem:[%s18446_s0 + $0x89] ss:$16 sm:%s3945_s23]   ;;  %v3984_v41 = vsel %vm14_vm2, %v9632_v38, %v3979_v61  ;;  %s3991_s23 = smov 3  ;;  %v3160_v44 = vpop.permute.xlu1 %3159  }
 0x224   :  { %v9625_v43 = vld [vmem:[%s18446_s0 + $0x89] ss:$16 sm:%s3948_s30]   ;;  %3985 = vrot.lane.b32.xlu1 %v3984_v41, %s10687_s18  ;;  %s3994_s30 = smov 12  ;;  %9455 = vst.msk [vmem:[%s18447_s1 + $0x38] sm:$0xff] %vm2725_vm8, %v3160_v44  }
 0x225   :  { %v9626_v45 = vld [vmem:[%s18446_s0 + $0x89] ss:$16 sm:%s3953_s2]   ;;  %v3951_v37 = vsel %vm6_vm0, %v9625_v43, %v9624_v40  ;;  %s3999_s2 = smov 48 }
 0x226   :  { %v9627_v48 = vld [vmem:[%s18446_s0 + $0x89] ss:$16 sm:%s3958_s11]   ;;  %v3956_v15 = vsel %vm10_vm1, %v9626_v45, %v3951_v37  ;;  %s4004_s11 = smov 192 }
 0x227   :  { %v9639_v50 = vld [vmem:[%s18446_s0 + $0x689] ss:$16 sm:%s4014_s10]   ;;  %v3961_v6 = vsel %vm14_vm2, %v9627_v48, %v3956_v15  ;;  %s4060_s10 = smov 3  ;;  %v3137_v5 = vpop.permute.xlu0 %3136  }
 0x228   :  { %v9640_v51 = vld [vmem:[%s18446_s0 + $0x689] ss:$16 sm:%s4017_s8]   ;;  %3962 = vrot.lane.b32.xlu0 %v3961_v6, %s10687_s18  ;;  %s4063_s8 = smov 12  ;;  %9450 = vst.msk [vmem:[%s18447_s1 + $0x18] sm:$0xff] %vm2725_vm8, %v3137_v5  }
 0x229   :  { %v4020_v52 = vsel %vm6_vm0, %v9640_v51, %v9639_v50  ;;  %v9641_v31 = vld [vmem:[%s18446_s0 + $0x689] ss:$16 sm:%s4022_s16]   ;;  %s4068_s16 = smov 48 }
 0x22a   :  { %v9642_v14 = vld [vmem:[%s18446_s0 + $0x689] ss:$16 sm:%s4027_s17]   ;;  %v4025_v55 = vsel %vm10_vm1, %v9641_v31, %v4020_v52  ;;  %s4073_s17 = smov 192 }
 0x22b   :  { %v9634_v56 = vld [vmem:[%s18446_s0 + $0x489] ss:$16 sm:%s3991_s23]   ;;  %v4030_v58 = vsel %vm14_vm2, %v9642_v14, %v4025_v55  ;;  %s4037_s23 = smov 3  ;;  %v3206_v12 = vpop.permute.xlu1 %3205  }
 0x22c   :  { %v9635_v59 = vld [vmem:[%s18446_s0 + $0x489] ss:$16 sm:%s3994_s30]   ;;  %4031 = vrot.lane.b32.xlu1 %v4030_v58, %s10687_s18  ;;  %s4040_s30 = smov 12  ;;  %9465 = vst.msk [vmem:[%s18447_s1 + $0x78] sm:$0xff] %vm2725_vm8, %v3206_v12  }
 0x22d   :  { %v9636_v62 = vld [vmem:[%s18446_s0 + $0x489] ss:$16 sm:%s3999_s2]   ;;  %v3997_v4 = vsel %vm6_vm0, %v9635_v59, %v9634_v56  ;;  %s4045_s2 = smov 48 }
 0x22e   :  { %v9637_v63 = vld [vmem:[%s18446_s0 + $0x489] ss:$16 sm:%s4004_s11]   ;;  %v4002_v0 = vsel %vm10_vm1, %v9636_v62, %v3997_v4  ;;  %s4050_s11 = smov 192 }
 0x22f   :  { %v9649_v42 = vld [vmem:[%s18446_s0 + $0xa89] ss:$16 sm:%s4060_s10]   ;;  %v4007_v46 = vsel %vm14_vm2, %v9637_v63, %v4002_v0  ;;  %s4106_s10 = smov 3  ;;  %v3183_v21 = vpop.permute.xlu0 %3182  }
 0x230   :  { %v9650_v1 = vld [vmem:[%s18446_s0 + $0xa89] ss:$16 sm:%s4063_s8]   ;;  %4008 = vrot.lane.b32.xlu0 %v4007_v46, %s10687_s18  ;;  %s4109_s8 = smov 12  ;;  %9460 = vst.msk [vmem:[%s18447_s1 + $0x58] sm:$0xff] %vm2725_vm8, %v3183_v21  }
 0x231   :  { %v4066_v2 = vsel %vm6_vm0, %v9650_v1, %v9649_v42  ;;  %v9651_v28 = vld [vmem:[%s18446_s0 + $0xa89] ss:$16 sm:%s4068_s16]   ;;  %s4114_s16 = smov 48 }
 0x232   :  { %v9652_v3 = vld [vmem:[%s18446_s0 + $0xa89] ss:$16 sm:%s4073_s17]   ;;  %v4071_v7 = vsel %vm10_vm1, %v9651_v28, %v4066_v2  ;;  %s4119_s17 = smov 192 }
 0x233   :  { %v9644_v8 = vld [vmem:[%s18446_s0 + $0x889] ss:$16 sm:%s4037_s23]   ;;  %v4076_v9 = vsel %vm14_vm2, %v9652_v3, %v4071_v7  ;;  %s4083_s23 = smov 3  ;;  %v3252_v29 = vpop.permute.xlu1 %3251  }
 0x234   :  { %v9645_v16 = vld [vmem:[%s18446_s0 + $0x889] ss:$16 sm:%s4040_s30]   ;;  %4077 = vrot.lane.b32.xlu1 %v4076_v9, %s10687_s18  ;;  %s4086_s30 = smov 12  ;;  %9475 = vst.msk [vmem:[%s18447_s1 + $0xb8] sm:$0xff] %vm2725_vm8, %v3252_v29  }
 0x235   :  { %v9646_v54 = vld [vmem:[%s18446_s0 + $0x889] ss:$16 sm:%s4045_s2]   ;;  %v4043_v10 = vsel %vm6_vm0, %v9645_v16, %v9644_v8  ;;  %s4091_s2 = smov 48 }
 0x236   :  { %v9647_v11 = vld [vmem:[%s18446_s0 + $0x889] ss:$16 sm:%s4050_s11]   ;;  %v4048_v36 = vsel %vm10_vm1, %v9646_v54, %v4043_v10  ;;  %s4096_s11 = smov 192 }
 0x237   :  { %v9659_v57 = vld [vmem:[%s18446_s0 + $0x309] ss:$16 sm:%s4106_s10]   ;;  %v4053_v17 = vsel %vm14_vm2, %v9647_v11, %v4048_v36  ;;  %s4152_s10 = smov 3  ;;  %v3229_v39 = vpop.permute.xlu0 %3228   ;;  %v3297_v47 = vpop.permute.xlu1 %3296  }
 0x238   :  { %v9660_v13 = vld [vmem:[%s18446_s0 + $0x309] ss:$16 sm:%s4109_s8]   ;;  %4054 = vrot.lane.b32.xlu0 %v4053_v17, %s10687_s18  ;;  %s4155_s8 = smov 12  ;;  %9470 = vst.msk [vmem:[%s18447_s1 + $0x98] sm:$0xff] %vm2725_vm8, %v3229_v39  }
 0x239   :  { %v4112_v18 = vsel %vm6_vm0, %v9660_v13, %v9659_v57  ;;  %v9661_v19 = vld [vmem:[%s18446_s0 + $0x309] ss:$16 sm:%s4114_s16]   ;;  %s4160_s16 = smov 48  ;;  %9484 = vst.msk [vmem:[%s18447_s1 + $0x20] sm:$0xff] %vm3276_vm9, %v3297_v47  }
 0x23a   :  { %v9662_v20 = vld [vmem:[%s18446_s0 + $0x309] ss:$16 sm:%s4119_s17]   ;;  %v4117_v23 = vsel %vm10_vm1, %v9661_v19, %v4112_v18  ;;  %s4165_s17 = smov 192 }
 0x23b   :  { %v9654_v26 = vld [vmem:[%s18446_s0 + $0x109] ss:$16 sm:%s4083_s23]   ;;  %v4122_v27 = vsel %vm14_vm2, %v9662_v20, %v4117_v23  ;;  %s4129_s23 = smov 3  ;;  %v3275_v53 = vpop.permute.xlu0 %3274   ;;  %v3343_v44 = vpop.permute.xlu1 %3342  }
 0x23c   :  { %v9655_v49 = vld [vmem:[%s18446_s0 + $0x109] ss:$16 sm:%s4086_s30]   ;;  %4123 = vrot.lane.b32.xlu1 %v4122_v27, %s10687_s18  ;;  %s4132_s30 = smov 12  ;;  %3277 = vst.msk [vmem:[%s18447_s1] sm:$0xff] %vm3276_vm9, %v3275_v53  }
 0x23d   :  { %v9656_v24 = vld [vmem:[%s18446_s0 + $0x109] ss:$16 sm:%s4091_s2]   ;;  %v4089_v30 = vsel %vm6_vm0, %v9655_v49, %v9654_v26  ;;  %s4137_s2 = smov 48  ;;  %9494 = vst.msk [vmem:[%s18447_s1 + $0x60] sm:$0xff] %vm3276_vm9, %v3343_v44  }
 0x23e   :  { %v9657_v32 = vld [vmem:[%s18446_s0 + $0x109] ss:$16 sm:%s4096_s11]   ;;  %v4094_v33 = vsel %vm10_vm1, %v9656_v24, %v4089_v30  ;;  %s4142_s11 = smov 192 }
 0x23f   :  { %v9669_v34 = vld [vmem:[%s18446_s0 + $0x709] ss:$16 sm:%s4152_s10]   ;;  %v4099_v35 = vsel %vm14_vm2, %v9657_v32, %v4094_v33  ;;  %s4198_s10 = smov 3  ;;  %v3320_v5 = vpop.permute.xlu0 %3319   ;;  %v3389_v12 = vpop.permute.xlu1 %3388  }
 0x240   :  { %v9670_v25 = vld [vmem:[%s18446_s0 + $0x709] ss:$16 sm:%s4155_s8]   ;;  %4100 = vrot.lane.b32.xlu0 %v4099_v35, %s10687_s18  ;;  %s4201_s8 = smov 12  ;;  %9489 = vst.msk [vmem:[%s18447_s1 + $0x40] sm:$0xff] %vm3276_vm9, %v3320_v5  }
 0x241   :  { %v4158_v60 = vsel %vm6_vm0, %v9670_v25, %v9669_v34  ;;  %v9671_v22 = vld [vmem:[%s18446_s0 + $0x709] ss:$16 sm:%s4160_s16]   ;;  %s4206_s16 = smov 48  ;;  %9504 = vst.msk [vmem:[%s18447_s1 + $0xa0] sm:$0xff] %vm3276_vm9, %v3389_v12  }
 0x242   :  { %v9672_v38 = vld [vmem:[%s18446_s0 + $0x709] ss:$16 sm:%s4165_s17]   ;;  %v4163_v61 = vsel %vm10_vm1, %v9671_v22, %v4158_v60  ;;  %s4211_s17 = smov 192 }
 0x243   :  { %v9664_v40 = vld [vmem:[%s18446_s0 + $0x509] ss:$16 sm:%s4129_s23]   ;;  %v4168_v41 = vsel %vm14_vm2, %v9672_v38, %v4163_v61  ;;  %s4175_s23 = smov 3  ;;  %v3366_v21 = vpop.permute.xlu0 %3365   ;;  %v3435_v29 = vpop.permute.xlu1 %3434  }
 0x244   :  { %v9665_v43 = vld [vmem:[%s18446_s0 + $0x509] ss:$16 sm:%s4132_s30]   ;;  %4169 = vrot.lane.b32.xlu1 %v4168_v41, %s10687_s18  ;;  %s4178_s30 = smov 12  ;;  %9499 = vst.msk [vmem:[%s18447_s1 + $0x80] sm:$0xff] %vm3276_vm9, %v3366_v21  }
 0x245   :  { %v9666_v45 = vld [vmem:[%s18446_s0 + $0x509] ss:$16 sm:%s4137_s2]   ;;  %v4135_v37 = vsel %vm6_vm0, %v9665_v43, %v9664_v40  ;;  %s4183_s2 = smov 48  ;;  %9514 = vst.msk [vmem:[%s18447_s1 + $0x28] sm:$0xff] %vm3276_vm9, %v3435_v29  }
 0x246   :  { %v9667_v48 = vld [vmem:[%s18446_s0 + $0x509] ss:$16 sm:%s4142_s11]   ;;  %v4140_v15 = vsel %vm10_vm1, %v9666_v45, %v4135_v37  ;;  %s4188_s11 = smov 192 }
 0x247   :  { %v9679_v50 = vld [vmem:[%s18446_s0 + $0xb09] ss:$16 sm:%s4198_s10]   ;;  %v4145_v6 = vsel %vm14_vm2, %v9667_v48, %v4140_v15  ;;  %s4244_s10 = smov 3  ;;  %v3412_v39 = vpop.permute.xlu0 %3411   ;;  %v3481_v47 = vpop.permute.xlu1 %3480  }
 0x248   :  { %v9680_v51 = vld [vmem:[%s18446_s0 + $0xb09] ss:$16 sm:%s4201_s8]   ;;  %4146 = vrot.lane.b32.xlu0 %v4145_v6, %s10687_s18  ;;  %s4247_s8 = smov 12  ;;  %9509 = vst.msk [vmem:[%s18447_s1 + $0x8] sm:$0xff] %vm3276_vm9, %v3412_v39  }
 0x249   :  { %v4204_v52 = vsel %vm6_vm0, %v9680_v51, %v9679_v50  ;;  %v9681_v31 = vld [vmem:[%s18446_s0 + $0xb09] ss:$16 sm:%s4206_s16]   ;;  %s4252_s16 = smov 48  ;;  %9524 = vst.msk [vmem:[%s18447_s1 + $0x68] sm:$0xff] %vm3276_vm9, %v3481_v47  }
 0x24a   :  { %v9682_v14 = vld [vmem:[%s18446_s0 + $0xb09] ss:$16 sm:%s4211_s17]   ;;  %v4209_v55 = vsel %vm10_vm1, %v9681_v31, %v4204_v52  ;;  %s4257_s17 = smov 192 }
 0x24b   :  { %v9674_v56 = vld [vmem:[%s18446_s0 + $0x909] ss:$16 sm:%s4175_s23]   ;;  %v4214_v58 = vsel %vm14_vm2, %v9682_v14, %v4209_v55  ;;  %s4221_s23 = smov 3  ;;  %v3458_v53 = vpop.permute.xlu0 %3457  }
 0x24c   :  { %v9675_v59 = vld [vmem:[%s18446_s0 + $0x909] ss:$16 sm:%s4178_s30]   ;;  %4215 = vrot.lane.b32.xlu1 %v4214_v58, %s10687_s18  ;;  %s4224_s30 = smov 12  ;;  %9519 = vst.msk [vmem:[%s18447_s1 + $0x48] sm:$0xff] %vm3276_vm9, %v3458_v53  }
 0x24d   :  { %v9676_v62 = vld [vmem:[%s18446_s0 + $0x909] ss:$16 sm:%s4183_s2]   ;;  %v4181_v4 = vsel %vm6_vm0, %v9675_v59, %v9674_v56  ;;  %s4229_s2 = smov 48 }
 0x24e   :  { %v9677_v63 = vld [vmem:[%s18446_s0 + $0x909] ss:$16 sm:%s4188_s11]   ;;  %v4186_v0 = vsel %vm10_vm1, %v9676_v62, %v4181_v4  ;;  %s4234_s11 = smov 192 }
 0x24f   :  { %v9689_v42 = vld [vmem:[%s18446_s0 + $0x389] ss:$16 sm:%s4244_s10]   ;;  %v4191_v46 = vsel %vm14_vm2, %v9677_v63, %v4186_v0  ;;  %s4290_s10 = smov 3  ;;  %v3527_v44 = vpop.permute.xlu1 %3526  }
 0x250   :  { %v9690_v1 = vld [vmem:[%s18446_s0 + $0x389] ss:$16 sm:%s4247_s8]   ;;  %4192 = vrot.lane.b32.xlu0 %v4191_v46, %s10687_s18  ;;  %s4293_s8 = smov 12  ;;  %9534 = vst.msk [vmem:[%s18447_s1 + $0xa8] sm:$0xff] %vm3276_vm9, %v3527_v44  }
 0x251   :  { %v4250_v2 = vsel %vm6_vm0, %v9690_v1, %v9689_v42  ;;  %v9691_v28 = vld [vmem:[%s18446_s0 + $0x389] ss:$16 sm:%s4252_s16]   ;;  %s4298_s16 = smov 48  ;;  %v9728_v42 = vld [vmem:[%s18446_s0 + $0x608] ss:$16 sm:%s4427_s9]   ;;  %s4473_s9 = smov 3 }
 0x252   :  { %v9692_v3 = vld [vmem:[%s18446_s0 + $0x389] ss:$16 sm:%s4257_s17]   ;;  %v4255_v7 = vsel %vm10_vm1, %v9691_v28, %v4250_v2  ;;  %s4303_s17 = smov 192  ;;  %v9730_v28 = vld [vmem:[%s18446_s0 + $0x608] ss:$16 sm:%s4435_s19]   ;;  %s4481_s19 = smov 48 }
 0x253   :  { %v9684_v8 = vld [vmem:[%s18446_s0 + $0x189] ss:$16 sm:%s4221_s23]   ;;  %v4260_v9 = vsel %vm14_vm2, %v9692_v3, %v4255_v7  ;;  %s4267_s23 = smov 3  ;;  %v3504_v5 = vpop.permute.xlu0 %3503  }
 0x254   :  { %v9685_v16 = vld [vmem:[%s18446_s0 + $0x189] ss:$16 sm:%s4224_s30]   ;;  %4261 = vrot.lane.b32.xlu1 %v4260_v9, %s10687_s18  ;;  %s4270_s30 = smov 12  ;;  %9529 = vst.msk [vmem:[%s18447_s1 + $0x88] sm:$0xff] %vm3276_vm9, %v3504_v5  }
 0x255   :  { %v9686_v54 = vld [vmem:[%s18446_s0 + $0x189] ss:$16 sm:%s4229_s2]   ;;  %v4227_v10 = vsel %vm6_vm0, %v9685_v16, %v9684_v8  ;;  %s4275_s2 = smov 48 }
 0x256   :  { %v9687_v11 = vld [vmem:[%s18446_s0 + $0x189] ss:$16 sm:%s4234_s11]   ;;  %v4232_v36 = vsel %vm10_vm1, %v9686_v54, %v4227_v10  ;;  %s4280_s11 = smov 192 }
 0x257   :  { %v9699_v57 = vld [vmem:[%s18446_s0 + $0x789] ss:$16 sm:%s4290_s10]   ;;  %v4237_v17 = vsel %vm14_vm2, %v9687_v11, %v4232_v36  ;;  %s4336_s10 = smov 3  ;;  %v3573_v12 = vpop.permute.xlu1 %3572  }
 0x258   :  { %v9700_v13 = vld [vmem:[%s18446_s0 + $0x789] ss:$16 sm:%s4293_s8]   ;;  %4238 = vrot.lane.b32.xlu0 %v4237_v17, %s10687_s18  ;;  %s4339_s8 = smov 12  ;;  %9544 = vst.msk [vmem:[%s18447_s1 + $0x30] sm:$0xff] %vm3276_vm9, %v3573_v12  }
 0x259   :  { %v4296_v18 = vsel %vm6_vm0, %v9700_v13, %v9699_v57  ;;  %v9701_v19 = vld [vmem:[%s18446_s0 + $0x789] ss:$16 sm:%s4298_s16]   ;;  %s4344_s16 = smov 48  ;;  %v9738_v57 = vld [vmem:[%s18446_s0 + $0xa08] ss:$16 sm:%s4473_s9]   ;;  %s4519_s9 = smov 3 }
 0x25a   :  { %v9702_v20 = vld [vmem:[%s18446_s0 + $0x789] ss:$16 sm:%s4303_s17]   ;;  %v4301_v23 = vsel %vm10_vm1, %v9701_v19, %v4296_v18  ;;  %s4349_s17 = smov 192  ;;  %v9740_v19 = vld [vmem:[%s18446_s0 + $0xa08] ss:$16 sm:%s4481_s19]   ;;  %s4527_s19 = smov 48 }
 0x25b   :  { %v9694_v26 = vld [vmem:[%s18446_s0 + $0x589] ss:$16 sm:%s4267_s23]   ;;  %v4306_v27 = vsel %vm14_vm2, %v9702_v20, %v4301_v23  ;;  %s4313_s23 = smov 3  ;;  %v3550_v21 = vpop.permute.xlu0 %3549  }
 0x25c   :  { %v9695_v49 = vld [vmem:[%s18446_s0 + $0x589] ss:$16 sm:%s4270_s30]   ;;  %4307 = vrot.lane.b32.xlu1 %v4306_v27, %s10687_s18  ;;  %s4316_s30 = smov 12  ;;  %9539 = vst.msk [vmem:[%s18447_s1 + $0x10] sm:$0xff] %vm3276_vm9, %v3550_v21  }
 0x25d   :  { %v9696_v24 = vld [vmem:[%s18446_s0 + $0x589] ss:$16 sm:%s4275_s2]   ;;  %v4273_v30 = vsel %vm6_vm0, %v9695_v49, %v9694_v26  ;;  %s4321_s2 = smov 48 }
 0x25e   :  { %v9697_v32 = vld [vmem:[%s18446_s0 + $0x589] ss:$16 sm:%s4280_s11]   ;;  %v4278_v33 = vsel %vm10_vm1, %v9696_v24, %v4273_v30  ;;  %s4326_s11 = smov 192 }
 0x25f   :  { %v9709_v34 = vld [vmem:[%s18446_s0 + $0xb89] ss:$16 sm:%s4336_s10]   ;;  %v4283_v35 = vsel %vm14_vm2, %v9697_v32, %v4278_v33  ;;  %s4381_s10 = smov 3  ;;  %v3619_v29 = vpop.permute.xlu1 %3618  }
 0x260   :  { %v9710_v25 = vld [vmem:[%s18446_s0 + $0xb89] ss:$16 sm:%s4339_s8]   ;;  %4284 = vrot.lane.b32.xlu0 %v4283_v35, %s10687_s18  ;;  %s4384_s8 = smov 12  ;;  %9554 = vst.msk [vmem:[%s18447_s1 + $0x70] sm:$0xff] %vm3276_vm9, %v3619_v29  }
 0x261   :  { %v4342_v60 = vsel %vm6_vm0, %v9710_v25, %v9709_v34  ;;  %v9711_v22 = vld [vmem:[%s18446_s0 + $0xb89] ss:$16 sm:%s4344_s16]   ;;  %s4389_s16 = smov 48  ;;  %v9718_v50 = vld [vmem:[%s18446_s0 + $0x208] ss:$16 sm:%s4381_s10]   ;;  %s4430_s10 = smov 12 }
 0x262   :  { %v9712_v38 = vld [vmem:[%s18446_s0 + $0xb89] ss:$16 sm:%s4349_s17]   ;;  %v4347_v61 = vsel %vm10_vm1, %v9711_v22, %v4342_v60  ;;  %s4394_s17 = smov 192  ;;  %v9719_v51 = vld [vmem:[%s18446_s0 + $0x208] ss:$16 sm:%s4384_s8]   ;;  %s7741_s8 = smov 48 }
 0x263   :  { %v9704_v40 = vld [vmem:[%s18446_s0 + $0x989] ss:$16 sm:%s4313_s23]   ;;  %v4352_v41 = vsel %vm14_vm2, %v9712_v38, %v4347_v61  ;;  %s4359_s23 = smov 3  ;;  %v4387_v52 = vsel %vm6_vm0, %v9719_v51, %v9718_v50  ;;  %v9720_v31 = vld [vmem:[%s18446_s0 + $0x208] ss:$16 sm:%s4389_s16]   ;;  %s4440_s16 = smov 192  ;;  %v3596_v39 = vpop.permute.xlu0 %3595  }
 0x264   :  { %v9705_v43 = vld [vmem:[%s18446_s0 + $0x989] ss:$16 sm:%s4316_s30]   ;;  %4353 = vrot.lane.b32.xlu1 %v4352_v41, %s10687_s18  ;;  %s4362_s30 = smov 12  ;;  %v4392_v55 = vsel %vm10_vm1, %v9720_v31, %v4387_v52  ;;  %9549 = vst.msk [vmem:[%s18447_s1 + $0x50] sm:$0xff] %vm3276_vm9, %v3596_v39  }
 0x265   :  { %v9706_v45 = vld [vmem:[%s18446_s0 + $0x989] ss:$16 sm:%s4321_s2]   ;;  %v4319_v37 = vsel %vm6_vm0, %v9705_v43, %v9704_v40  ;;  %s4367_s2 = smov 48  ;;  %v9721_v14 = vld [vmem:[%s18446_s0 + $0x208] ss:$16 sm:%s4394_s17]   ;;  %s10688_s17 = smov 32  }
 0x266   :  { %v9707_v48 = vld [vmem:[%s18446_s0 + $0x989] ss:$16 sm:%s4326_s11]   ;;  %v4324_v15 = vsel %vm10_vm1, %v9706_v45, %v4319_v37  ;;  %s4372_s11 = smov 192  ;;  %v9714_v56 = vld [vmem:[%s18446_s0 + $0x8] ss:$16 sm:%s4359_s23]   ;;  %v4397_v58 = vsel %vm14_vm2, %v9721_v14, %v4392_v55  ;;  %s4404_s23 = smov 3 }
 0x267   :  { %v4329_v6 = vsel %vm14_vm2, %v9707_v48, %v4324_v15  ;;  %v9715_v59 = vld [vmem:[%s18446_s0 + $0x8] ss:$16 sm:%s4362_s30]   ;;  %s4407_s30 = smov 12  ;;  %v3665_v47 = vpop.permute.xlu1 %3664  }
 0x268   :  { %4330 = vrot.lane.b32.xlu0 %v4329_v6, %s10687_s18  ;;  %v9716_v62 = vld [vmem:[%s18446_s0 + $0x8] ss:$16 sm:%s4367_s2]   ;;  %4398 = vrot.lane.b32.xlu1 %v4397_v58, %s10688_s17  ;;  %v4365_v4 = vsel %vm6_vm0, %v9715_v59, %v9714_v56  ;;  %s4412_s2 = smov 48  ;;  %s5529_s18 = smov 3 }
 0x269   :  { %v9717_v63 = vld [vmem:[%s18446_s0 + $0x8] ss:$16 sm:%s4372_s11]   ;;  %v4370_v0 = vsel %vm10_vm1, %v9716_v62, %v4365_v4  ;;  %s4417_s11 = smov 192  ;;  %9564 = vst.msk [vmem:[%s18447_s1 + $0xb0] sm:$0xff] %vm3276_vm9, %v3665_v47  }
 0x26a   :  { %v9729_v1 = vld [vmem:[%s18446_s0 + $0x608] ss:$16 sm:%s4430_s10]   ;;  %v4375_v46 = vsel %vm14_vm2, %v9717_v63, %v4370_v0  ;;  %s4476_s10 = smov 12 }
 0x26b   :  { %v4433_v2 = vsel %vm6_vm0, %v9729_v1, %v9728_v42  ;;  %v9731_v3 = vld [vmem:[%s18446_s0 + $0x608] ss:$16 sm:%s4440_s16]   ;;  %s4486_s16 = smov 192  ;;  %v3642_v53 = vpop.permute.xlu0 %3641  }
 0x26c   :  { %4376 = vrot.lane.b32.xlu0 %v4375_v46, %s10688_s17  ;;  %v4438_v7 = vsel %vm10_vm1, %v9730_v28, %v4433_v2  ;;  %v9723_v8 = vld [vmem:[%s18446_s0 + $0x408] ss:$16 sm:%s4404_s23]   ;;  %s4450_s23 = smov 3  ;;  %9559 = vst.msk [vmem:[%s18447_s1 + $0x90] sm:$0xff] %vm3276_vm9, %v3642_v53  }
 0x26d   :  { %v4443_v9 = vsel %vm14_vm2, %v9731_v3, %v4438_v7  ;;  %v9724_v16 = vld [vmem:[%s18446_s0 + $0x408] ss:$16 sm:%s4407_s30]   ;;  %s4453_s30 = smov 12 }
 0x26e   :  { %v9725_v54 = vld [vmem:[%s18446_s0 + $0x408] ss:$16 sm:%s4412_s2]   ;;  %4444 = vrot.lane.b32.xlu1 %v4443_v9, %s10688_s17  ;;  %v4410_v10 = vsel %vm6_vm0, %v9724_v16, %v9723_v8  ;;  %s4458_s2 = smov 48 }
 0x26f   :  { %v9726_v11 = vld [vmem:[%s18446_s0 + $0x408] ss:$16 sm:%s4417_s11]   ;;  %v4415_v36 = vsel %vm10_vm1, %v9725_v54, %v4410_v10  ;;  %s4463_s11 = smov 192  ;;  %v3711_v44 = vpop.permute.xlu1 %3710  }
 0x270   :  { %v9739_v13 = vld [vmem:[%s18446_s0 + $0xa08] ss:$16 sm:%s4476_s10]   ;;  %v4420_v17 = vsel %vm14_vm2, %v9726_v11, %v4415_v36  ;;  %s4522_s10 = smov 12  ;;  %9574 = vst.msk [vmem:[%s18447_s1 + $0x38] sm:$0xff] %vm3276_vm9, %v3711_v44  }
 0x271   :  { %v4479_v18 = vsel %vm6_vm0, %v9739_v13, %v9738_v57  ;;  %v9741_v20 = vld [vmem:[%s18446_s0 + $0xa08] ss:$16 sm:%s4486_s16]   ;;  %4421 = vrot.lane.b32.xlu0 %v4420_v17, %s10688_s17  ;;  %s4532_s16 = smov 192 }
 0x272   :  { %v4484_v23 = vsel %vm10_vm1, %v9740_v19, %v4479_v18  ;;  %v9733_v26 = vld [vmem:[%s18446_s0 + $0x808] ss:$16 sm:%s4450_s23]   ;;  %s4496_s23 = smov 3 }
 0x273   :  { %v4489_v27 = vsel %vm14_vm2, %v9741_v20, %v4484_v23  ;;  %v9734_v49 = vld [vmem:[%s18446_s0 + $0x808] ss:$16 sm:%s4453_s30]   ;;  %s4499_s30 = smov 12  ;;  %v3688_v5 = vpop.permute.xlu0 %3687  }
 0x274   :  { %v9735_v24 = vld [vmem:[%s18446_s0 + $0x808] ss:$16 sm:%s4458_s2]   ;;  %4490 = vrot.lane.b32.xlu1 %v4489_v27, %s10688_s17  ;;  %v4456_v30 = vsel %vm6_vm0, %v9734_v49, %v9733_v26  ;;  %s4504_s2 = smov 48  ;;  %9569 = vst.msk [vmem:[%s18447_s1 + $0x18] sm:$0xff] %vm3276_vm9, %v3688_v5  }
 0x275   :  { %v9736_v32 = vld [vmem:[%s18446_s0 + $0x808] ss:$16 sm:%s4463_s11]   ;;  %v4461_v33 = vsel %vm10_vm1, %v9735_v24, %v4456_v30  ;;  %s4509_s11 = smov 192 }
 0x276   :  { %v9748_v34 = vld [vmem:[%s18446_s0 + $0x288] ss:$16 sm:%s4519_s9]   ;;  %v4466_v35 = vsel %vm14_vm2, %v9736_v32, %v4461_v33  ;;  %s4565_s9 = smov 3 }
 0x277   :  { %v9749_v25 = vld [vmem:[%s18446_s0 + $0x288] ss:$16 sm:%s4522_s10]   ;;  %4467 = vrot.lane.b32.xlu0 %v4466_v35, %s10688_s17  ;;  %s4568_s10 = smov 12  ;;  %v3757_v12 = vpop.permute.xlu1 %3756  }
 0x278   :  { %v4525_v60 = vsel %vm6_vm0, %v9749_v25, %v9748_v34  ;;  %v9750_v22 = vld [vmem:[%s18446_s0 + $0x288] ss:$16 sm:%s4527_s19]   ;;  %s4573_s19 = smov 48  ;;  %9584 = vst.msk [vmem:[%s18447_s1 + $0x78] sm:$0xff] %vm3276_vm9, %v3757_v12  }
 0x279   :  { %v9751_v38 = vld [vmem:[%s18446_s0 + $0x288] ss:$16 sm:%s4532_s16]   ;;  %v4530_v61 = vsel %vm10_vm1, %v9750_v22, %v4525_v60  ;;  %s4578_s16 = smov 192 }
 0x27a   :  { %v9743_v40 = vld [vmem:[%s18446_s0 + $0x88] ss:$16 sm:%s4496_s23]   ;;  %v4535_v41 = vsel %vm14_vm2, %v9751_v38, %v4530_v61  ;;  %s4542_s23 = smov 3 }
 0x27b   :  { %v9744_v43 = vld [vmem:[%s18446_s0 + $0x88] ss:$16 sm:%s4499_s30]   ;;  %4536 = vrot.lane.b32.xlu1 %v4535_v41, %s10688_s17  ;;  %s4545_s30 = smov 12  ;;  %v3734_v21 = vpop.permute.xlu0 %3733  }
 0x27c   :  { %v9745_v45 = vld [vmem:[%s18446_s0 + $0x88] ss:$16 sm:%s4504_s2]   ;;  %v4502_v37 = vsel %vm6_vm0, %v9744_v43, %v9743_v40  ;;  %s4550_s2 = smov 48  ;;  %9579 = vst.msk [vmem:[%s18447_s1 + $0x58] sm:$0xff] %vm3276_vm9, %v3734_v21  }
 0x27d   :  { %v9746_v48 = vld [vmem:[%s18446_s0 + $0x88] ss:$16 sm:%s4509_s11]   ;;  %v4507_v15 = vsel %vm10_vm1, %v9745_v45, %v4502_v37  ;;  %s4555_s11 = smov 192 }
 0x27e   :  { %v9758_v50 = vld [vmem:[%s18446_s0 + $0x688] ss:$16 sm:%s4565_s9]   ;;  %v4512_v6 = vsel %vm14_vm2, %v9746_v48, %v4507_v15  ;;  %s4611_s9 = smov 3 }
 0x27f   :  { %v9759_v51 = vld [vmem:[%s18446_s0 + $0x688] ss:$16 sm:%s4568_s10]   ;;  %4513 = vrot.lane.b32.xlu0 %v4512_v6, %s10688_s17  ;;  %s4614_s10 = smov 12  ;;  %v3803_v29 = vpop.permute.xlu1 %3802  }
 0x280   :  { %v4571_v52 = vsel %vm6_vm0, %v9759_v51, %v9758_v50  ;;  %v9760_v31 = vld [vmem:[%s18446_s0 + $0x688] ss:$16 sm:%s4573_s19]   ;;  %s4619_s19 = smov 48  ;;  %9594 = vst.msk [vmem:[%s18447_s1 + $0xb8] sm:$0xff] %vm3276_vm9, %v3803_v29  }
 0x281   :  { %v9761_v14 = vld [vmem:[%s18446_s0 + $0x688] ss:$16 sm:%s4578_s16]   ;;  %v4576_v55 = vsel %vm10_vm1, %v9760_v31, %v4571_v52  ;;  %s4624_s16 = smov 192 }
 0x282   :  { %v9753_v56 = vld [vmem:[%s18446_s0 + $0x488] ss:$16 sm:%s4542_s23]   ;;  %v4581_v58 = vsel %vm14_vm2, %v9761_v14, %v4576_v55  ;;  %s4588_s23 = smov 3 }
 0x283   :  { %v9754_v59 = vld [vmem:[%s18446_s0 + $0x488] ss:$16 sm:%s4545_s30]   ;;  %4582 = vrot.lane.b32.xlu1 %v4581_v58, %s10688_s17  ;;  %s4591_s30 = smov 12  ;;  %v3780_v39 = vpop.permute.xlu0 %3779   ;;  %v3848_v47 = vpop.permute.xlu1 %3847  }
 0x284   :  { %v9755_v62 = vld [vmem:[%s18446_s0 + $0x488] ss:$16 sm:%s4550_s2]   ;;  %v4548_v4 = vsel %vm6_vm0, %v9754_v59, %v9753_v56  ;;  %s4596_s2 = smov 48  ;;  %9589 = vst.msk [vmem:[%s18447_s1 + $0x98] sm:$0xff] %vm3276_vm9, %v3780_v39  }
 0x285   :  { %v9756_v63 = vld [vmem:[%s18446_s0 + $0x488] ss:$16 sm:%s4555_s11]   ;;  %v4553_v0 = vsel %vm10_vm1, %v9755_v62, %v4548_v4  ;;  %s4601_s11 = smov 192  ;;  %9603 = vst.msk [vmem:[%s18447_s1 + $0x20] sm:$0xff] %vm3827_vm10, %v3848_v47  }
 0x286   :  { %v9768_v42 = vld [vmem:[%s18446_s0 + $0xa88] ss:$16 sm:%s4611_s9]   ;;  %v4558_v46 = vsel %vm14_vm2, %v9756_v63, %v4553_v0  ;;  %s4657_s9 = smov 3 }
 0x287   :  { %v9769_v1 = vld [vmem:[%s18446_s0 + $0xa88] ss:$16 sm:%s4614_s10]   ;;  %4559 = vrot.lane.b32.xlu0 %v4558_v46, %s10688_s17  ;;  %s4660_s10 = smov 12  ;;  %v3826_v53 = vpop.permute.xlu0 %3825  }
 0x288   :  { %v4617_v2 = vsel %vm6_vm0, %v9769_v1, %v9768_v42  ;;  %v9770_v28 = vld [vmem:[%s18446_s0 + $0xa88] ss:$16 sm:%s4619_s19]   ;;  %s4665_s19 = smov 48  ;;  %3828 = vst.msk [vmem:[%s18447_s1] sm:$0xff] %vm3827_vm10, %v3826_v53  }
 0x289   :  { %v9771_v3 = vld [vmem:[%s18446_s0 + $0xa88] ss:$16 sm:%s4624_s16]   ;;  %v4622_v7 = vsel %vm10_vm1, %v9770_v28, %v4617_v2  ;;  %s4670_s16 = smov 192  ;;  %v3894_v44 = vpop.permute.xlu1 %3893  }
 0x28a   :  { %v9763_v8 = vld [vmem:[%s18446_s0 + $0x888] ss:$16 sm:%s4588_s23]   ;;  %v4627_v9 = vsel %vm14_vm2, %v9771_v3, %v4622_v7  ;;  %s4634_s23 = smov 3  ;;  %9613 = vst.msk [vmem:[%s18447_s1 + $0x60] sm:$0xff] %vm3827_vm10, %v3894_v44  }
 0x28b   :  { %v9764_v16 = vld [vmem:[%s18446_s0 + $0x888] ss:$16 sm:%s4591_s30]   ;;  %4628 = vrot.lane.b32.xlu1 %v4627_v9, %s10688_s17  ;;  %s4637_s30 = smov 12 }
 0x28c   :  { %v9765_v54 = vld [vmem:[%s18446_s0 + $0x888] ss:$16 sm:%s4596_s2]   ;;  %v4594_v10 = vsel %vm6_vm0, %v9764_v16, %v9763_v8  ;;  %s4642_s2 = smov 48  ;;  %v3871_v5 = vpop.permute.xlu0 %3870  }
 0x28d   :  { %v9766_v11 = vld [vmem:[%s18446_s0 + $0x888] ss:$16 sm:%s4601_s11]   ;;  %v4599_v36 = vsel %vm10_vm1, %v9765_v54, %v4594_v10  ;;  %s4647_s11 = smov 192  ;;  %9608 = vst.msk [vmem:[%s18447_s1 + $0x40] sm:$0xff] %vm3827_vm10, %v3871_v5  }
 0x28e   :  { %v9778_v57 = vld [vmem:[%s18446_s0 + $0x308] ss:$16 sm:%s4657_s9]   ;;  %v4604_v17 = vsel %vm14_vm2, %v9766_v11, %v4599_v36  ;;  %s4703_s9 = smov 3 }
 0x28f   :  { %v9779_v13 = vld [vmem:[%s18446_s0 + $0x308] ss:$16 sm:%s4660_s10]   ;;  %4605 = vrot.lane.b32.xlu0 %v4604_v17, %s10688_s17  ;;  %s4706_s10 = smov 12  ;;  %v3940_v12 = vpop.permute.xlu1 %3939  }
 0x290   :  { %v4663_v18 = vsel %vm6_vm0, %v9779_v13, %v9778_v57  ;;  %v9780_v19 = vld [vmem:[%s18446_s0 + $0x308] ss:$16 sm:%s4665_s19]   ;;  %s4711_s19 = smov 48  ;;  %9623 = vst.msk [vmem:[%s18447_s1 + $0xa0] sm:$0xff] %vm3827_vm10, %v3940_v12  }
 0x291   :  { %v9781_v20 = vld [vmem:[%s18446_s0 + $0x308] ss:$16 sm:%s4670_s16]   ;;  %v4668_v23 = vsel %vm10_vm1, %v9780_v19, %v4663_v18  ;;  %s4716_s16 = smov 192 }
 0x292   :  { %v9773_v26 = vld [vmem:[%s18446_s0 + $0x108] ss:$16 sm:%s4634_s23]   ;;  %v4673_v27 = vsel %vm14_vm2, %v9781_v20, %v4668_v23  ;;  %s4680_s23 = smov 3  ;;  %v3917_v21 = vpop.permute.xlu0 %3916  }
 0x293   :  { %v9774_v49 = vld [vmem:[%s18446_s0 + $0x108] ss:$16 sm:%s4637_s30]   ;;  %4674 = vrot.lane.b32.xlu1 %v4673_v27, %s10688_s17  ;;  %s4683_s30 = smov 12  ;;  %9618 = vst.msk [vmem:[%s18447_s1 + $0x80] sm:$0xff] %vm3827_vm10, %v3917_v21  }
 0x294   :  { %v9775_v24 = vld [vmem:[%s18446_s0 + $0x108] ss:$16 sm:%s4642_s2]   ;;  %v4640_v30 = vsel %vm6_vm0, %v9774_v49, %v9773_v26  ;;  %s4688_s2 = smov 48 }
 0x295   :  { %v9776_v32 = vld [vmem:[%s18446_s0 + $0x108] ss:$16 sm:%s4647_s11]   ;;  %v4645_v33 = vsel %vm10_vm1, %v9775_v24, %v4640_v30  ;;  %s4693_s11 = smov 192 }
 0x296   :  { %v9788_v34 = vld [vmem:[%s18446_s0 + $0x708] ss:$16 sm:%s4703_s9]   ;;  %v4650_v35 = vsel %vm14_vm2, %v9776_v32, %v4645_v33  ;;  %s4749_s9 = smov 3  ;;  %v3986_v29 = vpop.permute.xlu1 %3985  }
 0x297   :  { %v9789_v25 = vld [vmem:[%s18446_s0 + $0x708] ss:$16 sm:%s4706_s10]   ;;  %4651 = vrot.lane.b32.xlu0 %v4650_v35, %s10688_s17  ;;  %s4752_s10 = smov 12  ;;  %9633 = vst.msk [vmem:[%s18447_s1 + $0x28] sm:$0xff] %vm3827_vm10, %v3986_v29  }
 0x298   :  { %v4709_v60 = vsel %vm6_vm0, %v9789_v25, %v9788_v34  ;;  %v9790_v22 = vld [vmem:[%s18446_s0 + $0x708] ss:$16 sm:%s4711_s19]   ;;  %s4757_s19 = smov 48 }
 0x299   :  { %v9791_v38 = vld [vmem:[%s18446_s0 + $0x708] ss:$16 sm:%s4716_s16]   ;;  %v4714_v61 = vsel %vm10_vm1, %v9790_v22, %v4709_v60  ;;  %s4762_s16 = smov 192 }
 0x29a   :  { %v9783_v40 = vld [vmem:[%s18446_s0 + $0x508] ss:$16 sm:%s4680_s23]   ;;  %v4719_v41 = vsel %vm14_vm2, %v9791_v38, %v4714_v61  ;;  %s4726_s23 = smov 3  ;;  %v3963_v39 = vpop.permute.xlu0 %3962  }
 0x29b   :  { %v9784_v43 = vld [vmem:[%s18446_s0 + $0x508] ss:$16 sm:%s4683_s30]   ;;  %4720 = vrot.lane.b32.xlu1 %v4719_v41, %s10688_s17  ;;  %s4729_s30 = smov 12  ;;  %9628 = vst.msk [vmem:[%s18447_s1 + $0x8] sm:$0xff] %vm3827_vm10, %v3963_v39  }
 0x29c   :  { %v9785_v45 = vld [vmem:[%s18446_s0 + $0x508] ss:$16 sm:%s4688_s2]   ;;  %v4686_v37 = vsel %vm6_vm0, %v9784_v43, %v9783_v40  ;;  %s4734_s2 = smov 48 }
 0x29d   :  { %v9786_v48 = vld [vmem:[%s18446_s0 + $0x508] ss:$16 sm:%s4693_s11]   ;;  %v4691_v15 = vsel %vm10_vm1, %v9785_v45, %v4686_v37  ;;  %s4739_s11 = smov 192 }
 0x29e   :  { %v9798_v50 = vld [vmem:[%s18446_s0 + $0xb08] ss:$16 sm:%s4749_s9]   ;;  %v4696_v6 = vsel %vm14_vm2, %v9786_v48, %v4691_v15  ;;  %s4795_s9 = smov 3  ;;  %v4032_v47 = vpop.permute.xlu1 %4031  }
 0x29f   :  { %v9799_v51 = vld [vmem:[%s18446_s0 + $0xb08] ss:$16 sm:%s4752_s10]   ;;  %4697 = vrot.lane.b32.xlu0 %v4696_v6, %s10688_s17  ;;  %s4798_s10 = smov 12  ;;  %9643 = vst.msk [vmem:[%s18447_s1 + $0x68] sm:$0xff] %vm3827_vm10, %v4032_v47  }
 0x2a0   :  { %v4755_v52 = vsel %vm6_vm0, %v9799_v51, %v9798_v50  ;;  %v9800_v31 = vld [vmem:[%s18446_s0 + $0xb08] ss:$16 sm:%s4757_s19]   ;;  %s4803_s19 = smov 48 }
 0x2a1   :  { %v9801_v14 = vld [vmem:[%s18446_s0 + $0xb08] ss:$16 sm:%s4762_s16]   ;;  %v4760_v55 = vsel %vm10_vm1, %v9800_v31, %v4755_v52  ;;  %s4808_s16 = smov 192 }
 0x2a2   :  { %v9793_v56 = vld [vmem:[%s18446_s0 + $0x908] ss:$16 sm:%s4726_s23]   ;;  %v4765_v58 = vsel %vm14_vm2, %v9801_v14, %v4760_v55  ;;  %s4772_s23 = smov 3  ;;  %v4009_v53 = vpop.permute.xlu0 %4008  }
 0x2a3   :  { %v9794_v59 = vld [vmem:[%s18446_s0 + $0x908] ss:$16 sm:%s4729_s30]   ;;  %4766 = vrot.lane.b32.xlu1 %v4765_v58, %s10688_s17  ;;  %s4775_s30 = smov 12  ;;  %9638 = vst.msk [vmem:[%s18447_s1 + $0x48] sm:$0xff] %vm3827_vm10, %v4009_v53  }
 0x2a4   :  { %v9795_v62 = vld [vmem:[%s18446_s0 + $0x908] ss:$16 sm:%s4734_s2]   ;;  %v4732_v4 = vsel %vm6_vm0, %v9794_v59, %v9793_v56  ;;  %s4780_s2 = smov 48 }
 0x2a5   :  { %v9796_v63 = vld [vmem:[%s18446_s0 + $0x908] ss:$16 sm:%s4739_s11]   ;;  %v4737_v0 = vsel %vm10_vm1, %v9795_v62, %v4732_v4  ;;  %s4785_s11 = smov 192 }
 0x2a6   :  { %v9808_v42 = vld [vmem:[%s18446_s0 + $0x388] ss:$16 sm:%s4795_s9]   ;;  %v4742_v46 = vsel %vm14_vm2, %v9796_v63, %v4737_v0  ;;  %s4841_s9 = smov 3  ;;  %v4078_v44 = vpop.permute.xlu1 %4077  }
 0x2a7   :  { %v9809_v1 = vld [vmem:[%s18446_s0 + $0x388] ss:$16 sm:%s4798_s10]   ;;  %4743 = vrot.lane.b32.xlu0 %v4742_v46, %s10688_s17  ;;  %s4844_s10 = smov 12  ;;  %9653 = vst.msk [vmem:[%s18447_s1 + $0xa8] sm:$0xff] %vm3827_vm10, %v4078_v44  }
 0x2a8   :  { %v4801_v2 = vsel %vm6_vm0, %v9809_v1, %v9808_v42  ;;  %v9810_v28 = vld [vmem:[%s18446_s0 + $0x388] ss:$16 sm:%s4803_s19]   ;;  %s4849_s19 = smov 48  ;;  %v9847_v42 = vld [vmem:[%s18446_s0 + $0x607] ss:$16 sm:%s4978_s27]   ;;  %s5024_s27 = smov 3 }
 0x2a9   :  { %v9811_v3 = vld [vmem:[%s18446_s0 + $0x388] ss:$16 sm:%s4808_s16]   ;;  %v4806_v7 = vsel %vm10_vm1, %v9810_v28, %v4801_v2  ;;  %s4854_s16 = smov 192  ;;  %v9849_v28 = vld [vmem:[%s18446_s0 + $0x607] ss:$16 sm:%s4986_s15]   ;;  %s5032_s15 = smov 48 }
 0x2aa   :  { %v9803_v8 = vld [vmem:[%s18446_s0 + $0x188] ss:$16 sm:%s4772_s23]   ;;  %v4811_v9 = vsel %vm14_vm2, %v9811_v3, %v4806_v7  ;;  %s4818_s23 = smov 3  ;;  %v4055_v5 = vpop.permute.xlu0 %4054  }
 0x2ab   :  { %v9804_v16 = vld [vmem:[%s18446_s0 + $0x188] ss:$16 sm:%s4775_s30]   ;;  %4812 = vrot.lane.b32.xlu1 %v4811_v9, %s10688_s17  ;;  %s4821_s30 = smov 12  ;;  %9648 = vst.msk [vmem:[%s18447_s1 + $0x88] sm:$0xff] %vm3827_vm10, %v4055_v5  }
 0x2ac   :  { %v9805_v54 = vld [vmem:[%s18446_s0 + $0x188] ss:$16 sm:%s4780_s2]   ;;  %v4778_v10 = vsel %vm6_vm0, %v9804_v16, %v9803_v8  ;;  %s4826_s2 = smov 48 }
 0x2ad   :  { %v9806_v11 = vld [vmem:[%s18446_s0 + $0x188] ss:$16 sm:%s4785_s11]   ;;  %v4783_v36 = vsel %vm10_vm1, %v9805_v54, %v4778_v10  ;;  %s4831_s11 = smov 192 }
 0x2ae   :  { %v9818_v57 = vld [vmem:[%s18446_s0 + $0x788] ss:$16 sm:%s4841_s9]   ;;  %v4788_v17 = vsel %vm14_vm2, %v9806_v11, %v4783_v36  ;;  %s4887_s9 = smov 3  ;;  %v4124_v12 = vpop.permute.xlu1 %4123  }
 0x2af   :  { %v9819_v13 = vld [vmem:[%s18446_s0 + $0x788] ss:$16 sm:%s4844_s10]   ;;  %4789 = vrot.lane.b32.xlu0 %v4788_v17, %s10688_s17  ;;  %s4890_s10 = smov 12  ;;  %9663 = vst.msk [vmem:[%s18447_s1 + $0x30] sm:$0xff] %vm3827_vm10, %v4124_v12  }
 0x2b0   :  { %v4847_v18 = vsel %vm6_vm0, %v9819_v13, %v9818_v57  ;;  %v9820_v19 = vld [vmem:[%s18446_s0 + $0x788] ss:$16 sm:%s4849_s19]   ;;  %s4895_s19 = smov 48  ;;  %v9857_v57 = vld [vmem:[%s18446_s0 + $0xa07] ss:$16 sm:%s5024_s27]   ;;  %s5070_s27 = smov 3 }
 0x2b1   :  { %v9821_v20 = vld [vmem:[%s18446_s0 + $0x788] ss:$16 sm:%s4854_s16]   ;;  %v4852_v23 = vsel %vm10_vm1, %v9820_v19, %v4847_v18  ;;  %s4900_s16 = smov 192  ;;  %v9859_v19 = vld [vmem:[%s18446_s0 + $0xa07] ss:$16 sm:%s5032_s15]   ;;  %s5078_s15 = smov 48 }
 0x2b2   :  { %v9813_v26 = vld [vmem:[%s18446_s0 + $0x588] ss:$16 sm:%s4818_s23]   ;;  %v4857_v27 = vsel %vm14_vm2, %v9821_v20, %v4852_v23  ;;  %s4864_s23 = smov 3  ;;  %v4101_v21 = vpop.permute.xlu0 %4100  }
 0x2b3   :  { %v9814_v49 = vld [vmem:[%s18446_s0 + $0x588] ss:$16 sm:%s4821_s30]   ;;  %4858 = vrot.lane.b32.xlu1 %v4857_v27, %s10688_s17  ;;  %s4867_s30 = smov 12  ;;  %9658 = vst.msk [vmem:[%s18447_s1 + $0x10] sm:$0xff] %vm3827_vm10, %v4101_v21  }
 0x2b4   :  { %v9815_v24 = vld [vmem:[%s18446_s0 + $0x588] ss:$16 sm:%s4826_s2]   ;;  %v4824_v30 = vsel %vm6_vm0, %v9814_v49, %v9813_v26  ;;  %s4872_s2 = smov 48 }
 0x2b5   :  { %v9816_v32 = vld [vmem:[%s18446_s0 + $0x588] ss:$16 sm:%s4831_s11]   ;;  %v4829_v33 = vsel %vm10_vm1, %v9815_v24, %v4824_v30  ;;  %s4877_s11 = smov 192 }
 0x2b6   :  { %v9828_v34 = vld [vmem:[%s18446_s0 + $0xb88] ss:$16 sm:%s4887_s9]   ;;  %v4834_v35 = vsel %vm14_vm2, %v9816_v32, %v4829_v33  ;;  %s4932_s9 = smov 3  ;;  %v4170_v29 = vpop.permute.xlu1 %4169  }
 0x2b7   :  { %v9829_v25 = vld [vmem:[%s18446_s0 + $0xb88] ss:$16 sm:%s4890_s10]   ;;  %4835 = vrot.lane.b32.xlu0 %v4834_v35, %s10688_s17  ;;  %s4935_s10 = smov 12  ;;  %9673 = vst.msk [vmem:[%s18447_s1 + $0x70] sm:$0xff] %vm3827_vm10, %v4170_v29  }
 0x2b8   :  { %v4893_v60 = vsel %vm6_vm0, %v9829_v25, %v9828_v34  ;;  %v9830_v22 = vld [vmem:[%s18446_s0 + $0xb88] ss:$16 sm:%s4895_s19]   ;;  %s4940_s19 = smov 48  ;;  %v9837_v50 = vld [vmem:[%s18446_s0 + $0x207] ss:$16 sm:%s4932_s9]   ;;  %s4981_s9 = smov 12 }
 0x2b9   :  { %v9831_v38 = vld [vmem:[%s18446_s0 + $0xb88] ss:$16 sm:%s4900_s16]   ;;  %v4898_v61 = vsel %vm10_vm1, %v9830_v22, %v4893_v60  ;;  %s4945_s16 = smov 192  ;;  %v9838_v51 = vld [vmem:[%s18446_s0 + $0x207] ss:$16 sm:%s4935_s10]   ;;  %s8292_s10 = smov 48 }
 0x2ba   :  { %v9823_v40 = vld [vmem:[%s18446_s0 + $0x988] ss:$16 sm:%s4864_s23]   ;;  %v4903_v41 = vsel %vm14_vm2, %v9831_v38, %v4898_v61  ;;  %s4910_s23 = smov 3  ;;  %v4938_v52 = vsel %vm6_vm0, %v9838_v51, %v9837_v50  ;;  %v9839_v31 = vld [vmem:[%s18446_s0 + $0x207] ss:$16 sm:%s4940_s19]   ;;  %s4991_s19 = smov 192  ;;  %v4147_v39 = vpop.permute.xlu0 %4146  }
 0x2bb   :  { %v9824_v43 = vld [vmem:[%s18446_s0 + $0x988] ss:$16 sm:%s4867_s30]   ;;  %4904 = vrot.lane.b32.xlu1 %v4903_v41, %s10688_s17  ;;  %s4913_s30 = smov 12  ;;  %v4943_v55 = vsel %vm10_vm1, %v9839_v31, %v4938_v52  ;;  %9668 = vst.msk [vmem:[%s18447_s1 + $0x50] sm:$0xff] %vm3827_vm10, %v4147_v39  }
 0x2bc   :  { %v9825_v45 = vld [vmem:[%s18446_s0 + $0x988] ss:$16 sm:%s4872_s2]   ;;  %v4870_v37 = vsel %vm6_vm0, %v9824_v43, %v9823_v40  ;;  %s4918_s2 = smov 48  ;;  %v9840_v14 = vld [vmem:[%s18446_s0 + $0x207] ss:$16 sm:%s4945_s16]   ;;  %s10689_s16 = smov 28  }
 0x2bd   :  { %v9826_v48 = vld [vmem:[%s18446_s0 + $0x988] ss:$16 sm:%s4877_s11]   ;;  %v4875_v15 = vsel %vm10_vm1, %v9825_v45, %v4870_v37  ;;  %s4923_s11 = smov 192  ;;  %v9833_v56 = vld [vmem:[%s18446_s0 + $0x7] ss:$16 sm:%s4910_s23]   ;;  %v4948_v58 = vsel %vm14_vm2, %v9840_v14, %v4943_v55  ;;  %s4955_s23 = smov 3 }
 0x2be   :  { %v4880_v6 = vsel %vm14_vm2, %v9826_v48, %v4875_v15  ;;  %v9834_v59 = vld [vmem:[%s18446_s0 + $0x7] ss:$16 sm:%s4913_s30]   ;;  %s4958_s30 = smov 12  ;;  %v4216_v47 = vpop.permute.xlu1 %4215  }
 0x2bf   :  { %4881 = vrot.lane.b32.xlu0 %v4880_v6, %s10688_s17  ;;  %v9835_v62 = vld [vmem:[%s18446_s0 + $0x7] ss:$16 sm:%s4918_s2]   ;;  %4949 = vrot.lane.b32.xlu1 %v4948_v58, %s10689_s16  ;;  %v4916_v4 = vsel %vm6_vm0, %v9834_v59, %v9833_v56  ;;  %s4963_s2 = smov 48  ;;  %s6080_s17 = smov 3 }
 0x2c0   :  { %v9836_v63 = vld [vmem:[%s18446_s0 + $0x7] ss:$16 sm:%s4923_s11]   ;;  %v4921_v0 = vsel %vm10_vm1, %v9835_v62, %v4916_v4  ;;  %s4968_s11 = smov 192  ;;  %9683 = vst.msk [vmem:[%s18447_s1 + $0xb0] sm:$0xff] %vm3827_vm10, %v4216_v47  }
 0x2c1   :  { %v9848_v1 = vld [vmem:[%s18446_s0 + $0x607] ss:$16 sm:%s4981_s9]   ;;  %v4926_v46 = vsel %vm14_vm2, %v9836_v63, %v4921_v0  ;;  %s5027_s9 = smov 12 }
 0x2c2   :  { %v4984_v2 = vsel %vm6_vm0, %v9848_v1, %v9847_v42  ;;  %v9850_v3 = vld [vmem:[%s18446_s0 + $0x607] ss:$16 sm:%s4991_s19]   ;;  %s5037_s19 = smov 192  ;;  %v4193_v53 = vpop.permute.xlu0 %4192  }
 0x2c3   :  { %4927 = vrot.lane.b32.xlu0 %v4926_v46, %s10689_s16  ;;  %v4989_v7 = vsel %vm10_vm1, %v9849_v28, %v4984_v2  ;;  %v9842_v8 = vld [vmem:[%s18446_s0 + $0x407] ss:$16 sm:%s4955_s23]   ;;  %s5001_s23 = smov 3  ;;  %9678 = vst.msk [vmem:[%s18447_s1 + $0x90] sm:$0xff] %vm3827_vm10, %v4193_v53  }
 0x2c4   :  { %v4994_v9 = vsel %vm14_vm2, %v9850_v3, %v4989_v7  ;;  %v9843_v16 = vld [vmem:[%s18446_s0 + $0x407] ss:$16 sm:%s4958_s30]   ;;  %s5004_s30 = smov 12 }
 0x2c5   :  { %v9844_v54 = vld [vmem:[%s18446_s0 + $0x407] ss:$16 sm:%s4963_s2]   ;;  %4995 = vrot.lane.b32.xlu1 %v4994_v9, %s10689_s16  ;;  %v4961_v10 = vsel %vm6_vm0, %v9843_v16, %v9842_v8  ;;  %s5009_s2 = smov 48 }
 0x2c6   :  { %v9845_v11 = vld [vmem:[%s18446_s0 + $0x407] ss:$16 sm:%s4968_s11]   ;;  %v4966_v36 = vsel %vm10_vm1, %v9844_v54, %v4961_v10  ;;  %s5014_s11 = smov 192  ;;  %v4262_v44 = vpop.permute.xlu1 %4261  }
 0x2c7   :  { %v9858_v13 = vld [vmem:[%s18446_s0 + $0xa07] ss:$16 sm:%s5027_s9]   ;;  %v4971_v17 = vsel %vm14_vm2, %v9845_v11, %v4966_v36  ;;  %s5073_s9 = smov 12  ;;  %9693 = vst.msk [vmem:[%s18447_s1 + $0x38] sm:$0xff] %vm3827_vm10, %v4262_v44  }
 0x2c8   :  { %v5030_v18 = vsel %vm6_vm0, %v9858_v13, %v9857_v57  ;;  %v9860_v20 = vld [vmem:[%s18446_s0 + $0xa07] ss:$16 sm:%s5037_s19]   ;;  %4972 = vrot.lane.b32.xlu0 %v4971_v17, %s10689_s16  ;;  %s5083_s19 = smov 192 }
 0x2c9   :  { %v5035_v23 = vsel %vm10_vm1, %v9859_v19, %v5030_v18  ;;  %v9852_v26 = vld [vmem:[%s18446_s0 + $0x807] ss:$16 sm:%s5001_s23]   ;;  %s5047_s23 = smov 3 }
 0x2ca   :  { %v5040_v27 = vsel %vm14_vm2, %v9860_v20, %v5035_v23  ;;  %v9853_v49 = vld [vmem:[%s18446_s0 + $0x807] ss:$16 sm:%s5004_s30]   ;;  %s5050_s30 = smov 12  ;;  %v4239_v5 = vpop.permute.xlu0 %4238  }
 0x2cb   :  { %v9854_v24 = vld [vmem:[%s18446_s0 + $0x807] ss:$16 sm:%s5009_s2]   ;;  %5041 = vrot.lane.b32.xlu1 %v5040_v27, %s10689_s16  ;;  %v5007_v30 = vsel %vm6_vm0, %v9853_v49, %v9852_v26  ;;  %s5055_s2 = smov 48  ;;  %9688 = vst.msk [vmem:[%s18447_s1 + $0x18] sm:$0xff] %vm3827_vm10, %v4239_v5  }
 0x2cc   :  { %v9855_v32 = vld [vmem:[%s18446_s0 + $0x807] ss:$16 sm:%s5014_s11]   ;;  %v5012_v33 = vsel %vm10_vm1, %v9854_v24, %v5007_v30  ;;  %s5060_s11 = smov 192 }
 0x2cd   :  { %v9867_v34 = vld [vmem:[%s18446_s0 + $0x287] ss:$16 sm:%s5070_s27]   ;;  %v5017_v35 = vsel %vm14_vm2, %v9855_v32, %v5012_v33  ;;  %s5116_s27 = smov 3 }
 0x2ce   :  { %v9868_v25 = vld [vmem:[%s18446_s0 + $0x287] ss:$16 sm:%s5073_s9]   ;;  %5018 = vrot.lane.b32.xlu0 %v5017_v35, %s10689_s16  ;;  %s5119_s9 = smov 12  ;;  %v4308_v12 = vpop.permute.xlu1 %4307  }
 0x2cf   :  { %v5076_v60 = vsel %vm6_vm0, %v9868_v25, %v9867_v34  ;;  %v9869_v22 = vld [vmem:[%s18446_s0 + $0x287] ss:$16 sm:%s5078_s15]   ;;  %s5124_s15 = smov 48  ;;  %9703 = vst.msk [vmem:[%s18447_s1 + $0x78] sm:$0xff] %vm3827_vm10, %v4308_v12  }
 0x2d0   :  { %v9870_v38 = vld [vmem:[%s18446_s0 + $0x287] ss:$16 sm:%s5083_s19]   ;;  %v5081_v61 = vsel %vm10_vm1, %v9869_v22, %v5076_v60  ;;  %s5129_s19 = smov 192 }
 0x2d1   :  { %v9862_v40 = vld [vmem:[%s18446_s0 + $0x87] ss:$16 sm:%s5047_s23]   ;;  %v5086_v41 = vsel %vm14_vm2, %v9870_v38, %v5081_v61  ;;  %s5093_s23 = smov 3 }
 0x2d2   :  { %v9863_v43 = vld [vmem:[%s18446_s0 + $0x87] ss:$16 sm:%s5050_s30]   ;;  %5087 = vrot.lane.b32.xlu1 %v5086_v41, %s10689_s16  ;;  %s5096_s30 = smov 12  ;;  %v4285_v21 = vpop.permute.xlu0 %4284  }
 0x2d3   :  { %v9864_v45 = vld [vmem:[%s18446_s0 + $0x87] ss:$16 sm:%s5055_s2]   ;;  %v5053_v37 = vsel %vm6_vm0, %v9863_v43, %v9862_v40  ;;  %s5101_s2 = smov 48  ;;  %9698 = vst.msk [vmem:[%s18447_s1 + $0x58] sm:$0xff] %vm3827_vm10, %v4285_v21  }
 0x2d4   :  { %v9865_v48 = vld [vmem:[%s18446_s0 + $0x87] ss:$16 sm:%s5060_s11]   ;;  %v5058_v15 = vsel %vm10_vm1, %v9864_v45, %v5053_v37  ;;  %s5106_s11 = smov 192 }
 0x2d5   :  { %v9877_v50 = vld [vmem:[%s18446_s0 + $0x687] ss:$16 sm:%s5116_s27]   ;;  %v5063_v6 = vsel %vm14_vm2, %v9865_v48, %v5058_v15  ;;  %s5162_s27 = smov 3 }
 0x2d6   :  { %v9878_v51 = vld [vmem:[%s18446_s0 + $0x687] ss:$16 sm:%s5119_s9]   ;;  %5064 = vrot.lane.b32.xlu0 %v5063_v6, %s10689_s16  ;;  %s5165_s9 = smov 12  ;;  %v4354_v29 = vpop.permute.xlu1 %4353  }
 0x2d7   :  { %v5122_v52 = vsel %vm6_vm0, %v9878_v51, %v9877_v50  ;;  %v9879_v31 = vld [vmem:[%s18446_s0 + $0x687] ss:$16 sm:%s5124_s15]   ;;  %s5170_s15 = smov 48  ;;  %9713 = vst.msk [vmem:[%s18447_s1 + $0xb8] sm:$0xff] %vm3827_vm10, %v4354_v29  }
 0x2d8   :  { %v9880_v14 = vld [vmem:[%s18446_s0 + $0x687] ss:$16 sm:%s5129_s19]   ;;  %v5127_v55 = vsel %vm10_vm1, %v9879_v31, %v5122_v52  ;;  %s5175_s19 = smov 192 }
 0x2d9   :  { %v9872_v56 = vld [vmem:[%s18446_s0 + $0x487] ss:$16 sm:%s5093_s23]   ;;  %v5132_v58 = vsel %vm14_vm2, %v9880_v14, %v5127_v55  ;;  %s5139_s23 = smov 3 }
 0x2da   :  { %v9873_v59 = vld [vmem:[%s18446_s0 + $0x487] ss:$16 sm:%s5096_s30]   ;;  %5133 = vrot.lane.b32.xlu1 %v5132_v58, %s10689_s16  ;;  %s5142_s30 = smov 12  ;;  %v4331_v39 = vpop.permute.xlu0 %4330   ;;  %v4399_v47 = vpop.permute.xlu1 %4398  }
 0x2db   :  { %v9874_v62 = vld [vmem:[%s18446_s0 + $0x487] ss:$16 sm:%s5101_s2]   ;;  %v5099_v4 = vsel %vm6_vm0, %v9873_v59, %v9872_v56  ;;  %s5147_s2 = smov 48  ;;  %9708 = vst.msk [vmem:[%s18447_s1 + $0x98] sm:$0xff] %vm3827_vm10, %v4331_v39  }
 0x2dc   :  { %v9875_v63 = vld [vmem:[%s18446_s0 + $0x487] ss:$16 sm:%s5106_s11]   ;;  %v5104_v0 = vsel %vm10_vm1, %v9874_v62, %v5099_v4  ;;  %s5152_s11 = smov 192  ;;  %9722 = vst.msk [vmem:[%s18447_s1 + $0x20] sm:$0xff] %vm4378_vm11, %v4399_v47  }
 0x2dd   :  { %v9887_v42 = vld [vmem:[%s18446_s0 + $0xa87] ss:$16 sm:%s5162_s27]   ;;  %v5109_v46 = vsel %vm14_vm2, %v9875_v63, %v5104_v0  ;;  %s5208_s27 = smov 3 }
 0x2de   :  { %v9888_v1 = vld [vmem:[%s18446_s0 + $0xa87] ss:$16 sm:%s5165_s9]   ;;  %5110 = vrot.lane.b32.xlu0 %v5109_v46, %s10689_s16  ;;  %s5211_s9 = smov 12  ;;  %v4377_v53 = vpop.permute.xlu0 %4376  }
 0x2df   :  { %v5168_v2 = vsel %vm6_vm0, %v9888_v1, %v9887_v42  ;;  %v9889_v28 = vld [vmem:[%s18446_s0 + $0xa87] ss:$16 sm:%s5170_s15]   ;;  %s5216_s15 = smov 48  ;;  %4379 = vst.msk [vmem:[%s18447_s1] sm:$0xff] %vm4378_vm11, %v4377_v53  }
 0x2e0   :  { %v9890_v3 = vld [vmem:[%s18446_s0 + $0xa87] ss:$16 sm:%s5175_s19]   ;;  %v5173_v7 = vsel %vm10_vm1, %v9889_v28, %v5168_v2  ;;  %s5221_s19 = smov 192  ;;  %v4445_v44 = vpop.permute.xlu1 %4444  }
 0x2e1   :  { %v9882_v8 = vld [vmem:[%s18446_s0 + $0x887] ss:$16 sm:%s5139_s23]   ;;  %v5178_v9 = vsel %vm14_vm2, %v9890_v3, %v5173_v7  ;;  %s5185_s23 = smov 3  ;;  %9732 = vst.msk [vmem:[%s18447_s1 + $0x60] sm:$0xff] %vm4378_vm11, %v4445_v44  }
 0x2e2   :  { %v9883_v16 = vld [vmem:[%s18446_s0 + $0x887] ss:$16 sm:%s5142_s30]   ;;  %5179 = vrot.lane.b32.xlu1 %v5178_v9, %s10689_s16  ;;  %s5188_s30 = smov 12 }
 0x2e3   :  { %v9884_v54 = vld [vmem:[%s18446_s0 + $0x887] ss:$16 sm:%s5147_s2]   ;;  %v5145_v10 = vsel %vm6_vm0, %v9883_v16, %v9882_v8  ;;  %s5193_s2 = smov 48  ;;  %v4422_v5 = vpop.permute.xlu0 %4421  }
 0x2e4   :  { %v9885_v11 = vld [vmem:[%s18446_s0 + $0x887] ss:$16 sm:%s5152_s11]   ;;  %v5150_v36 = vsel %vm10_vm1, %v9884_v54, %v5145_v10  ;;  %s5198_s11 = smov 192  ;;  %9727 = vst.msk [vmem:[%s18447_s1 + $0x40] sm:$0xff] %vm4378_vm11, %v4422_v5  }
 0x2e5   :  { %v9897_v57 = vld [vmem:[%s18446_s0 + $0x307] ss:$16 sm:%s5208_s27]   ;;  %v5155_v17 = vsel %vm14_vm2, %v9885_v11, %v5150_v36  ;;  %s5254_s27 = smov 3 }
 0x2e6   :  { %v9898_v13 = vld [vmem:[%s18446_s0 + $0x307] ss:$16 sm:%s5211_s9]   ;;  %5156 = vrot.lane.b32.xlu0 %v5155_v17, %s10689_s16  ;;  %s5257_s9 = smov 12  ;;  %v4491_v12 = vpop.permute.xlu1 %4490  }
 0x2e7   :  { %v5214_v18 = vsel %vm6_vm0, %v9898_v13, %v9897_v57  ;;  %v9899_v19 = vld [vmem:[%s18446_s0 + $0x307] ss:$16 sm:%s5216_s15]   ;;  %s5262_s15 = smov 48  ;;  %9742 = vst.msk [vmem:[%s18447_s1 + $0xa0] sm:$0xff] %vm4378_vm11, %v4491_v12  }
 0x2e8   :  { %v9900_v20 = vld [vmem:[%s18446_s0 + $0x307] ss:$16 sm:%s5221_s19]   ;;  %v5219_v23 = vsel %vm10_vm1, %v9899_v19, %v5214_v18  ;;  %s5267_s19 = smov 192 }
 0x2e9   :  { %v9892_v26 = vld [vmem:[%s18446_s0 + $0x107] ss:$16 sm:%s5185_s23]   ;;  %v5224_v27 = vsel %vm14_vm2, %v9900_v20, %v5219_v23  ;;  %s5231_s23 = smov 3  ;;  %v4468_v21 = vpop.permute.xlu0 %4467  }
 0x2ea   :  { %v9893_v49 = vld [vmem:[%s18446_s0 + $0x107] ss:$16 sm:%s5188_s30]   ;;  %5225 = vrot.lane.b32.xlu1 %v5224_v27, %s10689_s16  ;;  %s5234_s30 = smov 12  ;;  %9737 = vst.msk [vmem:[%s18447_s1 + $0x80] sm:$0xff] %vm4378_vm11, %v4468_v21  }
 0x2eb   :  { %v9894_v24 = vld [vmem:[%s18446_s0 + $0x107] ss:$16 sm:%s5193_s2]   ;;  %v5191_v30 = vsel %vm6_vm0, %v9893_v49, %v9892_v26  ;;  %s5239_s2 = smov 48 }
 0x2ec   :  { %v9895_v32 = vld [vmem:[%s18446_s0 + $0x107] ss:$16 sm:%s5198_s11]   ;;  %v5196_v33 = vsel %vm10_vm1, %v9894_v24, %v5191_v30  ;;  %s5244_s11 = smov 192 }
 0x2ed   :  { %v9907_v34 = vld [vmem:[%s18446_s0 + $0x707] ss:$16 sm:%s5254_s27]   ;;  %v5201_v35 = vsel %vm14_vm2, %v9895_v32, %v5196_v33  ;;  %s5300_s27 = smov 3  ;;  %v4537_v29 = vpop.permute.xlu1 %4536  }
 0x2ee   :  { %v9908_v25 = vld [vmem:[%s18446_s0 + $0x707] ss:$16 sm:%s5257_s9]   ;;  %5202 = vrot.lane.b32.xlu0 %v5201_v35, %s10689_s16  ;;  %s5303_s9 = smov 12  ;;  %9752 = vst.msk [vmem:[%s18447_s1 + $0x28] sm:$0xff] %vm4378_vm11, %v4537_v29  }
 0x2ef   :  { %v5260_v60 = vsel %vm6_vm0, %v9908_v25, %v9907_v34  ;;  %v9909_v22 = vld [vmem:[%s18446_s0 + $0x707] ss:$16 sm:%s5262_s15]   ;;  %s5308_s15 = smov 48 }
 0x2f0   :  { %v9910_v38 = vld [vmem:[%s18446_s0 + $0x707] ss:$16 sm:%s5267_s19]   ;;  %v5265_v61 = vsel %vm10_vm1, %v9909_v22, %v5260_v60  ;;  %s5313_s19 = smov 192 }
 0x2f1   :  { %v9902_v40 = vld [vmem:[%s18446_s0 + $0x507] ss:$16 sm:%s5231_s23]   ;;  %v5270_v41 = vsel %vm14_vm2, %v9910_v38, %v5265_v61  ;;  %s5277_s23 = smov 3  ;;  %v4514_v39 = vpop.permute.xlu0 %4513  }
 0x2f2   :  { %v9903_v43 = vld [vmem:[%s18446_s0 + $0x507] ss:$16 sm:%s5234_s30]   ;;  %5271 = vrot.lane.b32.xlu1 %v5270_v41, %s10689_s16  ;;  %s5280_s30 = smov 12  ;;  %9747 = vst.msk [vmem:[%s18447_s1 + $0x8] sm:$0xff] %vm4378_vm11, %v4514_v39  }
 0x2f3   :  { %v9904_v45 = vld [vmem:[%s18446_s0 + $0x507] ss:$16 sm:%s5239_s2]   ;;  %v5237_v37 = vsel %vm6_vm0, %v9903_v43, %v9902_v40  ;;  %s5285_s2 = smov 48 }
 0x2f4   :  { %v9905_v48 = vld [vmem:[%s18446_s0 + $0x507] ss:$16 sm:%s5244_s11]   ;;  %v5242_v15 = vsel %vm10_vm1, %v9904_v45, %v5237_v37  ;;  %s5290_s11 = smov 192 }
 0x2f5   :  { %v9917_v50 = vld [vmem:[%s18446_s0 + $0xb07] ss:$16 sm:%s5300_s27]   ;;  %v5247_v6 = vsel %vm14_vm2, %v9905_v48, %v5242_v15  ;;  %s5346_s27 = smov 3  ;;  %v4583_v47 = vpop.permute.xlu1 %4582  }
 0x2f6   :  { %v9918_v51 = vld [vmem:[%s18446_s0 + $0xb07] ss:$16 sm:%s5303_s9]   ;;  %5248 = vrot.lane.b32.xlu0 %v5247_v6, %s10689_s16  ;;  %s5349_s9 = smov 12  ;;  %9762 = vst.msk [vmem:[%s18447_s1 + $0x68] sm:$0xff] %vm4378_vm11, %v4583_v47  }
 0x2f7   :  { %v5306_v52 = vsel %vm6_vm0, %v9918_v51, %v9917_v50  ;;  %v9919_v31 = vld [vmem:[%s18446_s0 + $0xb07] ss:$16 sm:%s5308_s15]   ;;  %s5354_s15 = smov 48 }
 0x2f8   :  { %v9920_v14 = vld [vmem:[%s18446_s0 + $0xb07] ss:$16 sm:%s5313_s19]   ;;  %v5311_v55 = vsel %vm10_vm1, %v9919_v31, %v5306_v52  ;;  %s5359_s19 = smov 192 }
 0x2f9   :  { %v9912_v56 = vld [vmem:[%s18446_s0 + $0x907] ss:$16 sm:%s5277_s23]   ;;  %v5316_v58 = vsel %vm14_vm2, %v9920_v14, %v5311_v55  ;;  %s5323_s23 = smov 3  ;;  %v4560_v53 = vpop.permute.xlu0 %4559  }
 0x2fa   :  { %v9913_v59 = vld [vmem:[%s18446_s0 + $0x907] ss:$16 sm:%s5280_s30]   ;;  %5317 = vrot.lane.b32.xlu1 %v5316_v58, %s10689_s16  ;;  %s5326_s30 = smov 12  ;;  %9757 = vst.msk [vmem:[%s18447_s1 + $0x48] sm:$0xff] %vm4378_vm11, %v4560_v53  }
 0x2fb   :  { %v9914_v62 = vld [vmem:[%s18446_s0 + $0x907] ss:$16 sm:%s5285_s2]   ;;  %v5283_v4 = vsel %vm6_vm0, %v9913_v59, %v9912_v56  ;;  %s5331_s2 = smov 48 }
 0x2fc   :  { %v9915_v63 = vld [vmem:[%s18446_s0 + $0x907] ss:$16 sm:%s5290_s11]   ;;  %v5288_v0 = vsel %vm10_vm1, %v9914_v62, %v5283_v4  ;;  %s5336_s11 = smov 192 }
 0x2fd   :  { %v9927_v42 = vld [vmem:[%s18446_s0 + $0x387] ss:$16 sm:%s5346_s27]   ;;  %v5293_v46 = vsel %vm14_vm2, %v9915_v63, %v5288_v0  ;;  %s5392_s27 = smov 3  ;;  %v4629_v44 = vpop.permute.xlu1 %4628  }
 0x2fe   :  { %v9928_v1 = vld [vmem:[%s18446_s0 + $0x387] ss:$16 sm:%s5349_s9]   ;;  %5294 = vrot.lane.b32.xlu0 %v5293_v46, %s10689_s16  ;;  %s5395_s9 = smov 12  ;;  %9772 = vst.msk [vmem:[%s18447_s1 + $0xa8] sm:$0xff] %vm4378_vm11, %v4629_v44  }
 0x2ff   :  { %v5352_v2 = vsel %vm6_vm0, %v9928_v1, %v9927_v42  ;;  %v9929_v28 = vld [vmem:[%s18446_s0 + $0x387] ss:$16 sm:%s5354_s15]   ;;  %s5400_s15 = smov 48  ;;  %v9966_v42 = vld [vmem:[%s18446_s0 + $0x606] ss:$16 sm:%s5529_s18]   ;;  %s5575_s18 = smov 3 }
 0x300   :  { %v9930_v3 = vld [vmem:[%s18446_s0 + $0x387] ss:$16 sm:%s5359_s19]   ;;  %v5357_v7 = vsel %vm10_vm1, %v9929_v28, %v5352_v2  ;;  %s5405_s19 = smov 192  ;;  %v9968_v28 = vld [vmem:[%s18446_s0 + $0x606] ss:$16 sm:%s5537_s21]   ;;  %s5583_s21 = smov 48 }
 0x301   :  { %v9922_v8 = vld [vmem:[%s18446_s0 + $0x187] ss:$16 sm:%s5323_s23]   ;;  %v5362_v9 = vsel %vm14_vm2, %v9930_v3, %v5357_v7  ;;  %s5369_s23 = smov 3  ;;  %v4606_v5 = vpop.permute.xlu0 %4605  }
 0x302   :  { %v9923_v16 = vld [vmem:[%s18446_s0 + $0x187] ss:$16 sm:%s5326_s30]   ;;  %5363 = vrot.lane.b32.xlu1 %v5362_v9, %s10689_s16  ;;  %s5372_s30 = smov 12  ;;  %9767 = vst.msk [vmem:[%s18447_s1 + $0x88] sm:$0xff] %vm4378_vm11, %v4606_v5  }
 0x303   :  { %v9924_v54 = vld [vmem:[%s18446_s0 + $0x187] ss:$16 sm:%s5331_s2]   ;;  %v5329_v10 = vsel %vm6_vm0, %v9923_v16, %v9922_v8  ;;  %s5377_s2 = smov 48 }
 0x304   :  { %v9925_v11 = vld [vmem:[%s18446_s0 + $0x187] ss:$16 sm:%s5336_s11]   ;;  %v5334_v36 = vsel %vm10_vm1, %v9924_v54, %v5329_v10  ;;  %s5382_s11 = smov 192 }
 0x305   :  { %v9937_v57 = vld [vmem:[%s18446_s0 + $0x787] ss:$16 sm:%s5392_s27]   ;;  %v5339_v17 = vsel %vm14_vm2, %v9925_v11, %v5334_v36  ;;  %s5438_s27 = smov 3  ;;  %v4675_v12 = vpop.permute.xlu1 %4674  }
 0x306   :  { %v9938_v13 = vld [vmem:[%s18446_s0 + $0x787] ss:$16 sm:%s5395_s9]   ;;  %5340 = vrot.lane.b32.xlu0 %v5339_v17, %s10689_s16  ;;  %s5441_s9 = smov 12  ;;  %9782 = vst.msk [vmem:[%s18447_s1 + $0x30] sm:$0xff] %vm4378_vm11, %v4675_v12  }
 0x307   :  { %v5398_v18 = vsel %vm6_vm0, %v9938_v13, %v9937_v57  ;;  %v9939_v19 = vld [vmem:[%s18446_s0 + $0x787] ss:$16 sm:%s5400_s15]   ;;  %s5446_s15 = smov 48  ;;  %v9976_v57 = vld [vmem:[%s18446_s0 + $0xa06] ss:$16 sm:%s5575_s18]   ;;  %s5621_s18 = smov 3 }
 0x308   :  { %v9940_v20 = vld [vmem:[%s18446_s0 + $0x787] ss:$16 sm:%s5405_s19]   ;;  %v5403_v23 = vsel %vm10_vm1, %v9939_v19, %v5398_v18  ;;  %s5451_s19 = smov 192  ;;  %v9978_v19 = vld [vmem:[%s18446_s0 + $0xa06] ss:$16 sm:%s5583_s21]   ;;  %s5629_s21 = smov 48 }
 0x309   :  { %v9932_v26 = vld [vmem:[%s18446_s0 + $0x587] ss:$16 sm:%s5369_s23]   ;;  %v5408_v27 = vsel %vm14_vm2, %v9940_v20, %v5403_v23  ;;  %s5415_s23 = smov 3  ;;  %v4652_v21 = vpop.permute.xlu0 %4651  }
 0x30a   :  { %v9933_v49 = vld [vmem:[%s18446_s0 + $0x587] ss:$16 sm:%s5372_s30]   ;;  %5409 = vrot.lane.b32.xlu1 %v5408_v27, %s10689_s16  ;;  %s5418_s30 = smov 12  ;;  %9777 = vst.msk [vmem:[%s18447_s1 + $0x10] sm:$0xff] %vm4378_vm11, %v4652_v21  }
 0x30b   :  { %v9934_v24 = vld [vmem:[%s18446_s0 + $0x587] ss:$16 sm:%s5377_s2]   ;;  %v5375_v30 = vsel %vm6_vm0, %v9933_v49, %v9932_v26  ;;  %s5423_s2 = smov 48 }
 0x30c   :  { %v9935_v32 = vld [vmem:[%s18446_s0 + $0x587] ss:$16 sm:%s5382_s11]   ;;  %v5380_v33 = vsel %vm10_vm1, %v9934_v24, %v5375_v30  ;;  %s5428_s11 = smov 192 }
 0x30d   :  { %v9947_v34 = vld [vmem:[%s18446_s0 + $0xb87] ss:$16 sm:%s5438_s27]   ;;  %v5385_v35 = vsel %vm14_vm2, %v9935_v32, %v5380_v33  ;;  %s5483_s27 = smov 3  ;;  %v4721_v29 = vpop.permute.xlu1 %4720  }
 0x30e   :  { %v9948_v25 = vld [vmem:[%s18446_s0 + $0xb87] ss:$16 sm:%s5441_s9]   ;;  %5386 = vrot.lane.b32.xlu0 %v5385_v35, %s10689_s16  ;;  %s5486_s9 = smov 12  ;;  %9792 = vst.msk [vmem:[%s18447_s1 + $0x70] sm:$0xff] %vm4378_vm11, %v4721_v29  }
 0x30f   :  { %v5444_v60 = vsel %vm6_vm0, %v9948_v25, %v9947_v34  ;;  %v9949_v22 = vld [vmem:[%s18446_s0 + $0xb87] ss:$16 sm:%s5446_s15]   ;;  %s5491_s15 = smov 48  ;;  %v9956_v50 = vld [vmem:[%s18446_s0 + $0x206] ss:$16 sm:%s5483_s27]   ;;  %s5532_s27 = smov 12 }
 0x310   :  { %v9950_v38 = vld [vmem:[%s18446_s0 + $0xb87] ss:$16 sm:%s5451_s19]   ;;  %v5449_v61 = vsel %vm10_vm1, %v9949_v22, %v5444_v60  ;;  %s5496_s19 = smov 192  ;;  %v9957_v51 = vld [vmem:[%s18446_s0 + $0x206] ss:$16 sm:%s5486_s9]  }
 0x311   :  { %v9942_v40 = vld [vmem:[%s18446_s0 + $0x987] ss:$16 sm:%s5415_s23]   ;;  %v5454_v41 = vsel %vm14_vm2, %v9950_v38, %v5449_v61  ;;  %s5461_s23 = smov 3  ;;  %v5489_v52 = vsel %vm6_vm0, %v9957_v51, %v9956_v50  ;;  %v9958_v31 = vld [vmem:[%s18446_s0 + $0x206] ss:$16 sm:%s5491_s15]   ;;  %s5542_s15 = smov 192  ;;  %v4698_v39 = vpop.permute.xlu0 %4697  }
 0x312   :  { %v9943_v43 = vld [vmem:[%s18446_s0 + $0x987] ss:$16 sm:%s5418_s30]   ;;  %5455 = vrot.lane.b32.xlu1 %v5454_v41, %s10689_s16  ;;  %s5464_s30 = smov 12  ;;  %v5494_v55 = vsel %vm10_vm1, %v9958_v31, %v5489_v52  ;;  %9787 = vst.msk [vmem:[%s18447_s1 + $0x50] sm:$0xff] %vm4378_vm11, %v4698_v39  }
 0x313   :  { %v9944_v45 = vld [vmem:[%s18446_s0 + $0x987] ss:$16 sm:%s5423_s2]   ;;  %v5421_v37 = vsel %vm6_vm0, %v9943_v43, %v9942_v40  ;;  %s5469_s2 = smov 48  ;;  %v9959_v14 = vld [vmem:[%s18446_s0 + $0x206] ss:$16 sm:%s5496_s19]   ;;  %s10690_s19 = smov 24  }
 0x314   :  { %v9945_v48 = vld [vmem:[%s18446_s0 + $0x987] ss:$16 sm:%s5428_s11]   ;;  %v5426_v15 = vsel %vm10_vm1, %v9944_v45, %v5421_v37  ;;  %s5474_s11 = smov 192  ;;  %v9952_v56 = vld [vmem:[%s18446_s0 + $0x6] ss:$16 sm:%s5461_s23]   ;;  %v5499_v58 = vsel %vm14_vm2, %v9959_v14, %v5494_v55  ;;  %s5506_s23 = smov 3 }
 0x315   :  { %v5431_v6 = vsel %vm14_vm2, %v9945_v48, %v5426_v15  ;;  %v9953_v59 = vld [vmem:[%s18446_s0 + $0x6] ss:$16 sm:%s5464_s30]   ;;  %s5509_s30 = smov 12  ;;  %v4767_v47 = vpop.permute.xlu1 %4766  }
 0x316   :  { %5432 = vrot.lane.b32.xlu0 %v5431_v6, %s10689_s16  ;;  %v9954_v62 = vld [vmem:[%s18446_s0 + $0x6] ss:$16 sm:%s5469_s2]   ;;  %5500 = vrot.lane.b32.xlu1 %v5499_v58, %s10690_s19  ;;  %v5467_v4 = vsel %vm6_vm0, %v9953_v59, %v9952_v56  ;;  %s5514_s2 = smov 48  ;;  %s6631_s16 = smov 3 }
 0x317   :  { %v9955_v63 = vld [vmem:[%s18446_s0 + $0x6] ss:$16 sm:%s5474_s11]   ;;  %v5472_v0 = vsel %vm10_vm1, %v9954_v62, %v5467_v4  ;;  %s5519_s11 = smov 192  ;;  %9802 = vst.msk [vmem:[%s18447_s1 + $0xb0] sm:$0xff] %vm4378_vm11, %v4767_v47  }
 0x318   :  { %v9967_v1 = vld [vmem:[%s18446_s0 + $0x606] ss:$16 sm:%s5532_s27]   ;;  %v5477_v46 = vsel %vm14_vm2, %v9955_v63, %v5472_v0  ;;  %s5578_s27 = smov 12 }
 0x319   :  { %v5535_v2 = vsel %vm6_vm0, %v9967_v1, %v9966_v42  ;;  %v9969_v3 = vld [vmem:[%s18446_s0 + $0x606] ss:$16 sm:%s5542_s15]   ;;  %s5588_s15 = smov 192  ;;  %v4744_v53 = vpop.permute.xlu0 %4743  }
 0x31a   :  { %5478 = vrot.lane.b32.xlu0 %v5477_v46, %s10690_s19  ;;  %v5540_v7 = vsel %vm10_vm1, %v9968_v28, %v5535_v2  ;;  %v9961_v8 = vld [vmem:[%s18446_s0 + $0x406] ss:$16 sm:%s5506_s23]   ;;  %s5552_s23 = smov 3  ;;  %9797 = vst.msk [vmem:[%s18447_s1 + $0x90] sm:$0xff] %vm4378_vm11, %v4744_v53  }
 0x31b   :  { %v5545_v9 = vsel %vm14_vm2, %v9969_v3, %v5540_v7  ;;  %v9962_v16 = vld [vmem:[%s18446_s0 + $0x406] ss:$16 sm:%s5509_s30]   ;;  %s5555_s30 = smov 12 }
 0x31c   :  { %v9963_v54 = vld [vmem:[%s18446_s0 + $0x406] ss:$16 sm:%s5514_s2]   ;;  %5546 = vrot.lane.b32.xlu1 %v5545_v9, %s10690_s19  ;;  %v5512_v10 = vsel %vm6_vm0, %v9962_v16, %v9961_v8  ;;  %s5560_s2 = smov 48 }
 0x31d   :  { %v9964_v11 = vld [vmem:[%s18446_s0 + $0x406] ss:$16 sm:%s5519_s11]   ;;  %v5517_v36 = vsel %vm10_vm1, %v9963_v54, %v5512_v10  ;;  %s5565_s11 = smov 192  ;;  %v4813_v44 = vpop.permute.xlu1 %4812  }
 0x31e   :  { %v9977_v13 = vld [vmem:[%s18446_s0 + $0xa06] ss:$16 sm:%s5578_s27]   ;;  %v5522_v17 = vsel %vm14_vm2, %v9964_v11, %v5517_v36  ;;  %s5624_s27 = smov 12  ;;  %9812 = vst.msk [vmem:[%s18447_s1 + $0x38] sm:$0xff] %vm4378_vm11, %v4813_v44  }
 0x31f   :  { %v5581_v18 = vsel %vm6_vm0, %v9977_v13, %v9976_v57  ;;  %v9979_v20 = vld [vmem:[%s18446_s0 + $0xa06] ss:$16 sm:%s5588_s15]   ;;  %5523 = vrot.lane.b32.xlu0 %v5522_v17, %s10690_s19  ;;  %s5634_s15 = smov 192 }
 0x320   :  { %v5586_v23 = vsel %vm10_vm1, %v9978_v19, %v5581_v18  ;;  %v9971_v26 = vld [vmem:[%s18446_s0 + $0x806] ss:$16 sm:%s5552_s23]   ;;  %s5598_s23 = smov 3 }
 0x321   :  { %v5591_v27 = vsel %vm14_vm2, %v9979_v20, %v5586_v23  ;;  %v9972_v49 = vld [vmem:[%s18446_s0 + $0x806] ss:$16 sm:%s5555_s30]   ;;  %s5601_s30 = smov 12  ;;  %v4790_v5 = vpop.permute.xlu0 %4789  }
 0x322   :  { %v9973_v24 = vld [vmem:[%s18446_s0 + $0x806] ss:$16 sm:%s5560_s2]   ;;  %5592 = vrot.lane.b32.xlu1 %v5591_v27, %s10690_s19  ;;  %v5558_v30 = vsel %vm6_vm0, %v9972_v49, %v9971_v26  ;;  %s5606_s2 = smov 48  ;;  %9807 = vst.msk [vmem:[%s18447_s1 + $0x18] sm:$0xff] %vm4378_vm11, %v4790_v5  }
 0x323   :  { %v9974_v32 = vld [vmem:[%s18446_s0 + $0x806] ss:$16 sm:%s5565_s11]   ;;  %v5563_v33 = vsel %vm10_vm1, %v9973_v24, %v5558_v30  ;;  %s5611_s11 = smov 192 }
 0x324   :  { %v9986_v34 = vld [vmem:[%s18446_s0 + $0x286] ss:$16 sm:%s5621_s18]   ;;  %v5568_v35 = vsel %vm14_vm2, %v9974_v32, %v5563_v33  ;;  %s5667_s18 = smov 3 }
 0x325   :  { %v9987_v25 = vld [vmem:[%s18446_s0 + $0x286] ss:$16 sm:%s5624_s27]   ;;  %5569 = vrot.lane.b32.xlu0 %v5568_v35, %s10690_s19  ;;  %s5670_s27 = smov 12  ;;  %v4859_v12 = vpop.permute.xlu1 %4858  }
 0x326   :  { %v5627_v60 = vsel %vm6_vm0, %v9987_v25, %v9986_v34  ;;  %v9988_v22 = vld [vmem:[%s18446_s0 + $0x286] ss:$16 sm:%s5629_s21]   ;;  %s5675_s21 = smov 48  ;;  %9822 = vst.msk [vmem:[%s18447_s1 + $0x78] sm:$0xff] %vm4378_vm11, %v4859_v12  }
 0x327   :  { %v9989_v38 = vld [vmem:[%s18446_s0 + $0x286] ss:$16 sm:%s5634_s15]   ;;  %v5632_v61 = vsel %vm10_vm1, %v9988_v22, %v5627_v60  ;;  %s5680_s15 = smov 192 }
 0x328   :  { %v9981_v40 = vld [vmem:[%s18446_s0 + $0x86] ss:$16 sm:%s5598_s23]   ;;  %v5637_v41 = vsel %vm14_vm2, %v9989_v38, %v5632_v61  ;;  %s5644_s23 = smov 3 }
 0x329   :  { %v9982_v43 = vld [vmem:[%s18446_s0 + $0x86] ss:$16 sm:%s5601_s30]   ;;  %5638 = vrot.lane.b32.xlu1 %v5637_v41, %s10690_s19  ;;  %s5647_s30 = smov 12  ;;  %v4836_v21 = vpop.permute.xlu0 %4835  }
 0x32a   :  { %v9983_v45 = vld [vmem:[%s18446_s0 + $0x86] ss:$16 sm:%s5606_s2]   ;;  %v5604_v37 = vsel %vm6_vm0, %v9982_v43, %v9981_v40  ;;  %s5652_s2 = smov 48  ;;  %9817 = vst.msk [vmem:[%s18447_s1 + $0x58] sm:$0xff] %vm4378_vm11, %v4836_v21  }
 0x32b   :  { %v9984_v48 = vld [vmem:[%s18446_s0 + $0x86] ss:$16 sm:%s5611_s11]   ;;  %v5609_v15 = vsel %vm10_vm1, %v9983_v45, %v5604_v37  ;;  %s5657_s11 = smov 192 }
 0x32c   :  { %v9996_v50 = vld [vmem:[%s18446_s0 + $0x686] ss:$16 sm:%s5667_s18]   ;;  %v5614_v6 = vsel %vm14_vm2, %v9984_v48, %v5609_v15  ;;  %s5713_s18 = smov 3 }
 0x32d   :  { %v9997_v51 = vld [vmem:[%s18446_s0 + $0x686] ss:$16 sm:%s5670_s27]   ;;  %5615 = vrot.lane.b32.xlu0 %v5614_v6, %s10690_s19  ;;  %s5716_s27 = smov 12  ;;  %v4905_v29 = vpop.permute.xlu1 %4904  }
 0x32e   :  { %v5673_v52 = vsel %vm6_vm0, %v9997_v51, %v9996_v50  ;;  %v9998_v31 = vld [vmem:[%s18446_s0 + $0x686] ss:$16 sm:%s5675_s21]   ;;  %s5721_s21 = smov 48  ;;  %9832 = vst.msk [vmem:[%s18447_s1 + $0xb8] sm:$0xff] %vm4378_vm11, %v4905_v29  }
 0x32f   :  { %v9999_v14 = vld [vmem:[%s18446_s0 + $0x686] ss:$16 sm:%s5680_s15]   ;;  %v5678_v55 = vsel %vm10_vm1, %v9998_v31, %v5673_v52  ;;  %s5726_s15 = smov 192 }
 0x330   :  { %v9991_v56 = vld [vmem:[%s18446_s0 + $0x486] ss:$16 sm:%s5644_s23]   ;;  %v5683_v58 = vsel %vm14_vm2, %v9999_v14, %v5678_v55  ;;  %s5690_s23 = smov 3 }
 0x331   :  { %v9992_v59 = vld [vmem:[%s18446_s0 + $0x486] ss:$16 sm:%s5647_s30]   ;;  %5684 = vrot.lane.b32.xlu1 %v5683_v58, %s10690_s19  ;;  %s5693_s30 = smov 12  ;;  %v4882_v39 = vpop.permute.xlu0 %4881   ;;  %v4950_v47 = vpop.permute.xlu1 %4949  }
 0x332   :  { %v9993_v62 = vld [vmem:[%s18446_s0 + $0x486] ss:$16 sm:%s5652_s2]   ;;  %v5650_v4 = vsel %vm6_vm0, %v9992_v59, %v9991_v56  ;;  %s5698_s2 = smov 48  ;;  %9827 = vst.msk [vmem:[%s18447_s1 + $0x98] sm:$0xff] %vm4378_vm11, %v4882_v39  }
 0x333   :  { %v9994_v63 = vld [vmem:[%s18446_s0 + $0x486] ss:$16 sm:%s5657_s11]   ;;  %v5655_v0 = vsel %vm10_vm1, %v9993_v62, %v5650_v4  ;;  %s5703_s11 = smov 192  ;;  %9841 = vst.msk [vmem:[%s18447_s1 + $0x20] sm:$0xff] %vm4929_vm12, %v4950_v47  }
 0x334   :  { %v10006_v42 = vld [vmem:[%s18446_s0 + $0xa86] ss:$16 sm:%s5713_s18]   ;;  %v5660_v46 = vsel %vm14_vm2, %v9994_v63, %v5655_v0  ;;  %s5759_s18 = smov 3 }
 0x335   :  { %v10007_v1 = vld [vmem:[%s18446_s0 + $0xa86] ss:$16 sm:%s5716_s27]   ;;  %5661 = vrot.lane.b32.xlu0 %v5660_v46, %s10690_s19  ;;  %s5762_s27 = smov 12  ;;  %v4928_v53 = vpop.permute.xlu0 %4927  }
 0x336   :  { %v5719_v2 = vsel %vm6_vm0, %v10007_v1, %v10006_v42  ;;  %v10008_v28 = vld [vmem:[%s18446_s0 + $0xa86] ss:$16 sm:%s5721_s21]   ;;  %s5767_s21 = smov 48  ;;  %4930 = vst.msk [vmem:[%s18447_s1] sm:$0xff] %vm4929_vm12, %v4928_v53  }
 0x337   :  { %v10009_v3 = vld [vmem:[%s18446_s0 + $0xa86] ss:$16 sm:%s5726_s15]   ;;  %v5724_v7 = vsel %vm10_vm1, %v10008_v28, %v5719_v2  ;;  %s5772_s15 = smov 192  ;;  %v4996_v44 = vpop.permute.xlu1 %4995  }
 0x338   :  { %v10001_v8 = vld [vmem:[%s18446_s0 + $0x886] ss:$16 sm:%s5690_s23]   ;;  %v5729_v9 = vsel %vm14_vm2, %v10009_v3, %v5724_v7  ;;  %s5736_s23 = smov 3  ;;  %9851 = vst.msk [vmem:[%s18447_s1 + $0x60] sm:$0xff] %vm4929_vm12, %v4996_v44  }
 0x339   :  { %v10002_v16 = vld [vmem:[%s18446_s0 + $0x886] ss:$16 sm:%s5693_s30]   ;;  %5730 = vrot.lane.b32.xlu1 %v5729_v9, %s10690_s19  ;;  %s5739_s30 = smov 12 }
 0x33a   :  { %v10003_v54 = vld [vmem:[%s18446_s0 + $0x886] ss:$16 sm:%s5698_s2]   ;;  %v5696_v10 = vsel %vm6_vm0, %v10002_v16, %v10001_v8  ;;  %s5744_s2 = smov 48  ;;  %v4973_v5 = vpop.permute.xlu0 %4972  }
 0x33b   :  { %v10004_v11 = vld [vmem:[%s18446_s0 + $0x886] ss:$16 sm:%s5703_s11]   ;;  %v5701_v36 = vsel %vm10_vm1, %v10003_v54, %v5696_v10  ;;  %s5749_s11 = smov 192  ;;  %9846 = vst.msk [vmem:[%s18447_s1 + $0x40] sm:$0xff] %vm4929_vm12, %v4973_v5  }
 0x33c   :  { %v10016_v57 = vld [vmem:[%s18446_s0 + $0x306] ss:$16 sm:%s5759_s18]   ;;  %v5706_v17 = vsel %vm14_vm2, %v10004_v11, %v5701_v36  ;;  %s5805_s18 = smov 3 }
 0x33d   :  { %v10017_v13 = vld [vmem:[%s18446_s0 + $0x306] ss:$16 sm:%s5762_s27]   ;;  %5707 = vrot.lane.b32.xlu0 %v5706_v17, %s10690_s19  ;;  %s5808_s27 = smov 12  ;;  %v5042_v12 = vpop.permute.xlu1 %5041  }
 0x33e   :  { %v5765_v18 = vsel %vm6_vm0, %v10017_v13, %v10016_v57  ;;  %v10018_v19 = vld [vmem:[%s18446_s0 + $0x306] ss:$16 sm:%s5767_s21]   ;;  %s5813_s21 = smov 48  ;;  %9861 = vst.msk [vmem:[%s18447_s1 + $0xa0] sm:$0xff] %vm4929_vm12, %v5042_v12  }
 0x33f   :  { %v10019_v20 = vld [vmem:[%s18446_s0 + $0x306] ss:$16 sm:%s5772_s15]   ;;  %v5770_v23 = vsel %vm10_vm1, %v10018_v19, %v5765_v18  ;;  %s5818_s15 = smov 192 }
 0x340   :  { %v10011_v26 = vld [vmem:[%s18446_s0 + $0x106] ss:$16 sm:%s5736_s23]   ;;  %v5775_v27 = vsel %vm14_vm2, %v10019_v20, %v5770_v23  ;;  %s5782_s23 = smov 3  ;;  %v5019_v21 = vpop.permute.xlu0 %5018  }
 0x341   :  { %v10012_v49 = vld [vmem:[%s18446_s0 + $0x106] ss:$16 sm:%s5739_s30]   ;;  %5776 = vrot.lane.b32.xlu1 %v5775_v27, %s10690_s19  ;;  %s5785_s30 = smov 12  ;;  %9856 = vst.msk [vmem:[%s18447_s1 + $0x80] sm:$0xff] %vm4929_vm12, %v5019_v21  }
 0x342   :  { %v10013_v24 = vld [vmem:[%s18446_s0 + $0x106] ss:$16 sm:%s5744_s2]   ;;  %v5742_v30 = vsel %vm6_vm0, %v10012_v49, %v10011_v26  ;;  %s5790_s2 = smov 48 }
 0x343   :  { %v10014_v32 = vld [vmem:[%s18446_s0 + $0x106] ss:$16 sm:%s5749_s11]   ;;  %v5747_v33 = vsel %vm10_vm1, %v10013_v24, %v5742_v30  ;;  %s5795_s11 = smov 192 }
 0x344   :  { %v10026_v34 = vld [vmem:[%s18446_s0 + $0x706] ss:$16 sm:%s5805_s18]   ;;  %v5752_v35 = vsel %vm14_vm2, %v10014_v32, %v5747_v33  ;;  %s5851_s18 = smov 3  ;;  %v5088_v29 = vpop.permute.xlu1 %5087  }
 0x345   :  { %v10027_v25 = vld [vmem:[%s18446_s0 + $0x706] ss:$16 sm:%s5808_s27]   ;;  %5753 = vrot.lane.b32.xlu0 %v5752_v35, %s10690_s19  ;;  %s5854_s27 = smov 12  ;;  %9871 = vst.msk [vmem:[%s18447_s1 + $0x28] sm:$0xff] %vm4929_vm12, %v5088_v29  }
 0x346   :  { %v5811_v60 = vsel %vm6_vm0, %v10027_v25, %v10026_v34  ;;  %v10028_v22 = vld [vmem:[%s18446_s0 + $0x706] ss:$16 sm:%s5813_s21]   ;;  %s5859_s21 = smov 48 }
 0x347   :  { %v10029_v38 = vld [vmem:[%s18446_s0 + $0x706] ss:$16 sm:%s5818_s15]   ;;  %v5816_v61 = vsel %vm10_vm1, %v10028_v22, %v5811_v60  ;;  %s5864_s15 = smov 192 }
 0x348   :  { %v10021_v40 = vld [vmem:[%s18446_s0 + $0x506] ss:$16 sm:%s5782_s23]   ;;  %v5821_v41 = vsel %vm14_vm2, %v10029_v38, %v5816_v61  ;;  %s5828_s23 = smov 3  ;;  %v5065_v39 = vpop.permute.xlu0 %5064  }
 0x349   :  { %v10022_v43 = vld [vmem:[%s18446_s0 + $0x506] ss:$16 sm:%s5785_s30]   ;;  %5822 = vrot.lane.b32.xlu1 %v5821_v41, %s10690_s19  ;;  %s5831_s30 = smov 12  ;;  %9866 = vst.msk [vmem:[%s18447_s1 + $0x8] sm:$0xff] %vm4929_vm12, %v5065_v39  }
 0x34a   :  { %v10023_v45 = vld [vmem:[%s18446_s0 + $0x506] ss:$16 sm:%s5790_s2]   ;;  %v5788_v37 = vsel %vm6_vm0, %v10022_v43, %v10021_v40  ;;  %s5836_s2 = smov 48 }
 0x34b   :  { %v10024_v48 = vld [vmem:[%s18446_s0 + $0x506] ss:$16 sm:%s5795_s11]   ;;  %v5793_v15 = vsel %vm10_vm1, %v10023_v45, %v5788_v37  ;;  %s5841_s11 = smov 192 }
 0x34c   :  { %v10036_v50 = vld [vmem:[%s18446_s0 + $0xb06] ss:$16 sm:%s5851_s18]   ;;  %v5798_v6 = vsel %vm14_vm2, %v10024_v48, %v5793_v15  ;;  %s5897_s18 = smov 3  ;;  %v5134_v47 = vpop.permute.xlu1 %5133  }
 0x34d   :  { %v10037_v51 = vld [vmem:[%s18446_s0 + $0xb06] ss:$16 sm:%s5854_s27]   ;;  %5799 = vrot.lane.b32.xlu0 %v5798_v6, %s10690_s19  ;;  %s5900_s27 = smov 12  ;;  %9881 = vst.msk [vmem:[%s18447_s1 + $0x68] sm:$0xff] %vm4929_vm12, %v5134_v47  }
 0x34e   :  { %v5857_v52 = vsel %vm6_vm0, %v10037_v51, %v10036_v50  ;;  %v10038_v31 = vld [vmem:[%s18446_s0 + $0xb06] ss:$16 sm:%s5859_s21]   ;;  %s5905_s21 = smov 48 }
 0x34f   :  { %v10039_v14 = vld [vmem:[%s18446_s0 + $0xb06] ss:$16 sm:%s5864_s15]   ;;  %v5862_v55 = vsel %vm10_vm1, %v10038_v31, %v5857_v52  ;;  %s5910_s15 = smov 192 }
 0x350   :  { %v10031_v56 = vld [vmem:[%s18446_s0 + $0x906] ss:$16 sm:%s5828_s23]   ;;  %v5867_v58 = vsel %vm14_vm2, %v10039_v14, %v5862_v55  ;;  %s5874_s23 = smov 3  ;;  %v5111_v53 = vpop.permute.xlu0 %5110  }
 0x351   :  { %v10032_v59 = vld [vmem:[%s18446_s0 + $0x906] ss:$16 sm:%s5831_s30]   ;;  %5868 = vrot.lane.b32.xlu1 %v5867_v58, %s10690_s19  ;;  %s5877_s30 = smov 12  ;;  %9876 = vst.msk [vmem:[%s18447_s1 + $0x48] sm:$0xff] %vm4929_vm12, %v5111_v53  }
 0x352   :  { %v10033_v62 = vld [vmem:[%s18446_s0 + $0x906] ss:$16 sm:%s5836_s2]   ;;  %v5834_v4 = vsel %vm6_vm0, %v10032_v59, %v10031_v56  ;;  %s5882_s2 = smov 48 }
 0x353   :  { %v10034_v63 = vld [vmem:[%s18446_s0 + $0x906] ss:$16 sm:%s5841_s11]   ;;  %v5839_v0 = vsel %vm10_vm1, %v10033_v62, %v5834_v4  ;;  %s5887_s11 = smov 192 }
 0x354   :  { %v10046_v42 = vld [vmem:[%s18446_s0 + $0x386] ss:$16 sm:%s5897_s18]   ;;  %v5844_v46 = vsel %vm14_vm2, %v10034_v63, %v5839_v0  ;;  %s5943_s18 = smov 3  ;;  %v5180_v44 = vpop.permute.xlu1 %5179  }
 0x355   :  { %v10047_v1 = vld [vmem:[%s18446_s0 + $0x386] ss:$16 sm:%s5900_s27]   ;;  %5845 = vrot.lane.b32.xlu0 %v5844_v46, %s10690_s19  ;;  %s5946_s27 = smov 12  ;;  %9891 = vst.msk [vmem:[%s18447_s1 + $0xa8] sm:$0xff] %vm4929_vm12, %v5180_v44  }
 0x356   :  { %v5903_v2 = vsel %vm6_vm0, %v10047_v1, %v10046_v42  ;;  %v10048_v28 = vld [vmem:[%s18446_s0 + $0x386] ss:$16 sm:%s5905_s21]   ;;  %s5951_s21 = smov 48  ;;  %v10085_v42 = vld [vmem:[%s18446_s0 + $0x605] ss:$16 sm:%s6080_s17]   ;;  %s6126_s17 = smov 3 }
 0x357   :  { %v10049_v3 = vld [vmem:[%s18446_s0 + $0x386] ss:$16 sm:%s5910_s15]   ;;  %v5908_v7 = vsel %vm10_vm1, %v10048_v28, %v5903_v2  ;;  %s5956_s15 = smov 192  ;;  %v10087_v28 = vld [vmem:[%s18446_s0 + $0x605] ss:$16 sm:%s6088_s14]   ;;  %s6134_s14 = smov 48 }
 0x358   :  { %v10041_v8 = vld [vmem:[%s18446_s0 + $0x186] ss:$16 sm:%s5874_s23]   ;;  %v5913_v9 = vsel %vm14_vm2, %v10049_v3, %v5908_v7  ;;  %s5920_s23 = smov 3  ;;  %v5157_v5 = vpop.permute.xlu0 %5156  }
 0x359   :  { %v10042_v16 = vld [vmem:[%s18446_s0 + $0x186] ss:$16 sm:%s5877_s30]   ;;  %5914 = vrot.lane.b32.xlu1 %v5913_v9, %s10690_s19  ;;  %s5923_s30 = smov 12  ;;  %9886 = vst.msk [vmem:[%s18447_s1 + $0x88] sm:$0xff] %vm4929_vm12, %v5157_v5  }
 0x35a   :  { %v10043_v54 = vld [vmem:[%s18446_s0 + $0x186] ss:$16 sm:%s5882_s2]   ;;  %v5880_v10 = vsel %vm6_vm0, %v10042_v16, %v10041_v8  ;;  %s5928_s2 = smov 48 }
 0x35b   :  { %v10044_v11 = vld [vmem:[%s18446_s0 + $0x186] ss:$16 sm:%s5887_s11]   ;;  %v5885_v36 = vsel %vm10_vm1, %v10043_v54, %v5880_v10  ;;  %s5933_s11 = smov 192 }
 0x35c   :  { %v10056_v57 = vld [vmem:[%s18446_s0 + $0x786] ss:$16 sm:%s5943_s18]   ;;  %v5890_v17 = vsel %vm14_vm2, %v10044_v11, %v5885_v36  ;;  %s5989_s18 = smov 3  ;;  %v5226_v12 = vpop.permute.xlu1 %5225  }
 0x35d   :  { %v10057_v13 = vld [vmem:[%s18446_s0 + $0x786] ss:$16 sm:%s5946_s27]   ;;  %5891 = vrot.lane.b32.xlu0 %v5890_v17, %s10690_s19  ;;  %s5992_s27 = smov 12  ;;  %9901 = vst.msk [vmem:[%s18447_s1 + $0x30] sm:$0xff] %vm4929_vm12, %v5226_v12  }
 0x35e   :  { %v5949_v18 = vsel %vm6_vm0, %v10057_v13, %v10056_v57  ;;  %v10058_v19 = vld [vmem:[%s18446_s0 + $0x786] ss:$16 sm:%s5951_s21]   ;;  %s5997_s21 = smov 48  ;;  %v10095_v57 = vld [vmem:[%s18446_s0 + $0xa05] ss:$16 sm:%s6126_s17]   ;;  %s6172_s17 = smov 3 }
 0x35f   :  { %v10059_v20 = vld [vmem:[%s18446_s0 + $0x786] ss:$16 sm:%s5956_s15]   ;;  %v5954_v23 = vsel %vm10_vm1, %v10058_v19, %v5949_v18  ;;  %s6002_s15 = smov 192  ;;  %v10097_v19 = vld [vmem:[%s18446_s0 + $0xa05] ss:$16 sm:%s6134_s14]   ;;  %s6180_s14 = smov 48 }
 0x360   :  { %v10051_v26 = vld [vmem:[%s18446_s0 + $0x586] ss:$16 sm:%s5920_s23]   ;;  %v5959_v27 = vsel %vm14_vm2, %v10059_v20, %v5954_v23  ;;  %s5966_s23 = smov 3  ;;  %v5203_v21 = vpop.permute.xlu0 %5202  }
 0x361   :  { %v10052_v49 = vld [vmem:[%s18446_s0 + $0x586] ss:$16 sm:%s5923_s30]   ;;  %5960 = vrot.lane.b32.xlu1 %v5959_v27, %s10690_s19  ;;  %s5969_s30 = smov 12  ;;  %9896 = vst.msk [vmem:[%s18447_s1 + $0x10] sm:$0xff] %vm4929_vm12, %v5203_v21  }
 0x362   :  { %v10053_v24 = vld [vmem:[%s18446_s0 + $0x586] ss:$16 sm:%s5928_s2]   ;;  %v5926_v30 = vsel %vm6_vm0, %v10052_v49, %v10051_v26  ;;  %s5974_s2 = smov 48 }
 0x363   :  { %v10054_v32 = vld [vmem:[%s18446_s0 + $0x586] ss:$16 sm:%s5933_s11]   ;;  %v5931_v33 = vsel %vm10_vm1, %v10053_v24, %v5926_v30  ;;  %s5979_s11 = smov 192 }
 0x364   :  { %v10066_v34 = vld [vmem:[%s18446_s0 + $0xb86] ss:$16 sm:%s5989_s18]   ;;  %v5936_v35 = vsel %vm14_vm2, %v10054_v32, %v5931_v33  ;;  %s6034_s18 = smov 3  ;;  %v5272_v29 = vpop.permute.xlu1 %5271  }
 0x365   :  { %v10067_v25 = vld [vmem:[%s18446_s0 + $0xb86] ss:$16 sm:%s5992_s27]   ;;  %5937 = vrot.lane.b32.xlu0 %v5936_v35, %s10690_s19  ;;  %s6037_s27 = smov 12  ;;  %9911 = vst.msk [vmem:[%s18447_s1 + $0x70] sm:$0xff] %vm4929_vm12, %v5272_v29  }
 0x366   :  { %v5995_v60 = vsel %vm6_vm0, %v10067_v25, %v10066_v34  ;;  %v10068_v22 = vld [vmem:[%s18446_s0 + $0xb86] ss:$16 sm:%s5997_s21]   ;;  %s6042_s21 = smov 48  ;;  %v10075_v50 = vld [vmem:[%s18446_s0 + $0x205] ss:$16 sm:%s6034_s18]   ;;  %s6083_s18 = smov 12 }
 0x367   :  { %v10069_v38 = vld [vmem:[%s18446_s0 + $0xb86] ss:$16 sm:%s6002_s15]   ;;  %v6000_v61 = vsel %vm10_vm1, %v10068_v22, %v5995_v60  ;;  %s6047_s15 = smov 192  ;;  %v10076_v51 = vld [vmem:[%s18446_s0 + $0x205] ss:$16 sm:%s6037_s27]  }
 0x368   :  { %v10061_v40 = vld [vmem:[%s18446_s0 + $0x986] ss:$16 sm:%s5966_s23]   ;;  %v6005_v41 = vsel %vm14_vm2, %v10069_v38, %v6000_v61  ;;  %s6012_s23 = smov 3  ;;  %v6040_v52 = vsel %vm6_vm0, %v10076_v51, %v10075_v50  ;;  %v10077_v31 = vld [vmem:[%s18446_s0 + $0x205] ss:$16 sm:%s6042_s21]   ;;  %s6093_s21 = smov 192  ;;  %v5249_v39 = vpop.permute.xlu0 %5248  }
 0x369   :  { %v10062_v43 = vld [vmem:[%s18446_s0 + $0x986] ss:$16 sm:%s5969_s30]   ;;  %6006 = vrot.lane.b32.xlu1 %v6005_v41, %s10690_s19  ;;  %s6015_s30 = smov 12  ;;  %v6045_v55 = vsel %vm10_vm1, %v10077_v31, %v6040_v52  ;;  %9906 = vst.msk [vmem:[%s18447_s1 + $0x50] sm:$0xff] %vm4929_vm12, %v5249_v39  }
 0x36a   :  { %v10063_v45 = vld [vmem:[%s18446_s0 + $0x986] ss:$16 sm:%s5974_s2]   ;;  %v5972_v37 = vsel %vm6_vm0, %v10062_v43, %v10061_v40  ;;  %s6020_s2 = smov 48  ;;  %v10078_v14 = vld [vmem:[%s18446_s0 + $0x205] ss:$16 sm:%s6047_s15]   ;;  %s10691_s15 = smov 20  }
 0x36b   :  { %v10064_v48 = vld [vmem:[%s18446_s0 + $0x986] ss:$16 sm:%s5979_s11]   ;;  %v5977_v15 = vsel %vm10_vm1, %v10063_v45, %v5972_v37  ;;  %s6025_s11 = smov 192  ;;  %v10071_v56 = vld [vmem:[%s18446_s0 + $0x5] ss:$16 sm:%s6012_s23]   ;;  %v6050_v58 = vsel %vm14_vm2, %v10078_v14, %v6045_v55  ;;  %s6057_s23 = smov 3 }
 0x36c   :  { %v5982_v6 = vsel %vm14_vm2, %v10064_v48, %v5977_v15  ;;  %v10072_v59 = vld [vmem:[%s18446_s0 + $0x5] ss:$16 sm:%s6015_s30]   ;;  %s6060_s30 = smov 12  ;;  %v5318_v47 = vpop.permute.xlu1 %5317  }
 0x36d   :  { %5983 = vrot.lane.b32.xlu0 %v5982_v6, %s10690_s19  ;;  %v10073_v62 = vld [vmem:[%s18446_s0 + $0x5] ss:$16 sm:%s6020_s2]   ;;  %6051 = vrot.lane.b32.xlu1 %v6050_v58, %s10691_s15  ;;  %v6018_v4 = vsel %vm6_vm0, %v10072_v59, %v10071_v56  ;;  %s6065_s2 = smov 48  ;;  %s7182_s19 = smov 3 }
 0x36e   :  { %v10074_v63 = vld [vmem:[%s18446_s0 + $0x5] ss:$16 sm:%s6025_s11]   ;;  %v6023_v0 = vsel %vm10_vm1, %v10073_v62, %v6018_v4  ;;  %s6070_s11 = smov 192  ;;  %9921 = vst.msk [vmem:[%s18447_s1 + $0xb0] sm:$0xff] %vm4929_vm12, %v5318_v47  }
 0x36f   :  { %v10086_v1 = vld [vmem:[%s18446_s0 + $0x605] ss:$16 sm:%s6083_s18]   ;;  %v6028_v46 = vsel %vm14_vm2, %v10074_v63, %v6023_v0  ;;  %s6129_s18 = smov 12 }
 0x370   :  { %v6086_v2 = vsel %vm6_vm0, %v10086_v1, %v10085_v42  ;;  %v10088_v3 = vld [vmem:[%s18446_s0 + $0x605] ss:$16 sm:%s6093_s21]   ;;  %s6139_s21 = smov 192  ;;  %v5295_v53 = vpop.permute.xlu0 %5294  }
 0x371   :  { %6029 = vrot.lane.b32.xlu0 %v6028_v46, %s10691_s15  ;;  %v6091_v7 = vsel %vm10_vm1, %v10087_v28, %v6086_v2  ;;  %v10080_v8 = vld [vmem:[%s18446_s0 + $0x405] ss:$16 sm:%s6057_s23]   ;;  %s6103_s23 = smov 3  ;;  %9916 = vst.msk [vmem:[%s18447_s1 + $0x90] sm:$0xff] %vm4929_vm12, %v5295_v53  }
 0x372   :  { %v6096_v9 = vsel %vm14_vm2, %v10088_v3, %v6091_v7  ;;  %v10081_v16 = vld [vmem:[%s18446_s0 + $0x405] ss:$16 sm:%s6060_s30]   ;;  %s6106_s30 = smov 12 }
 0x373   :  { %v10082_v54 = vld [vmem:[%s18446_s0 + $0x405] ss:$16 sm:%s6065_s2]   ;;  %6097 = vrot.lane.b32.xlu1 %v6096_v9, %s10691_s15  ;;  %v6063_v10 = vsel %vm6_vm0, %v10081_v16, %v10080_v8  ;;  %s6111_s2 = smov 48 }
 0x374   :  { %v10083_v11 = vld [vmem:[%s18446_s0 + $0x405] ss:$16 sm:%s6070_s11]   ;;  %v6068_v36 = vsel %vm10_vm1, %v10082_v54, %v6063_v10  ;;  %s6116_s11 = smov 192  ;;  %v5364_v44 = vpop.permute.xlu1 %5363  }
 0x375   :  { %v10096_v13 = vld [vmem:[%s18446_s0 + $0xa05] ss:$16 sm:%s6129_s18]   ;;  %v6073_v17 = vsel %vm14_vm2, %v10083_v11, %v6068_v36  ;;  %s6175_s18 = smov 12  ;;  %9931 = vst.msk [vmem:[%s18447_s1 + $0x38] sm:$0xff] %vm4929_vm12, %v5364_v44  }
 0x376   :  { %v6132_v18 = vsel %vm6_vm0, %v10096_v13, %v10095_v57  ;;  %v10098_v20 = vld [vmem:[%s18446_s0 + $0xa05] ss:$16 sm:%s6139_s21]   ;;  %6074 = vrot.lane.b32.xlu0 %v6073_v17, %s10691_s15  ;;  %s6185_s21 = smov 192 }
 0x377   :  { %v6137_v23 = vsel %vm10_vm1, %v10097_v19, %v6132_v18  ;;  %v10090_v26 = vld [vmem:[%s18446_s0 + $0x805] ss:$16 sm:%s6103_s23]   ;;  %s6149_s23 = smov 3 }
 0x378   :  { %v6142_v27 = vsel %vm14_vm2, %v10098_v20, %v6137_v23  ;;  %v10091_v49 = vld [vmem:[%s18446_s0 + $0x805] ss:$16 sm:%s6106_s30]   ;;  %s6152_s30 = smov 12  ;;  %v5341_v5 = vpop.permute.xlu0 %5340  }
 0x379   :  { %v10092_v24 = vld [vmem:[%s18446_s0 + $0x805] ss:$16 sm:%s6111_s2]   ;;  %6143 = vrot.lane.b32.xlu1 %v6142_v27, %s10691_s15  ;;  %v6109_v30 = vsel %vm6_vm0, %v10091_v49, %v10090_v26  ;;  %s6157_s2 = smov 48  ;;  %9926 = vst.msk [vmem:[%s18447_s1 + $0x18] sm:$0xff] %vm4929_vm12, %v5341_v5  }
 0x37a   :  { %v10093_v32 = vld [vmem:[%s18446_s0 + $0x805] ss:$16 sm:%s6116_s11]   ;;  %v6114_v33 = vsel %vm10_vm1, %v10092_v24, %v6109_v30  ;;  %s6162_s11 = smov 192 }
 0x37b   :  { %v10105_v34 = vld [vmem:[%s18446_s0 + $0x285] ss:$16 sm:%s6172_s17]   ;;  %v6119_v35 = vsel %vm14_vm2, %v10093_v32, %v6114_v33  ;;  %s6218_s17 = smov 3 }
 0x37c   :  { %v10106_v25 = vld [vmem:[%s18446_s0 + $0x285] ss:$16 sm:%s6175_s18]   ;;  %6120 = vrot.lane.b32.xlu0 %v6119_v35, %s10691_s15  ;;  %s6221_s18 = smov 12  ;;  %v5410_v12 = vpop.permute.xlu1 %5409  }
 0x37d   :  { %v6178_v60 = vsel %vm6_vm0, %v10106_v25, %v10105_v34  ;;  %v10107_v22 = vld [vmem:[%s18446_s0 + $0x285] ss:$16 sm:%s6180_s14]   ;;  %s6226_s14 = smov 48  ;;  %9941 = vst.msk [vmem:[%s18447_s1 + $0x78] sm:$0xff] %vm4929_vm12, %v5410_v12  }
 0x37e   :  { %v10108_v38 = vld [vmem:[%s18446_s0 + $0x285] ss:$16 sm:%s6185_s21]   ;;  %v6183_v61 = vsel %vm10_vm1, %v10107_v22, %v6178_v60  ;;  %s6231_s21 = smov 192 }
 0x37f   :  { %v10100_v40 = vld [vmem:[%s18446_s0 + $0x85] ss:$16 sm:%s6149_s23]   ;;  %v6188_v41 = vsel %vm14_vm2, %v10108_v38, %v6183_v61  ;;  %s6195_s23 = smov 3 }
 0x380   :  { %v10101_v43 = vld [vmem:[%s18446_s0 + $0x85] ss:$16 sm:%s6152_s30]   ;;  %6189 = vrot.lane.b32.xlu1 %v6188_v41, %s10691_s15  ;;  %s6198_s30 = smov 12  ;;  %v5387_v21 = vpop.permute.xlu0 %5386  }
 0x381   :  { %v10102_v45 = vld [vmem:[%s18446_s0 + $0x85] ss:$16 sm:%s6157_s2]   ;;  %v6155_v37 = vsel %vm6_vm0, %v10101_v43, %v10100_v40  ;;  %s6203_s2 = smov 48  ;;  %9936 = vst.msk [vmem:[%s18447_s1 + $0x58] sm:$0xff] %vm4929_vm12, %v5387_v21  }
 0x382   :  { %v10103_v48 = vld [vmem:[%s18446_s0 + $0x85] ss:$16 sm:%s6162_s11]   ;;  %v6160_v15 = vsel %vm10_vm1, %v10102_v45, %v6155_v37  ;;  %s6208_s11 = smov 192 }
 0x383   :  { %v10115_v50 = vld [vmem:[%s18446_s0 + $0x685] ss:$16 sm:%s6218_s17]   ;;  %v6165_v6 = vsel %vm14_vm2, %v10103_v48, %v6160_v15  ;;  %s6264_s17 = smov 3 }
 0x384   :  { %v10116_v51 = vld [vmem:[%s18446_s0 + $0x685] ss:$16 sm:%s6221_s18]   ;;  %6166 = vrot.lane.b32.xlu0 %v6165_v6, %s10691_s15  ;;  %s6267_s18 = smov 12  ;;  %v5456_v29 = vpop.permute.xlu1 %5455  }
 0x385   :  { %v6224_v52 = vsel %vm6_vm0, %v10116_v51, %v10115_v50  ;;  %v10117_v31 = vld [vmem:[%s18446_s0 + $0x685] ss:$16 sm:%s6226_s14]   ;;  %s6272_s14 = smov 48  ;;  %9951 = vst.msk [vmem:[%s18447_s1 + $0xb8] sm:$0xff] %vm4929_vm12, %v5456_v29  }
 0x386   :  { %v10118_v14 = vld [vmem:[%s18446_s0 + $0x685] ss:$16 sm:%s6231_s21]   ;;  %v6229_v55 = vsel %vm10_vm1, %v10117_v31, %v6224_v52  ;;  %s6277_s21 = smov 192 }
 0x387   :  { %v10110_v56 = vld [vmem:[%s18446_s0 + $0x485] ss:$16 sm:%s6195_s23]   ;;  %v6234_v58 = vsel %vm14_vm2, %v10118_v14, %v6229_v55  ;;  %s6241_s23 = smov 3 }
 0x388   :  { %v10111_v59 = vld [vmem:[%s18446_s0 + $0x485] ss:$16 sm:%s6198_s30]   ;;  %6235 = vrot.lane.b32.xlu1 %v6234_v58, %s10691_s15  ;;  %s6244_s30 = smov 12  ;;  %v5433_v39 = vpop.permute.xlu0 %5432   ;;  %v5501_v47 = vpop.permute.xlu1 %5500  }
 0x389   :  { %v10112_v62 = vld [vmem:[%s18446_s0 + $0x485] ss:$16 sm:%s6203_s2]   ;;  %v6201_v4 = vsel %vm6_vm0, %v10111_v59, %v10110_v56  ;;  %s6249_s2 = smov 48  ;;  %9946 = vst.msk [vmem:[%s18447_s1 + $0x98] sm:$0xff] %vm4929_vm12, %v5433_v39  }
 0x38a   :  { %v10113_v63 = vld [vmem:[%s18446_s0 + $0x485] ss:$16 sm:%s6208_s11]   ;;  %v6206_v0 = vsel %vm10_vm1, %v10112_v62, %v6201_v4  ;;  %s6254_s11 = smov 192  ;;  %9960 = vst.msk [vmem:[%s18447_s1 + $0x20] sm:$0xff] %vm5480_vm13, %v5501_v47  }
 0x38b   :  { %v10125_v42 = vld [vmem:[%s18446_s0 + $0xa85] ss:$16 sm:%s6264_s17]   ;;  %v6211_v46 = vsel %vm14_vm2, %v10113_v63, %v6206_v0  ;;  %s6310_s17 = smov 3 }
 0x38c   :  { %v10126_v1 = vld [vmem:[%s18446_s0 + $0xa85] ss:$16 sm:%s6267_s18]   ;;  %6212 = vrot.lane.b32.xlu0 %v6211_v46, %s10691_s15  ;;  %s6313_s18 = smov 12  ;;  %v5479_v53 = vpop.permute.xlu0 %5478  }
 0x38d   :  { %v6270_v2 = vsel %vm6_vm0, %v10126_v1, %v10125_v42  ;;  %v10127_v28 = vld [vmem:[%s18446_s0 + $0xa85] ss:$16 sm:%s6272_s14]   ;;  %s6318_s14 = smov 48  ;;  %5481 = vst.msk [vmem:[%s18447_s1] sm:$0xff] %vm5480_vm13, %v5479_v53  }
 0x38e   :  { %v10128_v3 = vld [vmem:[%s18446_s0 + $0xa85] ss:$16 sm:%s6277_s21]   ;;  %v6275_v7 = vsel %vm10_vm1, %v10127_v28, %v6270_v2  ;;  %s6323_s21 = smov 192  ;;  %v5547_v44 = vpop.permute.xlu1 %5546  }
 0x38f   :  { %v10120_v8 = vld [vmem:[%s18446_s0 + $0x885] ss:$16 sm:%s6241_s23]   ;;  %v6280_v9 = vsel %vm14_vm2, %v10128_v3, %v6275_v7  ;;  %s6287_s23 = smov 3  ;;  %9970 = vst.msk [vmem:[%s18447_s1 + $0x60] sm:$0xff] %vm5480_vm13, %v5547_v44  }
 0x390   :  { %v10121_v16 = vld [vmem:[%s18446_s0 + $0x885] ss:$16 sm:%s6244_s30]   ;;  %6281 = vrot.lane.b32.xlu1 %v6280_v9, %s10691_s15  ;;  %s6290_s30 = smov 12 }
 0x391   :  { %v10122_v54 = vld [vmem:[%s18446_s0 + $0x885] ss:$16 sm:%s6249_s2]   ;;  %v6247_v10 = vsel %vm6_vm0, %v10121_v16, %v10120_v8  ;;  %s6295_s2 = smov 48  ;;  %v5524_v5 = vpop.permute.xlu0 %5523  }
 0x392   :  { %v10123_v11 = vld [vmem:[%s18446_s0 + $0x885] ss:$16 sm:%s6254_s11]   ;;  %v6252_v36 = vsel %vm10_vm1, %v10122_v54, %v6247_v10  ;;  %s6300_s11 = smov 192  ;;  %9965 = vst.msk [vmem:[%s18447_s1 + $0x40] sm:$0xff] %vm5480_vm13, %v5524_v5  }
 0x393   :  { %v10135_v57 = vld [vmem:[%s18446_s0 + $0x305] ss:$16 sm:%s6310_s17]   ;;  %v6257_v17 = vsel %vm14_vm2, %v10123_v11, %v6252_v36  ;;  %s6356_s17 = smov 3 }
 0x394   :  { %v10136_v13 = vld [vmem:[%s18446_s0 + $0x305] ss:$16 sm:%s6313_s18]   ;;  %6258 = vrot.lane.b32.xlu0 %v6257_v17, %s10691_s15  ;;  %s6359_s18 = smov 12  ;;  %v5593_v12 = vpop.permute.xlu1 %5592  }
 0x395   :  { %v6316_v18 = vsel %vm6_vm0, %v10136_v13, %v10135_v57  ;;  %v10137_v19 = vld [vmem:[%s18446_s0 + $0x305] ss:$16 sm:%s6318_s14]   ;;  %s6364_s14 = smov 48  ;;  %9980 = vst.msk [vmem:[%s18447_s1 + $0xa0] sm:$0xff] %vm5480_vm13, %v5593_v12  }
 0x396   :  { %v10138_v20 = vld [vmem:[%s18446_s0 + $0x305] ss:$16 sm:%s6323_s21]   ;;  %v6321_v23 = vsel %vm10_vm1, %v10137_v19, %v6316_v18  ;;  %s6369_s21 = smov 192 }
 0x397   :  { %v10130_v26 = vld [vmem:[%s18446_s0 + $0x105] ss:$16 sm:%s6287_s23]   ;;  %v6326_v27 = vsel %vm14_vm2, %v10138_v20, %v6321_v23  ;;  %s6333_s23 = smov 3  ;;  %v5570_v21 = vpop.permute.xlu0 %5569  }
 0x398   :  { %v10131_v49 = vld [vmem:[%s18446_s0 + $0x105] ss:$16 sm:%s6290_s30]   ;;  %6327 = vrot.lane.b32.xlu1 %v6326_v27, %s10691_s15  ;;  %s6336_s30 = smov 12  ;;  %9975 = vst.msk [vmem:[%s18447_s1 + $0x80] sm:$0xff] %vm5480_vm13, %v5570_v21  }
 0x399   :  { %v10132_v24 = vld [vmem:[%s18446_s0 + $0x105] ss:$16 sm:%s6295_s2]   ;;  %v6293_v30 = vsel %vm6_vm0, %v10131_v49, %v10130_v26  ;;  %s6341_s2 = smov 48 }
 0x39a   :  { %v10133_v32 = vld [vmem:[%s18446_s0 + $0x105] ss:$16 sm:%s6300_s11]   ;;  %v6298_v33 = vsel %vm10_vm1, %v10132_v24, %v6293_v30  ;;  %s6346_s11 = smov 192 }
 0x39b   :  { %v10145_v34 = vld [vmem:[%s18446_s0 + $0x705] ss:$16 sm:%s6356_s17]   ;;  %v6303_v35 = vsel %vm14_vm2, %v10133_v32, %v6298_v33  ;;  %s6402_s17 = smov 3  ;;  %v5639_v29 = vpop.permute.xlu1 %5638  }
 0x39c   :  { %v10146_v25 = vld [vmem:[%s18446_s0 + $0x705] ss:$16 sm:%s6359_s18]   ;;  %6304 = vrot.lane.b32.xlu0 %v6303_v35, %s10691_s15  ;;  %s6405_s18 = smov 12  ;;  %9990 = vst.msk [vmem:[%s18447_s1 + $0x28] sm:$0xff] %vm5480_vm13, %v5639_v29  }
 0x39d   :  { %v6362_v60 = vsel %vm6_vm0, %v10146_v25, %v10145_v34  ;;  %v10147_v22 = vld [vmem:[%s18446_s0 + $0x705] ss:$16 sm:%s6364_s14]   ;;  %s6410_s14 = smov 48 }
 0x39e   :  { %v10148_v38 = vld [vmem:[%s18446_s0 + $0x705] ss:$16 sm:%s6369_s21]   ;;  %v6367_v61 = vsel %vm10_vm1, %v10147_v22, %v6362_v60  ;;  %s6415_s21 = smov 192 }
 0x39f   :  { %v10140_v40 = vld [vmem:[%s18446_s0 + $0x505] ss:$16 sm:%s6333_s23]   ;;  %v6372_v41 = vsel %vm14_vm2, %v10148_v38, %v6367_v61  ;;  %s6379_s23 = smov 3  ;;  %v5616_v39 = vpop.permute.xlu0 %5615  }
 0x3a0   :  { %v10141_v43 = vld [vmem:[%s18446_s0 + $0x505] ss:$16 sm:%s6336_s30]   ;;  %6373 = vrot.lane.b32.xlu1 %v6372_v41, %s10691_s15  ;;  %s6382_s30 = smov 12  ;;  %9985 = vst.msk [vmem:[%s18447_s1 + $0x8] sm:$0xff] %vm5480_vm13, %v5616_v39  }
 0x3a1   :  { %v10142_v45 = vld [vmem:[%s18446_s0 + $0x505] ss:$16 sm:%s6341_s2]   ;;  %v6339_v37 = vsel %vm6_vm0, %v10141_v43, %v10140_v40  ;;  %s6387_s2 = smov 48 }
 0x3a2   :  { %v10143_v48 = vld [vmem:[%s18446_s0 + $0x505] ss:$16 sm:%s6346_s11]   ;;  %v6344_v15 = vsel %vm10_vm1, %v10142_v45, %v6339_v37  ;;  %s6392_s11 = smov 192 }
 0x3a3   :  { %v10155_v50 = vld [vmem:[%s18446_s0 + $0xb05] ss:$16 sm:%s6402_s17]   ;;  %v6349_v6 = vsel %vm14_vm2, %v10143_v48, %v6344_v15  ;;  %s6448_s17 = smov 3  ;;  %v5685_v47 = vpop.permute.xlu1 %5684  }
 0x3a4   :  { %v10156_v51 = vld [vmem:[%s18446_s0 + $0xb05] ss:$16 sm:%s6405_s18]   ;;  %6350 = vrot.lane.b32.xlu0 %v6349_v6, %s10691_s15  ;;  %s6451_s18 = smov 12  ;;  %10000 = vst.msk [vmem:[%s18447_s1 + $0x68] sm:$0xff] %vm5480_vm13, %v5685_v47  }
 0x3a5   :  { %v6408_v52 = vsel %vm6_vm0, %v10156_v51, %v10155_v50  ;;  %v10157_v31 = vld [vmem:[%s18446_s0 + $0xb05] ss:$16 sm:%s6410_s14]   ;;  %s6456_s14 = smov 48 }
 0x3a6   :  { %v10158_v14 = vld [vmem:[%s18446_s0 + $0xb05] ss:$16 sm:%s6415_s21]   ;;  %v6413_v55 = vsel %vm10_vm1, %v10157_v31, %v6408_v52  ;;  %s6461_s21 = smov 192 }
 0x3a7   :  { %v10150_v56 = vld [vmem:[%s18446_s0 + $0x905] ss:$16 sm:%s6379_s23]   ;;  %v6418_v58 = vsel %vm14_vm2, %v10158_v14, %v6413_v55  ;;  %s6425_s23 = smov 3  ;;  %v5662_v53 = vpop.permute.xlu0 %5661  }
 0x3a8   :  { %v10151_v59 = vld [vmem:[%s18446_s0 + $0x905] ss:$16 sm:%s6382_s30]   ;;  %6419 = vrot.lane.b32.xlu1 %v6418_v58, %s10691_s15  ;;  %s6428_s30 = smov 12  ;;  %9995 = vst.msk [vmem:[%s18447_s1 + $0x48] sm:$0xff] %vm5480_vm13, %v5662_v53  }
 0x3a9   :  { %v10152_v62 = vld [vmem:[%s18446_s0 + $0x905] ss:$16 sm:%s6387_s2]   ;;  %v6385_v4 = vsel %vm6_vm0, %v10151_v59, %v10150_v56  ;;  %s6433_s2 = smov 48 }
 0x3aa   :  { %v10153_v63 = vld [vmem:[%s18446_s0 + $0x905] ss:$16 sm:%s6392_s11]   ;;  %v6390_v0 = vsel %vm10_vm1, %v10152_v62, %v6385_v4  ;;  %s6438_s11 = smov 192 }
 0x3ab   :  { %v10165_v42 = vld [vmem:[%s18446_s0 + $0x385] ss:$16 sm:%s6448_s17]   ;;  %v6395_v46 = vsel %vm14_vm2, %v10153_v63, %v6390_v0  ;;  %s6494_s17 = smov 3  ;;  %v5731_v44 = vpop.permute.xlu1 %5730  }
 0x3ac   :  { %v10166_v1 = vld [vmem:[%s18446_s0 + $0x385] ss:$16 sm:%s6451_s18]   ;;  %6396 = vrot.lane.b32.xlu0 %v6395_v46, %s10691_s15  ;;  %s6497_s18 = smov 12  ;;  %10010 = vst.msk [vmem:[%s18447_s1 + $0xa8] sm:$0xff] %vm5480_vm13, %v5731_v44  }
 0x3ad   :  { %v6454_v2 = vsel %vm6_vm0, %v10166_v1, %v10165_v42  ;;  %v10167_v28 = vld [vmem:[%s18446_s0 + $0x385] ss:$16 sm:%s6456_s14]   ;;  %s6502_s14 = smov 48  ;;  %v10204_v42 = vld [vmem:[%s18446_s0 + $0x604] ss:$16 sm:%s6631_s16]   ;;  %s6677_s16 = smov 3 }
 0x3ae   :  { %v10168_v3 = vld [vmem:[%s18446_s0 + $0x385] ss:$16 sm:%s6461_s21]   ;;  %v6459_v7 = vsel %vm10_vm1, %v10167_v28, %v6454_v2  ;;  %s6507_s21 = smov 192  ;;  %v10206_v28 = vld [vmem:[%s18446_s0 + $0x604] ss:$16 sm:%s6639_s13]   ;;  %s6685_s13 = smov 48 }
 0x3af   :  { %v10160_v8 = vld [vmem:[%s18446_s0 + $0x185] ss:$16 sm:%s6425_s23]   ;;  %v6464_v9 = vsel %vm14_vm2, %v10168_v3, %v6459_v7  ;;  %s6471_s23 = smov 3  ;;  %v5708_v5 = vpop.permute.xlu0 %5707  }
 0x3b0   :  { %v10161_v16 = vld [vmem:[%s18446_s0 + $0x185] ss:$16 sm:%s6428_s30]   ;;  %6465 = vrot.lane.b32.xlu1 %v6464_v9, %s10691_s15  ;;  %s6474_s30 = smov 12  ;;  %10005 = vst.msk [vmem:[%s18447_s1 + $0x88] sm:$0xff] %vm5480_vm13, %v5708_v5  }
 0x3b1   :  { %v10162_v54 = vld [vmem:[%s18446_s0 + $0x185] ss:$16 sm:%s6433_s2]   ;;  %v6431_v10 = vsel %vm6_vm0, %v10161_v16, %v10160_v8  ;;  %s6479_s2 = smov 48 }
 0x3b2   :  { %v10163_v11 = vld [vmem:[%s18446_s0 + $0x185] ss:$16 sm:%s6438_s11]   ;;  %v6436_v36 = vsel %vm10_vm1, %v10162_v54, %v6431_v10  ;;  %s6484_s11 = smov 192 }
 0x3b3   :  { %v10175_v57 = vld [vmem:[%s18446_s0 + $0x785] ss:$16 sm:%s6494_s17]   ;;  %v6441_v17 = vsel %vm14_vm2, %v10163_v11, %v6436_v36  ;;  %s6540_s17 = smov 3  ;;  %v5777_v12 = vpop.permute.xlu1 %5776  }
 0x3b4   :  { %v10176_v13 = vld [vmem:[%s18446_s0 + $0x785] ss:$16 sm:%s6497_s18]   ;;  %6442 = vrot.lane.b32.xlu0 %v6441_v17, %s10691_s15  ;;  %s6543_s18 = smov 12  ;;  %10020 = vst.msk [vmem:[%s18447_s1 + $0x30] sm:$0xff] %vm5480_vm13, %v5777_v12  }
 0x3b5   :  { %v6500_v18 = vsel %vm6_vm0, %v10176_v13, %v10175_v57  ;;  %v10177_v19 = vld [vmem:[%s18446_s0 + $0x785] ss:$16 sm:%s6502_s14]   ;;  %s6548_s14 = smov 48  ;;  %v10214_v57 = vld [vmem:[%s18446_s0 + $0xa04] ss:$16 sm:%s6677_s16]   ;;  %s6723_s16 = smov 3 }
 0x3b6   :  { %v10178_v20 = vld [vmem:[%s18446_s0 + $0x785] ss:$16 sm:%s6507_s21]   ;;  %v6505_v23 = vsel %vm10_vm1, %v10177_v19, %v6500_v18  ;;  %s6553_s21 = smov 192  ;;  %v10216_v19 = vld [vmem:[%s18446_s0 + $0xa04] ss:$16 sm:%s6685_s13]   ;;  %s6731_s13 = smov 48 }
 0x3b7   :  { %v10170_v26 = vld [vmem:[%s18446_s0 + $0x585] ss:$16 sm:%s6471_s23]   ;;  %v6510_v27 = vsel %vm14_vm2, %v10178_v20, %v6505_v23  ;;  %s6517_s23 = smov 3  ;;  %v5754_v21 = vpop.permute.xlu0 %5753  }
 0x3b8   :  { %v10171_v49 = vld [vmem:[%s18446_s0 + $0x585] ss:$16 sm:%s6474_s30]   ;;  %6511 = vrot.lane.b32.xlu1 %v6510_v27, %s10691_s15  ;;  %s6520_s30 = smov 12  ;;  %10015 = vst.msk [vmem:[%s18447_s1 + $0x10] sm:$0xff] %vm5480_vm13, %v5754_v21  }
 0x3b9   :  { %v10172_v24 = vld [vmem:[%s18446_s0 + $0x585] ss:$16 sm:%s6479_s2]   ;;  %v6477_v30 = vsel %vm6_vm0, %v10171_v49, %v10170_v26  ;;  %s6525_s2 = smov 48 }
 0x3ba   :  { %v10173_v32 = vld [vmem:[%s18446_s0 + $0x585] ss:$16 sm:%s6484_s11]   ;;  %v6482_v33 = vsel %vm10_vm1, %v10172_v24, %v6477_v30  ;;  %s6530_s11 = smov 192 }
 0x3bb   :  { %v10185_v34 = vld [vmem:[%s18446_s0 + $0xb85] ss:$16 sm:%s6540_s17]   ;;  %v6487_v35 = vsel %vm14_vm2, %v10173_v32, %v6482_v33  ;;  %s6585_s17 = smov 3  ;;  %v5823_v29 = vpop.permute.xlu1 %5822  }
 0x3bc   :  { %v10186_v25 = vld [vmem:[%s18446_s0 + $0xb85] ss:$16 sm:%s6543_s18]   ;;  %6488 = vrot.lane.b32.xlu0 %v6487_v35, %s10691_s15  ;;  %s6588_s18 = smov 12  ;;  %10030 = vst.msk [vmem:[%s18447_s1 + $0x70] sm:$0xff] %vm5480_vm13, %v5823_v29  }
 0x3bd   :  { %v6546_v60 = vsel %vm6_vm0, %v10186_v25, %v10185_v34  ;;  %v10187_v22 = vld [vmem:[%s18446_s0 + $0xb85] ss:$16 sm:%s6548_s14]   ;;  %s6593_s14 = smov 48  ;;  %v10194_v50 = vld [vmem:[%s18446_s0 + $0x204] ss:$16 sm:%s6585_s17]   ;;  %s6634_s17 = smov 12 }
 0x3be   :  { %v10188_v38 = vld [vmem:[%s18446_s0 + $0xb85] ss:$16 sm:%s6553_s21]   ;;  %v6551_v61 = vsel %vm10_vm1, %v10187_v22, %v6546_v60  ;;  %s6598_s21 = smov 192  ;;  %v10195_v51 = vld [vmem:[%s18446_s0 + $0x204] ss:$16 sm:%s6588_s18]  }
 0x3bf   :  { %v10180_v40 = vld [vmem:[%s18446_s0 + $0x985] ss:$16 sm:%s6517_s23]   ;;  %v6556_v41 = vsel %vm14_vm2, %v10188_v38, %v6551_v61  ;;  %s6563_s23 = smov 3  ;;  %v6591_v52 = vsel %vm6_vm0, %v10195_v51, %v10194_v50  ;;  %v10196_v31 = vld [vmem:[%s18446_s0 + $0x204] ss:$16 sm:%s6593_s14]   ;;  %s6644_s14 = smov 192  ;;  %v5800_v39 = vpop.permute.xlu0 %5799  }
 0x3c0   :  { %v10181_v43 = vld [vmem:[%s18446_s0 + $0x985] ss:$16 sm:%s6520_s30]   ;;  %6557 = vrot.lane.b32.xlu1 %v6556_v41, %s10691_s15  ;;  %s6566_s30 = smov 12  ;;  %v6596_v55 = vsel %vm10_vm1, %v10196_v31, %v6591_v52  ;;  %10025 = vst.msk [vmem:[%s18447_s1 + $0x50] sm:$0xff] %vm5480_vm13, %v5800_v39  }
 0x3c1   :  { %v10182_v45 = vld [vmem:[%s18446_s0 + $0x985] ss:$16 sm:%s6525_s2]   ;;  %v6523_v37 = vsel %vm6_vm0, %v10181_v43, %v10180_v40  ;;  %s6571_s2 = smov 48  ;;  %v10197_v14 = vld [vmem:[%s18446_s0 + $0x204] ss:$16 sm:%s6598_s21]   ;;  %s10692_s21 = smov 16  }
 0x3c2   :  { %v10183_v48 = vld [vmem:[%s18446_s0 + $0x985] ss:$16 sm:%s6530_s11]   ;;  %v6528_v15 = vsel %vm10_vm1, %v10182_v45, %v6523_v37  ;;  %s6576_s11 = smov 192  ;;  %v10190_v56 = vld [vmem:[%s18446_s0 + $0x4] ss:$16 sm:%s6563_s23]   ;;  %v6601_v58 = vsel %vm14_vm2, %v10197_v14, %v6596_v55  ;;  %s6608_s23 = smov 3 }
 0x3c3   :  { %v6533_v6 = vsel %vm14_vm2, %v10183_v48, %v6528_v15  ;;  %v10191_v59 = vld [vmem:[%s18446_s0 + $0x4] ss:$16 sm:%s6566_s30]   ;;  %s6611_s30 = smov 12  ;;  %v5869_v47 = vpop.permute.xlu1 %5868  }
 0x3c4   :  { %6534 = vrot.lane.b32.xlu0 %v6533_v6, %s10691_s15  ;;  %v10192_v62 = vld [vmem:[%s18446_s0 + $0x4] ss:$16 sm:%s6571_s2]   ;;  %6602 = vrot.lane.b32.xlu1 %v6601_v58, %s10692_s21  ;;  %v6569_v4 = vsel %vm6_vm0, %v10191_v59, %v10190_v56  ;;  %s6616_s2 = smov 48  ;;  %s7733_s15 = smov 3 }
 0x3c5   :  { %v10193_v63 = vld [vmem:[%s18446_s0 + $0x4] ss:$16 sm:%s6576_s11]   ;;  %v6574_v0 = vsel %vm10_vm1, %v10192_v62, %v6569_v4  ;;  %s6621_s11 = smov 192  ;;  %10040 = vst.msk [vmem:[%s18447_s1 + $0xb0] sm:$0xff] %vm5480_vm13, %v5869_v47  }
 0x3c6   :  { %v10205_v1 = vld [vmem:[%s18446_s0 + $0x604] ss:$16 sm:%s6634_s17]   ;;  %v6579_v46 = vsel %vm14_vm2, %v10193_v63, %v6574_v0  ;;  %s6680_s17 = smov 12 }
 0x3c7   :  { %v6637_v2 = vsel %vm6_vm0, %v10205_v1, %v10204_v42  ;;  %v10207_v3 = vld [vmem:[%s18446_s0 + $0x604] ss:$16 sm:%s6644_s14]   ;;  %s6690_s14 = smov 192  ;;  %v5846_v53 = vpop.permute.xlu0 %5845  }
 0x3c8   :  { %6580 = vrot.lane.b32.xlu0 %v6579_v46, %s10692_s21  ;;  %v6642_v7 = vsel %vm10_vm1, %v10206_v28, %v6637_v2  ;;  %v10199_v8 = vld [vmem:[%s18446_s0 + $0x404] ss:$16 sm:%s6608_s23]   ;;  %s6654_s23 = smov 3  ;;  %10035 = vst.msk [vmem:[%s18447_s1 + $0x90] sm:$0xff] %vm5480_vm13, %v5846_v53  }
 0x3c9   :  { %v6647_v9 = vsel %vm14_vm2, %v10207_v3, %v6642_v7  ;;  %v10200_v16 = vld [vmem:[%s18446_s0 + $0x404] ss:$16 sm:%s6611_s30]   ;;  %s6657_s30 = smov 12 }
 0x3ca   :  { %v10201_v54 = vld [vmem:[%s18446_s0 + $0x404] ss:$16 sm:%s6616_s2]   ;;  %6648 = vrot.lane.b32.xlu1 %v6647_v9, %s10692_s21  ;;  %v6614_v10 = vsel %vm6_vm0, %v10200_v16, %v10199_v8  ;;  %s6662_s2 = smov 48 }
 0x3cb   :  { %v10202_v11 = vld [vmem:[%s18446_s0 + $0x404] ss:$16 sm:%s6621_s11]   ;;  %v6619_v36 = vsel %vm10_vm1, %v10201_v54, %v6614_v10  ;;  %s6667_s11 = smov 192  ;;  %v5915_v44 = vpop.permute.xlu1 %5914  }
 0x3cc   :  { %v10215_v13 = vld [vmem:[%s18446_s0 + $0xa04] ss:$16 sm:%s6680_s17]   ;;  %v6624_v17 = vsel %vm14_vm2, %v10202_v11, %v6619_v36  ;;  %s6726_s17 = smov 12  ;;  %10050 = vst.msk [vmem:[%s18447_s1 + $0x38] sm:$0xff] %vm5480_vm13, %v5915_v44  }
 0x3cd   :  { %v6683_v18 = vsel %vm6_vm0, %v10215_v13, %v10214_v57  ;;  %v10217_v20 = vld [vmem:[%s18446_s0 + $0xa04] ss:$16 sm:%s6690_s14]   ;;  %6625 = vrot.lane.b32.xlu0 %v6624_v17, %s10692_s21  ;;  %s6736_s14 = smov 192 }
 0x3ce   :  { %v6688_v23 = vsel %vm10_vm1, %v10216_v19, %v6683_v18  ;;  %v10209_v26 = vld [vmem:[%s18446_s0 + $0x804] ss:$16 sm:%s6654_s23]   ;;  %s6700_s23 = smov 3 }
 0x3cf   :  { %v6693_v27 = vsel %vm14_vm2, %v10217_v20, %v6688_v23  ;;  %v10210_v49 = vld [vmem:[%s18446_s0 + $0x804] ss:$16 sm:%s6657_s30]   ;;  %s6703_s30 = smov 12  ;;  %v5892_v5 = vpop.permute.xlu0 %5891  }
 0x3d0   :  { %v10211_v24 = vld [vmem:[%s18446_s0 + $0x804] ss:$16 sm:%s6662_s2]   ;;  %6694 = vrot.lane.b32.xlu1 %v6693_v27, %s10692_s21  ;;  %v6660_v30 = vsel %vm6_vm0, %v10210_v49, %v10209_v26  ;;  %s6708_s2 = smov 48  ;;  %10045 = vst.msk [vmem:[%s18447_s1 + $0x18] sm:$0xff] %vm5480_vm13, %v5892_v5  }
 0x3d1   :  { %v10212_v32 = vld [vmem:[%s18446_s0 + $0x804] ss:$16 sm:%s6667_s11]   ;;  %v6665_v33 = vsel %vm10_vm1, %v10211_v24, %v6660_v30  ;;  %s6713_s11 = smov 192 }
 0x3d2   :  { %v10224_v34 = vld [vmem:[%s18446_s0 + $0x284] ss:$16 sm:%s6723_s16]   ;;  %v6670_v35 = vsel %vm14_vm2, %v10212_v32, %v6665_v33  ;;  %s6769_s16 = smov 3 }
 0x3d3   :  { %v10225_v25 = vld [vmem:[%s18446_s0 + $0x284] ss:$16 sm:%s6726_s17]   ;;  %6671 = vrot.lane.b32.xlu0 %v6670_v35, %s10692_s21  ;;  %s6772_s17 = smov 12  ;;  %v5961_v12 = vpop.permute.xlu1 %5960  }
 0x3d4   :  { %v6729_v60 = vsel %vm6_vm0, %v10225_v25, %v10224_v34  ;;  %v10226_v22 = vld [vmem:[%s18446_s0 + $0x284] ss:$16 sm:%s6731_s13]   ;;  %s6777_s13 = smov 48  ;;  %10060 = vst.msk [vmem:[%s18447_s1 + $0x78] sm:$0xff] %vm5480_vm13, %v5961_v12  }
 0x3d5   :  { %v10227_v38 = vld [vmem:[%s18446_s0 + $0x284] ss:$16 sm:%s6736_s14]   ;;  %v6734_v61 = vsel %vm10_vm1, %v10226_v22, %v6729_v60  ;;  %s6782_s14 = smov 192 }
 0x3d6   :  { %v10219_v40 = vld [vmem:[%s18446_s0 + $0x84] ss:$16 sm:%s6700_s23]   ;;  %v6739_v41 = vsel %vm14_vm2, %v10227_v38, %v6734_v61  ;;  %s6746_s23 = smov 3 }
 0x3d7   :  { %v10220_v43 = vld [vmem:[%s18446_s0 + $0x84] ss:$16 sm:%s6703_s30]   ;;  %6740 = vrot.lane.b32.xlu1 %v6739_v41, %s10692_s21  ;;  %s6749_s30 = smov 12  ;;  %v5938_v21 = vpop.permute.xlu0 %5937  }
 0x3d8   :  { %v10221_v45 = vld [vmem:[%s18446_s0 + $0x84] ss:$16 sm:%s6708_s2]   ;;  %v6706_v37 = vsel %vm6_vm0, %v10220_v43, %v10219_v40  ;;  %s6754_s2 = smov 48  ;;  %10055 = vst.msk [vmem:[%s18447_s1 + $0x58] sm:$0xff] %vm5480_vm13, %v5938_v21  }
 0x3d9   :  { %v10222_v48 = vld [vmem:[%s18446_s0 + $0x84] ss:$16 sm:%s6713_s11]   ;;  %v6711_v15 = vsel %vm10_vm1, %v10221_v45, %v6706_v37  ;;  %s6759_s11 = smov 192 }
 0x3da   :  { %v10234_v50 = vld [vmem:[%s18446_s0 + $0x684] ss:$16 sm:%s6769_s16]   ;;  %v6716_v6 = vsel %vm14_vm2, %v10222_v48, %v6711_v15  ;;  %s6815_s16 = smov 3 }
 0x3db   :  { %v10235_v51 = vld [vmem:[%s18446_s0 + $0x684] ss:$16 sm:%s6772_s17]   ;;  %6717 = vrot.lane.b32.xlu0 %v6716_v6, %s10692_s21  ;;  %s6818_s17 = smov 12  ;;  %v6007_v29 = vpop.permute.xlu1 %6006  }
 0x3dc   :  { %v6775_v52 = vsel %vm6_vm0, %v10235_v51, %v10234_v50  ;;  %v10236_v31 = vld [vmem:[%s18446_s0 + $0x684] ss:$16 sm:%s6777_s13]   ;;  %s6823_s13 = smov 48  ;;  %10070 = vst.msk [vmem:[%s18447_s1 + $0xb8] sm:$0xff] %vm5480_vm13, %v6007_v29  }
 0x3dd   :  { %v10237_v14 = vld [vmem:[%s18446_s0 + $0x684] ss:$16 sm:%s6782_s14]   ;;  %v6780_v55 = vsel %vm10_vm1, %v10236_v31, %v6775_v52  ;;  %s6828_s14 = smov 192 }
 0x3de   :  { %v10229_v56 = vld [vmem:[%s18446_s0 + $0x484] ss:$16 sm:%s6746_s23]   ;;  %v6785_v58 = vsel %vm14_vm2, %v10237_v14, %v6780_v55  ;;  %s6792_s23 = smov 3 }
 0x3df   :  { %v10230_v59 = vld [vmem:[%s18446_s0 + $0x484] ss:$16 sm:%s6749_s30]   ;;  %6786 = vrot.lane.b32.xlu1 %v6785_v58, %s10692_s21  ;;  %s6795_s30 = smov 12  ;;  %v5984_v39 = vpop.permute.xlu0 %5983   ;;  %v6052_v47 = vpop.permute.xlu1 %6051  }
 0x3e0   :  { %v10231_v62 = vld [vmem:[%s18446_s0 + $0x484] ss:$16 sm:%s6754_s2]   ;;  %v6752_v4 = vsel %vm6_vm0, %v10230_v59, %v10229_v56  ;;  %s6800_s2 = smov 48  ;;  %10065 = vst.msk [vmem:[%s18447_s1 + $0x98] sm:$0xff] %vm5480_vm13, %v5984_v39  }
 0x3e1   :  { %v10232_v63 = vld [vmem:[%s18446_s0 + $0x484] ss:$16 sm:%s6759_s11]   ;;  %v6757_v0 = vsel %vm10_vm1, %v10231_v62, %v6752_v4  ;;  %s6805_s11 = smov 192  ;;  %10079 = vst.msk [vmem:[%s18447_s1 + $0x20] sm:$0xff] %vm6031_vm14, %v6052_v47  }
 0x3e2   :  { %v10244_v42 = vld [vmem:[%s18446_s0 + $0xa84] ss:$16 sm:%s6815_s16]   ;;  %v6762_v46 = vsel %vm14_vm2, %v10232_v63, %v6757_v0  ;;  %s6861_s16 = smov 3 }
 0x3e3   :  { %v10245_v1 = vld [vmem:[%s18446_s0 + $0xa84] ss:$16 sm:%s6818_s17]   ;;  %6763 = vrot.lane.b32.xlu0 %v6762_v46, %s10692_s21  ;;  %s6864_s17 = smov 12  ;;  %v6030_v53 = vpop.permute.xlu0 %6029  }
 0x3e4   :  { %v6821_v2 = vsel %vm6_vm0, %v10245_v1, %v10244_v42  ;;  %v10246_v28 = vld [vmem:[%s18446_s0 + $0xa84] ss:$16 sm:%s6823_s13]   ;;  %s6869_s13 = smov 48  ;;  %6032 = vst.msk [vmem:[%s18447_s1] sm:$0xff] %vm6031_vm14, %v6030_v53  }
 0x3e5   :  { %v10247_v3 = vld [vmem:[%s18446_s0 + $0xa84] ss:$16 sm:%s6828_s14]   ;;  %v6826_v7 = vsel %vm10_vm1, %v10246_v28, %v6821_v2  ;;  %s6874_s14 = smov 192  ;;  %v6098_v44 = vpop.permute.xlu1 %6097  }
 0x3e6   :  { %v10239_v8 = vld [vmem:[%s18446_s0 + $0x884] ss:$16 sm:%s6792_s23]   ;;  %v6831_v9 = vsel %vm14_vm2, %v10247_v3, %v6826_v7  ;;  %s6838_s23 = smov 3  ;;  %10089 = vst.msk [vmem:[%s18447_s1 + $0x60] sm:$0xff] %vm6031_vm14, %v6098_v44  }
 0x3e7   :  { %v10240_v16 = vld [vmem:[%s18446_s0 + $0x884] ss:$16 sm:%s6795_s30]   ;;  %6832 = vrot.lane.b32.xlu1 %v6831_v9, %s10692_s21  ;;  %s6841_s30 = smov 12 }
 0x3e8   :  { %v10241_v54 = vld [vmem:[%s18446_s0 + $0x884] ss:$16 sm:%s6800_s2]   ;;  %v6798_v10 = vsel %vm6_vm0, %v10240_v16, %v10239_v8  ;;  %s6846_s2 = smov 48  ;;  %v6075_v5 = vpop.permute.xlu0 %6074  }
 0x3e9   :  { %v10242_v11 = vld [vmem:[%s18446_s0 + $0x884] ss:$16 sm:%s6805_s11]   ;;  %v6803_v36 = vsel %vm10_vm1, %v10241_v54, %v6798_v10  ;;  %s6851_s11 = smov 192  ;;  %10084 = vst.msk [vmem:[%s18447_s1 + $0x40] sm:$0xff] %vm6031_vm14, %v6075_v5  }
 0x3ea   :  { %v10254_v57 = vld [vmem:[%s18446_s0 + $0x304] ss:$16 sm:%s6861_s16]   ;;  %v6808_v17 = vsel %vm14_vm2, %v10242_v11, %v6803_v36  ;;  %s6907_s16 = smov 3 }
 0x3eb   :  { %v10255_v13 = vld [vmem:[%s18446_s0 + $0x304] ss:$16 sm:%s6864_s17]   ;;  %6809 = vrot.lane.b32.xlu0 %v6808_v17, %s10692_s21  ;;  %s6910_s17 = smov 12  ;;  %v6144_v12 = vpop.permute.xlu1 %6143  }
 0x3ec   :  { %v6867_v18 = vsel %vm6_vm0, %v10255_v13, %v10254_v57  ;;  %v10256_v19 = vld [vmem:[%s18446_s0 + $0x304] ss:$16 sm:%s6869_s13]   ;;  %s6915_s13 = smov 48  ;;  %10099 = vst.msk [vmem:[%s18447_s1 + $0xa0] sm:$0xff] %vm6031_vm14, %v6144_v12  }
 0x3ed   :  { %v10257_v20 = vld [vmem:[%s18446_s0 + $0x304] ss:$16 sm:%s6874_s14]   ;;  %v6872_v23 = vsel %vm10_vm1, %v10256_v19, %v6867_v18  ;;  %s6920_s14 = smov 192 }
 0x3ee   :  { %v10249_v26 = vld [vmem:[%s18446_s0 + $0x104] ss:$16 sm:%s6838_s23]   ;;  %v6877_v27 = vsel %vm14_vm2, %v10257_v20, %v6872_v23  ;;  %s6884_s23 = smov 3  ;;  %v6121_v21 = vpop.permute.xlu0 %6120  }
 0x3ef   :  { %v10250_v49 = vld [vmem:[%s18446_s0 + $0x104] ss:$16 sm:%s6841_s30]   ;;  %6878 = vrot.lane.b32.xlu1 %v6877_v27, %s10692_s21  ;;  %s6887_s30 = smov 12  ;;  %10094 = vst.msk [vmem:[%s18447_s1 + $0x80] sm:$0xff] %vm6031_vm14, %v6121_v21  }
 0x3f0   :  { %v10251_v24 = vld [vmem:[%s18446_s0 + $0x104] ss:$16 sm:%s6846_s2]   ;;  %v6844_v30 = vsel %vm6_vm0, %v10250_v49, %v10249_v26  ;;  %s6892_s2 = smov 48 }
 0x3f1   :  { %v10252_v32 = vld [vmem:[%s18446_s0 + $0x104] ss:$16 sm:%s6851_s11]   ;;  %v6849_v33 = vsel %vm10_vm1, %v10251_v24, %v6844_v30  ;;  %s6897_s11 = smov 192 }
 0x3f2   :  { %v10264_v34 = vld [vmem:[%s18446_s0 + $0x704] ss:$16 sm:%s6907_s16]   ;;  %v6854_v35 = vsel %vm14_vm2, %v10252_v32, %v6849_v33  ;;  %s6953_s16 = smov 3  ;;  %v6190_v29 = vpop.permute.xlu1 %6189  }
 0x3f3   :  { %v10265_v25 = vld [vmem:[%s18446_s0 + $0x704] ss:$16 sm:%s6910_s17]   ;;  %6855 = vrot.lane.b32.xlu0 %v6854_v35, %s10692_s21  ;;  %s6956_s17 = smov 12  ;;  %10109 = vst.msk [vmem:[%s18447_s1 + $0x28] sm:$0xff] %vm6031_vm14, %v6190_v29  }
 0x3f4   :  { %v6913_v60 = vsel %vm6_vm0, %v10265_v25, %v10264_v34  ;;  %v10266_v22 = vld [vmem:[%s18446_s0 + $0x704] ss:$16 sm:%s6915_s13]   ;;  %s6961_s13 = smov 48 }
 0x3f5   :  { %v10267_v38 = vld [vmem:[%s18446_s0 + $0x704] ss:$16 sm:%s6920_s14]   ;;  %v6918_v61 = vsel %vm10_vm1, %v10266_v22, %v6913_v60  ;;  %s6966_s14 = smov 192 }
 0x3f6   :  { %v10259_v40 = vld [vmem:[%s18446_s0 + $0x504] ss:$16 sm:%s6884_s23]   ;;  %v6923_v41 = vsel %vm14_vm2, %v10267_v38, %v6918_v61  ;;  %s6930_s23 = smov 3  ;;  %v6167_v39 = vpop.permute.xlu0 %6166  }
 0x3f7   :  { %v10260_v43 = vld [vmem:[%s18446_s0 + $0x504] ss:$16 sm:%s6887_s30]   ;;  %6924 = vrot.lane.b32.xlu1 %v6923_v41, %s10692_s21  ;;  %s6933_s30 = smov 12  ;;  %10104 = vst.msk [vmem:[%s18447_s1 + $0x8] sm:$0xff] %vm6031_vm14, %v6167_v39  }
 0x3f8   :  { %v10261_v45 = vld [vmem:[%s18446_s0 + $0x504] ss:$16 sm:%s6892_s2]   ;;  %v6890_v37 = vsel %vm6_vm0, %v10260_v43, %v10259_v40  ;;  %s6938_s2 = smov 48 }
 0x3f9   :  { %v10262_v48 = vld [vmem:[%s18446_s0 + $0x504] ss:$16 sm:%s6897_s11]   ;;  %v6895_v15 = vsel %vm10_vm1, %v10261_v45, %v6890_v37  ;;  %s6943_s11 = smov 192 }
 0x3fa   :  { %v10274_v50 = vld [vmem:[%s18446_s0 + $0xb04] ss:$16 sm:%s6953_s16]   ;;  %v6900_v6 = vsel %vm14_vm2, %v10262_v48, %v6895_v15  ;;  %s6999_s16 = smov 3  ;;  %v6236_v47 = vpop.permute.xlu1 %6235  }
 0x3fb   :  { %v10275_v51 = vld [vmem:[%s18446_s0 + $0xb04] ss:$16 sm:%s6956_s17]   ;;  %6901 = vrot.lane.b32.xlu0 %v6900_v6, %s10692_s21  ;;  %s7002_s17 = smov 12  ;;  %10119 = vst.msk [vmem:[%s18447_s1 + $0x68] sm:$0xff] %vm6031_vm14, %v6236_v47  }
 0x3fc   :  { %v6959_v52 = vsel %vm6_vm0, %v10275_v51, %v10274_v50  ;;  %v10276_v31 = vld [vmem:[%s18446_s0 + $0xb04] ss:$16 sm:%s6961_s13]   ;;  %s7007_s13 = smov 48 }
 0x3fd   :  { %v10277_v14 = vld [vmem:[%s18446_s0 + $0xb04] ss:$16 sm:%s6966_s14]   ;;  %v6964_v55 = vsel %vm10_vm1, %v10276_v31, %v6959_v52  ;;  %s7012_s14 = smov 192 }
 0x3fe   :  { %v10269_v56 = vld [vmem:[%s18446_s0 + $0x904] ss:$16 sm:%s6930_s23]   ;;  %v6969_v58 = vsel %vm14_vm2, %v10277_v14, %v6964_v55  ;;  %s6976_s23 = smov 3  ;;  %v6213_v53 = vpop.permute.xlu0 %6212  }
 0x3ff   :  { %v10270_v59 = vld [vmem:[%s18446_s0 + $0x904] ss:$16 sm:%s6933_s30]   ;;  %6970 = vrot.lane.b32.xlu1 %v6969_v58, %s10692_s21  ;;  %s6979_s30 = smov 12  ;;  %10114 = vst.msk [vmem:[%s18447_s1 + $0x48] sm:$0xff] %vm6031_vm14, %v6213_v53  }
 0x400   :  { %v10271_v62 = vld [vmem:[%s18446_s0 + $0x904] ss:$16 sm:%s6938_s2]   ;;  %v6936_v4 = vsel %vm6_vm0, %v10270_v59, %v10269_v56  ;;  %s6984_s2 = smov 48 }
 0x401   :  { %v10272_v63 = vld [vmem:[%s18446_s0 + $0x904] ss:$16 sm:%s6943_s11]   ;;  %v6941_v0 = vsel %vm10_vm1, %v10271_v62, %v6936_v4  ;;  %s6989_s11 = smov 192 }
 0x402   :  { %v10284_v42 = vld [vmem:[%s18446_s0 + $0x384] ss:$16 sm:%s6999_s16]   ;;  %v6946_v46 = vsel %vm14_vm2, %v10272_v63, %v6941_v0  ;;  %s7045_s16 = smov 3  ;;  %v6282_v44 = vpop.permute.xlu1 %6281  }
 0x403   :  { %v10285_v1 = vld [vmem:[%s18446_s0 + $0x384] ss:$16 sm:%s7002_s17]   ;;  %6947 = vrot.lane.b32.xlu0 %v6946_v46, %s10692_s21  ;;  %s7048_s17 = smov 12  ;;  %10129 = vst.msk [vmem:[%s18447_s1 + $0xa8] sm:$0xff] %vm6031_vm14, %v6282_v44  }
 0x404   :  { %v7005_v2 = vsel %vm6_vm0, %v10285_v1, %v10284_v42  ;;  %v10286_v28 = vld [vmem:[%s18446_s0 + $0x384] ss:$16 sm:%s7007_s13]   ;;  %s7053_s13 = smov 48  ;;  %v10323_v42 = vld [vmem:[%s18446_s0 + $0x603] ss:$16 sm:%s7182_s19]   ;;  %s7228_s19 = smov 3 }
 0x405   :  { %v10287_v3 = vld [vmem:[%s18446_s0 + $0x384] ss:$16 sm:%s7012_s14]   ;;  %v7010_v7 = vsel %vm10_vm1, %v10286_v28, %v7005_v2  ;;  %s7058_s14 = smov 192  ;;  %v10325_v28 = vld [vmem:[%s18446_s0 + $0x603] ss:$16 sm:%s7190_s12]   ;;  %s7236_s12 = smov 48 }
 0x406   :  { %v10279_v8 = vld [vmem:[%s18446_s0 + $0x184] ss:$16 sm:%s6976_s23]   ;;  %v7015_v9 = vsel %vm14_vm2, %v10287_v3, %v7010_v7  ;;  %s7022_s23 = smov 3  ;;  %v6259_v5 = vpop.permute.xlu0 %6258  }
 0x407   :  { %v10280_v16 = vld [vmem:[%s18446_s0 + $0x184] ss:$16 sm:%s6979_s30]   ;;  %7016 = vrot.lane.b32.xlu1 %v7015_v9, %s10692_s21  ;;  %s7025_s30 = smov 12  ;;  %10124 = vst.msk [vmem:[%s18447_s1 + $0x88] sm:$0xff] %vm6031_vm14, %v6259_v5  }
 0x408   :  { %v10281_v54 = vld [vmem:[%s18446_s0 + $0x184] ss:$16 sm:%s6984_s2]   ;;  %v6982_v10 = vsel %vm6_vm0, %v10280_v16, %v10279_v8  ;;  %s7030_s2 = smov 48 }
 0x409   :  { %v10282_v11 = vld [vmem:[%s18446_s0 + $0x184] ss:$16 sm:%s6989_s11]   ;;  %v6987_v36 = vsel %vm10_vm1, %v10281_v54, %v6982_v10  ;;  %s7035_s11 = smov 192 }
 0x40a   :  { %v10294_v57 = vld [vmem:[%s18446_s0 + $0x784] ss:$16 sm:%s7045_s16]   ;;  %v6992_v17 = vsel %vm14_vm2, %v10282_v11, %v6987_v36  ;;  %s7091_s16 = smov 3  ;;  %v6328_v12 = vpop.permute.xlu1 %6327  }
 0x40b   :  { %v10295_v13 = vld [vmem:[%s18446_s0 + $0x784] ss:$16 sm:%s7048_s17]   ;;  %6993 = vrot.lane.b32.xlu0 %v6992_v17, %s10692_s21  ;;  %s7094_s17 = smov 12  ;;  %10139 = vst.msk [vmem:[%s18447_s1 + $0x30] sm:$0xff] %vm6031_vm14, %v6328_v12  }
 0x40c   :  { %v7051_v18 = vsel %vm6_vm0, %v10295_v13, %v10294_v57  ;;  %v10296_v19 = vld [vmem:[%s18446_s0 + $0x784] ss:$16 sm:%s7053_s13]   ;;  %s7099_s13 = smov 48  ;;  %v10333_v57 = vld [vmem:[%s18446_s0 + $0xa03] ss:$16 sm:%s7228_s19]   ;;  %s7274_s19 = smov 3 }
 0x40d   :  { %v10297_v20 = vld [vmem:[%s18446_s0 + $0x784] ss:$16 sm:%s7058_s14]   ;;  %v7056_v23 = vsel %vm10_vm1, %v10296_v19, %v7051_v18  ;;  %s7104_s14 = smov 192  ;;  %v10335_v19 = vld [vmem:[%s18446_s0 + $0xa03] ss:$16 sm:%s7236_s12]   ;;  %s7282_s12 = smov 48 }
 0x40e   :  { %v10289_v26 = vld [vmem:[%s18446_s0 + $0x584] ss:$16 sm:%s7022_s23]   ;;  %v7061_v27 = vsel %vm14_vm2, %v10297_v20, %v7056_v23  ;;  %s7068_s23 = smov 3  ;;  %v6305_v21 = vpop.permute.xlu0 %6304  }
 0x40f   :  { %v10290_v49 = vld [vmem:[%s18446_s0 + $0x584] ss:$16 sm:%s7025_s30]   ;;  %7062 = vrot.lane.b32.xlu1 %v7061_v27, %s10692_s21  ;;  %s7071_s30 = smov 12  ;;  %10134 = vst.msk [vmem:[%s18447_s1 + $0x10] sm:$0xff] %vm6031_vm14, %v6305_v21  }
 0x410   :  { %v10291_v24 = vld [vmem:[%s18446_s0 + $0x584] ss:$16 sm:%s7030_s2]   ;;  %v7028_v30 = vsel %vm6_vm0, %v10290_v49, %v10289_v26  ;;  %s7076_s2 = smov 48 }
 0x411   :  { %v10292_v32 = vld [vmem:[%s18446_s0 + $0x584] ss:$16 sm:%s7035_s11]   ;;  %v7033_v33 = vsel %vm10_vm1, %v10291_v24, %v7028_v30  ;;  %s7081_s11 = smov 192 }
 0x412   :  { %v10304_v34 = vld [vmem:[%s18446_s0 + $0xb84] ss:$16 sm:%s7091_s16]   ;;  %v7038_v35 = vsel %vm14_vm2, %v10292_v32, %v7033_v33  ;;  %s7136_s16 = smov 3  ;;  %v6374_v29 = vpop.permute.xlu1 %6373  }
 0x413   :  { %v10305_v25 = vld [vmem:[%s18446_s0 + $0xb84] ss:$16 sm:%s7094_s17]   ;;  %7039 = vrot.lane.b32.xlu0 %v7038_v35, %s10692_s21  ;;  %s7139_s17 = smov 12  ;;  %10149 = vst.msk [vmem:[%s18447_s1 + $0x70] sm:$0xff] %vm6031_vm14, %v6374_v29  }
 0x414   :  { %v7097_v60 = vsel %vm6_vm0, %v10305_v25, %v10304_v34  ;;  %v10306_v22 = vld [vmem:[%s18446_s0 + $0xb84] ss:$16 sm:%s7099_s13]   ;;  %s7144_s13 = smov 48  ;;  %v10313_v50 = vld [vmem:[%s18446_s0 + $0x203] ss:$16 sm:%s7136_s16]   ;;  %s7185_s16 = smov 12 }
 0x415   :  { %v10307_v38 = vld [vmem:[%s18446_s0 + $0xb84] ss:$16 sm:%s7104_s14]   ;;  %v7102_v61 = vsel %vm10_vm1, %v10306_v22, %v7097_v60  ;;  %s7149_s14 = smov 192  ;;  %v10314_v51 = vld [vmem:[%s18446_s0 + $0x203] ss:$16 sm:%s7139_s17]  }
 0x416   :  { %v10299_v40 = vld [vmem:[%s18446_s0 + $0x984] ss:$16 sm:%s7068_s23]   ;;  %v7107_v41 = vsel %vm14_vm2, %v10307_v38, %v7102_v61  ;;  %s7114_s23 = smov 3  ;;  %v7142_v52 = vsel %vm6_vm0, %v10314_v51, %v10313_v50  ;;  %v10315_v31 = vld [vmem:[%s18446_s0 + $0x203] ss:$16 sm:%s7144_s13]   ;;  %s7195_s13 = smov 192  ;;  %v6351_v39 = vpop.permute.xlu0 %6350  }
 0x417   :  { %v10300_v43 = vld [vmem:[%s18446_s0 + $0x984] ss:$16 sm:%s7071_s30]   ;;  %7108 = vrot.lane.b32.xlu1 %v7107_v41, %s10692_s21  ;;  %s7117_s30 = smov 12  ;;  %v7147_v55 = vsel %vm10_vm1, %v10315_v31, %v7142_v52  ;;  %10144 = vst.msk [vmem:[%s18447_s1 + $0x50] sm:$0xff] %vm6031_vm14, %v6351_v39  }
 0x418   :  { %v10301_v45 = vld [vmem:[%s18446_s0 + $0x984] ss:$16 sm:%s7076_s2]   ;;  %v7074_v37 = vsel %vm6_vm0, %v10300_v43, %v10299_v40  ;;  %s7122_s2 = smov 48  ;;  %v10316_v14 = vld [vmem:[%s18446_s0 + $0x203] ss:$16 sm:%s7149_s14]   ;;  %s10693_s14 = smov 12  }
 0x419   :  { %v10302_v48 = vld [vmem:[%s18446_s0 + $0x984] ss:$16 sm:%s7081_s11]   ;;  %v7079_v15 = vsel %vm10_vm1, %v10301_v45, %v7074_v37  ;;  %s7127_s11 = smov 192  ;;  %v10309_v56 = vld [vmem:[%s18446_s0 + $0x3] ss:$16 sm:%s7114_s23]   ;;  %v7152_v58 = vsel %vm14_vm2, %v10316_v14, %v7147_v55  ;;  %s7159_s23 = smov 3 }
 0x41a   :  { %v7084_v6 = vsel %vm14_vm2, %v10302_v48, %v7079_v15  ;;  %v10310_v59 = vld [vmem:[%s18446_s0 + $0x3] ss:$16 sm:%s7117_s30]   ;;  %s7162_s30 = smov 12  ;;  %v6420_v47 = vpop.permute.xlu1 %6419  }
 0x41b   :  { %7085 = vrot.lane.b32.xlu0 %v7084_v6, %s10692_s21  ;;  %v10311_v62 = vld [vmem:[%s18446_s0 + $0x3] ss:$16 sm:%s7122_s2]   ;;  %7153 = vrot.lane.b32.xlu1 %v7152_v58, %s10693_s14  ;;  %v7120_v4 = vsel %vm6_vm0, %v10310_v59, %v10309_v56  ;;  %s7167_s2 = smov 48  ;;  %s8284_s21 = smov 3 }
 0x41c   :  { %v10312_v63 = vld [vmem:[%s18446_s0 + $0x3] ss:$16 sm:%s7127_s11]   ;;  %v7125_v0 = vsel %vm10_vm1, %v10311_v62, %v7120_v4  ;;  %s7172_s11 = smov 192  ;;  %10159 = vst.msk [vmem:[%s18447_s1 + $0xb0] sm:$0xff] %vm6031_vm14, %v6420_v47  }
 0x41d   :  { %v10324_v1 = vld [vmem:[%s18446_s0 + $0x603] ss:$16 sm:%s7185_s16]   ;;  %v7130_v46 = vsel %vm14_vm2, %v10312_v63, %v7125_v0  ;;  %s7231_s16 = smov 12 }
 0x41e   :  { %v7188_v2 = vsel %vm6_vm0, %v10324_v1, %v10323_v42  ;;  %v10326_v3 = vld [vmem:[%s18446_s0 + $0x603] ss:$16 sm:%s7195_s13]   ;;  %s7241_s13 = smov 192  ;;  %v6397_v53 = vpop.permute.xlu0 %6396  }
 0x41f   :  { %7131 = vrot.lane.b32.xlu0 %v7130_v46, %s10693_s14  ;;  %v7193_v7 = vsel %vm10_vm1, %v10325_v28, %v7188_v2  ;;  %v10318_v8 = vld [vmem:[%s18446_s0 + $0x403] ss:$16 sm:%s7159_s23]   ;;  %s7205_s23 = smov 3  ;;  %10154 = vst.msk [vmem:[%s18447_s1 + $0x90] sm:$0xff] %vm6031_vm14, %v6397_v53  }
 0x420   :  { %v7198_v9 = vsel %vm14_vm2, %v10326_v3, %v7193_v7  ;;  %v10319_v16 = vld [vmem:[%s18446_s0 + $0x403] ss:$16 sm:%s7162_s30]   ;;  %s7208_s30 = smov 12 }
 0x421   :  { %v10320_v54 = vld [vmem:[%s18446_s0 + $0x403] ss:$16 sm:%s7167_s2]   ;;  %7199 = vrot.lane.b32.xlu1 %v7198_v9, %s10693_s14  ;;  %v7165_v10 = vsel %vm6_vm0, %v10319_v16, %v10318_v8  ;;  %s7213_s2 = smov 48 }
 0x422   :  { %v10321_v11 = vld [vmem:[%s18446_s0 + $0x403] ss:$16 sm:%s7172_s11]   ;;  %v7170_v36 = vsel %vm10_vm1, %v10320_v54, %v7165_v10  ;;  %s7218_s11 = smov 192  ;;  %v6466_v44 = vpop.permute.xlu1 %6465  }
 0x423   :  { %v10334_v13 = vld [vmem:[%s18446_s0 + $0xa03] ss:$16 sm:%s7231_s16]   ;;  %v7175_v17 = vsel %vm14_vm2, %v10321_v11, %v7170_v36  ;;  %s7277_s16 = smov 12  ;;  %10169 = vst.msk [vmem:[%s18447_s1 + $0x38] sm:$0xff] %vm6031_vm14, %v6466_v44  }
 0x424   :  { %v7234_v18 = vsel %vm6_vm0, %v10334_v13, %v10333_v57  ;;  %v10336_v20 = vld [vmem:[%s18446_s0 + $0xa03] ss:$16 sm:%s7241_s13]   ;;  %7176 = vrot.lane.b32.xlu0 %v7175_v17, %s10693_s14  ;;  %s7287_s13 = smov 192 }
 0x425   :  { %v7239_v23 = vsel %vm10_vm1, %v10335_v19, %v7234_v18  ;;  %v10328_v26 = vld [vmem:[%s18446_s0 + $0x803] ss:$16 sm:%s7205_s23]   ;;  %s7251_s23 = smov 3 }
 0x426   :  { %v7244_v27 = vsel %vm14_vm2, %v10336_v20, %v7239_v23  ;;  %v10329_v49 = vld [vmem:[%s18446_s0 + $0x803] ss:$16 sm:%s7208_s30]   ;;  %s7254_s30 = smov 12  ;;  %v6443_v5 = vpop.permute.xlu0 %6442  }
 0x427   :  { %v10330_v24 = vld [vmem:[%s18446_s0 + $0x803] ss:$16 sm:%s7213_s2]   ;;  %7245 = vrot.lane.b32.xlu1 %v7244_v27, %s10693_s14  ;;  %v7211_v30 = vsel %vm6_vm0, %v10329_v49, %v10328_v26  ;;  %s7259_s2 = smov 48  ;;  %10164 = vst.msk [vmem:[%s18447_s1 + $0x18] sm:$0xff] %vm6031_vm14, %v6443_v5  }
 0x428   :  { %v10331_v32 = vld [vmem:[%s18446_s0 + $0x803] ss:$16 sm:%s7218_s11]   ;;  %v7216_v33 = vsel %vm10_vm1, %v10330_v24, %v7211_v30  ;;  %s7264_s11 = smov 192 }
 0x429   :  { %v10343_v34 = vld [vmem:[%s18446_s0 + $0x283] ss:$16 sm:%s7274_s19]   ;;  %v7221_v35 = vsel %vm14_vm2, %v10331_v32, %v7216_v33  ;;  %s7320_s19 = smov 3 }
 0x42a   :  { %v10344_v25 = vld [vmem:[%s18446_s0 + $0x283] ss:$16 sm:%s7277_s16]   ;;  %7222 = vrot.lane.b32.xlu0 %v7221_v35, %s10693_s14  ;;  %s7323_s16 = smov 12  ;;  %v6512_v12 = vpop.permute.xlu1 %6511  }
 0x42b   :  { %v7280_v60 = vsel %vm6_vm0, %v10344_v25, %v10343_v34  ;;  %v10345_v22 = vld [vmem:[%s18446_s0 + $0x283] ss:$16 sm:%s7282_s12]   ;;  %s7328_s12 = smov 48  ;;  %10179 = vst.msk [vmem:[%s18447_s1 + $0x78] sm:$0xff] %vm6031_vm14, %v6512_v12  }
 0x42c   :  { %v10346_v38 = vld [vmem:[%s18446_s0 + $0x283] ss:$16 sm:%s7287_s13]   ;;  %v7285_v61 = vsel %vm10_vm1, %v10345_v22, %v7280_v60  ;;  %s7333_s13 = smov 192 }
 0x42d   :  { %v10338_v40 = vld [vmem:[%s18446_s0 + $0x83] ss:$16 sm:%s7251_s23]   ;;  %v7290_v41 = vsel %vm14_vm2, %v10346_v38, %v7285_v61  ;;  %s7297_s23 = smov 3 }
 0x42e   :  { %v10339_v43 = vld [vmem:[%s18446_s0 + $0x83] ss:$16 sm:%s7254_s30]   ;;  %7291 = vrot.lane.b32.xlu1 %v7290_v41, %s10693_s14  ;;  %s7300_s30 = smov 12  ;;  %v6489_v21 = vpop.permute.xlu0 %6488  }
 0x42f   :  { %v10340_v45 = vld [vmem:[%s18446_s0 + $0x83] ss:$16 sm:%s7259_s2]   ;;  %v7257_v37 = vsel %vm6_vm0, %v10339_v43, %v10338_v40  ;;  %s7305_s2 = smov 48  ;;  %10174 = vst.msk [vmem:[%s18447_s1 + $0x58] sm:$0xff] %vm6031_vm14, %v6489_v21  }
 0x430   :  { %v10341_v48 = vld [vmem:[%s18446_s0 + $0x83] ss:$16 sm:%s7264_s11]   ;;  %v7262_v15 = vsel %vm10_vm1, %v10340_v45, %v7257_v37  ;;  %s7310_s11 = smov 192 }
 0x431   :  { %v10353_v50 = vld [vmem:[%s18446_s0 + $0x683] ss:$16 sm:%s7320_s19]   ;;  %v7267_v6 = vsel %vm14_vm2, %v10341_v48, %v7262_v15  ;;  %s7366_s19 = smov 3 }
 0x432   :  { %v10354_v51 = vld [vmem:[%s18446_s0 + $0x683] ss:$16 sm:%s7323_s16]   ;;  %7268 = vrot.lane.b32.xlu0 %v7267_v6, %s10693_s14  ;;  %s7369_s16 = smov 12  ;;  %v6558_v29 = vpop.permute.xlu1 %6557  }
 0x433   :  { %v7326_v52 = vsel %vm6_vm0, %v10354_v51, %v10353_v50  ;;  %v10355_v31 = vld [vmem:[%s18446_s0 + $0x683] ss:$16 sm:%s7328_s12]   ;;  %s7374_s12 = smov 48  ;;  %10189 = vst.msk [vmem:[%s18447_s1 + $0xb8] sm:$0xff] %vm6031_vm14, %v6558_v29  }
 0x434   :  { %v10356_v14 = vld [vmem:[%s18446_s0 + $0x683] ss:$16 sm:%s7333_s13]   ;;  %v7331_v55 = vsel %vm10_vm1, %v10355_v31, %v7326_v52  ;;  %s7379_s13 = smov 192 }
 0x435   :  { %v10348_v56 = vld [vmem:[%s18446_s0 + $0x483] ss:$16 sm:%s7297_s23]   ;;  %v7336_v58 = vsel %vm14_vm2, %v10356_v14, %v7331_v55  ;;  %s7343_s23 = smov 3 }
 0x436   :  { %v10349_v59 = vld [vmem:[%s18446_s0 + $0x483] ss:$16 sm:%s7300_s30]   ;;  %7337 = vrot.lane.b32.xlu1 %v7336_v58, %s10693_s14  ;;  %s7346_s30 = smov 12  ;;  %v6535_v39 = vpop.permute.xlu0 %6534   ;;  %v6603_v47 = vpop.permute.xlu1 %6602  }
 0x437   :  { %v10350_v62 = vld [vmem:[%s18446_s0 + $0x483] ss:$16 sm:%s7305_s2]   ;;  %v7303_v4 = vsel %vm6_vm0, %v10349_v59, %v10348_v56  ;;  %s7351_s2 = smov 48  ;;  %10184 = vst.msk [vmem:[%s18447_s1 + $0x98] sm:$0xff] %vm6031_vm14, %v6535_v39  }
 0x438   :  { %v10351_v63 = vld [vmem:[%s18446_s0 + $0x483] ss:$16 sm:%s7310_s11]   ;;  %v7308_v0 = vsel %vm10_vm1, %v10350_v62, %v7303_v4  ;;  %s7356_s11 = smov 192  ;;  %10198 = vst.msk [vmem:[%s18447_s1 + $0x20] sm:$0xff] %vm6582_vm15, %v6603_v47  }
 0x439   :  { %v10363_v42 = vld [vmem:[%s18446_s0 + $0xa83] ss:$16 sm:%s7366_s19]   ;;  %v7313_v46 = vsel %vm14_vm2, %v10351_v63, %v7308_v0  ;;  %s7412_s19 = smov 3 }
 0x43a   :  { %v10364_v1 = vld [vmem:[%s18446_s0 + $0xa83] ss:$16 sm:%s7369_s16]   ;;  %7314 = vrot.lane.b32.xlu0 %v7313_v46, %s10693_s14  ;;  %s7415_s16 = smov 12  ;;  %v6581_v53 = vpop.permute.xlu0 %6580  }
 0x43b   :  { %v7372_v2 = vsel %vm6_vm0, %v10364_v1, %v10363_v42  ;;  %v10365_v28 = vld [vmem:[%s18446_s0 + $0xa83] ss:$16 sm:%s7374_s12]   ;;  %s7420_s12 = smov 48  ;;  %6583 = vst.msk [vmem:[%s18447_s1] sm:$0xff] %vm6582_vm15, %v6581_v53  }
 0x43c   :  { %v10366_v3 = vld [vmem:[%s18446_s0 + $0xa83] ss:$16 sm:%s7379_s13]   ;;  %v7377_v7 = vsel %vm10_vm1, %v10365_v28, %v7372_v2  ;;  %s7425_s13 = smov 192  ;;  %v6649_v44 = vpop.permute.xlu1 %6648  }
 0x43d   :  { %v10358_v8 = vld [vmem:[%s18446_s0 + $0x883] ss:$16 sm:%s7343_s23]   ;;  %v7382_v9 = vsel %vm14_vm2, %v10366_v3, %v7377_v7  ;;  %s7389_s23 = smov 3  ;;  %10208 = vst.msk [vmem:[%s18447_s1 + $0x60] sm:$0xff] %vm6582_vm15, %v6649_v44  }
 0x43e   :  { %v10359_v16 = vld [vmem:[%s18446_s0 + $0x883] ss:$16 sm:%s7346_s30]   ;;  %7383 = vrot.lane.b32.xlu1 %v7382_v9, %s10693_s14  ;;  %s7392_s30 = smov 12 }
 0x43f   :  { %v10360_v54 = vld [vmem:[%s18446_s0 + $0x883] ss:$16 sm:%s7351_s2]   ;;  %v7349_v10 = vsel %vm6_vm0, %v10359_v16, %v10358_v8  ;;  %s7397_s2 = smov 48  ;;  %v6626_v5 = vpop.permute.xlu0 %6625  }
 0x440   :  { %v10361_v11 = vld [vmem:[%s18446_s0 + $0x883] ss:$16 sm:%s7356_s11]   ;;  %v7354_v36 = vsel %vm10_vm1, %v10360_v54, %v7349_v10  ;;  %s7402_s11 = smov 192  ;;  %10203 = vst.msk [vmem:[%s18447_s1 + $0x40] sm:$0xff] %vm6582_vm15, %v6626_v5  }
 0x441   :  { %v10373_v57 = vld [vmem:[%s18446_s0 + $0x303] ss:$16 sm:%s7412_s19]   ;;  %v7359_v17 = vsel %vm14_vm2, %v10361_v11, %v7354_v36  ;;  %s7458_s19 = smov 3 }
 0x442   :  { %v10374_v13 = vld [vmem:[%s18446_s0 + $0x303] ss:$16 sm:%s7415_s16]   ;;  %7360 = vrot.lane.b32.xlu0 %v7359_v17, %s10693_s14  ;;  %s7461_s16 = smov 12  ;;  %v6695_v12 = vpop.permute.xlu1 %6694  }
 0x443   :  { %v7418_v18 = vsel %vm6_vm0, %v10374_v13, %v10373_v57  ;;  %v10375_v19 = vld [vmem:[%s18446_s0 + $0x303] ss:$16 sm:%s7420_s12]   ;;  %s7466_s12 = smov 48  ;;  %10218 = vst.msk [vmem:[%s18447_s1 + $0xa0] sm:$0xff] %vm6582_vm15, %v6695_v12  }
 0x444   :  { %v10376_v20 = vld [vmem:[%s18446_s0 + $0x303] ss:$16 sm:%s7425_s13]   ;;  %v7423_v23 = vsel %vm10_vm1, %v10375_v19, %v7418_v18  ;;  %s7471_s13 = smov 192 }
 0x445   :  { %v10368_v26 = vld [vmem:[%s18446_s0 + $0x103] ss:$16 sm:%s7389_s23]   ;;  %v7428_v27 = vsel %vm14_vm2, %v10376_v20, %v7423_v23  ;;  %s7435_s23 = smov 3  ;;  %v6672_v21 = vpop.permute.xlu0 %6671  }
 0x446   :  { %v10369_v49 = vld [vmem:[%s18446_s0 + $0x103] ss:$16 sm:%s7392_s30]   ;;  %7429 = vrot.lane.b32.xlu1 %v7428_v27, %s10693_s14  ;;  %s7438_s30 = smov 12  ;;  %10213 = vst.msk [vmem:[%s18447_s1 + $0x80] sm:$0xff] %vm6582_vm15, %v6672_v21  }
 0x447   :  { %v10370_v24 = vld [vmem:[%s18446_s0 + $0x103] ss:$16 sm:%s7397_s2]   ;;  %v7395_v30 = vsel %vm6_vm0, %v10369_v49, %v10368_v26  ;;  %s7443_s2 = smov 48 }
 0x448   :  { %v10371_v32 = vld [vmem:[%s18446_s0 + $0x103] ss:$16 sm:%s7402_s11]   ;;  %v7400_v33 = vsel %vm10_vm1, %v10370_v24, %v7395_v30  ;;  %s7448_s11 = smov 192 }
 0x449   :  { %v10383_v34 = vld [vmem:[%s18446_s0 + $0x703] ss:$16 sm:%s7458_s19]   ;;  %v7405_v35 = vsel %vm14_vm2, %v10371_v32, %v7400_v33  ;;  %s7504_s19 = smov 3  ;;  %v6741_v29 = vpop.permute.xlu1 %6740  }
 0x44a   :  { %v10384_v25 = vld [vmem:[%s18446_s0 + $0x703] ss:$16 sm:%s7461_s16]   ;;  %7406 = vrot.lane.b32.xlu0 %v7405_v35, %s10693_s14  ;;  %s7507_s16 = smov 12  ;;  %10228 = vst.msk [vmem:[%s18447_s1 + $0x28] sm:$0xff] %vm6582_vm15, %v6741_v29  }
 0x44b   :  { %v7464_v60 = vsel %vm6_vm0, %v10384_v25, %v10383_v34  ;;  %v10385_v22 = vld [vmem:[%s18446_s0 + $0x703] ss:$16 sm:%s7466_s12]   ;;  %s7512_s12 = smov 48 }
 0x44c   :  { %v10386_v38 = vld [vmem:[%s18446_s0 + $0x703] ss:$16 sm:%s7471_s13]   ;;  %v7469_v61 = vsel %vm10_vm1, %v10385_v22, %v7464_v60  ;;  %s7517_s13 = smov 192 }
 0x44d   :  { %v10378_v40 = vld [vmem:[%s18446_s0 + $0x503] ss:$16 sm:%s7435_s23]   ;;  %v7474_v41 = vsel %vm14_vm2, %v10386_v38, %v7469_v61  ;;  %s7481_s23 = smov 3  ;;  %v6718_v39 = vpop.permute.xlu0 %6717  }
 0x44e   :  { %v10379_v43 = vld [vmem:[%s18446_s0 + $0x503] ss:$16 sm:%s7438_s30]   ;;  %7475 = vrot.lane.b32.xlu1 %v7474_v41, %s10693_s14  ;;  %s7484_s30 = smov 12  ;;  %10223 = vst.msk [vmem:[%s18447_s1 + $0x8] sm:$0xff] %vm6582_vm15, %v6718_v39  }
 0x44f   :  { %v10380_v45 = vld [vmem:[%s18446_s0 + $0x503] ss:$16 sm:%s7443_s2]   ;;  %v7441_v37 = vsel %vm6_vm0, %v10379_v43, %v10378_v40  ;;  %s7489_s2 = smov 48 }
 0x450   :  { %v10381_v48 = vld [vmem:[%s18446_s0 + $0x503] ss:$16 sm:%s7448_s11]   ;;  %v7446_v15 = vsel %vm10_vm1, %v10380_v45, %v7441_v37  ;;  %s7494_s11 = smov 192 }
 0x451   :  { %v10393_v50 = vld [vmem:[%s18446_s0 + $0xb03] ss:$16 sm:%s7504_s19]   ;;  %v7451_v6 = vsel %vm14_vm2, %v10381_v48, %v7446_v15  ;;  %s7550_s19 = smov 3  ;;  %v6787_v47 = vpop.permute.xlu1 %6786  }
 0x452   :  { %v10394_v51 = vld [vmem:[%s18446_s0 + $0xb03] ss:$16 sm:%s7507_s16]   ;;  %7452 = vrot.lane.b32.xlu0 %v7451_v6, %s10693_s14  ;;  %s7553_s16 = smov 12  ;;  %10238 = vst.msk [vmem:[%s18447_s1 + $0x68] sm:$0xff] %vm6582_vm15, %v6787_v47  }
 0x453   :  { %v7510_v52 = vsel %vm6_vm0, %v10394_v51, %v10393_v50  ;;  %v10395_v31 = vld [vmem:[%s18446_s0 + $0xb03] ss:$16 sm:%s7512_s12]   ;;  %s7558_s12 = smov 48 }
 0x454   :  { %v10396_v14 = vld [vmem:[%s18446_s0 + $0xb03] ss:$16 sm:%s7517_s13]   ;;  %v7515_v55 = vsel %vm10_vm1, %v10395_v31, %v7510_v52  ;;  %s7563_s13 = smov 192 }
 0x455   :  { %v10388_v56 = vld [vmem:[%s18446_s0 + $0x903] ss:$16 sm:%s7481_s23]   ;;  %v7520_v58 = vsel %vm14_vm2, %v10396_v14, %v7515_v55  ;;  %s7527_s23 = smov 3  ;;  %v6764_v53 = vpop.permute.xlu0 %6763  }
 0x456   :  { %v10389_v59 = vld [vmem:[%s18446_s0 + $0x903] ss:$16 sm:%s7484_s30]   ;;  %7521 = vrot.lane.b32.xlu1 %v7520_v58, %s10693_s14  ;;  %s7530_s30 = smov 12  ;;  %10233 = vst.msk [vmem:[%s18447_s1 + $0x48] sm:$0xff] %vm6582_vm15, %v6764_v53  }
 0x457   :  { %v10390_v62 = vld [vmem:[%s18446_s0 + $0x903] ss:$16 sm:%s7489_s2]   ;;  %v7487_v4 = vsel %vm6_vm0, %v10389_v59, %v10388_v56  ;;  %s7535_s2 = smov 48 }
 0x458   :  { %v10391_v63 = vld [vmem:[%s18446_s0 + $0x903] ss:$16 sm:%s7494_s11]   ;;  %v7492_v0 = vsel %vm10_vm1, %v10390_v62, %v7487_v4  ;;  %s7540_s11 = smov 192 }
 0x459   :  { %v10403_v42 = vld [vmem:[%s18446_s0 + $0x383] ss:$16 sm:%s7550_s19]   ;;  %v7497_v46 = vsel %vm14_vm2, %v10391_v63, %v7492_v0  ;;  %s7596_s19 = smov 3  ;;  %v6833_v44 = vpop.permute.xlu1 %6832  }
 0x45a   :  { %v10404_v1 = vld [vmem:[%s18446_s0 + $0x383] ss:$16 sm:%s7553_s16]   ;;  %7498 = vrot.lane.b32.xlu0 %v7497_v46, %s10693_s14  ;;  %s7599_s16 = smov 12  ;;  %10248 = vst.msk [vmem:[%s18447_s1 + $0xa8] sm:$0xff] %vm6582_vm15, %v6833_v44  }
 0x45b   :  { %v7556_v2 = vsel %vm6_vm0, %v10404_v1, %v10403_v42  ;;  %v10405_v28 = vld [vmem:[%s18446_s0 + $0x383] ss:$16 sm:%s7558_s12]   ;;  %s7604_s12 = smov 48  ;;  %v10442_v42 = vld [vmem:[%s18446_s0 + $0x602] ss:$16 sm:%s7733_s15]   ;;  %s7779_s15 = smov 3 }
 0x45c   :  { %v10406_v3 = vld [vmem:[%s18446_s0 + $0x383] ss:$16 sm:%s7563_s13]   ;;  %v7561_v7 = vsel %vm10_vm1, %v10405_v28, %v7556_v2  ;;  %s7609_s13 = smov 192  ;;  %v10444_v28 = vld [vmem:[%s18446_s0 + $0x602] ss:$16 sm:%s7741_s8]   ;;  %s7787_s8 = smov 48 }
 0x45d   :  { %v10398_v8 = vld [vmem:[%s18446_s0 + $0x183] ss:$16 sm:%s7527_s23]   ;;  %v7566_v9 = vsel %vm14_vm2, %v10406_v3, %v7561_v7  ;;  %s7573_s23 = smov 3  ;;  %v6810_v5 = vpop.permute.xlu0 %6809  }
 0x45e   :  { %v10399_v16 = vld [vmem:[%s18446_s0 + $0x183] ss:$16 sm:%s7530_s30]   ;;  %7567 = vrot.lane.b32.xlu1 %v7566_v9, %s10693_s14  ;;  %s7576_s30 = smov 12  ;;  %10243 = vst.msk [vmem:[%s18447_s1 + $0x88] sm:$0xff] %vm6582_vm15, %v6810_v5  }
 0x45f   :  { %v10400_v54 = vld [vmem:[%s18446_s0 + $0x183] ss:$16 sm:%s7535_s2]   ;;  %v7533_v10 = vsel %vm6_vm0, %v10399_v16, %v10398_v8  ;;  %s7581_s2 = smov 48 }
 0x460   :  { %v10401_v11 = vld [vmem:[%s18446_s0 + $0x183] ss:$16 sm:%s7540_s11]   ;;  %v7538_v36 = vsel %vm10_vm1, %v10400_v54, %v7533_v10  ;;  %s7586_s11 = smov 192 }
 0x461   :  { %v10413_v57 = vld [vmem:[%s18446_s0 + $0x783] ss:$16 sm:%s7596_s19]   ;;  %v7543_v17 = vsel %vm14_vm2, %v10401_v11, %v7538_v36  ;;  %s7642_s19 = smov 3  ;;  %v6879_v12 = vpop.permute.xlu1 %6878  }
 0x462   :  { %v10414_v13 = vld [vmem:[%s18446_s0 + $0x783] ss:$16 sm:%s7599_s16]   ;;  %7544 = vrot.lane.b32.xlu0 %v7543_v17, %s10693_s14  ;;  %s7645_s16 = smov 12  ;;  %10258 = vst.msk [vmem:[%s18447_s1 + $0x30] sm:$0xff] %vm6582_vm15, %v6879_v12  }
 0x463   :  { %v7602_v18 = vsel %vm6_vm0, %v10414_v13, %v10413_v57  ;;  %v10415_v19 = vld [vmem:[%s18446_s0 + $0x783] ss:$16 sm:%s7604_s12]   ;;  %s7650_s12 = smov 48  ;;  %v10452_v57 = vld [vmem:[%s18446_s0 + $0xa02] ss:$16 sm:%s7779_s15]   ;;  %s7825_s15 = smov 3 }
 0x464   :  { %v10416_v20 = vld [vmem:[%s18446_s0 + $0x783] ss:$16 sm:%s7609_s13]   ;;  %v7607_v23 = vsel %vm10_vm1, %v10415_v19, %v7602_v18  ;;  %s7655_s13 = smov 192  ;;  %v10454_v19 = vld [vmem:[%s18446_s0 + $0xa02] ss:$16 sm:%s7787_s8]   ;;  %s7833_s8 = smov 48 }
 0x465   :  { %v10408_v26 = vld [vmem:[%s18446_s0 + $0x583] ss:$16 sm:%s7573_s23]   ;;  %v7612_v27 = vsel %vm14_vm2, %v10416_v20, %v7607_v23  ;;  %s7619_s23 = smov 3  ;;  %v6856_v21 = vpop.permute.xlu0 %6855  }
 0x466   :  { %v10409_v49 = vld [vmem:[%s18446_s0 + $0x583] ss:$16 sm:%s7576_s30]   ;;  %7613 = vrot.lane.b32.xlu1 %v7612_v27, %s10693_s14  ;;  %s7622_s30 = smov 12  ;;  %10253 = vst.msk [vmem:[%s18447_s1 + $0x10] sm:$0xff] %vm6582_vm15, %v6856_v21  }
 0x467   :  { %v10410_v24 = vld [vmem:[%s18446_s0 + $0x583] ss:$16 sm:%s7581_s2]   ;;  %v7579_v30 = vsel %vm6_vm0, %v10409_v49, %v10408_v26  ;;  %s7627_s2 = smov 48 }
 0x468   :  { %v10411_v32 = vld [vmem:[%s18446_s0 + $0x583] ss:$16 sm:%s7586_s11]   ;;  %v7584_v33 = vsel %vm10_vm1, %v10410_v24, %v7579_v30  ;;  %s7632_s11 = smov 192 }
 0x469   :  { %v10423_v34 = vld [vmem:[%s18446_s0 + $0xb83] ss:$16 sm:%s7642_s19]   ;;  %v7589_v35 = vsel %vm14_vm2, %v10411_v32, %v7584_v33  ;;  %s7687_s19 = smov 3  ;;  %v6925_v29 = vpop.permute.xlu1 %6924  }
 0x46a   :  { %v10424_v25 = vld [vmem:[%s18446_s0 + $0xb83] ss:$16 sm:%s7645_s16]   ;;  %7590 = vrot.lane.b32.xlu0 %v7589_v35, %s10693_s14  ;;  %s7690_s16 = smov 12  ;;  %10268 = vst.msk [vmem:[%s18447_s1 + $0x70] sm:$0xff] %vm6582_vm15, %v6925_v29  }
 0x46b   :  { %v7648_v60 = vsel %vm6_vm0, %v10424_v25, %v10423_v34  ;;  %v10425_v22 = vld [vmem:[%s18446_s0 + $0xb83] ss:$16 sm:%s7650_s12]   ;;  %s7695_s12 = smov 48  ;;  %v10432_v50 = vld [vmem:[%s18446_s0 + $0x202] ss:$16 sm:%s7687_s19]   ;;  %s7736_s19 = smov 12 }
 0x46c   :  { %v10426_v38 = vld [vmem:[%s18446_s0 + $0xb83] ss:$16 sm:%s7655_s13]   ;;  %v7653_v61 = vsel %vm10_vm1, %v10425_v22, %v7648_v60  ;;  %s7700_s13 = smov 192  ;;  %v10433_v51 = vld [vmem:[%s18446_s0 + $0x202] ss:$16 sm:%s7690_s16]  }
 0x46d   :  { %v10418_v40 = vld [vmem:[%s18446_s0 + $0x983] ss:$16 sm:%s7619_s23]   ;;  %v7658_v41 = vsel %vm14_vm2, %v10426_v38, %v7653_v61  ;;  %s7665_s23 = smov 3  ;;  %v7693_v52 = vsel %vm6_vm0, %v10433_v51, %v10432_v50  ;;  %v10434_v31 = vld [vmem:[%s18446_s0 + $0x202] ss:$16 sm:%s7695_s12]   ;;  %s7746_s12 = smov 192  ;;  %v6902_v39 = vpop.permute.xlu0 %6901  }
 0x46e   :  { %v10419_v43 = vld [vmem:[%s18446_s0 + $0x983] ss:$16 sm:%s7622_s30]   ;;  %7659 = vrot.lane.b32.xlu1 %v7658_v41, %s10693_s14  ;;  %s7668_s30 = smov 12  ;;  %v7698_v55 = vsel %vm10_vm1, %v10434_v31, %v7693_v52  ;;  %10263 = vst.msk [vmem:[%s18447_s1 + $0x50] sm:$0xff] %vm6582_vm15, %v6902_v39  }
 0x46f   :  { %v10420_v45 = vld [vmem:[%s18446_s0 + $0x983] ss:$16 sm:%s7627_s2]   ;;  %v7625_v37 = vsel %vm6_vm0, %v10419_v43, %v10418_v40  ;;  %s7673_s2 = smov 48  ;;  %v10435_v14 = vld [vmem:[%s18446_s0 + $0x202] ss:$16 sm:%s7700_s13]   ;;  %s10694_s13 = smov 8  }
 0x470   :  { %v10421_v48 = vld [vmem:[%s18446_s0 + $0x983] ss:$16 sm:%s7632_s11]   ;;  %v7630_v15 = vsel %vm10_vm1, %v10420_v45, %v7625_v37  ;;  %s7678_s11 = smov 192  ;;  %v10428_v56 = vld [vmem:[%s18446_s0 + $0x2] ss:$16 sm:%s7665_s23]   ;;  %v7703_v58 = vsel %vm14_vm2, %v10435_v14, %v7698_v55  ;;  %s7710_s23 = smov 3 }
 0x471   :  { %v7635_v6 = vsel %vm14_vm2, %v10421_v48, %v7630_v15  ;;  %v10429_v59 = vld [vmem:[%s18446_s0 + $0x2] ss:$16 sm:%s7668_s30]   ;;  %s7713_s30 = smov 12  ;;  %v6971_v47 = vpop.permute.xlu1 %6970  }
 0x472   :  { %7636 = vrot.lane.b32.xlu0 %v7635_v6, %s10693_s14  ;;  %v10430_v62 = vld [vmem:[%s18446_s0 + $0x2] ss:$16 sm:%s7673_s2]   ;;  %7704 = vrot.lane.b32.xlu1 %v7703_v58, %s10694_s13  ;;  %v7671_v4 = vsel %vm6_vm0, %v10429_v59, %v10428_v56  ;;  %s7718_s2 = smov 48 }
 0x473   :  { %v10431_v63 = vld [vmem:[%s18446_s0 + $0x2] ss:$16 sm:%s7678_s11]   ;;  %v7676_v0 = vsel %vm10_vm1, %v10430_v62, %v7671_v4  ;;  %s7723_s11 = smov 192  ;;  %10278 = vst.msk [vmem:[%s18447_s1 + $0xb0] sm:$0xff] %vm6582_vm15, %v6971_v47  }
 0x474   :  { %v10443_v1 = vld [vmem:[%s18446_s0 + $0x602] ss:$16 sm:%s7736_s19]   ;;  %v7681_v46 = vsel %vm14_vm2, %v10431_v63, %v7676_v0  ;;  %s7782_s19 = smov 12 }
 0x475   :  { %v7739_v2 = vsel %vm6_vm0, %v10443_v1, %v10442_v42  ;;  %v10445_v3 = vld [vmem:[%s18446_s0 + $0x602] ss:$16 sm:%s7746_s12]   ;;  %s7792_s12 = smov 192  ;;  %v6948_v53 = vpop.permute.xlu0 %6947  }
 0x476   :  { %7682 = vrot.lane.b32.xlu0 %v7681_v46, %s10694_s13  ;;  %v7744_v7 = vsel %vm10_vm1, %v10444_v28, %v7739_v2  ;;  %v10437_v8 = vld [vmem:[%s18446_s0 + $0x402] ss:$16 sm:%s7710_s23]   ;;  %s7756_s23 = smov 3  ;;  %10273 = vst.msk [vmem:[%s18447_s1 + $0x90] sm:$0xff] %vm6582_vm15, %v6948_v53  }
 0x477   :  { %v7749_v9 = vsel %vm14_vm2, %v10445_v3, %v7744_v7  ;;  %v10438_v16 = vld [vmem:[%s18446_s0 + $0x402] ss:$16 sm:%s7713_s30]   ;;  %s7759_s30 = smov 12 }
 0x478   :  { %v10439_v54 = vld [vmem:[%s18446_s0 + $0x402] ss:$16 sm:%s7718_s2]   ;;  %7750 = vrot.lane.b32.xlu1 %v7749_v9, %s10694_s13  ;;  %v7716_v10 = vsel %vm6_vm0, %v10438_v16, %v10437_v8  ;;  %s7764_s2 = smov 48 }
 0x479   :  { %v10440_v11 = vld [vmem:[%s18446_s0 + $0x402] ss:$16 sm:%s7723_s11]   ;;  %v7721_v36 = vsel %vm10_vm1, %v10439_v54, %v7716_v10  ;;  %s7769_s11 = smov 192  ;;  %v7017_v44 = vpop.permute.xlu1 %7016  }
 0x47a   :  { %v10453_v13 = vld [vmem:[%s18446_s0 + $0xa02] ss:$16 sm:%s7782_s19]   ;;  %v7726_v17 = vsel %vm14_vm2, %v10440_v11, %v7721_v36  ;;  %s7828_s19 = smov 12  ;;  %10288 = vst.msk [vmem:[%s18447_s1 + $0x38] sm:$0xff] %vm6582_vm15, %v7017_v44  }
 0x47b   :  { %v7785_v18 = vsel %vm6_vm0, %v10453_v13, %v10452_v57  ;;  %v10455_v20 = vld [vmem:[%s18446_s0 + $0xa02] ss:$16 sm:%s7792_s12]   ;;  %7727 = vrot.lane.b32.xlu0 %v7726_v17, %s10694_s13  ;;  %s7838_s12 = smov 192 }
 0x47c   :  { %v7790_v23 = vsel %vm10_vm1, %v10454_v19, %v7785_v18  ;;  %v10447_v26 = vld [vmem:[%s18446_s0 + $0x802] ss:$16 sm:%s7756_s23]   ;;  %s7802_s23 = smov 3 }
 0x47d   :  { %v7795_v27 = vsel %vm14_vm2, %v10455_v20, %v7790_v23  ;;  %v10448_v49 = vld [vmem:[%s18446_s0 + $0x802] ss:$16 sm:%s7759_s30]   ;;  %s7805_s30 = smov 12  ;;  %v6994_v5 = vpop.permute.xlu0 %6993  }
 0x47e   :  { %v10449_v24 = vld [vmem:[%s18446_s0 + $0x802] ss:$16 sm:%s7764_s2]   ;;  %7796 = vrot.lane.b32.xlu1 %v7795_v27, %s10694_s13  ;;  %v7762_v30 = vsel %vm6_vm0, %v10448_v49, %v10447_v26  ;;  %s7810_s2 = smov 48  ;;  %10283 = vst.msk [vmem:[%s18447_s1 + $0x18] sm:$0xff] %vm6582_vm15, %v6994_v5  }
 0x47f   :  { %v10450_v32 = vld [vmem:[%s18446_s0 + $0x802] ss:$16 sm:%s7769_s11]   ;;  %v7767_v33 = vsel %vm10_vm1, %v10449_v24, %v7762_v30  ;;  %s7815_s11 = smov 192 }
 0x480   :  { %v10462_v34 = vld [vmem:[%s18446_s0 + $0x282] ss:$16 sm:%s7825_s15]   ;;  %v7772_v35 = vsel %vm14_vm2, %v10450_v32, %v7767_v33  ;;  %s7871_s15 = smov 3 }
 0x481   :  { %v10463_v25 = vld [vmem:[%s18446_s0 + $0x282] ss:$16 sm:%s7828_s19]   ;;  %7773 = vrot.lane.b32.xlu0 %v7772_v35, %s10694_s13  ;;  %s7874_s19 = smov 12  ;;  %v7063_v12 = vpop.permute.xlu1 %7062  }
 0x482   :  { %v7831_v60 = vsel %vm6_vm0, %v10463_v25, %v10462_v34  ;;  %v10464_v22 = vld [vmem:[%s18446_s0 + $0x282] ss:$16 sm:%s7833_s8]   ;;  %s7879_s8 = smov 48  ;;  %10298 = vst.msk [vmem:[%s18447_s1 + $0x78] sm:$0xff] %vm6582_vm15, %v7063_v12  }
 0x483   :  { %v10465_v38 = vld [vmem:[%s18446_s0 + $0x282] ss:$16 sm:%s7838_s12]   ;;  %v7836_v61 = vsel %vm10_vm1, %v10464_v22, %v7831_v60  ;;  %s7884_s12 = smov 192 }
 0x484   :  { %v10457_v40 = vld [vmem:[%s18446_s0 + $0x82] ss:$16 sm:%s7802_s23]   ;;  %v7841_v41 = vsel %vm14_vm2, %v10465_v38, %v7836_v61  ;;  %s7848_s23 = smov 3 }
 0x485   :  { %v10458_v43 = vld [vmem:[%s18446_s0 + $0x82] ss:$16 sm:%s7805_s30]   ;;  %7842 = vrot.lane.b32.xlu1 %v7841_v41, %s10694_s13  ;;  %s7851_s30 = smov 12  ;;  %v7040_v21 = vpop.permute.xlu0 %7039  }
 0x486   :  { %v10459_v45 = vld [vmem:[%s18446_s0 + $0x82] ss:$16 sm:%s7810_s2]   ;;  %v7808_v37 = vsel %vm6_vm0, %v10458_v43, %v10457_v40  ;;  %s7856_s2 = smov 48  ;;  %10293 = vst.msk [vmem:[%s18447_s1 + $0x58] sm:$0xff] %vm6582_vm15, %v7040_v21  }
 0x487   :  { %v10460_v48 = vld [vmem:[%s18446_s0 + $0x82] ss:$16 sm:%s7815_s11]   ;;  %v7813_v15 = vsel %vm10_vm1, %v10459_v45, %v7808_v37  ;;  %s7861_s11 = smov 192 }
 0x488   :  { %v10472_v50 = vld [vmem:[%s18446_s0 + $0x682] ss:$16 sm:%s7871_s15]   ;;  %v7818_v6 = vsel %vm14_vm2, %v10460_v48, %v7813_v15  ;;  %s7917_s15 = smov 3 }
 0x489   :  { %v10473_v51 = vld [vmem:[%s18446_s0 + $0x682] ss:$16 sm:%s7874_s19]   ;;  %7819 = vrot.lane.b32.xlu0 %v7818_v6, %s10694_s13  ;;  %s7920_s19 = smov 12  ;;  %v7109_v29 = vpop.permute.xlu1 %7108  }
 0x48a   :  { %v7877_v52 = vsel %vm6_vm0, %v10473_v51, %v10472_v50  ;;  %v10474_v31 = vld [vmem:[%s18446_s0 + $0x682] ss:$16 sm:%s7879_s8]   ;;  %s7925_s8 = smov 48  ;;  %10308 = vst.msk [vmem:[%s18447_s1 + $0xb8] sm:$0xff] %vm6582_vm15, %v7109_v29  }
 0x48b   :  { %v10475_v14 = vld [vmem:[%s18446_s0 + $0x682] ss:$16 sm:%s7884_s12]   ;;  %v7882_v55 = vsel %vm10_vm1, %v10474_v31, %v7877_v52  ;;  %s7930_s12 = smov 192 }
 0x48c   :  { %v10467_v56 = vld [vmem:[%s18446_s0 + $0x482] ss:$16 sm:%s7848_s23]   ;;  %v7887_v58 = vsel %vm14_vm2, %v10475_v14, %v7882_v55  ;;  %s7894_s23 = smov 3 }
 0x48d   :  { %v10468_v59 = vld [vmem:[%s18446_s0 + $0x482] ss:$16 sm:%s7851_s30]   ;;  %7888 = vrot.lane.b32.xlu1 %v7887_v58, %s10694_s13  ;;  %s7897_s30 = smov 12  ;;  %v7086_v39 = vpop.permute.xlu0 %7085   ;;  %v7154_v47 = vpop.permute.xlu1 %7153  }
 0x48e   :  { %v10469_v62 = vld [vmem:[%s18446_s0 + $0x482] ss:$16 sm:%s7856_s2]   ;;  %v7854_v4 = vsel %vm6_vm0, %v10468_v59, %v10467_v56  ;;  %s7902_s2 = smov 48  ;;  %10303 = vst.msk [vmem:[%s18447_s1 + $0x98] sm:$0xff] %vm6582_vm15, %v7086_v39  }
 0x48f   :  { %v10470_v63 = vld [vmem:[%s18446_s0 + $0x482] ss:$16 sm:%s7861_s11]   ;;  %v7859_v0 = vsel %vm10_vm1, %v10469_v62, %v7854_v4  ;;  %s7907_s11 = smov 192  ;;  %10317 = vst.msk [vmem:[%s18447_s1 + $0x20] sm:$0xff] %vm7133_vm3, %v7154_v47  }
 0x490   :  { %v10482_v42 = vld [vmem:[%s18446_s0 + $0xa82] ss:$16 sm:%s7917_s15]   ;;  %v7864_v46 = vsel %vm14_vm2, %v10470_v63, %v7859_v0  ;;  %s7963_s15 = smov 3 }
 0x491   :  { %v10483_v1 = vld [vmem:[%s18446_s0 + $0xa82] ss:$16 sm:%s7920_s19]   ;;  %7865 = vrot.lane.b32.xlu0 %v7864_v46, %s10694_s13  ;;  %s7966_s19 = smov 12  ;;  %v7132_v53 = vpop.permute.xlu0 %7131  }
 0x492   :  { %v7923_v2 = vsel %vm6_vm0, %v10483_v1, %v10482_v42  ;;  %v10484_v28 = vld [vmem:[%s18446_s0 + $0xa82] ss:$16 sm:%s7925_s8]   ;;  %s7971_s8 = smov 48  ;;  %7134 = vst.msk [vmem:[%s18447_s1] sm:$0xff] %vm7133_vm3, %v7132_v53  }
 0x493   :  { %v10485_v3 = vld [vmem:[%s18446_s0 + $0xa82] ss:$16 sm:%s7930_s12]   ;;  %v7928_v7 = vsel %vm10_vm1, %v10484_v28, %v7923_v2  ;;  %s7976_s12 = smov 192  ;;  %v7200_v44 = vpop.permute.xlu1 %7199  }
 0x494   :  { %v10477_v8 = vld [vmem:[%s18446_s0 + $0x882] ss:$16 sm:%s7894_s23]   ;;  %v7933_v9 = vsel %vm14_vm2, %v10485_v3, %v7928_v7  ;;  %s7940_s23 = smov 3  ;;  %10327 = vst.msk [vmem:[%s18447_s1 + $0x60] sm:$0xff] %vm7133_vm3, %v7200_v44  }
 0x495   :  { %v10478_v16 = vld [vmem:[%s18446_s0 + $0x882] ss:$16 sm:%s7897_s30]   ;;  %7934 = vrot.lane.b32.xlu1 %v7933_v9, %s10694_s13  ;;  %s7943_s30 = smov 12 }
 0x496   :  { %v10479_v54 = vld [vmem:[%s18446_s0 + $0x882] ss:$16 sm:%s7902_s2]   ;;  %v7900_v10 = vsel %vm6_vm0, %v10478_v16, %v10477_v8  ;;  %s7948_s2 = smov 48  ;;  %v7177_v5 = vpop.permute.xlu0 %7176  }
 0x497   :  { %v10480_v11 = vld [vmem:[%s18446_s0 + $0x882] ss:$16 sm:%s7907_s11]   ;;  %v7905_v36 = vsel %vm10_vm1, %v10479_v54, %v7900_v10  ;;  %s7953_s11 = smov 192  ;;  %10322 = vst.msk [vmem:[%s18447_s1 + $0x40] sm:$0xff] %vm7133_vm3, %v7177_v5  }
 0x498   :  { %v10492_v57 = vld [vmem:[%s18446_s0 + $0x302] ss:$16 sm:%s7963_s15]   ;;  %v7910_v17 = vsel %vm14_vm2, %v10480_v11, %v7905_v36  ;;  %s8009_s15 = smov 3 }
 0x499   :  { %v10493_v13 = vld [vmem:[%s18446_s0 + $0x302] ss:$16 sm:%s7966_s19]   ;;  %7911 = vrot.lane.b32.xlu0 %v7910_v17, %s10694_s13  ;;  %s8012_s19 = smov 12  ;;  %v7246_v12 = vpop.permute.xlu1 %7245  }
 0x49a   :  { %v7969_v18 = vsel %vm6_vm0, %v10493_v13, %v10492_v57  ;;  %v10494_v19 = vld [vmem:[%s18446_s0 + $0x302] ss:$16 sm:%s7971_s8]   ;;  %s8017_s8 = smov 48  ;;  %10337 = vst.msk [vmem:[%s18447_s1 + $0xa0] sm:$0xff] %vm7133_vm3, %v7246_v12  }
 0x49b   :  { %v10495_v20 = vld [vmem:[%s18446_s0 + $0x302] ss:$16 sm:%s7976_s12]   ;;  %v7974_v23 = vsel %vm10_vm1, %v10494_v19, %v7969_v18  ;;  %s8022_s12 = smov 192 }
 0x49c   :  { %v10487_v26 = vld [vmem:[%s18446_s0 + $0x102] ss:$16 sm:%s7940_s23]   ;;  %v7979_v27 = vsel %vm14_vm2, %v10495_v20, %v7974_v23  ;;  %s7986_s23 = smov 3  ;;  %v7223_v21 = vpop.permute.xlu0 %7222  }
 0x49d   :  { %v10488_v49 = vld [vmem:[%s18446_s0 + $0x102] ss:$16 sm:%s7943_s30]   ;;  %7980 = vrot.lane.b32.xlu1 %v7979_v27, %s10694_s13  ;;  %s7989_s30 = smov 12  ;;  %10332 = vst.msk [vmem:[%s18447_s1 + $0x80] sm:$0xff] %vm7133_vm3, %v7223_v21  }
 0x49e   :  { %v10489_v24 = vld [vmem:[%s18446_s0 + $0x102] ss:$16 sm:%s7948_s2]   ;;  %v7946_v30 = vsel %vm6_vm0, %v10488_v49, %v10487_v26  ;;  %s7994_s2 = smov 48 }
 0x49f   :  { %v10490_v32 = vld [vmem:[%s18446_s0 + $0x102] ss:$16 sm:%s7953_s11]   ;;  %v7951_v33 = vsel %vm10_vm1, %v10489_v24, %v7946_v30  ;;  %s7999_s11 = smov 192 }
 0x4a0   :  { %v10502_v34 = vld [vmem:[%s18446_s0 + $0x702] ss:$16 sm:%s8009_s15]   ;;  %v7956_v35 = vsel %vm14_vm2, %v10490_v32, %v7951_v33  ;;  %s8055_s15 = smov 3  ;;  %v7292_v29 = vpop.permute.xlu1 %7291  }
 0x4a1   :  { %v10503_v25 = vld [vmem:[%s18446_s0 + $0x702] ss:$16 sm:%s8012_s19]   ;;  %7957 = vrot.lane.b32.xlu0 %v7956_v35, %s10694_s13  ;;  %s8058_s19 = smov 12  ;;  %10347 = vst.msk [vmem:[%s18447_s1 + $0x28] sm:$0xff] %vm7133_vm3, %v7292_v29  }
 0x4a2   :  { %v8015_v60 = vsel %vm6_vm0, %v10503_v25, %v10502_v34  ;;  %v10504_v22 = vld [vmem:[%s18446_s0 + $0x702] ss:$16 sm:%s8017_s8]   ;;  %s8063_s8 = smov 48 }
 0x4a3   :  { %v10505_v38 = vld [vmem:[%s18446_s0 + $0x702] ss:$16 sm:%s8022_s12]   ;;  %v8020_v61 = vsel %vm10_vm1, %v10504_v22, %v8015_v60  ;;  %s8068_s12 = smov 192 }
 0x4a4   :  { %v10497_v40 = vld [vmem:[%s18446_s0 + $0x502] ss:$16 sm:%s7986_s23]   ;;  %v8025_v41 = vsel %vm14_vm2, %v10505_v38, %v8020_v61  ;;  %s8032_s23 = smov 3  ;;  %v7269_v39 = vpop.permute.xlu0 %7268  }
 0x4a5   :  { %v10498_v43 = vld [vmem:[%s18446_s0 + $0x502] ss:$16 sm:%s7989_s30]   ;;  %8026 = vrot.lane.b32.xlu1 %v8025_v41, %s10694_s13  ;;  %s8035_s30 = smov 12  ;;  %10342 = vst.msk [vmem:[%s18447_s1 + $0x8] sm:$0xff] %vm7133_vm3, %v7269_v39  }
 0x4a6   :  { %v10499_v45 = vld [vmem:[%s18446_s0 + $0x502] ss:$16 sm:%s7994_s2]   ;;  %v7992_v37 = vsel %vm6_vm0, %v10498_v43, %v10497_v40  ;;  %s8040_s2 = smov 48 }
 0x4a7   :  { %v10500_v48 = vld [vmem:[%s18446_s0 + $0x502] ss:$16 sm:%s7999_s11]   ;;  %v7997_v15 = vsel %vm10_vm1, %v10499_v45, %v7992_v37  ;;  %s8045_s11 = smov 192 }
 0x4a8   :  { %v10512_v50 = vld [vmem:[%s18446_s0 + $0xb02] ss:$16 sm:%s8055_s15]   ;;  %v8002_v6 = vsel %vm14_vm2, %v10500_v48, %v7997_v15  ;;  %s8101_s15 = smov 3  ;;  %v7338_v47 = vpop.permute.xlu1 %7337  }
 0x4a9   :  { %v10513_v51 = vld [vmem:[%s18446_s0 + $0xb02] ss:$16 sm:%s8058_s19]   ;;  %8003 = vrot.lane.b32.xlu0 %v8002_v6, %s10694_s13  ;;  %s8104_s19 = smov 12  ;;  %10357 = vst.msk [vmem:[%s18447_s1 + $0x68] sm:$0xff] %vm7133_vm3, %v7338_v47  }
 0x4aa   :  { %v8061_v52 = vsel %vm6_vm0, %v10513_v51, %v10512_v50  ;;  %v10514_v31 = vld [vmem:[%s18446_s0 + $0xb02] ss:$16 sm:%s8063_s8]   ;;  %s8109_s8 = smov 48 }
 0x4ab   :  { %v10515_v14 = vld [vmem:[%s18446_s0 + $0xb02] ss:$16 sm:%s8068_s12]   ;;  %v8066_v55 = vsel %vm10_vm1, %v10514_v31, %v8061_v52  ;;  %s8114_s12 = smov 192 }
 0x4ac   :  { %v10507_v56 = vld [vmem:[%s18446_s0 + $0x902] ss:$16 sm:%s8032_s23]   ;;  %v8071_v58 = vsel %vm14_vm2, %v10515_v14, %v8066_v55  ;;  %s8078_s23 = smov 3  ;;  %v7315_v53 = vpop.permute.xlu0 %7314  }
 0x4ad   :  { %v10508_v59 = vld [vmem:[%s18446_s0 + $0x902] ss:$16 sm:%s8035_s30]   ;;  %8072 = vrot.lane.b32.xlu1 %v8071_v58, %s10694_s13  ;;  %s8081_s30 = smov 12  ;;  %10352 = vst.msk [vmem:[%s18447_s1 + $0x48] sm:$0xff] %vm7133_vm3, %v7315_v53  }
 0x4ae   :  { %v10509_v62 = vld [vmem:[%s18446_s0 + $0x902] ss:$16 sm:%s8040_s2]   ;;  %v8038_v4 = vsel %vm6_vm0, %v10508_v59, %v10507_v56  ;;  %s8086_s2 = smov 48 }
 0x4af   :  { %v10510_v63 = vld [vmem:[%s18446_s0 + $0x902] ss:$16 sm:%s8045_s11]   ;;  %v8043_v0 = vsel %vm10_vm1, %v10509_v62, %v8038_v4  ;;  %s8091_s11 = smov 192 }
 0x4b0   :  { %v10522_v42 = vld [vmem:[%s18446_s0 + $0x382] ss:$16 sm:%s8101_s15]   ;;  %v8048_v46 = vsel %vm14_vm2, %v10510_v63, %v8043_v0  ;;  %s8147_s15 = smov 3  ;;  %v7384_v44 = vpop.permute.xlu1 %7383  }
 0x4b1   :  { %v10523_v1 = vld [vmem:[%s18446_s0 + $0x382] ss:$16 sm:%s8104_s19]   ;;  %8049 = vrot.lane.b32.xlu0 %v8048_v46, %s10694_s13  ;;  %s8150_s19 = smov 12  ;;  %10367 = vst.msk [vmem:[%s18447_s1 + $0xa8] sm:$0xff] %vm7133_vm3, %v7384_v44  }
 0x4b2   :  { %v8107_v2 = vsel %vm6_vm0, %v10523_v1, %v10522_v42  ;;  %v10524_v28 = vld [vmem:[%s18446_s0 + $0x382] ss:$16 sm:%s8109_s8]   ;;  %s8155_s8 = smov 48  ;;  %v10561_v42 = vld [vmem:[%s18446_s0 + $0x601] ss:$16 sm:%s8284_s21]   ;;  %s8330_s21 = smov 3 }
 0x4b3   :  { %v10525_v3 = vld [vmem:[%s18446_s0 + $0x382] ss:$16 sm:%s8114_s12]   ;;  %v8112_v7 = vsel %vm10_vm1, %v10524_v28, %v8107_v2  ;;  %s8160_s12 = smov 192  ;;  %v10563_v28 = vld [vmem:[%s18446_s0 + $0x601] ss:$16 sm:%s8292_s10]   ;;  %s8338_s10 = smov 48 }
 0x4b4   :  { %v10517_v8 = vld [vmem:[%s18446_s0 + $0x182] ss:$16 sm:%s8078_s23]   ;;  %v8117_v9 = vsel %vm14_vm2, %v10525_v3, %v8112_v7  ;;  %s8124_s23 = smov 3  ;;  %v7361_v5 = vpop.permute.xlu0 %7360  }
 0x4b5   :  { %v10518_v16 = vld [vmem:[%s18446_s0 + $0x182] ss:$16 sm:%s8081_s30]   ;;  %8118 = vrot.lane.b32.xlu1 %v8117_v9, %s10694_s13  ;;  %s8127_s30 = smov 12  ;;  %10362 = vst.msk [vmem:[%s18447_s1 + $0x88] sm:$0xff] %vm7133_vm3, %v7361_v5  }
 0x4b6   :  { %v10519_v54 = vld [vmem:[%s18446_s0 + $0x182] ss:$16 sm:%s8086_s2]   ;;  %v8084_v10 = vsel %vm6_vm0, %v10518_v16, %v10517_v8  ;;  %s8132_s2 = smov 48 }
 0x4b7   :  { %v10520_v11 = vld [vmem:[%s18446_s0 + $0x182] ss:$16 sm:%s8091_s11]   ;;  %v8089_v36 = vsel %vm10_vm1, %v10519_v54, %v8084_v10  ;;  %s8137_s11 = smov 192 }
 0x4b8   :  { %v10532_v57 = vld [vmem:[%s18446_s0 + $0x782] ss:$16 sm:%s8147_s15]   ;;  %v8094_v17 = vsel %vm14_vm2, %v10520_v11, %v8089_v36  ;;  %s8193_s15 = smov 3  ;;  %v7430_v12 = vpop.permute.xlu1 %7429  }
 0x4b9   :  { %v10533_v13 = vld [vmem:[%s18446_s0 + $0x782] ss:$16 sm:%s8150_s19]   ;;  %8095 = vrot.lane.b32.xlu0 %v8094_v17, %s10694_s13  ;;  %s8196_s19 = smov 12  ;;  %10377 = vst.msk [vmem:[%s18447_s1 + $0x30] sm:$0xff] %vm7133_vm3, %v7430_v12  }
 0x4ba   :  { %v8153_v18 = vsel %vm6_vm0, %v10533_v13, %v10532_v57  ;;  %v10534_v19 = vld [vmem:[%s18446_s0 + $0x782] ss:$16 sm:%s8155_s8]   ;;  %s8201_s8 = smov 48  ;;  %v10571_v57 = vld [vmem:[%s18446_s0 + $0xa01] ss:$16 sm:%s8330_s21]   ;;  %s8376_s21 = smov 3 }
 0x4bb   :  { %v10535_v20 = vld [vmem:[%s18446_s0 + $0x782] ss:$16 sm:%s8160_s12]   ;;  %v8158_v23 = vsel %vm10_vm1, %v10534_v19, %v8153_v18  ;;  %s8206_s12 = smov 192  ;;  %v10573_v19 = vld [vmem:[%s18446_s0 + $0xa01] ss:$16 sm:%s8338_s10]   ;;  %s8384_s10 = smov 48 }
 0x4bc   :  { %v10527_v26 = vld [vmem:[%s18446_s0 + $0x582] ss:$16 sm:%s8124_s23]   ;;  %v8163_v27 = vsel %vm14_vm2, %v10535_v20, %v8158_v23  ;;  %s8170_s23 = smov 3  ;;  %v7407_v21 = vpop.permute.xlu0 %7406  }
 0x4bd   :  { %v10528_v49 = vld [vmem:[%s18446_s0 + $0x582] ss:$16 sm:%s8127_s30]   ;;  %8164 = vrot.lane.b32.xlu1 %v8163_v27, %s10694_s13  ;;  %s8173_s30 = smov 12  ;;  %10372 = vst.msk [vmem:[%s18447_s1 + $0x10] sm:$0xff] %vm7133_vm3, %v7407_v21  }
 0x4be   :  { %v10529_v24 = vld [vmem:[%s18446_s0 + $0x582] ss:$16 sm:%s8132_s2]   ;;  %v8130_v30 = vsel %vm6_vm0, %v10528_v49, %v10527_v26  ;;  %s8178_s2 = smov 48 }
 0x4bf   :  { %v10530_v32 = vld [vmem:[%s18446_s0 + $0x582] ss:$16 sm:%s8137_s11]   ;;  %v8135_v33 = vsel %vm10_vm1, %v10529_v24, %v8130_v30  ;;  %s8183_s11 = smov 192 }
 0x4c0   :  { %v10542_v34 = vld [vmem:[%s18446_s0 + $0xb82] ss:$16 sm:%s8193_s15]   ;;  %v8140_v35 = vsel %vm14_vm2, %v10530_v32, %v8135_v33  ;;  %s8238_s15 = smov 3  ;;  %v7476_v29 = vpop.permute.xlu1 %7475  }
 0x4c1   :  { %v10543_v25 = vld [vmem:[%s18446_s0 + $0xb82] ss:$16 sm:%s8196_s19]   ;;  %8141 = vrot.lane.b32.xlu0 %v8140_v35, %s10694_s13  ;;  %s8241_s19 = smov 12  ;;  %10387 = vst.msk [vmem:[%s18447_s1 + $0x70] sm:$0xff] %vm7133_vm3, %v7476_v29  }
 0x4c2   :  { %v8199_v60 = vsel %vm6_vm0, %v10543_v25, %v10542_v34  ;;  %v10544_v22 = vld [vmem:[%s18446_s0 + $0xb82] ss:$16 sm:%s8201_s8]   ;;  %s8246_s8 = smov 48  ;;  %v10551_v50 = vld [vmem:[%s18446_s0 + $0x201] ss:$16 sm:%s8238_s15]   ;;  %s8287_s15 = smov 12 }
 0x4c3   :  { %v10545_v38 = vld [vmem:[%s18446_s0 + $0xb82] ss:$16 sm:%s8206_s12]   ;;  %v8204_v61 = vsel %vm10_vm1, %v10544_v22, %v8199_v60  ;;  %s8251_s12 = smov 192  ;;  %v10552_v51 = vld [vmem:[%s18446_s0 + $0x201] ss:$16 sm:%s8241_s19]  }
 0x4c4   :  { %v10537_v40 = vld [vmem:[%s18446_s0 + $0x982] ss:$16 sm:%s8170_s23]   ;;  %v8209_v41 = vsel %vm14_vm2, %v10545_v38, %v8204_v61  ;;  %s8216_s23 = smov 3  ;;  %v8244_v52 = vsel %vm6_vm0, %v10552_v51, %v10551_v50  ;;  %v10553_v31 = vld [vmem:[%s18446_s0 + $0x201] ss:$16 sm:%s8246_s8]   ;;  %s8297_s8 = smov 192  ;;  %v7453_v39 = vpop.permute.xlu0 %7452  }
 0x4c5   :  { %v10538_v43 = vld [vmem:[%s18446_s0 + $0x982] ss:$16 sm:%s8173_s30]   ;;  %8210 = vrot.lane.b32.xlu1 %v8209_v41, %s10694_s13  ;;  %s8219_s30 = smov 12  ;;  %v8249_v55 = vsel %vm10_vm1, %v10553_v31, %v8244_v52  ;;  %10382 = vst.msk [vmem:[%s18447_s1 + $0x50] sm:$0xff] %vm7133_vm3, %v7453_v39  }
 0x4c6   :  { %v10539_v45 = vld [vmem:[%s18446_s0 + $0x982] ss:$16 sm:%s8178_s2]   ;;  %v8176_v37 = vsel %vm6_vm0, %v10538_v43, %v10537_v40  ;;  %s8224_s2 = smov 48  ;;  %v10554_v14 = vld [vmem:[%s18446_s0 + $0x201] ss:$16 sm:%s8251_s12]   ;;  %s10695_s12 = smov 4  }
 0x4c7   :  { %v10540_v48 = vld [vmem:[%s18446_s0 + $0x982] ss:$16 sm:%s8183_s11]   ;;  %v8181_v15 = vsel %vm10_vm1, %v10539_v45, %v8176_v37  ;;  %s8229_s11 = smov 192  ;;  %v10547_v56 = vld [vmem:[%s18446_s0 + $0x1] ss:$16 sm:%s8216_s23]   ;;  %v8254_v58 = vsel %vm14_vm2, %v10554_v14, %v8249_v55  ;;  %s8261_s23 = smov 3 }
 0x4c8   :  { %v8186_v6 = vsel %vm14_vm2, %v10540_v48, %v8181_v15  ;;  %v10548_v59 = vld [vmem:[%s18446_s0 + $0x1] ss:$16 sm:%s8219_s30]   ;;  %s8264_s30 = smov 12  ;;  %v7522_v47 = vpop.permute.xlu1 %7521  }
 0x4c9   :  { %8187 = vrot.lane.b32.xlu0 %v8186_v6, %s10694_s13  ;;  %v10549_v62 = vld [vmem:[%s18446_s0 + $0x1] ss:$16 sm:%s8224_s2]   ;;  %8255 = vrot.lane.b32.xlu1 %v8254_v58, %s10695_s12  ;;  %v8222_v4 = vsel %vm6_vm0, %v10548_v59, %v10547_v56  ;;  %s8269_s2 = smov 48 }
 0x4ca   :  { %v10550_v63 = vld [vmem:[%s18446_s0 + $0x1] ss:$16 sm:%s8229_s11]   ;;  %v8227_v0 = vsel %vm10_vm1, %v10549_v62, %v8222_v4  ;;  %s8274_s11 = smov 192  ;;  %10397 = vst.msk [vmem:[%s18447_s1 + $0xb0] sm:$0xff] %vm7133_vm3, %v7522_v47  }
 0x4cb   :  { %v10562_v1 = vld [vmem:[%s18446_s0 + $0x601] ss:$16 sm:%s8287_s15]   ;;  %v8232_v46 = vsel %vm14_vm2, %v10550_v63, %v8227_v0  ;;  %s8333_s15 = smov 12 }
 0x4cc   :  { %v8290_v2 = vsel %vm6_vm0, %v10562_v1, %v10561_v42  ;;  %v10564_v3 = vld [vmem:[%s18446_s0 + $0x601] ss:$16 sm:%s8297_s8]   ;;  %s8343_s8 = smov 192  ;;  %v7499_v53 = vpop.permute.xlu0 %7498  }
 0x4cd   :  { %8233 = vrot.lane.b32.xlu0 %v8232_v46, %s10695_s12  ;;  %v8295_v7 = vsel %vm10_vm1, %v10563_v28, %v8290_v2  ;;  %v10556_v8 = vld [vmem:[%s18446_s0 + $0x401] ss:$16 sm:%s8261_s23]   ;;  %s8307_s23 = smov 3  ;;  %10392 = vst.msk [vmem:[%s18447_s1 + $0x90] sm:$0xff] %vm7133_vm3, %v7499_v53  }
 0x4ce   :  { %v8300_v9 = vsel %vm14_vm2, %v10564_v3, %v8295_v7  ;;  %v10557_v16 = vld [vmem:[%s18446_s0 + $0x401] ss:$16 sm:%s8264_s30]   ;;  %s8310_s30 = smov 12 }
 0x4cf   :  { %v10558_v54 = vld [vmem:[%s18446_s0 + $0x401] ss:$16 sm:%s8269_s2]   ;;  %8301 = vrot.lane.b32.xlu1 %v8300_v9, %s10695_s12  ;;  %v8267_v10 = vsel %vm6_vm0, %v10557_v16, %v10556_v8  ;;  %s8315_s2 = smov 48 }
 0x4d0   :  { %v10559_v11 = vld [vmem:[%s18446_s0 + $0x401] ss:$16 sm:%s8274_s11]   ;;  %v8272_v36 = vsel %vm10_vm1, %v10558_v54, %v8267_v10  ;;  %s8320_s11 = smov 192  ;;  %v7568_v44 = vpop.permute.xlu1 %7567  }
 0x4d1   :  { %v10572_v13 = vld [vmem:[%s18446_s0 + $0xa01] ss:$16 sm:%s8333_s15]   ;;  %v8277_v17 = vsel %vm14_vm2, %v10559_v11, %v8272_v36  ;;  %s8379_s15 = smov 12  ;;  %10407 = vst.msk [vmem:[%s18447_s1 + $0x38] sm:$0xff] %vm7133_vm3, %v7568_v44  }
 0x4d2   :  { %v8336_v18 = vsel %vm6_vm0, %v10572_v13, %v10571_v57  ;;  %v10574_v20 = vld [vmem:[%s18446_s0 + $0xa01] ss:$16 sm:%s8343_s8]   ;;  %8278 = vrot.lane.b32.xlu0 %v8277_v17, %s10695_s12  ;;  %s8389_s8 = smov 192 }
 0x4d3   :  { %v8341_v23 = vsel %vm10_vm1, %v10573_v19, %v8336_v18  ;;  %v10566_v26 = vld [vmem:[%s18446_s0 + $0x801] ss:$16 sm:%s8307_s23]   ;;  %s8353_s23 = smov 3 }
 0x4d4   :  { %v8346_v27 = vsel %vm14_vm2, %v10574_v20, %v8341_v23  ;;  %v10567_v49 = vld [vmem:[%s18446_s0 + $0x801] ss:$16 sm:%s8310_s30]   ;;  %s8356_s30 = smov 12  ;;  %v7545_v5 = vpop.permute.xlu0 %7544  }
 0x4d5   :  { %v10568_v24 = vld [vmem:[%s18446_s0 + $0x801] ss:$16 sm:%s8315_s2]   ;;  %8347 = vrot.lane.b32.xlu1 %v8346_v27, %s10695_s12  ;;  %v8313_v30 = vsel %vm6_vm0, %v10567_v49, %v10566_v26  ;;  %s8361_s2 = smov 48  ;;  %10402 = vst.msk [vmem:[%s18447_s1 + $0x18] sm:$0xff] %vm7133_vm3, %v7545_v5  }
 0x4d6   :  { %v10569_v32 = vld [vmem:[%s18446_s0 + $0x801] ss:$16 sm:%s8320_s11]   ;;  %v8318_v33 = vsel %vm10_vm1, %v10568_v24, %v8313_v30  ;;  %s8366_s11 = smov 192 }
 0x4d7   :  { %v10581_v34 = vld [vmem:[%s18446_s0 + $0x281] ss:$16 sm:%s8376_s21]   ;;  %v8323_v35 = vsel %vm14_vm2, %v10569_v32, %v8318_v33  ;;  %s8422_s21 = smov 3 }
 0x4d8   :  { %v10582_v25 = vld [vmem:[%s18446_s0 + $0x281] ss:$16 sm:%s8379_s15]   ;;  %8324 = vrot.lane.b32.xlu0 %v8323_v35, %s10695_s12  ;;  %s8425_s15 = smov 12  ;;  %v7614_v12 = vpop.permute.xlu1 %7613  }
 0x4d9   :  { %v8382_v60 = vsel %vm6_vm0, %v10582_v25, %v10581_v34  ;;  %v10583_v22 = vld [vmem:[%s18446_s0 + $0x281] ss:$16 sm:%s8384_s10]   ;;  %s8430_s10 = smov 48  ;;  %10417 = vst.msk [vmem:[%s18447_s1 + $0x78] sm:$0xff] %vm7133_vm3, %v7614_v12  }
 0x4da   :  { %v10584_v38 = vld [vmem:[%s18446_s0 + $0x281] ss:$16 sm:%s8389_s8]   ;;  %v8387_v61 = vsel %vm10_vm1, %v10583_v22, %v8382_v60  ;;  %s8435_s8 = smov 192 }
 0x4db   :  { %v10576_v40 = vld [vmem:[%s18446_s0 + $0x81] ss:$16 sm:%s8353_s23]   ;;  %v8392_v41 = vsel %vm14_vm2, %v10584_v38, %v8387_v61  ;;  %s8399_s23 = smov 3 }
 0x4dc   :  { %v10577_v43 = vld [vmem:[%s18446_s0 + $0x81] ss:$16 sm:%s8356_s30]   ;;  %8393 = vrot.lane.b32.xlu1 %v8392_v41, %s10695_s12  ;;  %s8402_s30 = smov 12  ;;  %v7591_v21 = vpop.permute.xlu0 %7590  }
 0x4dd   :  { %v10578_v45 = vld [vmem:[%s18446_s0 + $0x81] ss:$16 sm:%s8361_s2]   ;;  %v8359_v37 = vsel %vm6_vm0, %v10577_v43, %v10576_v40  ;;  %s8407_s2 = smov 48  ;;  %10412 = vst.msk [vmem:[%s18447_s1 + $0x58] sm:$0xff] %vm7133_vm3, %v7591_v21  }
 0x4de   :  { %v10579_v48 = vld [vmem:[%s18446_s0 + $0x81] ss:$16 sm:%s8366_s11]   ;;  %v8364_v15 = vsel %vm10_vm1, %v10578_v45, %v8359_v37  ;;  %s8412_s11 = smov 192 }
 0x4df   :  { %v10591_v50 = vld [vmem:[%s18446_s0 + $0x681] ss:$16 sm:%s8422_s21]   ;;  %v8369_v6 = vsel %vm14_vm2, %v10579_v48, %v8364_v15  ;;  %s8468_s21 = smov 3 }
 0x4e0   :  { %v10592_v51 = vld [vmem:[%s18446_s0 + $0x681] ss:$16 sm:%s8425_s15]   ;;  %8370 = vrot.lane.b32.xlu0 %v8369_v6, %s10695_s12  ;;  %s8471_s15 = smov 12  ;;  %v7660_v29 = vpop.permute.xlu1 %7659  }
 0x4e1   :  { %v8428_v52 = vsel %vm6_vm0, %v10592_v51, %v10591_v50  ;;  %v10593_v31 = vld [vmem:[%s18446_s0 + $0x681] ss:$16 sm:%s8430_s10]   ;;  %s8476_s10 = smov 48  ;;  %10427 = vst.msk [vmem:[%s18447_s1 + $0xb8] sm:$0xff] %vm7133_vm3, %v7660_v29  }
 0x4e2   :  { %v10594_v14 = vld [vmem:[%s18446_s0 + $0x681] ss:$16 sm:%s8435_s8]   ;;  %v8433_v55 = vsel %vm10_vm1, %v10593_v31, %v8428_v52  ;;  %s8481_s8 = smov 192 }
 0x4e3   :  { %v10586_v56 = vld [vmem:[%s18446_s0 + $0x481] ss:$16 sm:%s8399_s23]   ;;  %v8438_v58 = vsel %vm14_vm2, %v10594_v14, %v8433_v55  ;;  %s8445_s23 = smov 3 }
 0x4e4   :  { %v10587_v59 = vld [vmem:[%s18446_s0 + $0x481] ss:$16 sm:%s8402_s30]   ;;  %8439 = vrot.lane.b32.xlu1 %v8438_v58, %s10695_s12  ;;  %s8448_s30 = smov 12  ;;  %v7637_v39 = vpop.permute.xlu0 %7636   ;;  %v7705_v47 = vpop.permute.xlu1 %7704  }
 0x4e5   :  { %v10588_v62 = vld [vmem:[%s18446_s0 + $0x481] ss:$16 sm:%s8407_s2]   ;;  %v8405_v4 = vsel %vm6_vm0, %v10587_v59, %v10586_v56  ;;  %s8453_s2 = smov 48  ;;  %10422 = vst.msk [vmem:[%s18447_s1 + $0x98] sm:$0xff] %vm7133_vm3, %v7637_v39  }
 0x4e6   :  { %v10589_v63 = vld [vmem:[%s18446_s0 + $0x481] ss:$16 sm:%s8412_s11]   ;;  %v8410_v0 = vsel %vm10_vm1, %v10588_v62, %v8405_v4  ;;  %s8458_s11 = smov 192  ;;  %10436 = vst.msk [vmem:[%s18447_s1 + $0x20] sm:$0xff] %vm7684_vm4, %v7705_v47  }
 0x4e7   :  { %v10601_v42 = vld [vmem:[%s18446_s0 + $0xa81] ss:$16 sm:%s8468_s21]   ;;  %v8415_v46 = vsel %vm14_vm2, %v10589_v63, %v8410_v0  ;;  %s8514_s21 = smov 3 }
 0x4e8   :  { %v10602_v1 = vld [vmem:[%s18446_s0 + $0xa81] ss:$16 sm:%s8471_s15]   ;;  %8416 = vrot.lane.b32.xlu0 %v8415_v46, %s10695_s12  ;;  %s8517_s15 = smov 12 }
 0x4e9   :  { %v8474_v2 = vsel %vm6_vm0, %v10602_v1, %v10601_v42  ;;  %v10603_v28 = vld [vmem:[%s18446_s0 + $0xa81] ss:$16 sm:%s8476_s10]   ;;  %s8522_s10 = smov 48 }
 0x4ea   :  { %v10604_v3 = vld [vmem:[%s18446_s0 + $0xa81] ss:$16 sm:%s8481_s8]   ;;  %v8479_v7 = vsel %vm10_vm1, %v10603_v28, %v8474_v2  ;;  %s8527_s8 = smov 192 }
 0x4eb   :  { %v10596_v8 = vld [vmem:[%s18446_s0 + $0x881] ss:$16 sm:%s8445_s23]   ;;  %v8484_v9 = vsel %vm14_vm2, %v10604_v3, %v8479_v7  ;;  %s8491_s23 = smov 3 }
 0x4ec   :  { %v10597_v16 = vld [vmem:[%s18446_s0 + $0x881] ss:$16 sm:%s8448_s30]   ;;  %8485 = vrot.lane.b32.xlu1 %v8484_v9, %s10695_s12  ;;  %s8494_s30 = smov 12 }
 0x4ed   :  { %v10598_v54 = vld [vmem:[%s18446_s0 + $0x881] ss:$16 sm:%s8453_s2]   ;;  %v8451_v10 = vsel %vm6_vm0, %v10597_v16, %v10596_v8  ;;  %s8499_s2 = smov 48 }
 0x4ee   :  { %v10599_v11 = vld [vmem:[%s18446_s0 + $0x881] ss:$16 sm:%s8458_s11]   ;;  %v8456_v36 = vsel %vm10_vm1, %v10598_v54, %v8451_v10  ;;  %s8504_s11 = smov 192 }
 0x4ef   :  { %v10611_v57 = vld [vmem:[%s18446_s0 + $0x301] ss:$16 sm:%s8514_s21]   ;;  %v8461_v17 = vsel %vm14_vm2, %v10599_v11, %v8456_v36  ;;  %s8560_s21 = smov 3 }
 0x4f0   :  { %v10612_v13 = vld [vmem:[%s18446_s0 + $0x301] ss:$16 sm:%s8517_s15]   ;;  %8462 = vrot.lane.b32.xlu0 %v8461_v17, %s10695_s12  ;;  %s8563_s15 = smov 12 }
 0x4f1   :  { %v8520_v18 = vsel %vm6_vm0, %v10612_v13, %v10611_v57  ;;  %v10613_v19 = vld [vmem:[%s18446_s0 + $0x301] ss:$16 sm:%s8522_s10]   ;;  %s8568_s10 = smov 48 }
 0x4f2   :  { %v10614_v20 = vld [vmem:[%s18446_s0 + $0x301] ss:$16 sm:%s8527_s8]   ;;  %v8525_v23 = vsel %vm10_vm1, %v10613_v19, %v8520_v18  ;;  %s8573_s8 = smov 192 }
 0x4f3   :  { %v10606_v26 = vld [vmem:[%s18446_s0 + $0x101] ss:$16 sm:%s8491_s23]   ;;  %v8530_v27 = vsel %vm14_vm2, %v10614_v20, %v8525_v23  ;;  %s8537_s23 = smov 3 }
 0x4f4   :  { %v10607_v49 = vld [vmem:[%s18446_s0 + $0x101] ss:$16 sm:%s8494_s30]   ;;  %8531 = vrot.lane.b32.xlu1 %v8530_v27, %s10695_s12  ;;  %s8540_s30 = smov 12 }
 0x4f5   :  { %v10608_v24 = vld [vmem:[%s18446_s0 + $0x101] ss:$16 sm:%s8499_s2]   ;;  %v8497_v30 = vsel %vm6_vm0, %v10607_v49, %v10606_v26  ;;  %s8545_s2 = smov 48 }
 0x4f6   :  { %v10609_v32 = vld [vmem:[%s18446_s0 + $0x101] ss:$16 sm:%s8504_s11]   ;;  %v8502_v33 = vsel %vm10_vm1, %v10608_v24, %v8497_v30  ;;  %s8550_s11 = smov 192 }
 0x4f7   :  { %v10621_v34 = vld [vmem:[%s18446_s0 + $0x701] ss:$16 sm:%s8560_s21]   ;;  %v8507_v35 = vsel %vm14_vm2, %v10609_v32, %v8502_v33  ;;  %s8606_s21 = smov 3 }
 0x4f8   :  { %v10622_v25 = vld [vmem:[%s18446_s0 + $0x701] ss:$16 sm:%s8563_s15]   ;;  %8508 = vrot.lane.b32.xlu0 %v8507_v35, %s10695_s12  ;;  %s8609_s15 = smov 12 }
 0x4f9   :  { %v8566_v60 = vsel %vm6_vm0, %v10622_v25, %v10621_v34  ;;  %v10623_v22 = vld [vmem:[%s18446_s0 + $0x701] ss:$16 sm:%s8568_s10]   ;;  %s8614_s10 = smov 48 }
 0x4fa   :  { %v10624_v38 = vld [vmem:[%s18446_s0 + $0x701] ss:$16 sm:%s8573_s8]   ;;  %v8571_v61 = vsel %vm10_vm1, %v10623_v22, %v8566_v60  ;;  %s8619_s8 = smov 192 }
 0x4fb   :  { %v10616_v40 = vld [vmem:[%s18446_s0 + $0x501] ss:$16 sm:%s8537_s23]   ;;  %v8576_v41 = vsel %vm14_vm2, %v10624_v38, %v8571_v61  ;;  %s8583_s23 = smov 3 }
 0x4fc   :  { %v10617_v43 = vld [vmem:[%s18446_s0 + $0x501] ss:$16 sm:%s8540_s30]   ;;  %8577 = vrot.lane.b32.xlu1 %v8576_v41, %s10695_s12  ;;  %s8586_s30 = smov 12 }
 0x4fd   :  { %v10618_v45 = vld [vmem:[%s18446_s0 + $0x501] ss:$16 sm:%s8545_s2]   ;;  %v8543_v37 = vsel %vm6_vm0, %v10617_v43, %v10616_v40  ;;  %s8591_s2 = smov 48 }
 0x4fe   :  { %v10619_v48 = vld [vmem:[%s18446_s0 + $0x501] ss:$16 sm:%s8550_s11]   ;;  %v8548_v15 = vsel %vm10_vm1, %v10618_v45, %v8543_v37  ;;  %s8596_s11 = smov 192 }
 0x4ff   :  { %v10631_v50 = vld [vmem:[%s18446_s0 + $0xb01] ss:$16 sm:%s8606_s21]   ;;  %v8553_v6 = vsel %vm14_vm2, %v10619_v48, %v8548_v15  ;;  %s8652_s21 = smov 3 }
 0x500   :  { %v10632_v51 = vld [vmem:[%s18446_s0 + $0xb01] ss:$16 sm:%s8609_s15]   ;;  %8554 = vrot.lane.b32.xlu0 %v8553_v6, %s10695_s12  ;;  %s8655_s15 = smov 12  ;;  %v7751_v6 = vpop.permute.xlu1 %7750  }
 0x501   :  { %v8612_v52 = vsel %vm6_vm0, %v10632_v51, %v10631_v50  ;;  %v10633_v31 = vld [vmem:[%s18446_s0 + $0xb01] ss:$16 sm:%s8614_s10]   ;;  %s8660_s10 = smov 48  ;;  %v7683_v51 = vpop.permute.xlu0 %7682   ;;  %10446 = vst.msk [vmem:[%s18447_s1 + $0x60] sm:$0xff] %vm7684_vm4, %v7751_v6  }
 0x502   :  { %v10634_v14 = vld [vmem:[%s18446_s0 + $0xb01] ss:$16 sm:%s8619_s8]   ;;  %v8617_v55 = vsel %vm10_vm1, %v10633_v31, %v8612_v52  ;;  %s8665_s8 = smov 192  ;;  %7685 = vst.msk [vmem:[%s18447_s1] sm:$0xff] %vm7684_vm4, %v7683_v51  }
 0x503   :  { %v10626_v56 = vld [vmem:[%s18446_s0 + $0x901] ss:$16 sm:%s8583_s23]   ;;  %v8622_v58 = vsel %vm14_vm2, %v10634_v14, %v8617_v55  ;;  %s8629_s23 = smov 3 }
 0x504   :  { %v10627_v59 = vld [vmem:[%s18446_s0 + $0x901] ss:$16 sm:%s8586_s30]   ;;  %8623 = vrot.lane.b32.xlu1 %v8622_v58, %s10695_s12  ;;  %s8632_s30 = smov 12  ;;  %v7797_v31 = vpop.permute.xlu1 %7796  }
 0x505   :  { %v10628_v62 = vld [vmem:[%s18446_s0 + $0x901] ss:$16 sm:%s8591_s2]   ;;  %v8589_v4 = vsel %vm6_vm0, %v10627_v59, %v10626_v56  ;;  %s8637_s2 = smov 48  ;;  %v7728_v52 = vpop.permute.xlu0 %7727   ;;  %10456 = vst.msk [vmem:[%s18447_s1 + $0xa0] sm:$0xff] %vm7684_vm4, %v7797_v31  }
 0x506   :  { %v10629_v63 = vld [vmem:[%s18446_s0 + $0x901] ss:$16 sm:%s8596_s11]   ;;  %v8594_v0 = vsel %vm10_vm1, %v10628_v62, %v8589_v4  ;;  %s8642_s11 = smov 192  ;;  %10441 = vst.msk [vmem:[%s18447_s1 + $0x40] sm:$0xff] %vm7684_vm4, %v7728_v52  }
 0x507   :  { %v10641_v42 = vld [vmem:[%s18446_s0 + $0x381] ss:$16 sm:%s8652_s21]   ;;  %v8599_v46 = vsel %vm14_vm2, %v10629_v63, %v8594_v0  ;;  %s8698_s21 = smov 3 }
 0x508   :  { %v10642_v1 = vld [vmem:[%s18446_s0 + $0x381] ss:$16 sm:%s8655_s15]   ;;  %8600 = vrot.lane.b32.xlu0 %v8599_v46, %s10695_s12  ;;  %s8701_s15 = smov 12  ;;  %v7843_v53 = vpop.permute.xlu1 %7842  }
 0x509   :  { %v8658_v2 = vsel %vm6_vm0, %v10642_v1, %v10641_v42  ;;  %v10643_v28 = vld [vmem:[%s18446_s0 + $0x381] ss:$16 sm:%s8660_s10]   ;;  %s8706_s10 = smov 48  ;;  %v7774_v14 = vpop.permute.xlu0 %7773   ;;  %10466 = vst.msk [vmem:[%s18447_s1 + $0x28] sm:$0xff] %vm7684_vm4, %v7843_v53  }
 0x50a   :  { %v10644_v3 = vld [vmem:[%s18446_s0 + $0x381] ss:$16 sm:%s8665_s8]   ;;  %v8663_v7 = vsel %vm10_vm1, %v10643_v28, %v8658_v2  ;;  %s8711_s8 = smov 192  ;;  %10451 = vst.msk [vmem:[%s18447_s1 + $0x80] sm:$0xff] %vm7684_vm4, %v7774_v14  }
 0x50b   :  { %v10636_v8 = vld [vmem:[%s18446_s0 + $0x181] ss:$16 sm:%s8629_s23]   ;;  %v8668_v9 = vsel %vm14_vm2, %v10644_v3, %v8663_v7  ;;  %s8675_s23 = smov 3 }
 0x50c   :  { %v10637_v16 = vld [vmem:[%s18446_s0 + $0x181] ss:$16 sm:%s8632_s30]   ;;  %8669 = vrot.lane.b32.xlu1 %v8668_v9, %s10695_s12  ;;  %s8678_s30 = smov 12  ;;  %v7889_v56 = vpop.permute.xlu1 %7888  }
 0x50d   :  { %v10638_v54 = vld [vmem:[%s18446_s0 + $0x181] ss:$16 sm:%s8637_s2]   ;;  %v8635_v10 = vsel %vm6_vm0, %v10637_v16, %v10636_v8  ;;  %s8683_s2 = smov 48  ;;  %v7820_v55 = vpop.permute.xlu0 %7819   ;;  %10476 = vst.msk [vmem:[%s18447_s1 + $0x68] sm:$0xff] %vm7684_vm4, %v7889_v56  }
 0x50e   :  { %v10639_v11 = vld [vmem:[%s18446_s0 + $0x181] ss:$16 sm:%s8642_s11]   ;;  %v8640_v36 = vsel %vm10_vm1, %v10638_v54, %v8635_v10  ;;  %s8688_s11 = smov 192  ;;  %10461 = vst.msk [vmem:[%s18447_s1 + $0x8] sm:$0xff] %vm7684_vm4, %v7820_v55  }
 0x50f   :  { %v10651_v57 = vld [vmem:[%s18446_s0 + $0x781] ss:$16 sm:%s8698_s21]   ;;  %v8645_v17 = vsel %vm14_vm2, %v10639_v11, %v8640_v36  ;;  %s8744_s21 = smov 3 }
 0x510   :  { %v10652_v13 = vld [vmem:[%s18446_s0 + $0x781] ss:$16 sm:%s8701_s15]   ;;  %8646 = vrot.lane.b32.xlu0 %v8645_v17, %s10695_s12  ;;  %s8747_s15 = smov 12  ;;  %v7935_v59 = vpop.permute.xlu1 %7934  }
 0x511   :  { %v8704_v18 = vsel %vm6_vm0, %v10652_v13, %v10651_v57  ;;  %v10653_v19 = vld [vmem:[%s18446_s0 + $0x781] ss:$16 sm:%s8706_s10]   ;;  %s8752_s10 = smov 48  ;;  %v7866_v58 = vpop.permute.xlu0 %7865   ;;  %10486 = vst.msk [vmem:[%s18447_s1 + $0xa8] sm:$0xff] %vm7684_vm4, %v7935_v59  }
 0x512   :  { %v10654_v20 = vld [vmem:[%s18446_s0 + $0x781] ss:$16 sm:%s8711_s8]   ;;  %v8709_v23 = vsel %vm10_vm1, %v10653_v19, %v8704_v18  ;;  %s8757_s8 = smov 192  ;;  %10471 = vst.msk [vmem:[%s18447_s1 + $0x48] sm:$0xff] %vm7684_vm4, %v7866_v58  }
 0x513   :  { %v10646_v26 = vld [vmem:[%s18446_s0 + $0x581] ss:$16 sm:%s8675_s23]   ;;  %v8714_v27 = vsel %vm14_vm2, %v10654_v20, %v8709_v23  ;;  %s8721_s23 = smov 3 }
 0x514   :  { %v10647_v49 = vld [vmem:[%s18446_s0 + $0x581] ss:$16 sm:%s8678_s30]   ;;  %8715 = vrot.lane.b32.xlu1 %v8714_v27, %s10695_s12  ;;  %s8724_s30 = smov 12  ;;  %v7981_v44 = vpop.permute.xlu1 %7980  }
 0x515   :  { %v10648_v24 = vld [vmem:[%s18446_s0 + $0x581] ss:$16 sm:%s8683_s2]   ;;  %v8681_v30 = vsel %vm6_vm0, %v10647_v49, %v10646_v26  ;;  %s8729_s2 = smov 48  ;;  %v7912_v62 = vpop.permute.xlu0 %7911   ;;  %10496 = vst.msk [vmem:[%s18447_s1 + $0x30] sm:$0xff] %vm7684_vm4, %v7981_v44  }
 0x516   :  { %v10649_v32 = vld [vmem:[%s18446_s0 + $0x581] ss:$16 sm:%s8688_s11]   ;;  %v8686_v33 = vsel %vm10_vm1, %v10648_v24, %v8681_v30  ;;  %s8734_s11 = smov 192  ;;  %10481 = vst.msk [vmem:[%s18447_s1 + $0x88] sm:$0xff] %vm7684_vm4, %v7912_v62  }
 0x517   :  { %v10661_v34 = vld [vmem:[%s18446_s0 + $0xb81] ss:$16 sm:%s8744_s21]   ;;  %v8691_v35 = vsel %vm14_vm2, %v10649_v32, %v8686_v33 }
 0x518   :  { %v10662_v25 = vld [vmem:[%s18446_s0 + $0xb81] ss:$16 sm:%s8747_s15]   ;;  %8692 = vrot.lane.b32.xlu0 %v8691_v35, %s10695_s12  ;;  %v8027_v63 = vpop.permute.xlu1 %8026  }
 0x519   :  { %v8750_v60 = vsel %vm6_vm0, %v10662_v25, %v10661_v34  ;;  %v10663_v22 = vld [vmem:[%s18446_s0 + $0xb81] ss:$16 sm:%s8752_s10]   ;;  %v7958_v4 = vpop.permute.xlu0 %7957   ;;  %10506 = vst.msk [vmem:[%s18447_s1 + $0x70] sm:$0xff] %vm7684_vm4, %v8027_v63  }
 0x51a   :  { %v10664_v38 = vld [vmem:[%s18446_s0 + $0xb81] ss:$16 sm:%s8757_s8]   ;;  %v8755_v61 = vsel %vm10_vm1, %v10663_v22, %v8750_v60  ;;  %10491 = vst.msk [vmem:[%s18447_s1 + $0x10] sm:$0xff] %vm7684_vm4, %v7958_v4  }
 0x51b   :  { %v10656_v40 = vld [vmem:[%s18446_s0 + $0x981] ss:$16 sm:%s8721_s23]   ;;  %v8760_v41 = vsel %vm14_vm2, %v10664_v38, %v8755_v61 }
 0x51c   :  { %v10657_v43 = vld [vmem:[%s18446_s0 + $0x981] ss:$16 sm:%s8724_s30]   ;;  %8761 = vrot.lane.b32.xlu1 %v8760_v41, %s10695_s12 }
 0x51d   :  { %v10658_v45 = vld [vmem:[%s18446_s0 + $0x981] ss:$16 sm:%s8729_s2]   ;;  %v8727_v37 = vsel %vm6_vm0, %v10657_v43, %v10656_v40  ;;  %v8004_v0 = vpop.permute.xlu0 %8003   ;;  %vm8235_vm0 = vcmask 64544  }
 0x51e   :  { %v10659_v48 = vld [vmem:[%s18446_s0 + $0x981] ss:$16 sm:%s8734_s11]   ;;  %v8732_v15 = vsel %vm10_vm1, %v10658_v45, %v8727_v37  ;;  %10501 = vst.msk [vmem:[%s18447_s1 + $0x50] sm:$0xff] %vm7684_vm4, %v8004_v0  }
 0x51f   :  { %v8737_v50 = vsel %vm14_vm2, %v10659_v48, %v8732_v15  ;;  %v8073_v42 = vpop.permute.xlu1 %8072  }
 0x520   :  { %8738 = vrot.lane.b32.xlu0 %v8737_v50, %s10695_s12  ;;  %10516 = vst.msk [vmem:[%s18447_s1 + $0xb0] sm:$0xff] %vm7684_vm4, %v8073_v42  }
 0x523   :  { %v8050_v1 = vpop.permute.xlu0 %8049  }
 0x524   :  { %10511 = vst.msk [vmem:[%s18447_s1 + $0x90] sm:$0xff] %vm7684_vm4, %v8050_v1  }
 0x527   :  { %v8119_v46 = vpop.permute.xlu1 %8118  }
 0x528   :  { %10526 = vst.msk [vmem:[%s18447_s1 + $0x38] sm:$0xff] %vm7684_vm4, %v8119_v46  }
 0x52b   :  { %v8096_v2 = vpop.permute.xlu0 %8095  }
 0x52c   :  { %10521 = vst.msk [vmem:[%s18447_s1 + $0x18] sm:$0xff] %vm7684_vm4, %v8096_v2  }
 0x52f   :  { %v8165_v28 = vpop.permute.xlu1 %8164  }
 0x530   :  { %10536 = vst.msk [vmem:[%s18447_s1 + $0x78] sm:$0xff] %vm7684_vm4, %v8165_v28  }
 0x533   :  { %v8142_v3 = vpop.permute.xlu0 %8141  }
 0x534   :  { %10531 = vst.msk [vmem:[%s18447_s1 + $0x58] sm:$0xff] %vm7684_vm4, %v8142_v3  }
 0x537   :  { %v8211_v5 = vpop.permute.xlu1 %8210  }
 0x538   :  { %10546 = vst.msk [vmem:[%s18447_s1 + $0xb8] sm:$0xff] %vm7684_vm4, %v8211_v5  }
 0x53b   :  { %v8188_v7 = vpop.permute.xlu0 %8187   ;;  %v8256_v8 = vpop.permute.xlu1 %8255  }
 0x53c   :  { %10541 = vst.msk [vmem:[%s18447_s1 + $0x98] sm:$0xff] %vm7684_vm4, %v8188_v7  }
 0x53d   :  { %10555 = vst.msk [vmem:[%s18447_s1 + $0x20] sm:$0xff] %vm8235_vm0, %v8256_v8  }
 0x53f   :  { %v8234_v9 = vpop.permute.xlu0 %8233  }
 0x540   :  { %8236 = vst.msk [vmem:[%s18447_s1] sm:$0xff] %vm8235_vm0, %v8234_v9  }
 0x541   :  { %v8302_v16 = vpop.permute.xlu1 %8301  }
 0x542   :  { %10565 = vst.msk [vmem:[%s18447_s1 + $0x60] sm:$0xff] %vm8235_vm0, %v8302_v16  }
 0x544   :  { %v8279_v54 = vpop.permute.xlu0 %8278  }
 0x545   :  { %10560 = vst.msk [vmem:[%s18447_s1 + $0x40] sm:$0xff] %vm8235_vm0, %v8279_v54  }
 0x547   :  { %v8348_v12 = vpop.permute.xlu1 %8347  }
 0x548   :  { %10575 = vst.msk [vmem:[%s18447_s1 + $0xa0] sm:$0xff] %vm8235_vm0, %v8348_v12  }
 0x54a   :  { %v8325_v10 = vpop.permute.xlu0 %8324  }
 0x54b   :  { %10570 = vst.msk [vmem:[%s18447_s1 + $0x80] sm:$0xff] %vm8235_vm0, %v8325_v10  }
 0x54e   :  { %v8394_v11 = vpop.permute.xlu1 %8393  }
 0x54f   :  { %10585 = vst.msk [vmem:[%s18447_s1 + $0x28] sm:$0xff] %vm8235_vm0, %v8394_v11  }
 0x552   :  { %v8371_v36 = vpop.permute.xlu0 %8370  }
 0x553   :  { %10580 = vst.msk [vmem:[%s18447_s1 + $0x8] sm:$0xff] %vm8235_vm0, %v8371_v36  }
 0x556   :  { %v8440_v57 = vpop.permute.xlu1 %8439  }
 0x557   :  { %10595 = vst.msk [vmem:[%s18447_s1 + $0x68] sm:$0xff] %vm8235_vm0, %v8440_v57  }
 0x55a   :  { %v8417_v13 = vpop.permute.xlu0 %8416  }
 0x55b   :  { %10590 = vst.msk [vmem:[%s18447_s1 + $0x48] sm:$0xff] %vm8235_vm0, %v8417_v13  }
 0x55e   :  { %v8486_v17 = vpop.permute.xlu1 %8485  }
 0x55f   :  { %10605 = vst.msk [vmem:[%s18447_s1 + $0xa8] sm:$0xff] %vm8235_vm0, %v8486_v17  }
 0x562   :  { %v8463_v18 = vpop.permute.xlu0 %8462  }
 0x563   :  { %10600 = vst.msk [vmem:[%s18447_s1 + $0x88] sm:$0xff] %vm8235_vm0, %v8463_v18  }
 0x566   :  { %v8532_v19 = vpop.permute.xlu1 %8531  }
 0x567   :  { %10615 = vst.msk [vmem:[%s18447_s1 + $0x30] sm:$0xff] %vm8235_vm0, %v8532_v19  }
 0x56a   :  { %v8509_v20 = vpop.permute.xlu0 %8508  }
 0x56b   :  { %10610 = vst.msk [vmem:[%s18447_s1 + $0x10] sm:$0xff] %vm8235_vm0, %v8509_v20  }
 0x56e   :  { %v8578_v21 = vpop.permute.xlu1 %8577  }
 0x56f   :  { %10625 = vst.msk [vmem:[%s18447_s1 + $0x70] sm:$0xff] %vm8235_vm0, %v8578_v21  }
 0x572   :  { %v8555_v23 = vpop.permute.xlu0 %8554  }
 0x573   :  { %10620 = vst.msk [vmem:[%s18447_s1 + $0x50] sm:$0xff] %vm8235_vm0, %v8555_v23  }
 0x576   :  { %v8624_v26 = vpop.permute.xlu1 %8623  }
 0x577   :  { %10635 = vst.msk [vmem:[%s18447_s1 + $0xb0] sm:$0xff] %vm8235_vm0, %v8624_v26  }
 0x57a   :  { %v8601_v27 = vpop.permute.xlu0 %8600  }
 0x57b   :  { %10630 = vst.msk [vmem:[%s18447_s1 + $0x90] sm:$0xff] %vm8235_vm0, %v8601_v27  }
 0x57e   :  { %v8670_v49 = vpop.permute.xlu1 %8669  }
 0x57f   :  { %10645 = vst.msk [vmem:[%s18447_s1 + $0x38] sm:$0xff] %vm8235_vm0, %v8670_v49  }
 0x582   :  { %v8647_v24 = vpop.permute.xlu0 %8646  }
 0x583   :  { %10640 = vst.msk [vmem:[%s18447_s1 + $0x18] sm:$0xff] %vm8235_vm0, %v8647_v24  }
 0x586   :  { %v8716_v29 = vpop.permute.xlu1 %8715  }
 0x587   :  { %10655 = vst.msk [vmem:[%s18447_s1 + $0x78] sm:$0xff] %vm8235_vm0, %v8716_v29  }
 0x58a   :  { %v8693_v30 = vpop.permute.xlu0 %8692  }
 0x58b   :  { %10650 = vst.msk [vmem:[%s18447_s1 + $0x58] sm:$0xff] %vm8235_vm0, %v8693_v30  }
 0x58e   :  { %v8762_v32 = vpop.permute.xlu1 %8761  }
 0x58f   :  { %10665 = vst.msk [vmem:[%s18447_s1 + $0xb8] sm:$0xff] %vm8235_vm0, %v8762_v32  }
 0x592   :  { %v8739_v33 = vpop.permute.xlu0 %8738  }
 0x593   :  { %10660 = vst.msk [vmem:[%s18447_s1 + $0x98] sm:$0xff] %vm8235_vm0, %v8739_v33  }

// kernel: tile.13
= control target key start
LH: loop header
LB: loop body
LE: loop exit
PB: predicated region body
PF: predicated region fallthrough
CT: control target
= control target key end

     0   :  { %s40_s0 = inlined_call_operand.vmem [shape: f32[4], index: 0, kind: input, shape index: {}]   ;;  %s41_s1 = inlined_call_operand.vmem [shape: f32[32,4], index: 1, kind: output, shape index: {}]  }
   0x1   :  { %v4_v0 = vld [vmem:[%s40_s0] ss:$0 sm:$0xff] }
   0x2   :  { %5 = vst [vmem:[%s41_s1] sm:$0xff] %v4_v0  ;;  %12 = vst [vmem:[%s41_s1 + $0x8] sm:$0xff] %v4_v0 }
   0x3   :  { %13 = vst [vmem:[%s41_s1 + $0x10] sm:$0xff] %v4_v0  ;;  %14 = vst [vmem:[%s41_s1 + $0x18] sm:$0xff] %v4_v0 }

// kernel: tile.14
= control target key start
LH: loop header
LB: loop body
LE: loop exit
PB: predicated region body
PF: predicated region fallthrough
CT: control target
= control target key end

     0   :  { %s259_s10 = smov 124   ;;  %s260_s11 = smov 116   ;;  %vm3_vm0 = vcmask 31744   ;;  %vm9_vm1 = vcmask 1048544   ;;  %vm15_vm2 = vcmask 1015744   ;;  %vm21_vm3 = vcmask 982944   ;;  %s399_s0 = inlined_call_operand.vmem [shape: f32[32,4], index: 0, kind: input, shape index: {}]   ;;  %s400_s1 = inlined_call_operand.vmem [shape: f32[1,128], index: 1, kind: output, shape index: {}]  }
   0x1   :  { %v197_v0 = vld [vmem:[%s399_s0 + $0x1f] sm:$0x1]   ;;  %v199_v1 = vld [vmem:[%s399_s0 + $0x1d] sm:$0x1]   ;;  %v198_v2 = vld [vmem:[%s399_s0 + $0x1e] sm:$0x1]  }
   0x2   :  { %7 = vrot.lane.b32.xlu0 %v197_v0, %s259_s10  ;;  %19 = vrot.lane.b32.xlu1 %v199_v1, %s260_s11  ;;  %v200_v3 = vld [vmem:[%s399_s0 + $0x1c] sm:$0x1]   ;;  %s261_s16 = smov 120   ;;  %s262_s17 = smov 112   ;;  %v201_v4 = vld [vmem:[%s399_s0 + $0x1b] sm:$0x1]  }
   0x3   :  { %v202_v5 = vld [vmem:[%s399_s0 + $0x1a] sm:$0x1]   ;;  %s263_s22 = smov 108   ;;  %s264_s23 = smov 104   ;;  %v203_v6 = vld [vmem:[%s399_s0 + $0x19] sm:$0x1]  }
   0x4   :  { %v204_v7 = vld [vmem:[%s399_s0 + $0x18] sm:$0x1]   ;;  %s265_s28 = smov 100   ;;  %s266_s29 = smov 96   ;;  %v205_v8 = vld [vmem:[%s399_s0 + $0x17] sm:$0x1]  }
   0x5   :  { %v206_v9 = vld [vmem:[%s399_s0 + $0x16] sm:$0x1]   ;;  %v2_v10 = vld [vmem:[%s399_s0] sm:$0x1]   ;;  %s267_s7 = smov 92   ;;  %s268_s8 = smov 88  }
   0x6   :  { %13 = vrot.lane.b32.xlu0 %v198_v2, %s261_s16  ;;  %25 = vrot.lane.b32.xlu1 %v200_v3, %s262_s17  ;;  %4 = vst.msk [vmem:[#allocation0] sm:$0x1] %vm3_vm0, %v2_v10   ;;  %v207_v11 = vld [vmem:[%s399_s0 + $0x15] sm:$0x1]   ;;  %v208_v12 = vld [vmem:[%s399_s0 + $0x14] sm:$0x1]  }
   0x7   :  { %s269_s13 = smov 84   ;;  %s270_s14 = smov 80   ;;  %v209_v13 = vld [vmem:[%s399_s0 + $0x13] sm:$0x1]   ;;  %v210_v14 = vld [vmem:[%s399_s0 + $0x12] sm:$0x1]  }
   0x8   :  { %s271_s19 = smov 76   ;;  %s272_s20 = smov 72   ;;  %v211_v15 = vld [vmem:[%s399_s0 + $0x11] sm:$0x1]   ;;  %v212_v16 = vld [vmem:[%s399_s0 + $0x10] sm:$0x1]  }
   0x9   :  { %s273_s25 = smov 68   ;;  %s274_s26 = smov 64   ;;  %v213_v17 = vld [vmem:[%s399_s0 + $0xf] sm:$0x1]   ;;  %v214_v18 = vld [vmem:[%s399_s0 + $0xe] sm:$0x1]  }
   0xa   :  { %31 = vrot.lane.b32.xlu0 %v201_v4, %s263_s22  ;;  %37 = vrot.lane.b32.xlu1 %v202_v5, %s264_s23  ;;  %s275_s2 = smov 60   ;;  %s276_s3 = smov 56   ;;  %v215_v19 = vld [vmem:[%s399_s0 + $0xd] sm:$0x1]   ;;  %v216_v20 = vld [vmem:[%s399_s0 + $0xc] sm:$0x1]  }
   0xb   :  { %s278_s9 = smov 48   ;;  %v217_v21 = vld [vmem:[%s399_s0 + $0xb] sm:$0x1]   ;;  %v218_v22 = vld [vmem:[%s399_s0 + $0xa] sm:$0x1]   ;;  %s280_s15 = smov 40  }
   0xc   :  { %v219_v23 = vld [vmem:[%s399_s0 + $0x9] sm:$0x1]   ;;  %v220_v24 = vld [vmem:[%s399_s0 + $0x8] sm:$0x1]   ;;  %s282_s21 = smov 32   ;;  %s284_s27 = smov 24  }
   0xd   :  { %v221_v25 = vld [vmem:[%s399_s0 + $0x7] sm:$0x1]   ;;  %v222_v26 = vld [vmem:[%s399_s0 + $0x6] sm:$0x1]   ;;  %v223_v27 = vld [vmem:[%s399_s0 + $0x5] sm:$0x1]  }
   0xe   :  { %43 = vrot.lane.b32.xlu0 %v203_v6, %s265_s28  ;;  %49 = vrot.lane.b32.xlu1 %v204_v7, %s266_s29  ;;  %v224_v28 = vld [vmem:[%s399_s0 + $0x4] sm:$0x1]   ;;  %s286_s4 = smov 16   ;;  %v225_v29 = vld [vmem:[%s399_s0 + $0x3] sm:$0x1]   ;;  %s288_s10 = smov 8  }
   0xf   :  { %v226_v30 = vld [vmem:[%s399_s0 + $0x2] sm:$0x1]   ;;  %v227_v31 = vld [vmem:[%s399_s0 + $0x1] sm:$0x1]   ;;  %s289_s0 = smov 4   ;;  %vm27_vm4 = vcmask 950144  }
  0x10   :  { %vm33_vm5 = vcmask 917344   ;;  %vm39_vm6 = vcmask 884544   ;;  %vm45_vm7 = vcmask 851744   ;;  %vm51_vm8 = vcmask 818944  }
  0x11   :  { %vm57_vm9 = vcmask 786144   ;;  %vm63_vm10 = vcmask 753344   ;;  %vm69_vm11 = vcmask 720544   ;;  %vm75_vm12 = vcmask 687744  }
  0x12   :  { %55 = vrot.lane.b32.xlu0 %v205_v8, %s267_s7  ;;  %61 = vrot.lane.b32.xlu1 %v206_v9, %s268_s8  ;;  %s277_s8 = smov 52   ;;  %vm81_vm13 = vcmask 654944   ;;  %vm87_vm14 = vcmask 622144   ;;  %vm93_vm15 = vcmask 589344   ;;  %vm99_vm0 = vcmask 556544  }
  0x16   :  { %67 = vrot.lane.b32.xlu0 %v207_v11, %s269_s13  ;;  %73 = vrot.lane.b32.xlu1 %v208_v12, %s270_s14  ;;  %s279_s14 = smov 44  }
  0x1a   :  { %79 = vrot.lane.b32.xlu0 %v209_v13, %s271_s19  ;;  %85 = vrot.lane.b32.xlu1 %v210_v14, %s272_s20  ;;  %s281_s20 = smov 36  }
  0x1e   :  { %91 = vrot.lane.b32.xlu0 %v211_v15, %s273_s25  ;;  %97 = vrot.lane.b32.xlu1 %v212_v16, %s274_s26  ;;  %s283_s26 = smov 28  }
  0x22   :  { %103 = vrot.lane.b32.xlu0 %v213_v17, %s275_s2  ;;  %109 = vrot.lane.b32.xlu1 %v214_v18, %s276_s3  ;;  %s285_s3 = smov 20  }
  0x26   :  { %115 = vrot.lane.b32.xlu0 %v215_v19, %s277_s8  ;;  %121 = vrot.lane.b32.xlu1 %v216_v20, %s278_s9  ;;  %s287_s9 = smov 12  }
  0x2a   :  { %127 = vrot.lane.b32.xlu0 %v217_v21, %s279_s14  ;;  %133 = vrot.lane.b32.xlu1 %v218_v22, %s280_s15 }
  0x2e   :  { %139 = vrot.lane.b32.xlu0 %v219_v23, %s281_s20  ;;  %145 = vrot.lane.b32.xlu1 %v220_v24, %s282_s21 }
  0x32   :  { %151 = vrot.lane.b32.xlu0 %v221_v25, %s283_s26  ;;  %157 = vrot.lane.b32.xlu1 %v222_v26, %s284_s27 }
  0x36   :  { %163 = vrot.lane.b32.xlu0 %v223_v27, %s285_s3  ;;  %169 = vrot.lane.b32.xlu1 %v224_v28, %s286_s4 }
  0x3a   :  { %175 = vrot.lane.b32.xlu0 %v225_v29, %s287_s9  ;;  %181 = vrot.lane.b32.xlu1 %v226_v30, %s288_s10 }
  0x3e   :  { %187 = vrot.lane.b32.xlu0 %v227_v31, %s289_s0 }
  0x74   :  { %v8_v32 = vpop.permute.xlu0 %7   ;;  %v20_v33 = vpop.permute.xlu1 %19  }
  0x75   :  { %10 = vst.msk [vmem:[#allocation0] sm:$0x1] %vm9_vm1, %v8_v32   ;;  %vm105_vm1 = vcmask 523744  }
  0x78   :  { %v14_v34 = vpop.permute.xlu0 %13   ;;  %v26_v35 = vpop.permute.xlu1 %25  }
  0x79   :  { %16 = vst.msk [vmem:[#allocation0] sm:$0x1] %vm15_vm2, %v14_v34   ;;  %vm111_vm2 = vcmask 490944  }
  0x7a   :  { %22 = vst.msk [vmem:[#allocation0] sm:$0x1] %vm21_vm3, %v20_v33   ;;  %vm117_vm3 = vcmask 458144  }
  0x7b   :  { %28 = vst.msk [vmem:[#allocation0] sm:$0x1] %vm27_vm4, %v26_v35   ;;  %vm123_vm4 = vcmask 425344  }
  0x7c   :  { %v32_v36 = vpop.permute.xlu0 %31   ;;  %v38_v37 = vpop.permute.xlu1 %37  }
  0x7d   :  { %34 = vst.msk [vmem:[#allocation0] sm:$0x1] %vm33_vm5, %v32_v36   ;;  %vm129_vm5 = vcmask 392544  }
  0x7e   :  { %40 = vst.msk [vmem:[#allocation0] sm:$0x1] %vm39_vm6, %v38_v37   ;;  %vm135_vm6 = vcmask 359744  }
  0x80   :  { %v44_v38 = vpop.permute.xlu0 %43   ;;  %v50_v39 = vpop.permute.xlu1 %49  }
  0x81   :  { %46 = vst.msk [vmem:[#allocation0] sm:$0x1] %vm45_vm7, %v44_v38   ;;  %vm141_vm7 = vcmask 326944  }
  0x82   :  { %52 = vst.msk [vmem:[#allocation0] sm:$0x1] %vm51_vm8, %v50_v39   ;;  %vm147_vm8 = vcmask 294144  }
  0x84   :  { %v56_v40 = vpop.permute.xlu0 %55   ;;  %v62_v41 = vpop.permute.xlu1 %61  }
  0x85   :  { %58 = vst.msk [vmem:[#allocation0] sm:$0x1] %vm57_vm9, %v56_v40   ;;  %vm153_vm9 = vcmask 261344  }
  0x86   :  { %64 = vst.msk [vmem:[#allocation0] sm:$0x1] %vm63_vm10, %v62_v41   ;;  %vm159_vm10 = vcmask 228544  }
  0x88   :  { %v68_v42 = vpop.permute.xlu0 %67   ;;  %v74_v43 = vpop.permute.xlu1 %73  }
  0x89   :  { %70 = vst.msk [vmem:[#allocation0] sm:$0x1] %vm69_vm11, %v68_v42   ;;  %vm165_vm11 = vcmask 195744  }
  0x8a   :  { %76 = vst.msk [vmem:[#allocation0] sm:$0x1] %vm75_vm12, %v74_v43   ;;  %vm171_vm12 = vcmask 162944  }
  0x8c   :  { %v80_v44 = vpop.permute.xlu0 %79   ;;  %v86_v45 = vpop.permute.xlu1 %85  }
  0x8d   :  { %82 = vst.msk [vmem:[#allocation0] sm:$0x1] %vm81_vm13, %v80_v44   ;;  %vm177_vm13 = vcmask 130144  }
  0x8e   :  { %88 = vst.msk [vmem:[#allocation0] sm:$0x1] %vm87_vm14, %v86_v45   ;;  %vm183_vm14 = vcmask 97344  }
  0x90   :  { %v92_v46 = vpop.permute.xlu0 %91   ;;  %v98_v47 = vpop.permute.xlu1 %97  }
  0x91   :  { %94 = vst.msk [vmem:[#allocation0] sm:$0x1] %vm93_vm15, %v92_v46   ;;  %vm189_vm15 = vcmask 64544  }
  0x92   :  { %100 = vst.msk [vmem:[#allocation0] sm:$0x1] %vm99_vm0, %v98_v47  }
  0x94   :  { %v104_v48 = vpop.permute.xlu0 %103   ;;  %v110_v49 = vpop.permute.xlu1 %109  }
  0x95   :  { %106 = vst.msk [vmem:[#allocation0] sm:$0x1] %vm105_vm1, %v104_v48  }
  0x96   :  { %112 = vst.msk [vmem:[#allocation0] sm:$0x1] %vm111_vm2, %v110_v49  }
  0x98   :  { %v116_v50 = vpop.permute.xlu0 %115   ;;  %v122_v51 = vpop.permute.xlu1 %121  }
  0x99   :  { %118 = vst.msk [vmem:[#allocation0] sm:$0x1] %vm117_vm3, %v116_v50  }
  0x9a   :  { %124 = vst.msk [vmem:[#allocation0] sm:$0x1] %vm123_vm4, %v122_v51  }
  0x9c   :  { %v128_v52 = vpop.permute.xlu0 %127   ;;  %v134_v53 = vpop.permute.xlu1 %133  }
  0x9d   :  { %130 = vst.msk [vmem:[#allocation0] sm:$0x1] %vm129_vm5, %v128_v52  }
  0x9e   :  { %136 = vst.msk [vmem:[#allocation0] sm:$0x1] %vm135_vm6, %v134_v53  }
  0xa0   :  { %v140_v54 = vpop.permute.xlu0 %139   ;;  %v146_v55 = vpop.permute.xlu1 %145  }
  0xa1   :  { %142 = vst.msk [vmem:[#allocation0] sm:$0x1] %vm141_vm7, %v140_v54  }
  0xa2   :  { %148 = vst.msk [vmem:[#allocation0] sm:$0x1] %vm147_vm8, %v146_v55  }
  0xa4   :  { %v152_v56 = vpop.permute.xlu0 %151   ;;  %v158_v57 = vpop.permute.xlu1 %157  }
  0xa5   :  { %154 = vst.msk [vmem:[#allocation0] sm:$0x1] %vm153_vm9, %v152_v56  }
  0xa6   :  { %160 = vst.msk [vmem:[#allocation0] sm:$0x1] %vm159_vm10, %v158_v57  }
  0xa8   :  { %v164_v58 = vpop.permute.xlu0 %163   ;;  %v170_v59 = vpop.permute.xlu1 %169  }
  0xa9   :  { %166 = vst.msk [vmem:[#allocation0] sm:$0x1] %vm165_vm11, %v164_v58  }
  0xaa   :  { %172 = vst.msk [vmem:[#allocation0] sm:$0x1] %vm171_vm12, %v170_v59  }
  0xac   :  { %v176_v60 = vpop.permute.xlu0 %175   ;;  %v182_v61 = vpop.permute.xlu1 %181  }
  0xad   :  { %178 = vst.msk [vmem:[#allocation0] sm:$0x1] %vm177_vm13, %v176_v60  }
  0xae   :  { %184 = vst.msk [vmem:[#allocation0] sm:$0x1] %vm183_vm14, %v182_v61  }
  0xb0   :  { %v188_v62 = vpop.permute.xlu0 %187  }
  0xb1   :  { %190 = vst.msk [vmem:[#allocation0] sm:$0x1] %vm189_vm15, %v188_v62  }
  0xb8   :  { %v194_v63 = vld [vmem:[#allocation0] sm:$0x1] }
  0xb9   :  { %196 = vst [vmem:[%s400_s1] sm:$0x1] %v194_v63 }

// kernel: res_block_pallas.1
= control target key start
LH: loop header
LB: loop body
LE: loop exit
PB: predicated region body
PF: predicated region fallthrough
CT: control target
= control target key end

     0   :  { %v1065_v0 = vmov 0.0   ;;  %vm1066_vm0 = vmmov 0   ;;  %vm32_vm1 = vcmask 1040384   ;;  %vm33_vm2 = vsmask.f32 256  ;;  %s1343_s1 = inlined_call_operand.vmem [shape: bf16[3,128,128], index: 1, kind: input, shape index: {}]   ;;  %s1344_s0 = inlined_call_operand.vmem [shape: f32[1,16,128], index: 0, kind: input, shape index: {}]   ;;  %s1345_s3 = inlined_call_operand.vmem [shape: bf16[3,128,128], index: 3, kind: input, shape index: {}]   ;;  %s1346_s2 = inlined_call_operand.vmem [shape: f32[1,128], index: 2, kind: input, shape index: {}]   ;;  %s1347_s4 = inlined_call_operand.vmem [shape: f32[1,128], index: 4, kind: input, shape index: {}]   ;;  %s1348_s5 = inlined_call_operand.vmem [shape: f32[1,16,128], index: 5, kind: output, shape index: {}]  }
   0x1   :  { %895 = vmatprep.subr.bf16.mxu0 %v1065_v0  ;;  %915 = vmatprep.subr.bf16.mxu1 %v1065_v0  ;;  %v1017_v1 = vld [vmem:[%s1343_s1 + $0x40] sm:$0xff]   ;;  %v1019_v3 = vld [vmem:[%s1343_s1 + $0x48] sm:$0xff]   ;;  %v1021_v5 = vld [vmem:[%s1343_s1 + $0x50] sm:$0xff]   ;;  %vm39_vm4 = vcmask 1047552   ;;  %vm40_vm5 = vsmask.f32 7424 }
   0x2   :  { %v1018_v2 = vld [vmem:[%s1343_s1] sm:$0xff]   ;;  %911 = vmatprep.mubr.msk.bf16.mxu0 %vm1066_vm0, %v1065_v0  ;;  %931 = vmatprep.mubr.msk.bf16.mxu1 %vm1066_vm0, %v1065_v0  ;;  %v1020_v4 = vld [vmem:[%s1343_s1 + $0x8] sm:$0xff]   ;;  %v1022_v6 = vld [vmem:[%s1343_s1 + $0x10] sm:$0xff]  }
   0x3   :  { %896 = vmatpush3.bf16.msra.mxu0 %v1017_v1  ;;  %916 = vmatpush3.bf16.msra.mxu1 %v1018_v2  ;;  %v1023_v7 = vld [vmem:[%s1343_s1 + $0x58] sm:$0xff]   ;;  %v1025_v9 = vld [vmem:[%s1343_s1 + $0x60] sm:$0xff]   ;;  %v1149_v12 = vld [vmem:[%s1344_s0 + $0x8] sm:$0xff] }
   0x4   :  { %897 = vmatprep.subr.bf16.mxu0 %v1065_v0  ;;  %917 = vmatprep.subr.bf16.mxu1 %v1065_v0  ;;  %v1024_v8 = vld [vmem:[%s1343_s1 + $0x18] sm:$0xff]   ;;  %v1026_v10 = vld [vmem:[%s1343_s1 + $0x20] sm:$0xff]   ;;  %v1027_v14 = vld [vmem:[%s1343_s1 + $0x68] sm:$0xff]  }
   0x5   :  { %v1144_v11 = vld [vmem:[%s1344_s0] sm:$0xff]  ;;  %v1028_v15 = vld [vmem:[%s1343_s1 + $0x28] sm:$0xff]   ;;  %v1029_v17 = vld [vmem:[%s1343_s1 + $0x70] sm:$0xff]  }
   0x6   :  { %v23_v13 = vpack.c.bf16 %v1149_v12, %v1144_v11  ;;  %v1030_v18 = vld [vmem:[%s1343_s1 + $0x30] sm:$0xff]   ;;  %v1031_v21 = vld [vmem:[%s1343_s1 + $0x78] sm:$0xff]   ;;  %vm1177_vm3 = vmand %vm32_vm1, %vm33_vm2 }
   0x7   :  { %898 = vmatpush3.bf16.msra.mxu0 %v1019_v3  ;;  %918 = vmatpush3.bf16.msra.mxu1 %v1020_v4  ;;  %v1032_v22 = vld [vmem:[%s1343_s1 + $0x38] sm:$0xff]   ;;  %v1033_v25 = vld [vmem:[%s1343_s1 + $0x80] sm:$0xff]   ;;  %v1034_v27 = vld [vmem:[%s1343_s1 + $0x88] sm:$0xff]  }
   0x8   :  { %899 = vmatprep.subr.bf16.mxu0 %v1065_v0  ;;  %919 = vmatprep.subr.bf16.mxu1 %v1065_v0  ;;  %v25_v16 = vshrl.u32 %v23_v13, 16  ;;  %v28_v20 = vshll.u32 %v23_v13, 16  ;;  %v1035_v28 = vld [vmem:[%s1343_s1 + $0x90] sm:$0xff]   ;;  %v1036_v29 = vld [vmem:[%s1343_s1 + $0x98] sm:$0xff]   ;;  %v1037_v30 = vld [vmem:[%s1343_s1 + $0xa0] sm:$0xff]  }
   0x9   :  { %v1038_v31 = vld [vmem:[%s1343_s1 + $0xa8] sm:$0xff]   ;;  %v1039_v32 = vld [vmem:[%s1343_s1 + $0xb0] sm:$0xff]   ;;  %v1040_v34 = vld [vmem:[%s1343_s1 + $0xb8] sm:$0xff]  }
   0xa   :  { %v27_v19 = vrot.slane %v25_v16, 7  ;;  %v36_v33 = vrot.slane %v28_v20, 1  ;;  %vm1220_vm6 = vmand %vm39_vm4, %vm40_vm5  ;;  %v1041_v38 = vld [vmem:[%s1345_s3 + $0x40] sm:$0xff]   ;;  %v1042_v39 = vld [vmem:[%s1345_s3 + $0x48] sm:$0xff]  }
   0xb   :  { %900 = vmatpush3.bf16.msra.mxu0 %v1021_v5  ;;  %920 = vmatpush3.bf16.msra.mxu1 %v1022_v6  ;;  %v1044_v40 = vld [vmem:[%s1345_s3] sm:$0xff]   ;;  %v1046_v41 = vld [vmem:[%s1345_s3 + $0x8] sm:$0xff]   ;;  %v1043_v42 = vld [vmem:[%s1345_s3 + $0x50] sm:$0xff]  }
   0xc   :  { %901 = vmatprep.subr.bf16.mxu0 %v1065_v0  ;;  %921 = vmatprep.subr.bf16.mxu1 %v1065_v0  ;;  %v30_v23 = vor.u32 %v28_v20, %v27_v19  ;;  %v37_v35 = vor.u32 %v36_v33, %v25_v16  ;;  %v1048_v43 = vld [vmem:[%s1345_s3 + $0x10] sm:$0xff]   ;;  %v1045_v44 = vld [vmem:[%s1345_s3 + $0x58] sm:$0xff]   ;;  %v1047_v45 = vld [vmem:[%s1345_s3 + $0x60] sm:$0xff]  }
   0xd   :  { %v1049_v46 = vld [vmem:[%s1345_s3 + $0x68] sm:$0xff]   ;;  %v1050_v47 = vld [vmem:[%s1345_s3 + $0x18] sm:$0xff]   ;;  %v1051_v48 = vld [vmem:[%s1345_s3 + $0x70] sm:$0xff]  }
   0xe   :  { %v35_v26 = vsel %vm1177_vm3, 0, %v30_v23  ;;  %v42_v37 = vsel %vm1220_vm6, %v37_v35, 0  ;;  %v1052_v49 = vld [vmem:[%s1345_s3 + $0x20] sm:$0xff]   ;;  %v1053_v50 = vld [vmem:[%s1345_s3 + $0x78] sm:$0xff]   ;;  %v1054_v51 = vld [vmem:[%s1345_s3 + $0x28] sm:$0xff]  }
   0xf   :  { %902 = vmatpush3.bf16.msra.mxu0 %v1023_v7  ;;  %922 = vmatpush3.bf16.msra.mxu1 %v1024_v8  ;;  %v1055_v52 = vld [vmem:[%s1345_s3 + $0x30] sm:$0xff]   ;;  %v1057_v53 = vld [vmem:[%s1345_s3 + $0x38] sm:$0xff]   ;;  %v783_v2 = vld [vmem:[%s1346_s2] ss:$0 sm:$0xff] }
  0x10   :  { %903 = vmatprep.subr.bf16.mxu0 %v1065_v0  ;;  %923 = vmatprep.subr.bf16.mxu1 %v1065_v0  ;;  %v1056_v16 = vld [vmem:[%s1345_s3 + $0x80] sm:$0xff]   ;;  %v1058_v19 = vld [vmem:[%s1345_s3 + $0x88] sm:$0xff]   ;;  %v1059_v23 = vld [vmem:[%s1345_s3 + $0x90] sm:$0xff]  }
  0x11   :  { %v1062_v24 = vld [vmem:[%s1345_s3 + $0xa8] sm:$0xff]  }
  0x13   :  { %904 = vmatpush3.bf16.msra.mxu0 %v1025_v9  ;;  %924 = vmatpush3.bf16.msra.mxu1 %v1026_v10 }
  0x14   :  { %905 = vmatprep.subr.bf16.mxu0 %v1065_v0  ;;  %925 = vmatprep.subr.bf16.mxu1 %v1065_v0 }
  0x17   :  { %906 = vmatpush3.bf16.msra.mxu0 %v1027_v14  ;;  %926 = vmatpush3.bf16.msra.mxu1 %v1028_v15 }
  0x18   :  { %907 = vmatprep.subr.bf16.mxu0 %v1065_v0  ;;  %927 = vmatprep.subr.bf16.mxu1 %v1065_v0 }
  0x1b   :  { %908 = vmatpush3.bf16.msra.mxu0 %v1029_v17  ;;  %928 = vmatpush3.bf16.msra.mxu1 %v1030_v18 }
  0x1c   :  { %909 = vmatprep.subr.bf16.mxu0 %v1065_v0  ;;  %929 = vmatprep.subr.bf16.mxu1 %v1065_v0 }
  0x1f   :  { %910 = vmatpush3.bf16.msra.mxu0 %v1031_v21  ;;  %930 = vmatpush3.bf16.msra.mxu1 %v1032_v22 }
  0x20   :  { %935 = vmatprep.subr.bf16.mxu0 %v1065_v0  ;;  %955 = vmatprep.subr.bf16.mxu1 %v1065_v0 }
  0x22   :  { %912 = vmatmul.mubr.bf16.vlgmr.msra.gmra.mrb[0].mxu0 %v23_v13  ;;  %932 = vmatmul.mubr.bf16.vlgmr.msra.gmra.mrb[0].mxu1 %v35_v26  ;;  %v1060_v26 = vld [vmem:[%s1345_s3 + $0x98] sm:$0xff]  }
  0x23   :  { %936 = vmatpush3.bf16.msra.mxu0 %v1033_v25  ;;  %951 = vmatprep.mubr.msk.bf16.mxu0 %vm1066_vm0, %v1065_v0 }
  0x24   :  { %937 = vmatprep.subr.bf16.mxu0 %v1065_v0  ;;  %971 = vmatprep.mubr.msk.bf16.mxu1 %vm1066_vm0, %v1065_v0 }
  0x25   :  { %956 = vmatpush3.bf16.msra.mxu1 %v1041_v38 }
  0x26   :  { %957 = vmatprep.subr.bf16.mxu1 %v1065_v0 }
  0x27   :  { %938 = vmatpush3.bf16.msra.mxu0 %v1034_v27  ;;  %v1061_v27 = vld [vmem:[%s1345_s3 + $0xa0] sm:$0xff]  }
  0x28   :  { %939 = vmatprep.subr.bf16.mxu0 %v1065_v0 }
  0x29   :  { %958 = vmatpush3.bf16.msra.mxu1 %v1042_v39 }
  0x2a   :  { %959 = vmatprep.subr.bf16.mxu1 %v1065_v0 }
  0x2b   :  { %940 = vmatpush3.bf16.msra.mxu0 %v1035_v28  ;;  %v1063_v28 = vld [vmem:[%s1345_s3 + $0xb0] sm:$0xff]  }
  0x2c   :  { %941 = vmatprep.subr.bf16.mxu0 %v1065_v0 }
  0x2d   :  { %960 = vmatpush3.bf16.msra.mxu1 %v1043_v42 }
  0x2e   :  { %961 = vmatprep.subr.bf16.mxu1 %v1065_v0 }
  0x2f   :  { %942 = vmatpush3.bf16.msra.mxu0 %v1036_v29 }
  0x30   :  { %943 = vmatprep.subr.bf16.mxu0 %v1065_v0 }
  0x31   :  { %962 = vmatpush3.bf16.msra.mxu1 %v1045_v44 }
  0x32   :  { %963 = vmatprep.subr.bf16.mxu1 %v1065_v0 }
  0x33   :  { %944 = vmatpush3.bf16.msra.mxu0 %v1037_v30  ;;  %v1064_v30 = vld [vmem:[%s1345_s3 + $0xb8] sm:$0xff]  }
  0x34   :  { %945 = vmatprep.subr.bf16.mxu0 %v1065_v0 }
  0x35   :  { %964 = vmatpush3.bf16.msra.mxu1 %v1047_v45 }
  0x36   :  { %965 = vmatprep.subr.bf16.mxu1 %v1065_v0 }
  0x37   :  { %946 = vmatpush3.bf16.msra.mxu0 %v1038_v31 }
  0x38   :  { %947 = vmatprep.subr.bf16.mxu0 %v1065_v0 }
  0x39   :  { %966 = vmatpush3.bf16.msra.mxu1 %v1049_v46 }
  0x3a   :  { %967 = vmatprep.subr.bf16.mxu1 %v1065_v0 }
  0x3b   :  { %948 = vmatpush3.bf16.msra.mxu0 %v1039_v32 }
  0x3c   :  { %949 = vmatprep.subr.bf16.mxu0 %v1065_v0 }
  0x3d   :  { %968 = vmatpush3.bf16.msra.mxu1 %v1051_v48 }
  0x3e   :  { %969 = vmatprep.subr.bf16.mxu1 %v1065_v0 }
  0x3f   :  { %950 = vmatpush3.bf16.msra.mxu0 %v1040_v34 }
  0x40   :  { %975 = vmatprep.subr.bf16.mxu0 %v1065_v0 }
  0x41   :  { %970 = vmatpush3.bf16.msra.mxu1 %v1053_v50 }
  0x42   :  { %952 = vmatmul.mubr.bf16.vlgmr.msra.gmra.mrb[4].mxu0 %v42_v37  ;;  %995 = vmatprep.subr.bf16.mxu1 %v1065_v0 }
  0x43   :  { %991 = vmatprep.mubr.msk.bf16.mxu0 %vm1066_vm0, %v1065_v0  ;;  %976 = vmatpush3.bf16.msra.mxu0 %v1044_v40 }
  0x44   :  { %977 = vmatprep.subr.bf16.mxu0 %v1065_v0 }
  0x47   :  { %978 = vmatpush3.bf16.msra.mxu0 %v1046_v41 }
  0x48   :  { %979 = vmatprep.subr.bf16.mxu0 %v1065_v0 }
  0x4b   :  { %980 = vmatpush3.bf16.msra.mxu0 %v1048_v43 }
  0x4c   :  { %981 = vmatprep.subr.bf16.mxu0 %v1065_v0 }
  0x4f   :  { %982 = vmatpush3.bf16.msra.mxu0 %v1050_v47 }
  0x50   :  { %983 = vmatprep.subr.bf16.mxu0 %v1065_v0 }
  0x53   :  { %984 = vmatpush3.bf16.msra.mxu0 %v1052_v49 }
  0x54   :  { %985 = vmatprep.subr.bf16.mxu0 %v1065_v0 }
  0x57   :  { %986 = vmatpush3.bf16.msra.mxu0 %v1054_v51 }
  0x58   :  { %987 = vmatprep.subr.bf16.mxu0 %v1065_v0 }
  0x5b   :  { %988 = vmatpush3.bf16.msra.mxu0 %v1055_v52 }
  0x5c   :  { %989 = vmatprep.subr.bf16.mxu0 %v1065_v0 }
  0x5f   :  { %990 = vmatpush3.bf16.msra.mxu0 %v1057_v53 }
  0xf5   :  { %v158_v54 = vpop.f32.mrb[0].mxu0  ;;  %v247_v55 = vpop.f32.mrb[0].mxu1 }
  0xf6   :  { %v913_v56 = vpop.f32.mrb[1].mxu0  ;;  %v248_v57 = vadd.f32 %v247_v55, %v158_v54  ;;  %v933_v58 = vpop.f32.mrb[1].mxu1 }
  0xf7   :  { %v161_v59 = vpop.f32.mrb[2].mxu0  ;;  %v250_v60 = vpop.f32.mrb[2].mxu1 }
  0xf8   :  { %v914_v61 = vpop.f32.mrb[3].mxu0  ;;  %v251_v62 = vadd.f32 %v250_v60, %v161_v59  ;;  %v934_v63 = vpop.f32.mrb[3].mxu1 }
 0x115   :  { %v353_v1 = vpop.f32.mrb[4].mxu0 }
 0x116   :  { %v360_v3 = vadd.f32 %v353_v1, %v248_v57  ;;  %v953_v4 = vpop.f32.mrb[5].mxu0 }
 0x117   :  { %v356_v5 = vpop.f32.mrb[6].mxu0 }
 0x118   :  { %v369_v6 = vadd.f32 %v783_v2, %v360_v3  ;;  %v361_v7 = vadd.f32 %v356_v5, %v251_v62  ;;  %v954_v8 = vpop.f32.mrb[7].mxu0 }
 0x11a   :  { %v373_v9 = vmul.f32 0.1, %v369_v6  ;;  %v370_v10 = vadd.f32 %v783_v2, %v361_v7  ;;  %vm371_vm7 = vcmp.ge.f32.partialorder %v369_v6, 0.0 }
 0x11c   :  { %vm372_vm8 = vcmp.ge.f32.partialorder %v370_v10, 0.0  ;;  %v374_v13 = vmul.f32 0.1, %v370_v10  ;;  %v375_v14 = vsel %vm371_vm7, %v369_v6, %v373_v9 }
 0x11e   :  { %v376_v15 = vsel %vm372_vm8, %v370_v10, %v374_v13 }
 0x11f   :  { %v377_v17 = vpack.c.bf16 %v376_v15, %v375_v14 }
 0x121   :  { %972 = vmatmul.mubr.bf16.vlgmr.msra.gmra.mrb[4].mxu1 %v377_v17  ;;  %v379_v18 = vshrl.u32 %v377_v17, 16  ;;  %v382_v21 = vshll.u32 %v377_v17, 16 }
 0x122   :  { %996 = vmatpush3.bf16.msra.mxu1 %v1056_v16  ;;  %1011 = vmatprep.mubr.msk.bf16.mxu1 %vm1066_vm0, %v1065_v0 }
 0x123   :  { %997 = vmatprep.subr.bf16.mxu1 %v1065_v0  ;;  %v381_v20 = vrot.slane %v379_v18, 7  ;;  %v387_v29 = vrot.slane %v382_v21, 1 }
 0x125   :  { %v384_v22 = vor.u32 %v382_v21, %v381_v20  ;;  %v388_v31 = vor.u32 %v387_v29, %v379_v18 }
 0x126   :  { %998 = vmatpush3.bf16.msra.mxu1 %v1058_v19 }
 0x127   :  { %v386_v25 = vsel %vm1177_vm3, 0, %v384_v22  ;;  %999 = vmatprep.subr.bf16.mxu1 %v1065_v0  ;;  %v390_v32 = vsel %vm1220_vm6, %v388_v31, 0 }
 0x128   :  { %992 = vmatmul.mubr.bf16.vlgmr.msra.gmra.mrb[8].mxu0 %v386_v25 }
 0x12a   :  { %1000 = vmatpush3.bf16.msra.mxu1 %v1059_v23 }
 0x12b   :  { %1001 = vmatprep.subr.bf16.mxu1 %v1065_v0 }
 0x12e   :  { %1002 = vmatpush3.bf16.msra.mxu1 %v1060_v26 }
 0x12f   :  { %1003 = vmatprep.subr.bf16.mxu1 %v1065_v0 }
 0x132   :  { %1004 = vmatpush3.bf16.msra.mxu1 %v1061_v27 }
 0x133   :  { %1005 = vmatprep.subr.bf16.mxu1 %v1065_v0 }
 0x136   :  { %1006 = vmatpush3.bf16.msra.mxu1 %v1062_v24 }
 0x137   :  { %1007 = vmatprep.subr.bf16.mxu1 %v1065_v0 }
 0x13a   :  { %1008 = vmatpush3.bf16.msra.mxu1 %v1063_v28 }
 0x13b   :  { %1009 = vmatprep.subr.bf16.mxu1 %v1065_v0  ;;  %v840_v0 = vld [vmem:[%s1347_s4] ss:$0 sm:$0xff] }
 0x13e   :  { %1010 = vmatpush3.bf16.msra.mxu1 %v1064_v30 }
 0x141   :  { %1012 = vmatmul.mubr.bf16.vlgmr.msra.gmra.mrb[8].mxu1 %v390_v32 }
 0x1f4   :  { %v506_v33 = vpop.f32.mrb[4].mxu1 }
 0x1f5   :  { %v973_v34 = vpop.f32.mrb[5].mxu1 }
 0x1f6   :  { %v509_v35 = vpop.f32.mrb[6].mxu1 }
 0x1f7   :  { %v974_v37 = vpop.f32.mrb[7].mxu1 }
 0x1fb   :  { %v595_v38 = vpop.f32.mrb[8].mxu0 }
 0x1fc   :  { %v596_v39 = vadd.f32 %v595_v38, %v506_v33  ;;  %v993_v40 = vpop.f32.mrb[9].mxu0 }
 0x1fd   :  { %v598_v41 = vpop.f32.mrb[10].mxu0 }
 0x1fe   :  { %v599_v42 = vadd.f32 %v598_v41, %v509_v35  ;;  %v994_v43 = vpop.f32.mrb[11].mxu0 }
 0x214   :  { %v701_v44 = vpop.f32.mrb[8].mxu1 }
 0x215   :  { %v708_v45 = vadd.f32 %v701_v44, %v596_v39  ;;  %v1013_v46 = vpop.f32.mrb[9].mxu1 }
 0x216   :  { %v704_v36 = vpop.f32.mrb[10].mxu1 }
 0x217   :  { %v717_v47 = vadd.f32 %v840_v0, %v708_v45  ;;  %v709_v48 = vadd.f32 %v704_v36, %v599_v42  ;;  %v1014_v49 = vpop.f32.mrb[11].mxu1 }
 0x219   :  { %v719_v50 = vadd.f32 %v717_v47, %v1144_v11  ;;  %v718_v51 = vadd.f32 %v840_v0, %v709_v48 }
 0x21b   :  { %721 = vst [vmem:[%s1348_s5] sm:$0xff] %v719_v50  ;;  %v720_v52 = vadd.f32 %v718_v51, %v1149_v12 }
 0x21d   :  { %722 = vst [vmem:[%s1348_s5 + $0x8] sm:$0xff] %v720_v52 }

</bundles_post_ra>
